<compile_context>
chip_gen: v6e
topology: v6e:2x2x1
jax: 0.10.0
libtpu: 0.0.40
codegen_flags: <defaults>
</compile_context>

<pallas_src>
from collections import Counter
from functools import partial
from typing import Dict, Optional

import numpy as np
import jax
import jax.numpy as jnp
from jax.experimental import pallas as pl
from jax.experimental.pallas import tpu as pltpu

_HALO = 128  # lane-aligned halo width (>= max_n - 1 for any realistic max_n)


def _round_up(x: int, m: int) -> int:
    return ((x + m - 1) // m) * m


def _device_tile_params():
    """Generation-aware (tb_max, vmem_limit_MiB)."""
    try:
        kind = jax.devices()[0].device_kind.lower()
    except Exception:
        kind = ""
    if "v7" in kind:        # 64 MiB VMEM per TensorCore -> smaller live set
        return 16, 48
    return 32, 64           # v5e / v6e: 128 MiB physical VMEM


# ----------------------------------------------------------------------------
# Pallas kernel factory: fused n-gram lookup for all n-gram sizes
# ----------------------------------------------------------------------------
def _make_ngram_kernel(ngram_sizes, modes, base, max_n, ts, halo):
    packed_ns = [n for n, m in zip(ngram_sizes, modes) if m == "packed"]
    split_los = [n - (n + 1) // 2 for n, m in zip(ngram_sizes, modes) if m == "split"]
    kmax = max(packed_ns + split_los + [1])
    vmax = max([n for n, m in zip(ngram_sizes, modes) if m != "perpos"], default=0)

    def kernel(x_ref, xh_ref, vtab_ref, vid_ref, out_ref, cat_ref):
        # x_ref   : (tb, ts)        int32  main sequence tile
        # xh_ref  : (tb, halo)      int32  the 128 tokens preceding this tile
        #                                  (zeros for the first tile, via the
        #                                  left zero padding of the operand)
        # vtab_ref: (G, R, V, 1)    int32  vocab keys, vocab on SUBLANES
        # vid_ref : (G, V, 1)       int32  vocab ids (rank + 4); padding = 0
        # out_ref : (G, tb, ts)     int32
        # cat_ref : (tb, halo + ts) int32  scratch: [halo | tile]
        cat_ref[:, :halo] = xh_ref[...]
        cat_ref[:, halo:] = x_ref[...]

        # planes[j][b, t] = x[b, t - j]  (halo supplies the t - j < 0 part)
        planes = [x_ref[...]]
        for j in range(1, max_n):
            planes.append(cat_ref[:, halo - j: halo - j + ts])

        # Incremental packed keys on narrow (tb, ts) tiles:
        # keys[k] packs the last k window tokens, keys[k] = plane*base^(k-1)+keys[k-1].
        keys = {1: planes[0]}
        for k in range(2, kmax + 1):
            keys[k] = planes[k - 1] * (base ** (k - 1)) + keys[k - 1]

        # Windows containing tokens outside [0, base) can never be in the vocab
        # (guaranteed host-side); force their packed keys to -1 so int32
        # wraparound cannot produce a false match.
        if vmax > 0:
            tok_ok = [jnp.logical_and(p >= 0, p < base) for p in planes[:vmax]]
            win_ok = {1: tok_ok[0]}
            for k in range(2, vmax + 1):
                win_ok[k] = jnp.logical_and(win_ok[k - 1], tok_ok[k - 1])

        vtab = vtab_ref[...]   # (G, R, V, 1)
        vid = vid_ref[...]     # (G, V, 1)

        for g, (n, mode) in enumerate(zip(ngram_sizes, modes)):
            # match is laid out (tb, V, ts): vocab on sublanes, seq on lanes.
            # The id reduction below is therefore a cheap sublane reduce
            # (VPU adds + a 3-stage intra-vreg reduce) and the output stays
            # lane-dense -- no XLU lane reduction, no skinny-output relayout.
            if mode == "packed":
                key = jnp.where(win_ok[n], keys[n], -1)
                match = key[:, None, :] == vtab[g, 0][None, :, :]
            elif mode == "split":
                h = (n + 1) // 2
                hi = planes[n - 1]
                for p in range(1, h):
                    hi = hi * base + planes[n - 1 - p]
                hi = jnp.where(win_ok[n], hi, -1)
                lo = keys[n - h]
                match = jnp.logical_and(
                    hi[:, None, :] == vtab[g, 0][None, :, :],
                    lo[:, None, :] == vtab[g, 1][None, :, :],
                )
            else:  # per-position exact compare (no token_vocab_size given)
                match = planes[n - 1][:, None, :] == vtab[g, 0][None, :, :]
                for p in range(1, n):
                    match = jnp.logical_and(
                        match,
                        planes[n - 1 - p][:, None, :] == vtab[g, p][None, :, :],
                    )
            # Vocab keys are unique (asserted host-side) and padding ids are 0,
            # so the masked sum over the vocab axis equals dict.get(window, 0).
            sel = jnp.where(match, vid[g][None, :, :], 0)
            out_ref[g] = jnp.sum(sel, axis=1).astype(jnp.int32)

    return kernel


# ----------------------------------------------------------------------------
# Cached, jitted forward (one pallas_call for all n-gram sizes)
# ----------------------------------------------------------------------------
@partial(jax.jit, static_argnames=("ngram_sizes", "modes", "base", "tb_max", "vmem_mb"))
def _ngram_forward(x, vtab, vid, *, ngram_sizes, modes, base, tb_max, vmem_mb):
    x = x.astype(jnp.int32)
    B, S = x.shape
    G = len(ngram_sizes)
    max_n = max(ngram_sizes)
    R, V = vtab.shape[1], vtab.shape[2]

    # ---- tile / pad geometry: lane-dense seq tiles, generation-aware tb ----
    tb = min(tb_max, _round_up(B, 8))
    B_pad = _round_up(B, tb)
    S_pad = _round_up(S, 128)
    cands = [t for t in (512, 256, 128) if S_pad % t == 0]
    ts = cands[0]
    if (B_pad // tb) * (S_pad // ts) < 2:
        # Prefer >= 2 grid steps so both TensorCores are used on megacore parts.
        for t in cands:
            if S_pad // t >= 2:
                ts = t
                break
    n_bi, n_si = B_pad // tb, S_pad // ts
    hpt = ts // _HALO  # 128-wide halo blocks per seq tile

    # Single padded operand: [ts zeros | x | right zeros].  The left pad doubles
    # as the zero halo of the first seq tile, so no shifted-plane stack and no
    # in-kernel halo predication is needed.  The same array is passed twice:
    # once as the main (tb, ts) tile and once as the (tb, 128) halo block.
    xl = jnp.pad(x, ((0, B_pad - B), (ts, S_pad - S)))

    kern = _make_ngram_kernel(ngram_sizes, modes, base, max_n, ts, _HALO)

    out = pl.pallas_call(
        kern,
        out_shape=jax.ShapeDtypeStruct((G, B_pad, S_pad), jnp.int32),
        grid=(n_bi, n_si),
        in_specs=[
            pl.BlockSpec((tb, ts), lambda bi, si: (bi, si + 1)),
            pl.BlockSpec((tb, _HALO), lambda bi, si: (bi, (si + 1) * hpt - 1)),
            # Broadcast vocab tables (constant index_map).  They are only a few
            # hundred KiB; pipeline_mode=pl.Buffered(1) would halve that if the
            # vocab widths ever grow into the thousands.
            pl.BlockSpec((G, R, V, 1), lambda bi, si: (0, 0, 0, 0)),
            pl.BlockSpec((G, V, 1), lambda bi, si: (0, 0, 0)),
        ],
        out_specs=pl.BlockSpec((G, tb, ts), lambda bi, si: (0, bi, si)),
        scratch_shapes=[pltpu.VMEM((tb, _HALO + ts), jnp.int32)],
        compiler_params=pltpu.CompilerParams(
            dimension_semantics=("parallel", "parallel"),
            vmem_limit_bytes=vmem_mb * 1024 * 1024,
        ),
    )(xl, xl, vtab, vid)
    return out[:, :B, :S]


# ----------------------------------------------------------------------------
# Module port (host-side state + cached tables + Pallas forward)
# ----------------------------------------------------------------------------
class RealtimeNgramProcessorPallas:
    def __init__(
        self,
        ngram_to_size: Dict[int, int],
        min_freq: int = 1,
        token_vocab_size: Optional[int] = None,
    ):
        self.ngram_to_size = ngram_to_size
        self.min_freq = min_freq
        self.ngram_sizes = sorted(ngram_to_size.keys())
        assert min(self.ngram_sizes) >= 2, "Minimum ngram size must be 2"
        self.ngram_counters = {n: Counter() for n in self.ngram_sizes}
        self.token_vocab_size = token_vocab_size
        # vocab tables padded to a lane-friendly width (multiple of 128)
        self.v_pad = max(128, _round_up(max(ngram_to_size.values()), 128))
        self._tables = None  # cached device (vtab, vid, modes); None => stale

    # TODO(synk): frequency counting uses a Python Counter + threading.Lock in
    # the original module; it is inherently host-side/stateful, so it stays in
    # numpy here and only feeds the vocab tables consumed by the kernel.
    def update_from_batch(self, data_np: np.ndarray):
        data_np = np.asarray(data_np)
        max_n = max(self.ngram_sizes)
        padded = np.pad(data_np, ((0, 0), (max_n - 1, 0)), constant_values=0)
        for n in self.ngram_sizes:
            sub = padded[:, max_n - n:]
            windows = np.lib.stride_tricks.sliding_window_view(sub, n, axis=1)
            batch_counts = Counter(
                tuple(int(t) for t in w) for w in windows.reshape(-1, n)
            )
            self.ngram_counters[n].update(batch_counts)
        self._tables = None  # vocab changed -> invalidate cached device tables

    def _get_top_ngrams(self, n: int):
        counter = self.ngram_counters[n]
        max_size = self.ngram_to_size[n]
        most_common = [
            (ng, c) for ng, c in counter.most_common() if c >= self.min_freq
        ][:max_size]
        return {ng: idx + 4 for idx, (ng, _) in enumerate(most_common)}

    def _device_tables(self):
        """Build (and cache) the device vocab tables consumed by the kernel."""
        if self._tables is not None:
            return self._tables
        G = len(self.ngram_sizes)
        base = self.token_vocab_size
        V = self.v_pad
        lookups = {n: self._get_top_ngrams(n) for n in self.ngram_sizes}

        # Per-size lookup mode: single packed int32 key, two half-keys, or
        # per-position compares.  Packing is only used when every vocab token
        # is provably in [0, base) and the key provably fits in int32.
        modes = []
        for n in self.ngram_sizes:
            lk = lookups[n]
            in_range = (
                base is not None and base >= 2
                and all(0 <= int(t) < base for ng in lk for t in ng)
            )
            h = (n + 1) // 2
            if in_range and base ** n < 2 ** 31:
                modes.append("packed")
            elif in_range and base ** h < 2 ** 31:
                modes.append("split")
            else:
                modes.append("perpos")

        def rows_needed(n, m):
            return 1 if m == "packed" else (2 if m == "split" else n)

        R = max(rows_needed(n, m) for n, m in zip(self.ngram_sizes, modes))

        # vocab on the SUBLANE axis (trailing singleton lane dim): the kernel
        # compares/reduces over sublanes so the output stays lane-dense.
        vtab = np.full((G, R, V, 1), -1, dtype=np.int32)  # -1 never matches valid keys
        vid = np.zeros((G, V, 1), dtype=np.int32)         # 0 == "not in vocab"

        def pack(toks):
            k = 0
            for t in toks:
                k = k * base + int(t)
            return k

        for g, n in enumerate(self.ngram_sizes):
            lk = lookups[n]
            assert len(lk) <= V
            seen = set()
            for col, (ng, idx) in enumerate(lk.items()):
                vid[g, col, 0] = idx
                if modes[g] == "packed":
                    key = (pack(ng),)
                    vtab[g, 0, col, 0] = key[0]
                elif modes[g] == "split":
                    h = (n + 1) // 2
                    key = (pack(ng[:h]), pack(ng[h:]))
                    vtab[g, 0, col, 0] = key[0]
                    vtab[g, 1, col, 0] = key[1]
                else:
                    key = tuple(int(t) for t in ng)
                    for p in range(n):
                        vtab[g, p, col, 0] = key[p]
                assert key not in seen, "duplicate vocab key for ngram size %d" % n
                seen.add(key)

        self._tables = (jnp.asarray(vtab), jnp.asarray(vid), tuple(modes))
        return self._tables

    def forward(self, x) -> jax.Array:
        # TODO(synk): torch emits int64 ids; int32 is emitted here (ids are small).
        vtab, vid, modes = self._device_tables()
        tb_max, vmem_mb = _device_tile_params()
        base = int(self.token_vocab_size) if self.token_vocab_size else None
        return _ngram_forward(
            jnp.asarray(x, dtype=jnp.int32), vtab, vid,
            ngram_sizes=tuple(self.ngram_sizes),
            modes=modes,
            base=base,
            tb_max=tb_max,
            vmem_mb=vmem_mb,
        )

    __call__ = forward


# ----------------------------------------------------------------------------
# Pure numpy reference reproducing the torch module's forward
# ----------------------------------------------------------------------------
def reference_forward(proc: RealtimeNgramProcessorPallas, data_np: np.ndarray) -> np.ndarray:
    outs = []
    for n in proc.ngram_sizes:
        padded = np.pad(data_np, ((0, 0), (n - 1, 0)), constant_values=0)
        windows = np.lib.stride_tricks.sliding_window_view(padded, n, axis=1)
        lookup = proc._get_top_ngrams(n)
        ids = np.array(
            [[lookup.get(tuple(int(t) for t in w), 0) for w in batch] for batch in windows],
            dtype=np.int32,
        )
        outs.append(ids)
    return np.stack(outs, axis=0)


# ----------------------------------------------------------------------------
# Main
# ----------------------------------------------------------------------------
if __name__ == "__main__":
    key = jax.random.PRNGKey(0)
    B, S = 4, 96
    TOKVOC = 260  # BLT-style byte vocab: n=2,3 packed keys, n=4 split half-keys
    k1, k2 = jax.random.split(key)
    x1 = jax.random.randint(k1, (B, S), 1, TOKVOC, dtype=jnp.int32)
    x2 = jax.random.randint(k2, (B, S), 1, TOKVOC, dtype=jnp.int32)
    x1_np = np.asarray(x1)
    x2_np = np.asarray(x2)

    # --- main processor: packed + split key paths ---
    ngram_to_size = {2: 24, 3: 24, 4: 24}
    proc = RealtimeNgramProcessorPallas(ngram_to_size, min_freq=1,
                                        token_vocab_size=TOKVOC)
    proc.update_from_batch(x1_np)

    out1 = jax.block_until_ready(proc.forward(x1))
    out2 = jax.block_until_ready(proc.forward(x2))  # cached tables + jit cache

    ref1 = reference_forward(proc, x1_np)
    ref2 = reference_forward(proc, x2_np)
    assert out1.shape == (len(proc.ngram_sizes), B, S), out1.shape
    np.testing.assert_array_equal(np.asarray(out1), ref1)
    np.testing.assert_array_equal(np.asarray(out2), ref2)

    # --- second processor: per-position fallback path (no token_vocab_size) ---
    proc2 = RealtimeNgramProcessorPallas({2: 16, 3: 16}, min_freq=1,
                                         token_vocab_size=None)
    proc2.update_from_batch(x1_np)
    out3 = jax.block_until_ready(proc2.forward(x1))
    ref3 = reference_forward(proc2, x1_np)
    np.testing.assert_array_equal(np.asarray(out3), ref3)

    print("KERNEL_OK")
</pallas_src>

<mosaic_0001>
module attributes {stable_mosaic.version = 11 : i64} {
  func.func @kernel(%arg0: i32, %arg1: i32, %arg2: memref<8x128xi32, #tpu.memory_space<vmem>>, %arg3: memref<8x128xi32, #tpu.memory_space<vmem>>, %arg4: memref<3x2x128x1xi32, #tpu.memory_space<vmem>>, %arg5: memref<3x128x1xi32, #tpu.memory_space<vmem>>, %arg6: memref<3x8x128xi32, #tpu.memory_space<vmem>>, %arg7: memref<8x256xi32, #tpu.memory_space<vmem>>) attributes {dimension_semantics = [#tpu.dimension_semantics<parallel>, #tpu.dimension_semantics<parallel>], iteration_bounds = array<i64: 1, 1>, scalar_prefetch = 0 : i64, scratch_operands = 1 : i64, tpu.core_type = #tpu.core_type<tc>, window_params = [{transform_indices = @transform_0, window_bounds = array<i64: 8, 128>}, {transform_indices = @transform_1, window_bounds = array<i64: 8, 128>}, {pipeline_mode = #tpu.pipeline_mode<synchronous>, transform_indices = @transform_2, window_bounds = array<i64: 3, 2, 128, 1>}, {pipeline_mode = #tpu.pipeline_mode<synchronous>, transform_indices = @transform_3, window_bounds = array<i64: 3, 128, 1>}, {transform_indices = @transform_4, window_bounds = array<i64: 3, 8, 128>}]} {
    %c0 = arith.constant 0 : index
    %c0_0 = arith.constant 0 : index
    %0 = vector.load %arg3[%c0, %c0_0] : memref<8x128xi32, #tpu.memory_space<vmem>>, vector<8x128xi32>
    %c0_1 = arith.constant 0 : index
    %c0_2 = arith.constant 0 : index
    %1 = vector.load %arg7[%c0_1, %c0_2] : memref<8x256xi32, #tpu.memory_space<vmem>>, vector<8x128xi32>
    tpu.vector_store %arg7[%c0_1, %c0_2], %0 {strides = array<i32>} : memref<8x256xi32, #tpu.memory_space<vmem>>, vector<8x128xi32>,
    %c0_3 = arith.constant 0 : index
    %c0_4 = arith.constant 0 : index
    %2 = vector.load %arg2[%c0_3, %c0_4] : memref<8x128xi32, #tpu.memory_space<vmem>>, vector<8x128xi32>
    %c0_5 = arith.constant 0 : index
    %c128 = arith.constant 128 : index
    %3 = vector.load %arg7[%c0_5, %c128] : memref<8x256xi32, #tpu.memory_space<vmem>>, vector<8x128xi32>
    tpu.vector_store %arg7[%c0_5, %c128], %2 {strides = array<i32>} : memref<8x256xi32, #tpu.memory_space<vmem>>, vector<8x128xi32>,
    %c0_6 = arith.constant 0 : index
    %c0_7 = arith.constant 0 : index
    %4 = vector.load %arg2[%c0_6, %c0_7] : memref<8x128xi32, #tpu.memory_space<vmem>>, vector<8x128xi32>
    %c0_8 = arith.constant 0 : index
    %c127 = arith.constant 127 : index
    %5 = vector.load %arg7[%c0_8, %c127] : memref<8x256xi32, #tpu.memory_space<vmem>>, vector<8x128xi32>
    %c0_9 = arith.constant 0 : index
    %c126 = arith.constant 126 : index
    %6 = vector.load %arg7[%c0_9, %c126] : memref<8x256xi32, #tpu.memory_space<vmem>>, vector<8x128xi32>
    %c0_10 = arith.constant 0 : index
    %c125 = arith.constant 125 : index
    %7 = vector.load %arg7[%c0_10, %c125] : memref<8x256xi32, #tpu.memory_space<vmem>>, vector<8x128xi32>
    %c260_i32 = arith.constant 260 : i32
    %8 = vector.broadcast %c260_i32 : i32 to vector<8x128xi32>
    %9 = arith.muli %5, %8 : vector<8x128xi32>
    %10 = arith.addi %9, %4 : vector<8x128xi32>
    %c67600_i32 = arith.constant 67600 : i32
    %11 = vector.broadcast %c67600_i32 : i32 to vector<8x128xi32>
    %12 = arith.muli %6, %11 : vector<8x128xi32>
    %13 = arith.addi %12, %10 : vector<8x128xi32>
    %c0_i32 = arith.constant 0 : i32
    %14 = vector.broadcast %c0_i32 : i32 to vector<8x128xi32>
    %15 = arith.cmpi sge, %4, %14 : vector<8x128xi32>
    %c260_i32_11 = arith.constant 260 : i32
    %16 = vector.broadcast %c260_i32_11 : i32 to vector<8x128xi32>
    %17 = arith.cmpi slt, %4, %16 : vector<8x128xi32>
    %18 = arith.andi %15, %17 : vector<8x128xi1>
    %c0_i32_12 = arith.constant 0 : i32
    %19 = vector.broadcast %c0_i32_12 : i32 to vector<8x128xi32>
    %20 = arith.cmpi sge, %5, %19 : vector<8x128xi32>
    %c260_i32_13 = arith.constant 260 : i32
    %21 = vector.broadcast %c260_i32_13 : i32 to vector<8x128xi32>
    %22 = arith.cmpi slt, %5, %21 : vector<8x128xi32>
    %23 = arith.andi %20, %22 : vector<8x128xi1>
    %c0_i32_14 = arith.constant 0 : i32
    %24 = vector.broadcast %c0_i32_14 : i32 to vector<8x128xi32>
    %25 = arith.cmpi sge, %6, %24 : vector<8x128xi32>
    %c260_i32_15 = arith.constant 260 : i32
    %26 = vector.broadcast %c260_i32_15 : i32 to vector<8x128xi32>
    %27 = arith.cmpi slt, %6, %26 : vector<8x128xi32>
    %28 = arith.andi %25, %27 : vector<8x128xi1>
    %c0_i32_16 = arith.constant 0 : i32
    %29 = vector.broadcast %c0_i32_16 : i32 to vector<8x128xi32>
    %30 = arith.cmpi sge, %7, %29 : vector<8x128xi32>
    %c260_i32_17 = arith.constant 260 : i32
    %31 = vector.broadcast %c260_i32_17 : i32 to vector<8x128xi32>
    %32 = arith.cmpi slt, %7, %31 : vector<8x128xi32>
    %33 = arith.andi %30, %32 : vector<8x128xi1>
    %34 = arith.andi %18, %23 : vector<8x128xi1>
    %35 = arith.andi %34, %28 : vector<8x128xi1>
    %36 = arith.andi %35, %33 : vector<8x128xi1>
    %c0_18 = arith.constant 0 : index
    %c0_19 = arith.constant 0 : index
    %c0_20 = arith.constant 0 : index
    %c0_21 = arith.constant 0 : index
    %37 = vector.load %arg4[%c0_18, %c0_19, %c0_20, %c0_21] : memref<3x2x128x1xi32, #tpu.memory_space<vmem>>, vector<3x2x128x1xi32>
    %c0_22 = arith.constant 0 : index
    %c0_23 = arith.constant 0 : index
    %c0_24 = arith.constant 0 : index
    %38 = vector.load %arg5[%c0_22, %c0_23, %c0_24] : memref<3x128x1xi32, #tpu.memory_space<vmem>>, vector<3x128x1xi32>
    %c-1_i32 = arith.constant -1 : i32
    %39 = vector.broadcast %c-1_i32 : i32 to vector<8x128xi32>
    %40 = arith.select %34, %10, %39 : vector<8x128xi1>, vector<8x128xi32>
    %41 = vector.shape_cast %40 : vector<8x128xi32> to vector<8x1x128xi32>
    %42 = vector.extract_strided_slice %37 {offsets = [0, 0, 0, 0], sizes = [1, 1, 128, 1], strides = [1, 1, 1, 1]} : vector<3x2x128x1xi32> to vector<1x1x128x1xi32>
    %43 = vector.shape_cast %42 : vector<1x1x128x1xi32> to vector<128x1xi32>
    %44 = vector.shape_cast %43 : vector<128x1xi32> to vector<1x128x1xi32>
    %45 = vector.broadcast %41 : vector<8x1x128xi32> to vector<8x128x128xi32>
    %46 = vector.broadcast %44 : vector<1x128x1xi32> to vector<8x128x128xi32>
    %47 = arith.cmpi eq, %45, %46 : vector<8x128x128xi32>
    %48 = vector.extract_strided_slice %38 {offsets = [0, 0, 0], sizes = [1, 128, 1], strides = [1, 1, 1]} : vector<3x128x1xi32> to vector<1x128x1xi32>
    %49 = vector.shape_cast %48 : vector<1x128x1xi32> to vector<128x1xi32>
    %50 = vector.shape_cast %49 : vector<128x1xi32> to vector<1x128x1xi32>
    %c0_i32_25 = arith.constant 0 : i32
    %51 = vector.shape_cast %50 : vector<1x128x1xi32> to vector<1x128x1xi32>
    %52 = vector.broadcast %51 : vector<1x128x1xi32> to vector<8x128x128xi32>
    %53 = vector.broadcast %c0_i32_25 : i32 to vector<8x128x128xi32>
    %54 = arith.select %47, %52, %53 : vector<8x128x128xi1>, vector<8x128x128xi32>
    %cst = arith.constant dense<0> : vector<8x128xi32>
    %55 = vector.multi_reduction <add>, %54, %cst [1] : vector<8x128x128xi32> to vector<8x128xi32>
    %c0_26 = arith.constant 0 : index
    %c0_27 = arith.constant 0 : index
    %c0_28 = arith.constant 0 : index
    %56 = vector.load %arg6[%c0_26, %c0_27, %c0_28] : memref<3x8x128xi32, #tpu.memory_space<vmem>>, vector<1x8x128xi32>
    %57 = vector.shape_cast %56 : vector<1x8x128xi32> to vector<8x128xi32>
    %58 = vector.shape_cast %55 : vector<8x128xi32> to vector<1x8x128xi32>
    tpu.vector_store %arg6[%c0_26, %c0_27, %c0_28], %58 {strides = array<i32>} : memref<3x8x128xi32, #tpu.memory_space<vmem>>, vector<1x8x128xi32>,
    %c-1_i32_29 = arith.constant -1 : i32
    %59 = vector.broadcast %c-1_i32_29 : i32 to vector<8x128xi32>
    %60 = arith.select %35, %13, %59 : vector<8x128xi1>, vector<8x128xi32>
    %61 = vector.shape_cast %60 : vector<8x128xi32> to vector<8x1x128xi32>
    %62 = vector.extract_strided_slice %37 {offsets = [1, 0, 0, 0], sizes = [1, 1, 128, 1], strides = [1, 1, 1, 1]} : vector<3x2x128x1xi32> to vector<1x1x128x1xi32>
    %63 = vector.shape_cast %62 : vector<1x1x128x1xi32> to vector<128x1xi32>
    %64 = vector.shape_cast %63 : vector<128x1xi32> to vector<1x128x1xi32>
    %65 = vector.broadcast %61 : vector<8x1x128xi32> to vector<8x128x128xi32>
    %66 = vector.broadcast %64 : vector<1x128x1xi32> to vector<8x128x128xi32>
    %67 = arith.cmpi eq, %65, %66 : vector<8x128x128xi32>
    %68 = vector.extract_strided_slice %38 {offsets = [1, 0, 0], sizes = [1, 128, 1], strides = [1, 1, 1]} : vector<3x128x1xi32> to vector<1x128x1xi32>
    %69 = vector.shape_cast %68 : vector<1x128x1xi32> to vector<128x1xi32>
    %70 = vector.shape_cast %69 : vector<128x1xi32> to vector<1x128x1xi32>
    %c0_i32_30 = arith.constant 0 : i32
    %71 = vector.shape_cast %70 : vector<1x128x1xi32> to vector<1x128x1xi32>
    %72 = vector.broadcast %71 : vector<1x128x1xi32> to vector<8x128x128xi32>
    %73 = vector.broadcast %c0_i32_30 : i32 to vector<8x128x128xi32>
    %74 = arith.select %67, %72, %73 : vector<8x128x128xi1>, vector<8x128x128xi32>
    %cst_31 = arith.constant dense<0> : vector<8x128xi32>
    %75 = vector.multi_reduction <add>, %74, %cst_31 [1] : vector<8x128x128xi32> to vector<8x128xi32>
    %c1 = arith.constant 1 : index
    %c0_32 = arith.constant 0 : index
    %c0_33 = arith.constant 0 : index
    %76 = vector.load %arg6[%c1, %c0_32, %c0_33] : memref<3x8x128xi32, #tpu.memory_space<vmem>>, vector<1x8x128xi32>
    %77 = vector.shape_cast %76 : vector<1x8x128xi32> to vector<8x128xi32>
    %78 = vector.shape_cast %75 : vector<8x128xi32> to vector<1x8x128xi32>
    tpu.vector_store %arg6[%c1, %c0_32, %c0_33], %78 {strides = array<i32>} : memref<3x8x128xi32, #tpu.memory_space<vmem>>, vector<1x8x128xi32>,
    %c260_i32_34 = arith.constant 260 : i32
    %79 = vector.broadcast %c260_i32_34 : i32 to vector<8x128xi32>
    %80 = arith.muli %7, %79 : vector<8x128xi32>
    %81 = arith.addi %80, %6 : vector<8x128xi32>
    %c-1_i32_35 = arith.constant -1 : i32
    %82 = vector.broadcast %c-1_i32_35 : i32 to vector<8x128xi32>
    %83 = arith.select %36, %81, %82 : vector<8x128xi1>, vector<8x128xi32>
    %84 = vector.shape_cast %83 : vector<8x128xi32> to vector<8x1x128xi32>
    %85 = vector.extract_strided_slice %37 {offsets = [2, 0, 0, 0], sizes = [1, 1, 128, 1], strides = [1, 1, 1, 1]} : vector<3x2x128x1xi32> to vector<1x1x128x1xi32>
    %86 = vector.shape_cast %85 : vector<1x1x128x1xi32> to vector<128x1xi32>
    %87 = vector.shape_cast %86 : vector<128x1xi32> to vector<1x128x1xi32>
    %88 = vector.broadcast %84 : vector<8x1x128xi32> to vector<8x128x128xi32>
    %89 = vector.broadcast %87 : vector<1x128x1xi32> to vector<8x128x128xi32>
    %90 = arith.cmpi eq, %88, %89 : vector<8x128x128xi32>
    %91 = vector.shape_cast %10 : vector<8x128xi32> to vector<8x1x128xi32>
    %92 = vector.extract_strided_slice %37 {offsets = [2, 1, 0, 0], sizes = [1, 1, 128, 1], strides = [1, 1, 1, 1]} : vector<3x2x128x1xi32> to vector<1x1x128x1xi32>
    %93 = vector.shape_cast %92 : vector<1x1x128x1xi32> to vector<128x1xi32>
    %94 = vector.shape_cast %93 : vector<128x1xi32> to vector<1x128x1xi32>
    %95 = vector.broadcast %91 : vector<8x1x128xi32> to vector<8x128x128xi32>
    %96 = vector.broadcast %94 : vector<1x128x1xi32> to vector<8x128x128xi32>
    %97 = arith.cmpi eq, %95, %96 : vector<8x128x128xi32>
    %98 = arith.andi %90, %97 : vector<8x128x128xi1>
    %99 = vector.extract_strided_slice %38 {offsets = [2, 0, 0], sizes = [1, 128, 1], strides = [1, 1, 1]} : vector<3x128x1xi32> to vector<1x128x1xi32>
    %100 = vector.shape_cast %99 : vector<1x128x1xi32> to vector<128x1xi32>
    %101 = vector.shape_cast %100 : vector<128x1xi32> to vector<1x128x1xi32>
    %c0_i32_36 = arith.constant 0 : i32
    %102 = vector.shape_cast %101 : vector<1x128x1xi32> to vector<1x128x1xi32>
    %103 = vector.broadcast %102 : vector<1x128x1xi32> to vector<8x128x128xi32>
    %104 = vector.broadcast %c0_i32_36 : i32 to vector<8x128x128xi32>
    %105 = arith.select %98, %103, %104 : vector<8x128x128xi1>, vector<8x128x128xi32>
    %cst_37 = arith.constant dense<0> : vector<8x128xi32>
    %106 = vector.multi_reduction <add>, %105, %cst_37 [1] : vector<8x128x128xi32> to vector<8x128xi32>
    %c2 = arith.constant 2 : index
    %c0_38 = arith.constant 0 : index
    %c0_39 = arith.constant 0 : index
    %107 = vector.load %arg6[%c2, %c0_38, %c0_39] : memref<3x8x128xi32, #tpu.memory_space<vmem>>, vector<1x8x128xi32>
    %108 = vector.shape_cast %107 : vector<1x8x128xi32> to vector<8x128xi32>
    %109 = vector.shape_cast %106 : vector<8x128xi32> to vector<1x8x128xi32>
    tpu.vector_store %arg6[%c2, %c0_38, %c0_39], %109 {strides = array<i32>} : memref<3x8x128xi32, #tpu.memory_space<vmem>>, vector<1x8x128xi32>,
    return
  }
  func.func @transform_0(%arg0: i32, %arg1: i32) -> (i32, i32) {
    %c1_i32 = arith.constant 1 : i32
    %0 = arith.addi %arg1, %c1_i32 : i32
    %c0_i32 = arith.constant 0 : i32
    return %arg0, %0 : i32, i32
  }
  func.func @transform_1(%arg0: i32, %arg1: i32) -> (i32, i32) {
    %c1_i32 = arith.constant 1 : i32
    %0 = arith.addi %arg1, %c1_i32 : i32
    %c1_i32_0 = arith.constant 1 : i32
    %1 = arith.muli %0, %c1_i32_0 : i32
    %c1_i32_1 = arith.constant 1 : i32
    %2 = arith.subi %1, %c1_i32_1 : i32
    %c0_i32 = arith.constant 0 : i32
    return %arg0, %2 : i32, i32
  }
  func.func @transform_2(%arg0: i32, %arg1: i32) -> (i32, i32, i32, i32) {
    %c0_i32 = arith.constant 0 : i32
    %c0_i32_0 = arith.constant 0 : i32
    %c0_i32_1 = arith.constant 0 : i32
    %c0_i32_2 = arith.constant 0 : i32
    %c0_i32_3 = arith.constant 0 : i32
    return %c0_i32, %c0_i32_0, %c0_i32_1, %c0_i32_2 : i32, i32, i32, i32
  }
  func.func @transform_3(%arg0: i32, %arg1: i32) -> (i32, i32, i32) {
    %c0_i32 = arith.constant 0 : i32
    %c0_i32_0 = arith.constant 0 : i32
    %c0_i32_1 = arith.constant 0 : i32
    %c0_i32_2 = arith.constant 0 : i32
    return %c0_i32, %c0_i32_0, %c0_i32_1 : i32, i32, i32
  }
  func.func @transform_4(%arg0: i32, %arg1: i32) -> (i32, i32, i32) {
    %c0_i32 = arith.constant 0 : i32
    %c0_i32_0 = arith.constant 0 : i32
    return %c0_i32, %arg0, %arg1 : i32, i32, i32
  }
}

</mosaic_0001>

<bundles_post_ra>
// kernel: _ngram_forward.1
= control target key start
LH: loop header
LB: loop body
LE: loop exit
PB: predicated region body
PF: predicated region fallthrough
CT: control target
= control target key end

     0   :  { %v10377_v2 = vmov 0   ;;  %s3660_s19 = smov 127   ;;  %s3661_s20 = smov 1   ;;  %v3664_v53 = vmov 1966171168   ;;  %v214_v55 = vlaneseq  ;;  %vm10418_vm6 = vcmask 7168   ;;  %s10372_s0 = inlined_call_operand.vmem [shape: s32[8,256], index: 0, kind: input, shape index: {}, may-alias: {0,1}]   ;;  %s10373_s1 = inlined_call_operand.vmem [shape: s32[8,256], index: 1, kind: input, shape index: {}, may-alias: {0,1}]   ;;  %s10374_s2 = inlined_call_operand.vmem [shape: s32[3,2,128,1], index: 2, kind: input, shape index: {}]   ;;  %s10375_s3 = inlined_call_operand.vmem [shape: s32[3,128,1], index: 3, kind: input, shape index: {}]   ;;  %s10376_s4 = inlined_call_operand.vmem [shape: s32[3,8,128], index: 4, kind: output, shape index: {}]  }
   0x1   :  { %v3693_v0 = vld [vmem:[%s10372_s0 + $0x8] sm:$0xff]  ;;  %v3698_v1 = vld [vmem:[%s10373_s1] sm:$0xff]  ;;  %3655 = vset.pattern.permute.xlu1 %v10377_v2  ;;  %3656 = vset.pattern.permute.xlu0 %v10377_v2  ;;  %s3662_s21 = smov 2   ;;  %s3663_s22 = smov 3   ;;  %v94_v8 = vld [vmem:[%s10374_s2 + $0x10] sm:$0xff]  ;;  %v212_v54 = vunpack.c.l.s4 %v3664_v53  ;;  %vm10422_vm9 = vcmask 1039360  }
   0x2   :  { %43 = vrot.lane.b32.xlu0 %v3693_v0, %s3660_s19  ;;  %vm57_vm0 = vcmp.ge.s32.totalorder %v3693_v0, 0  ;;  %vm58_vm1 = vcmp.lt.s32.totalorder %v3693_v0, 260  ;;  %vm60_vm2 = vcmp.ge.s32.totalorder %v3698_v1, 0  ;;  %vm62_vm3 = vcmp.lt.s32.totalorder %v3698_v1, 260  ;;  %v92_v6 = vld [vmem:[%s10374_s2] sm:$0xff]  ;;  %v93_v7 = vld [vmem:[%s10374_s2 + $0x8] sm:$0xff] }
   0x3   :  { %vm64_vm4 = vmand %vm60_vm2, %vm62_vm3  ;;  %v96_v9 = vld [vmem:[%s10374_s2 + $0x20] sm:$0xff]  ;;  %v95_v10 = vld [vmem:[%s10374_s2 + $0x18] sm:$0xff]  ;;  %v10379_v57 = vmul.u32 260, %v3698_v1  ;;  %v213_v58 = vunpack.c.0.s8 %v212_v54  ;;  %v3867_v59 = vshrl.u32 %v214_v55, 7  ;;  %v10380_v60 = vmul.u32 260, %v3693_v0 }
   0x4   :  { %v66_v3 = vsel %vm64_vm4, 1, %v10377_v2  ;;  %vm3709_vm5 = vmand %vm57_vm0, %vm58_vm1  ;;  %v98_v11 = vld [vmem:[%s10374_s2 + $0x30] sm:$0xff]  ;;  %v97_v12 = vld [vmem:[%s10374_s2 + $0x28] sm:$0xff] }
   0x5   :  { %68 = vrot.lane.b32.xlu1 %v66_v3, %s3661_s20  ;;  %v67_v5 = vsel %vm3709_vm5, 1, %v10377_v2  ;;  %v100_v13 = vld [vmem:[%s10374_s2 + $0x40] sm:$0xff]  ;;  %v99_v14 = vld [vmem:[%s10374_s2 + $0x38] sm:$0xff]  ;;  %v102_v15 = vld [vmem:[%s10374_s2 + $0x50] sm:$0xff]  ;;  %v3871_v62 = vsub.s32 %v213_v58, %v3867_v59 }
   0x6   :  { %70 = vrot.lane.b32.xlu0 %v67_v5, %s3661_s20  ;;  %v101_v16 = vld [vmem:[%s10374_s2 + $0x48] sm:$0xff]  ;;  %v104_v17 = vld [vmem:[%s10374_s2 + $0x60] sm:$0xff]  ;;  %v103_v18 = vld [vmem:[%s10374_s2 + $0x58] sm:$0xff] }
   0x7   :  { %v106_v19 = vld [vmem:[%s10374_s2 + $0x70] sm:$0xff]  ;;  %v105_v20 = vld [vmem:[%s10374_s2 + $0x68] sm:$0xff]  ;;  %v156_v21 = vld [vmem:[%s10375_s3] sm:$0xff]  ;;  %10616 = vst [vmem:[#allocation3_spill] sm:$0xff] %v3871_v62 }
   0x8   :  { %v107_v22 = vld [vmem:[%s10374_s2 + $0x78] sm:$0xff]  ;;  %v158_v23 = vld [vmem:[%s10375_s3 + $0x10] sm:$0xff]  ;;  %v157_v24 = vld [vmem:[%s10375_s3 + $0x8] sm:$0xff] }
   0x9   :  { %76 = vrot.lane.b32.xlu1 %v66_v3, %s3662_s21  ;;  %v160_v25 = vld [vmem:[%s10375_s3 + $0x20] sm:$0xff]  ;;  %v159_v26 = vld [vmem:[%s10375_s3 + $0x18] sm:$0xff]  ;;  %v162_v27 = vld [vmem:[%s10375_s3 + $0x30] sm:$0xff] }
   0xa   :  { %78 = vrot.lane.b32.xlu0 %v67_v5, %s3662_s21  ;;  %v161_v28 = vld [vmem:[%s10375_s3 + $0x28] sm:$0xff]  ;;  %v164_v29 = vld [vmem:[%s10375_s3 + $0x40] sm:$0xff]  ;;  %v163_v30 = vld [vmem:[%s10375_s3 + $0x38] sm:$0xff] }
   0xb   :  { %v166_v31 = vld [vmem:[%s10375_s3 + $0x50] sm:$0xff]  ;;  %v165_v32 = vld [vmem:[%s10375_s3 + $0x48] sm:$0xff]  ;;  %v168_v33 = vld [vmem:[%s10375_s3 + $0x60] sm:$0xff] }
   0xc   :  { %v167_v34 = vld [vmem:[%s10375_s3 + $0x58] sm:$0xff]  ;;  %v170_v35 = vld [vmem:[%s10375_s3 + $0x70] sm:$0xff]  ;;  %v169_v36 = vld [vmem:[%s10375_s3 + $0x68] sm:$0xff] }
   0xd   :  { %84 = vrot.lane.b32.xlu1 %v66_v3, %s3663_s22  ;;  %v108_v37 = vld [vmem:[%s10374_s2 + $0x100] sm:$0xff]  ;;  %v171_v38 = vld [vmem:[%s10375_s3 + $0x78] sm:$0xff]  ;;  %v110_v39 = vld [vmem:[%s10374_s2 + $0x110] sm:$0xff] }
   0xe   :  { %86 = vrot.lane.b32.xlu0 %v67_v5, %s3663_s22  ;;  %v109_v40 = vld [vmem:[%s10374_s2 + $0x108] sm:$0xff]  ;;  %v112_v41 = vld [vmem:[%s10374_s2 + $0x120] sm:$0xff]  ;;  %v111_v42 = vld [vmem:[%s10374_s2 + $0x118] sm:$0xff] }
   0xf   :  { %v114_v43 = vld [vmem:[%s10374_s2 + $0x130] sm:$0xff]  ;;  %v113_v44 = vld [vmem:[%s10374_s2 + $0x128] sm:$0xff]  ;;  %v116_v45 = vld [vmem:[%s10374_s2 + $0x140] sm:$0xff] }
  0x10   :  { %v115_v46 = vld [vmem:[%s10374_s2 + $0x138] sm:$0xff]  ;;  %v118_v47 = vld [vmem:[%s10374_s2 + $0x150] sm:$0xff]  ;;  %v117_v48 = vld [vmem:[%s10374_s2 + $0x148] sm:$0xff] }
  0x11   :  { %292 = vperm.xlu1 %3655, %v92_v6   ;;  %v120_v49 = vld [vmem:[%s10374_s2 + $0x160] sm:$0xff]  ;;  %v119_v50 = vld [vmem:[%s10374_s2 + $0x158] sm:$0xff]  ;;  %v122_v51 = vld [vmem:[%s10374_s2 + $0x170] sm:$0xff] }
  0x12   :  { %295 = vperm.xlu0 %3656, %v93_v7   ;;  %v121_v52 = vld [vmem:[%s10374_s2 + $0x168] sm:$0xff]  ;;  %v123_v56 = vld [vmem:[%s10374_s2 + $0x178] sm:$0xff]  ;;  %v186_v55 = vld [vmem:[%s10375_s3 + $0xf0] sm:$0xff] }
  0x13   :  { %v185_v53 = vld [vmem:[%s10375_s3 + $0xe8] sm:$0xff]  ;;  %v187_v58 = vld [vmem:[%s10375_s3 + $0xf8] sm:$0xff] }
  0x15   :  { %298 = vperm.xlu1 %3655, %v94_v8  }
  0x16   :  { %304 = vperm.xlu0 %3656, %v96_v9   ;;  %v1768_v9 = vsub.s32 1, %v3867_v59 }
  0x19   :  { %301 = vperm.xlu1 %3655, %v95_v10  }
  0x1a   :  { %310 = vperm.xlu0 %3656, %v98_v11  }
  0x1d   :  { %307 = vperm.xlu1 %3655, %v97_v12  }
  0x1e   :  { %316 = vperm.xlu0 %3656, %v100_v13  }
  0x21   :  { %313 = vperm.xlu1 %3655, %v99_v14  }
  0x22   :  { %322 = vperm.xlu0 %3656, %v102_v15   ;;  %v172_v15 = vld [vmem:[%s10375_s3 + $0x80] sm:$0xff] }
  0x25   :  { %319 = vperm.xlu1 %3655, %v101_v16  }
  0x26   :  { %328 = vperm.xlu0 %3656, %v104_v17  }
  0x29   :  { %325 = vperm.xlu1 %3655, %v103_v18  }
  0x2a   :  { %334 = vperm.xlu0 %3656, %v106_v19  }
  0x2d   :  { %331 = vperm.xlu1 %3655, %v105_v20  }
  0x2e   :  { %468 = vperm.xlu0 %3656, %v156_v21   ;;  %v173_v21 = vld [vmem:[%s10375_s3 + $0x88] sm:$0xff] }
  0x31   :  { %337 = vperm.xlu1 %3655, %v107_v22  }
  0x32   :  { %474 = vperm.xlu0 %3656, %v158_v23  }
  0x35   :  { %471 = vperm.xlu1 %3655, %v157_v24  }
  0x36   :  { %480 = vperm.xlu0 %3656, %v160_v25  }
  0x39   :  { %477 = vperm.xlu1 %3655, %v159_v26  }
  0x3a   :  { %486 = vperm.xlu0 %3656, %v162_v27  }
  0x3d   :  { %483 = vperm.xlu1 %3655, %v161_v28  }
  0x3e   :  { %492 = vperm.xlu0 %3656, %v164_v29   ;;  %v174_v29 = vld [vmem:[%s10375_s3 + $0x90] sm:$0xff] }
  0x41   :  { %489 = vperm.xlu1 %3655, %v163_v30  }
  0x42   :  { %498 = vperm.xlu0 %3656, %v166_v31  }
  0x45   :  { %495 = vperm.xlu1 %3655, %v165_v32   ;;  %v175_v32 = vld [vmem:[%s10375_s3 + $0x98] sm:$0xff] }
  0x46   :  { %504 = vperm.xlu0 %3656, %v168_v33  }
  0x49   :  { %501 = vperm.xlu1 %3655, %v167_v34  }
  0x4a   :  { %510 = vperm.xlu0 %3656, %v170_v35  }
  0x4d   :  { %507 = vperm.xlu1 %3655, %v169_v36   ;;  %v176_v36 = vld [vmem:[%s10375_s3 + $0xa0] sm:$0xff] }
  0x4e   :  { %914 = vperm.xlu0 %3656, %v108_v37   ;;  %v177_v37 = vld [vmem:[%s10375_s3 + $0xa8] sm:$0xff] }
  0x51   :  { %513 = vperm.xlu1 %3655, %v171_v38  }
  0x52   :  { %920 = vperm.xlu0 %3656, %v110_v39   ;;  %v178_v39 = vld [vmem:[%s10375_s3 + $0xb0] sm:$0xff] }
  0x55   :  { %917 = vperm.xlu1 %3655, %v109_v40  }
  0x56   :  { %926 = vperm.xlu0 %3656, %v112_v41   ;;  %v179_v41 = vld [vmem:[%s10375_s3 + $0xb8] sm:$0xff] }
  0x59   :  { %923 = vperm.xlu1 %3655, %v111_v42  }
  0x5a   :  { %932 = vperm.xlu0 %3656, %v114_v43   ;;  %v180_v43 = vld [vmem:[%s10375_s3 + $0xc0] sm:$0xff] }
  0x5d   :  { %929 = vperm.xlu1 %3655, %v113_v44  }
  0x5e   :  { %938 = vperm.xlu0 %3656, %v116_v45   ;;  %v181_v45 = vld [vmem:[%s10375_s3 + $0xc8] sm:$0xff] }
  0x61   :  { %935 = vperm.xlu1 %3655, %v115_v46  }
  0x62   :  { %944 = vperm.xlu0 %3656, %v118_v47   ;;  %v182_v47 = vld [vmem:[%s10375_s3 + $0xd0] sm:$0xff] }
  0x65   :  { %941 = vperm.xlu1 %3655, %v117_v48  }
  0x66   :  { %950 = vperm.xlu0 %3656, %v120_v49   ;;  %v183_v49 = vld [vmem:[%s10375_s3 + $0xd8] sm:$0xff] }
  0x69   :  { %947 = vperm.xlu1 %3655, %v119_v50  }
  0x6a   :  { %956 = vperm.xlu0 %3656, %v122_v51   ;;  %v184_v51 = vld [vmem:[%s10375_s3 + $0xe0] sm:$0xff] }
  0x6d   :  { %953 = vperm.xlu1 %3655, %v121_v52  }
  0x71   :  { %959 = vperm.xlu1 %3655, %v123_v56  }
  0x74   :  { %v44_v61 = vpop.permute.xlu0 %43 }
  0x75   :  { %v45_v63 = vadd.s32 %v44_v61, %v10379_v57  ;;  %v46_v3 = vadd.s32 %v44_v61, %v10380_v60 }
  0x77   :  { %v1712_v5 = vcombine.low %v45_v63, %v46_v3  ;;  %v1713_v6 = vcombine.high %v45_v63, %v46_v3  ;;  %49 = vrot.lane.b32.xlu0 %v45_v63, %s3660_s19  ;;  %51 = vrot.lane.b32.xlu1 %v46_v3, %s3660_s19  ;;  %v3889_v14 = vpop.permute.xlu1 %68 }
  0x78   :  { %v3909_v20 = vpop.permute.xlu0 %70 }
  0x79   :  { %v1720_v7 = vrot.slane %v1712_v5, %v3871_v62  ;;  %v1727_v8 = vrot.slane %v1713_v6, %v3871_v62 }
  0x7b   :  { %v1728_v10 = vcombine.high %v1720_v7, %v1720_v7  ;;  %v1729_v11 = vcombine.high %v1727_v8, %v1727_v8  ;;  %v3883_v12 = vrot.slane %v1720_v7, %v3871_v62  ;;  %v3886_v13 = vrot.slane %v1727_v8, %v3871_v62  ;;  %206 = vrot.lane.b32.xlu0 %v46_v3, %s3661_s20  ;;  %v3952_v34 = vpop.permute.xlu1 %76 }
  0x7c   :  { %204 = vrot.lane.b32.xlu1 %v45_v63, %s3661_s20  ;;  %10633 = vst [vmem:[#allocation20_spill] sm:$0xff] %v3952_v34  ;;  %v3954_v35 = vpop.permute.xlu0 %78 }
  0x7d   :  { %10617 = vst [vmem:[#allocation4_spill] sm:$0xff] %v3883_v12  ;;  %10618 = vst [vmem:[#allocation5_spill] sm:$0xff] %v3886_v13  ;;  %v3896_v16 = vrot.slane %v1728_v10, %v3871_v62  ;;  %v3899_v17 = vrot.slane %v1729_v11, %v3871_v62  ;;  %v3903_v18 = vcombine.high %v3883_v12, %v3883_v12 }
  0x7e   :  { %v3907_v19 = vcombine.high %v3886_v13, %v3886_v13  ;;  %v3915_v22 = vrot.slane %v3883_v12, %v1768_v9  ;;  %v3918_v23 = vrot.slane %v3886_v13, %v1768_v9  ;;  %10634 = vst [vmem:[#allocation21_spill] sm:$0xff] %v3954_v35 }
  0x7f   :  { %10619 = vst [vmem:[#allocation6_spill] sm:$0xff] %v3896_v16  ;;  %10620 = vst [vmem:[#allocation7_spill] sm:$0xff] %v3899_v17  ;;  %v3922_v24 = vcombine.high %v3896_v16, %v3896_v16  ;;  %v3926_v25 = vcombine.high %v3899_v17, %v3899_v17  ;;  %v3929_v26 = vrot.slane %v3896_v16, %v1768_v9  ;;  %1090 = vperm.xlu0 %3656, %v172_v15   ;;  %v3962_v38 = vpop.permute.xlu1 %84  ;;  %v129_v16 = vld [vmem:[%s10374_s2 + $0x228] sm:$0xff] }
  0x80   :  { %10621 = vst [vmem:[#allocation8_spill] sm:$0xff] %v3903_v18  ;;  %10622 = vst [vmem:[#allocation9_spill] sm:$0xff] %v3907_v19  ;;  %v3932_v27 = vrot.slane %v3903_v18, %v1768_v9  ;;  %v3935_v28 = vrot.slane %v3899_v17, %v1768_v9  ;;  %1093 = vperm.xlu1 %3655, %v173_v21   ;;  %v3944_v31 = vrot.slane %v3907_v19, %v1768_v9  ;;  %v3967_v40 = vpop.permute.xlu0 %86 }
  0x81   :  { %10623 = vst [vmem:[#allocation10_spill] sm:$0xff] %v3915_v22  ;;  %10624 = vst [vmem:[#allocation11_spill] sm:$0xff] %v3918_v23  ;;  %v3941_v30 = vrot.slane %v3922_v24, %v1768_v9  ;;  %v3950_v33 = vrot.slane %v3926_v25, %v1768_v9 }
  0x82   :  { %10625 = vst [vmem:[#allocation12_spill] sm:$0xff] %v3922_v24  ;;  %10626 = vst [vmem:[#allocation13_spill] sm:$0xff] %v3926_v25 }
  0x83   :  { %10627 = vst [vmem:[#allocation14_spill] sm:$0xff] %v3929_v26  ;;  %10628 = vst [vmem:[#allocation15_spill] sm:$0xff] %v3932_v27  ;;  %1096 = vperm.xlu0 %3656, %v174_v29  }
  0x84   :  { %10629 = vst [vmem:[#allocation16_spill] sm:$0xff] %v3935_v28  ;;  %10630 = vst [vmem:[#allocation17_spill] sm:$0xff] %v3941_v30  ;;  %1099 = vperm.xlu1 %3655, %v175_v32  }
  0x85   :  { %10631 = vst [vmem:[#allocation18_spill] sm:$0xff] %v3944_v31  ;;  %10632 = vst [vmem:[#allocation19_spill] sm:$0xff] %v3950_v33 }
  0x86   :  { %10635 = vst [vmem:[#allocation22_spill] sm:$0xff] %v3962_v38  ;;  %10636 = vst [vmem:[#allocation23_spill] sm:$0xff] %v3967_v40 }
  0x87   :  { %1102 = vperm.xlu0 %3656, %v176_v36  }
  0x88   :  { %1105 = vperm.xlu1 %3655, %v177_v37  }
  0x8b   :  { %1108 = vperm.xlu0 %3656, %v178_v39  }
  0x8c   :  { %1111 = vperm.xlu1 %3655, %v179_v41   ;;  %v3972_v42 = vpop.permute.xlu1 %292 }
  0x8d   :  { %v3977_v44 = vpop.permute.xlu0 %295 }
  0x8f   :  { %1114 = vperm.xlu0 %3656, %v180_v43  }
  0x90   :  { %1117 = vperm.xlu1 %3655, %v181_v45   ;;  %v3982_v46 = vpop.permute.xlu1 %298 }
  0x91   :  { %v3987_v48 = vpop.permute.xlu0 %304 }
  0x93   :  { %1120 = vperm.xlu0 %3656, %v182_v47  }
  0x94   :  { %1123 = vperm.xlu1 %3655, %v183_v49   ;;  %v3992_v50 = vpop.permute.xlu1 %301 }
  0x95   :  { %v3997_v52 = vpop.permute.xlu0 %310 }
  0x97   :  { %1126 = vperm.xlu0 %3656, %v184_v51  }
  0x98   :  { %1129 = vperm.xlu1 %3655, %v185_v53   ;;  %v4002_v54 = vpop.permute.xlu1 %307 }
  0x99   :  { %v4007_v56 = vpop.permute.xlu0 %316 }
  0x9b   :  { %1132 = vperm.xlu0 %3656, %v186_v55  }
  0x9c   :  { %1135 = vperm.xlu1 %3655, %v187_v58   ;;  %v4012_v61 = vpop.permute.xlu1 %313 }
  0x9d   :  { %v4014_v63 = vpop.permute.xlu0 %322 }
  0x9f   :  { %1442 = vrot.lane.b32.xlu0 %v3698_v1, %s3660_s19 }
  0xa0   :  { %v4018_v3 = vpop.permute.xlu1 %319  ;;  %1444 = vrot.lane.b32.xlu1 %v3693_v0, %s3660_s19 }
  0xa1   :  { %v4022_v5 = vpop.permute.xlu0 %328 }
  0xa4   :  { %v4024_v6 = vpop.permute.xlu1 %325 }
  0xa5   :  { %v4026_v7 = vpop.permute.xlu0 %334 }
  0xa8   :  { %v4028_v8 = vpop.permute.xlu1 %331 }
  0xa9   :  { %v4030_v9 = vpop.permute.xlu0 %468 }
  0xac   :  { %v4032_v10 = vpop.permute.xlu1 %337 }
  0xad   :  { %v4034_v11 = vpop.permute.xlu0 %474 }
  0xb0   :  { %v4036_v15 = vpop.permute.xlu1 %471 }
  0xb1   :  { %10637 = vst [vmem:[#allocation24_spill] sm:$0xff] %v4036_v15  ;;  %v4038_v21 = vpop.permute.xlu0 %480 }
  0xb4   :  { %v4040_v29 = vpop.permute.xlu1 %477 }
  0xb5   :  { %v4042_v32 = vpop.permute.xlu0 %486 }
  0xb8   :  { %v4044_v36 = vpop.permute.xlu1 %483 }
  0xb9   :  { %v4046_v37 = vpop.permute.xlu0 %492 }
  0xbc   :  { %v4048_v39 = vpop.permute.xlu1 %489 }
  0xbd   :  { %v4050_v41 = vpop.permute.xlu0 %498 }
  0xc0   :  { %v4052_v43 = vpop.permute.xlu1 %495 }
  0xc1   :  { %v4054_v45 = vpop.permute.xlu0 %504 }
  0xc4   :  { %v4056_v47 = vpop.permute.xlu1 %501 }
  0xc5   :  { %v4058_v49 = vpop.permute.xlu0 %510 }
  0xc8   :  { %v4060_v51 = vpop.permute.xlu1 %507 }
  0xc9   :  { %v4062_v53 = vpop.permute.xlu0 %914 }
  0xca   :  { %10638 = vst [vmem:[#allocation25_spill] sm:$0xff] %v4062_v53 }
  0xcc   :  { %v4064_v55 = vpop.permute.xlu1 %513 }
  0xcd   :  { %v4066_v58 = vpop.permute.xlu0 %920 }
  0xce   :  { %10639 = vst [vmem:[#allocation26_spill] sm:$0xff] %v4066_v58 }
  0xd0   :  { %v4068_v2 = vpop.permute.xlu1 %917 }
  0xd1   :  { %10640 = vst [vmem:[#allocation27_spill] sm:$0xff] %v4068_v2  ;;  %v4070_v57 = vpop.permute.xlu0 %926 }
  0xd2   :  { %10641 = vst [vmem:[#allocation28_spill] sm:$0xff] %v4070_v57 }
  0xd4   :  { %v4072_v60 = vpop.permute.xlu1 %923 }
  0xd5   :  { %10642 = vst [vmem:[#allocation29_spill] sm:$0xff] %v4072_v60  ;;  %v4074_v38 = vpop.permute.xlu0 %932 }
  0xd6   :  { %10643 = vst [vmem:[#allocation30_spill] sm:$0xff] %v4074_v38 }
  0xd8   :  { %v4076_v40 = vpop.permute.xlu1 %929 }
  0xd9   :  { %10644 = vst [vmem:[#allocation31_spill] sm:$0xff] %v4076_v40  ;;  %v4078_v33 = vpop.permute.xlu0 %938 }
  0xda   :  { %10645 = vst [vmem:[#allocation32_spill] sm:$0xff] %v4078_v33 }
  0xdc   :  { %v4080_v25 = vpop.permute.xlu1 %935 }
  0xdd   :  { %10646 = vst [vmem:[#allocation33_spill] sm:$0xff] %v4080_v25  ;;  %v4082_v31 = vpop.permute.xlu0 %944 }
  0xde   :  { %10647 = vst [vmem:[#allocation34_spill] sm:$0xff] %v4082_v31 }
  0xe0   :  { %v4084_v19 = vpop.permute.xlu1 %941 }
  0xe1   :  { %10648 = vst [vmem:[#allocation35_spill] sm:$0xff] %v4084_v19  ;;  %v4086_v28 = vpop.permute.xlu0 %950  ;;  %v10660_v19 = vmov 0 }
  0xe2   :  { %10649 = vst [vmem:[#allocation36_spill] sm:$0xff] %v4086_v28  ;;  %v73_v28 = vsel %vm10418_vm6, %v3889_v14, %v3909_v20 }
  0xe3   :  { %vm74_vm7 = vcmp.ne.s32.totalorder %v73_v28, 0 }
  0xe4   :  { %v4088_v17 = vpop.permute.xlu1 %947  ;;  %vm4114_vm8 = vmand %vm3709_vm5, %vm74_vm7 }
  0xe5   :  { %10650 = vst [vmem:[#allocation37_spill] sm:$0xff] %v4088_v17  ;;  %v4092_v2 = vpop.permute.xlu0 %956  ;;  %v10661_v19 = vsel %vm4114_vm8, 4294967295, %v10660_v19 }
  0xe6   :  { %10652 = vst [vmem:[#allocation39_spill] sm:$0xff] %v4092_v2  ;;  %10662 = vst [vmem:[#allocation47_spill] sm:$0xff] %v10661_v19 }
  0xe8   :  { %v4090_v23 = vpop.permute.xlu1 %953 }
  0xe9   :  { %10651 = vst [vmem:[#allocation38_spill] sm:$0xff] %v4090_v23  ;;  %v4096_v38 = vpop.permute.xlu0 %49 }
  0xea   :  { %10654 = vst [vmem:[#allocation41_spill] sm:$0xff] %v4096_v38 }
  0xec   :  { %v4094_v53 = vpop.permute.xlu1 %959 }
  0xed   :  { %10653 = vst [vmem:[#allocation40_spill] sm:$0xff] %v4094_v53  ;;  %v207_v33 = vpop.permute.xlu0 %206 }
  0xf0   :  { %v4098_v40 = vpop.permute.xlu1 %51 }
  0xf1   :  { %10655 = vst [vmem:[#allocation42_spill] sm:$0xff] %v4098_v40 }
  0xf4   :  { %v205_v25 = vpop.permute.xlu1 %204 }
  0xf5   :  { %v208_v53 = vsel %vm10418_vm6, %v205_v25, %v207_v33 }
  0xfa   :  { %v4100_v31 = vpop.permute.xlu0 %1090 }
  0xfb   :  { %10656 = vst [vmem:[#allocation43_spill] sm:$0xff] %v4100_v31  ;;  %v4105_v17 = vpop.permute.xlu1 %1093  ;;  %v209_v31 = vsel %vm4114_vm8, %v208_v53, 4294967295 }
  0xfc   :  { %10657 = vst [vmem:[#allocation44_spill] sm:$0xff] %v4105_v17  ;;  %v210_v20 = vcombine.high %v209_v31, %v209_v31  ;;  %v217_v25 = vrot.slane %v209_v31, %v3871_v62  ;;  %v4142_v31 = vsub.s32 0, %v3867_v59 }
  0xfe   :  { %v4107_v23 = vpop.permute.xlu0 %1096  ;;  %v224_v4 = vrot.slane %v210_v20, %v3871_v62  ;;  %10671 = vst [vmem:[#allocation56_spill] sm:$0xff] %v4142_v31 }
  0xff   :  { %10658 = vst [vmem:[#allocation45_spill] sm:$0xff] %v4107_v23  ;;  %v4110_v2 = vpop.permute.xlu1 %1099  ;;  %v225_v23 = vcombine.high %v217_v25, %v217_v25 }
 0x100   :  { %10659 = vst [vmem:[#allocation46_spill] sm:$0xff] %v4110_v2  ;;  %v226_v60 = vcombine.high %v224_v4, %v224_v4 }
 0x102   :  { %v4120_v57 = vpop.permute.xlu0 %1102  ;;  %v254_v20 = vrot.slane %v226_v60, %v3871_v62 }
 0x103   :  { %10663 = vst [vmem:[#allocation48_spill] sm:$0xff] %v4120_v57  ;;  %v4122_v14 = vpop.permute.xlu1 %1105  ;;  %v233_v57 = vrot.slane %v217_v25, %v3871_v62 }
 0x104   :  { %10664 = vst [vmem:[#allocation49_spill] sm:$0xff] %v4122_v14 }
 0x105   :  { %v4148_v58 = vrot.slane %v233_v57, %v4142_v31 }
 0x106   :  { %v4124_v28 = vpop.permute.xlu0 %1108 }
 0x107   :  { %10665 = vst [vmem:[#allocation50_spill] sm:$0xff] %v4124_v28  ;;  %v4126_v17 = vpop.permute.xlu1 %1111  ;;  %v240_v28 = vrot.slane %v224_v4, %v3871_v62  ;;  %vm339_vm10 = vcmp.eq.s32.totalorder %v4148_v58, %v3972_v42  ;;  %vm340_vm11 = vcmp.eq.s32.totalorder %v4148_v58, %v3977_v44  ;;  %vm341_vm12 = vcmp.eq.s32.totalorder %v4148_v58, %v3982_v46 }
 0x108   :  { %10666 = vst [vmem:[#allocation51_spill] sm:$0xff] %v4126_v17  ;;  %v247_v17 = vrot.slane %v225_v23, %v3871_v62  ;;  %vm342_vm13 = vcmp.eq.s32.totalorder %v4148_v58, %v3992_v50  ;;  %vm343_vm14 = vcmp.eq.s32.totalorder %v4148_v58, %v3987_v48  ;;  %vm344_vm15 = vcmp.eq.s32.totalorder %v4148_v58, %v4002_v54 }
 0x109   :  { %v256_v25 = vcombine.high %v240_v28, %v240_v28  ;;  %v4161_v60 = vrot.slane %v240_v28, %v4142_v31  ;;  %vm345_vm0 = vcmp.eq.s32.totalorder %v4148_v58, %v3997_v52  ;;  %vm346_vm1 = vcmp.eq.s32.totalorder %v4148_v58, %v4012_v61 }
 0x10a   :  { %v4130_v33 = vpop.permute.xlu0 %1114  ;;  %v257_v30 = vcombine.high %v247_v17, %v247_v17  ;;  %v4153_v4 = vrot.slane %v247_v17, %v4142_v31  ;;  %v4173_v17 = vrot.slane %v254_v20, %v4142_v31 }
 0x10b   :  { %10667 = vst [vmem:[#allocation52_spill] sm:$0xff] %v4130_v33  ;;  %v4132_v2 = vpop.permute.xlu1 %1117 }
 0x10c   :  { %10668 = vst [vmem:[#allocation53_spill] sm:$0xff] %v4132_v2  ;;  %v255_v2 = vcombine.high %v233_v57, %v233_v57  ;;  %v4170_v57 = vrot.slane %v257_v30, %v4142_v31  ;;  %vm366_vm7 = vcmp.eq.s32.totalorder %v4153_v4, %v4024_v6  ;;  %vm368_vm6 = vcmp.eq.s32.totalorder %v4153_v4, %v4028_v8 }
 0x10e   :  { %v4134_v53 = vpop.permute.xlu0 %1120  ;;  %v4158_v59 = vrot.slane %v255_v2, %v4142_v31  ;;  %v4176_v2 = vrot.slane %v256_v25, %v4142_v31  ;;  %v10678_v25 = vmul.u32 260, %v3693_v0  ;;  %v125_v0 = vld [vmem:[%s10374_s2 + $0x208] sm:$0xff] }
 0x10f   :  { %10669 = vst [vmem:[#allocation54_spill] sm:$0xff] %v4134_v53  ;;  %v4137_v14 = vpop.permute.xlu1 %1123 }
 0x110   :  { %10670 = vst [vmem:[#allocation55_spill] sm:$0xff] %v4137_v14  ;;  %v258_v14 = vcombine.high %v254_v20, %v254_v20  ;;  %10676 = vst [vmem:[#allocation61_spill] sm:$0xff] %v4176_v2  ;;  %vm371_vm4 = vcmp.eq.s32.totalorder %v4158_v59, %v3972_v42  ;;  %vm372_vm5 = vcmp.eq.s32.totalorder %v4158_v59, %v3977_v44 }
 0x111   :  { %vm375_vm2 = vcmp.eq.s32.totalorder %v4158_v59, %v3987_v48  ;;  %vm376_vm3 = vcmp.eq.s32.totalorder %v4158_v59, %v4002_v54  ;;  %v4506_v2 = vsel %vm371_vm4, %v4030_v9, 0  ;;  %vm400_vm4 = vcmp.eq.s32.totalorder %v4170_v57, %v4028_v8 }
 0x112   :  { %v4145_v33 = vpop.permute.xlu0 %1126  ;;  %v4181_v28 = vrot.slane %v258_v14, %v4142_v31  ;;  %10709 = vst [vmem:[#allocation69_spill] sm:$0xff] %v4506_v2 }
 0x113   :  { %10672 = vst [vmem:[#allocation57_spill] sm:$0xff] %v4145_v33  ;;  %v4150_v53 = vpop.permute.xlu1 %1129 }
 0x114   :  { %10673 = vst [vmem:[#allocation58_spill] sm:$0xff] %v4150_v53  ;;  %10677 = vst [vmem:[#allocation62_spill] sm:$0xff] %v4181_v28 }
 0x116   :  { %v4155_v23 = vpop.permute.xlu0 %1132 }
 0x117   :  { %10674 = vst [vmem:[#allocation59_spill] sm:$0xff] %v4155_v23  ;;  %v4163_v33 = vpop.permute.xlu1 %1135  ;;  %v10679_v23 = vmul.u32 260, %v3698_v1  ;;  %v124_v1 = vld [vmem:[%s10374_s2 + $0x200] sm:$0xff] }
 0x118   :  { %10675 = vst [vmem:[#allocation60_spill] sm:$0xff] %v4163_v33 }
 0x11a   :  { %v1443_v30 = vpop.permute.xlu0 %1442 }
 0x11b   :  { %v1445_v14 = vpop.permute.xlu1 %1444 }
 0x11c   :  { %v1446_v20 = vsel %vm10422_vm9, %v1443_v30, %v1445_v14  ;;  %v1448_v33 = vadd.s32 %v1445_v14, %v10678_v25  ;;  %vm367_vm9 = vcmp.eq.s32.totalorder %v4153_v4, %v4022_v5  ;;  %v4284_v30 = vsel %vm340_vm11, %v4036_v15, 0 }
 0x11d   :  { %v1447_v53 = vadd.s32 %v1446_v20, %v10679_v23  ;;  %v4278_v23 = vsel %vm339_vm10, %v4030_v9, 0  ;;  %10681 = vst [vmem:[#allocation64_spill] sm:$0xff] %v4284_v30  ;;  %v127_v20 = vld [vmem:[%s10374_s2 + $0x218] sm:$0xff]  ;;  %v519_v25 = vsel %vm343_vm14, %v4038_v21, 0  ;;  %vm378_vm10 = vcmp.eq.s32.totalorder %v4158_v59, %v4012_v61 }
 0x11e   :  { %1451 = vrot.lane.b32.xlu1 %v1448_v33, %s3663_s22  ;;  %v517_v33 = vsel %vm341_vm12, %v4034_v11, 0  ;;  %10680 = vst [vmem:[#allocation63_spill] sm:$0xff] %v4278_v23  ;;  %vm377_vm12 = vcmp.eq.s32.totalorder %v4158_v59, %v3997_v52  ;;  %vm10691_vm11 = vcmp.eq.s32.totalorder %v4148_v58, %v4032_v10  ;;  %vm10702_vm14 = vcmp.eq.s32.totalorder %v4153_v4, %v4018_v3 }
 0x11f   :  { %1449 = vrot.lane.b32.xlu0 %v1447_v53, %s3663_s22  ;;  %v518_v53 = vsel %vm342_vm13, %v4040_v29, 0  ;;  %vm10685_vm13 = vcmp.eq.s32.totalorder %v4148_v58, %v4024_v6 }
 0x120   :  { %v644_v14 = vadd.s32 %v518_v53, %v517_v33  ;;  %v522_v33 = vsel %vm346_vm1, %v4048_v39, 0  ;;  %v126_v53 = vld [vmem:[%s10374_s2 + $0x210] sm:$0xff]  ;;  %vm10684_vm1 = vcmp.eq.s32.totalorder %v4148_v58, %v4014_v63 }
 0x121   :  { %v4332_v24 = vsel %vm10684_vm1, %v4050_v41, 0  ;;  %vm10688_vm1 = vcmp.eq.s32.totalorder %v4153_v4, %v3992_v50 }
 0x122   :  { %1540 = vperm.xlu1 %3655, %v125_v0   ;;  %v520_v0 = vsel %vm344_vm15, %v4044_v36, 0  ;;  %v645_v62 = vadd.s32 %v644_v14, %v519_v25  ;;  %vm10682_vm15 = vcmp.eq.s32.totalorder %v4148_v58, %v4007_v56  ;;  %v4340_v14 = vsel %vm10685_vm13, %v4056_v47, 0 }
 0x123   :  { %1537 = vperm.xlu0 %3656, %v124_v1   ;;  %v521_v1 = vsel %vm345_vm0, %v4042_v32, 0  ;;  %v523_v19 = vsel %vm10682_vm15, %v4046_v37, 0  ;;  %vm10683_vm0 = vcmp.eq.s32.totalorder %v4148_v58, %v4018_v3  ;;  %vm10686_vm15 = vcmp.eq.s32.totalorder %v4148_v58, %v4022_v5 }
 0x124   :  { %v4326_v13 = vsel %vm10683_vm0, %v4052_v43, 0  ;;  %v4346_v25 = vsel %vm10686_vm15, %v4054_v45, 0  ;;  %vm10687_vm0 = vcmp.eq.s32.totalorder %v4153_v4, %v3982_v46  ;;  %v534_v35 = vsel %vm10688_vm1, %v4040_v29, 0 }
 0x125   :  { %v533_v34 = vsel %vm10687_vm0, %v4034_v11, 0  ;;  %vm383_vm13 = vcmp.eq.s32.totalorder %v4158_v59, %v4022_v5  ;;  %v646_v27 = vadd.s32 %v645_v62, %v520_v0  ;;  %vm10689_vm0 = vcmp.eq.s32.totalorder %v4148_v58, %v4028_v8 }
 0x126   :  { %1546 = vperm.xlu1 %3655, %v127_v20   ;;  %v4368_v18 = vsel %vm10689_vm0, %v4060_v51, 0  ;;  %vm10690_vm1 = vcmp.eq.s32.totalorder %v4148_v58, %v4026_v7  ;;  %v665_v26 = vadd.s32 %v534_v35, %v533_v34  ;;  %v4383_v62 = vsel %vm10691_vm11, %v4064_v55, 0  ;;  %v128_v58 = vld [vmem:[%s10374_s2 + $0x220] sm:$0xff] }
 0x127   :  { %v4374_v20 = vsel %vm10690_vm1, %v4058_v49, 0  ;;  %1543 = vperm.xlu0 %3656, %v126_v53   ;;  %10692 = vst [vmem:[#allocation65_spill] sm:$0xff] %v4383_v62  ;;  %vm10693_vm0 = vcmp.eq.s32.totalorder %v4153_v4, %v3972_v42  ;;  %vm10695_vm1 = vcmp.eq.s32.totalorder %v4153_v4, %v3977_v44  ;;  %vm10697_vm15 = vcmp.eq.s32.totalorder %v4153_v4, %v3987_v48 }
 0x128   :  { %v4389_v0 = vsel %vm10693_vm0, %v4030_v9, 0  ;;  %v4395_v34 = vsel %vm10695_vm1, %v4036_v15, 0  ;;  %v535_v35 = vsel %vm10697_vm15, %v4038_v21, 0  ;;  %v647_v53 = vadd.s32 %v646_v27, %v521_v1 }
 0x129   :  { %10694 = vst [vmem:[#allocation66_spill] sm:$0xff] %v4389_v0  ;;  %10696 = vst [vmem:[#allocation67_spill] sm:$0xff] %v4395_v34  ;;  %v666_v38 = vadd.s32 %v665_v26, %v535_v35  ;;  %vm10698_vm15 = vcmp.eq.s32.totalorder %v4153_v4, %v4002_v54  ;;  %vm10699_vm11 = vcmp.eq.s32.totalorder %v4153_v4, %v3997_v52  ;;  %v4432_v27 = vsel %vm10702_vm14, %v4052_v43, 0  ;;  %v131_v0 = vld [vmem:[%s10374_s2 + $0x238] sm:$0xff] }
 0x12a   :  { %v536_v40 = vsel %vm10698_vm15, %v4044_v36, 0  ;;  %v537_v22 = vsel %vm10699_vm11, %v4042_v32, 0  ;;  %vm10700_vm0 = vcmp.eq.s32.totalorder %v4153_v4, %v4012_v61  ;;  %vm10701_vm1 = vcmp.eq.s32.totalorder %v4153_v4, %v4007_v56  ;;  %1552 = vperm.xlu1 %3655, %v129_v16  }
 0x12b   :  { %v538_v12 = vsel %vm10700_vm0, %v4048_v39, 0  ;;  %v539_v26 = vsel %vm10701_vm1, %v4046_v37, 0  ;;  %vm10703_vm11 = vcmp.eq.s32.totalorder %v4153_v4, %v4014_v63  ;;  %vm388_vm0 = vcmp.eq.s32.totalorder %v4170_v57, %v3977_v44  ;;  %1549 = vperm.xlu0 %3656, %v128_v58  }
 0x12c   :  { %v4438_v1 = vsel %vm10703_vm11, %v4050_v41, 0  ;;  %vm392_vm15 = vcmp.eq.s32.totalorder %v4170_v57, %v4002_v54  ;;  %vm393_vm1 = vcmp.eq.s32.totalorder %v4170_v57, %v3997_v52  ;;  %v648_v35 = vadd.s32 %v647_v53, %v522_v33  ;;  %v130_v53 = vld [vmem:[%s10374_s2 + $0x230] sm:$0xff] }
 0x12d   :  { %v667_v31 = vadd.s32 %v666_v38, %v536_v40  ;;  %v4452_v34 = vsel %vm366_vm7, %v4056_v47, 0  ;;  %v4458_v16 = vsel %vm367_vm9, %v4054_v45, 0  ;;  %v4467_v38 = vsel %vm368_vm6, %v4060_v51, 0 }
 0x12e   :  { %vm10704_vm7 = vcmp.eq.s32.totalorder %v4153_v4, %v4026_v7  ;;  %vm10705_vm9 = vcmp.eq.s32.totalorder %v4158_v59, %v3982_v46  ;;  %vm10706_vm11 = vcmp.eq.s32.totalorder %v4158_v59, %v3992_v50  ;;  %vm397_vm14 = vcmp.eq.s32.totalorder %v4170_v57, %v4014_v63  ;;  %1558 = vperm.xlu1 %3655, %v131_v0   ;;  %v133_v0 = vld [vmem:[%s10374_s2 + $0x248] sm:$0xff] }
 0x12f   :  { %v4473_v40 = vsel %vm10704_vm7, %v4058_v49, 0  ;;  %v549_v33 = vsel %vm10705_vm9, %v4034_v11, 0  ;;  %v550_v58 = vsel %vm10706_vm11, %v4040_v29, 0  ;;  %vm396_vm7 = vcmp.eq.s32.totalorder %v4170_v57, %v4018_v3  ;;  %1555 = vperm.xlu0 %3656, %v130_v53  }
 0x130   :  { %vm398_vm9 = vcmp.eq.s32.totalorder %v4170_v57, %v4024_v6  ;;  %v649_v30 = vadd.s32 %v648_v35, %v523_v19  ;;  %v668_v23 = vadd.s32 %v667_v31, %v537_v22  ;;  %vm10707_vm11 = vcmp.eq.s32.totalorder %v4153_v4, %v4032_v10 }
 0x131   :  { %v4498_v28 = vsel %vm10707_vm11, %v4064_v55, 0  ;;  %v686_v62 = vadd.s32 %v550_v58, %v549_v33  ;;  %vm399_vm6 = vcmp.eq.s32.totalorder %v4170_v57, %v4022_v5  ;;  %v4512_v19 = vsel %vm372_vm5, %v4036_v15, 0 }
 0x132   :  { %10708 = vst [vmem:[#allocation68_spill] sm:$0xff] %v4498_v28  ;;  %10710 = vst [vmem:[#allocation70_spill] sm:$0xff] %v4512_v19  ;;  %v551_v22 = vsel %vm375_vm2, %v4038_v21, 0  ;;  %v552_v31 = vsel %vm376_vm3, %v4044_v36, 0  ;;  %vm405_vm11 = vcmp.eq.s32.totalorder %v4161_v60, %v3982_v46  ;;  %v650_v4 = vadd.s32 %v649_v30, %v4326_v13  ;;  %1564 = vperm.xlu1 %3655, %v133_v0   ;;  %v134_v0 = vld [vmem:[%s10374_s2 + $0x250] sm:$0xff] }
 0x133   :  { %v669_v35 = vadd.s32 %v668_v23, %v538_v12  ;;  %v687_v33 = vadd.s32 %v686_v62, %v551_v22  ;;  %v553_v58 = vsel %vm377_vm12, %v4042_v32, 0  ;;  %v554_v13 = vsel %vm378_vm10, %v4048_v39, 0  ;;  %v132_v62 = vld [vmem:[%s10374_s2 + $0x240] sm:$0xff] }
 0x134   :  { %vm10711_vm3 = vcmp.eq.s32.totalorder %v4158_v59, %v4007_v56  ;;  %vm10712_vm12 = vcmp.eq.s32.totalorder %v4158_v59, %v4018_v3  ;;  %vm10713_vm2 = vcmp.eq.s32.totalorder %v4158_v59, %v4014_v63  ;;  %vm402_vm10 = vcmp.eq.s32.totalorder %v4170_v57, %v4032_v10  ;;  %1561 = vperm.xlu0 %3656, %v132_v62  }
 0x135   :  { %v555_v12 = vsel %vm10711_vm3, %v4046_v37, 0  ;;  %v4550_v23 = vsel %vm10712_vm12, %v4052_v43, 0  ;;  %v4556_v30 = vsel %vm10713_vm2, %v4050_v41, 0  ;;  %v651_v53 = vadd.s32 %v650_v4, %v4332_v24 }
 0x136   :  { %v670_v22 = vadd.s32 %v669_v35, %v539_v26  ;;  %v688_v19 = vadd.s32 %v687_v33, %v552_v31  ;;  %vm10714_vm2 = vcmp.eq.s32.totalorder %v4158_v59, %v4024_v6  ;;  %v4580_v28 = vsel %vm383_vm13, %v4054_v45, 0 }
 0x137   :  { %v4572_v2 = vsel %vm10714_vm2, %v4056_v47, 0  ;;  %10715 = vst [vmem:[#allocation71_spill] sm:$0xff] %v4580_v28  ;;  %vm10716_vm12 = vcmp.eq.s32.totalorder %v4158_v59, %v4028_v8  ;;  %vm10718_vm2 = vcmp.eq.s32.totalorder %v4170_v57, %v3982_v46  ;;  %vm10719_vm5 = vcmp.eq.s32.totalorder %v4170_v57, %v3992_v50  ;;  %v135_v28 = vld [vmem:[%s10374_s2 + $0x258] sm:$0xff] }
 0x138   :  { %v4586_v24 = vsel %vm10716_vm12, %v4060_v51, 0  ;;  %v565_v26 = vsel %vm10718_vm2, %v4034_v11, 0  ;;  %v566_v31 = vsel %vm10719_vm5, %v4040_v29, 0  ;;  %v652_v4 = vadd.s32 %v651_v53, %v4340_v14  ;;  %1570 = vperm.xlu1 %3655, %v135_v28   ;;  %1567 = vperm.xlu0 %3656, %v134_v0   ;;  %v137_v28 = vld [vmem:[%s10374_s2 + $0x268] sm:$0xff] }
 0x139   :  { %10717 = vst [vmem:[#allocation72_spill] sm:$0xff] %v4586_v24  ;;  %v671_v35 = vadd.s32 %v670_v22, %v4432_v27  ;;  %v689_v33 = vadd.s32 %v688_v19, %v553_v58  ;;  %v707_v24 = vadd.s32 %v566_v31, %v565_v26  ;;  %vm10720_vm2 = vcmp.eq.s32.totalorder %v4158_v59, %v4026_v7 }
 0x13a   :  { %v4613_v14 = vsel %vm10720_vm2, %v4058_v49, 0  ;;  %vm10721_vm3 = vcmp.eq.s32.totalorder %v4158_v59, %v4032_v10  ;;  %vm10722_vm13 = vcmp.eq.s32.totalorder %v4170_v57, %v3972_v42  ;;  %vm10723_vm12 = vcmp.eq.s32.totalorder %v4170_v57, %v3987_v48 }
 0x13b   :  { %v4619_v27 = vsel %vm10721_vm3, %v4064_v55, 0  ;;  %v4625_v19 = vsel %vm10722_vm13, %v4030_v9, 0  ;;  %v567_v58 = vsel %vm10723_vm12, %v4038_v21, 0  ;;  %vm412_vm2 = vcmp.eq.s32.totalorder %v4161_v60, %v4018_v3 }
 0x13c   :  { %vm413_vm3 = vcmp.eq.s32.totalorder %v4161_v60, %v4014_v63  ;;  %vm414_vm5 = vcmp.eq.s32.totalorder %v4161_v60, %v4024_v6  ;;  %v653_v59 = vadd.s32 %v652_v4, %v4346_v25  ;;  %v672_v62 = vadd.s32 %v671_v35, %v4438_v1  ;;  %1576 = vperm.xlu1 %3655, %v137_v28   ;;  %v138_v28 = vld [vmem:[%s10374_s2 + $0x270] sm:$0xff] }
 0x13d   :  { %v690_v53 = vadd.s32 %v689_v33, %v554_v13  ;;  %v708_v22 = vadd.s32 %v707_v24, %v567_v58  ;;  %v4648_v26 = vsel %vm388_vm0, %v4036_v15, 0  ;;  %v568_v31 = vsel %vm392_vm15, %v4044_v36, 0  ;;  %v136_v58 = vld [vmem:[%s10374_s2 + $0x260] sm:$0xff] }
 0x13e   :  { %10724 = vst [vmem:[#allocation73_spill] sm:$0xff] %v4648_v26  ;;  %v569_v25 = vsel %vm393_vm1, %v4042_v32, 0  ;;  %vm10725_vm12 = vcmp.eq.s32.totalorder %v4170_v57, %v4012_v61  ;;  %vm416_vm0 = vcmp.eq.s32.totalorder %v4161_v60, %v4028_v8  ;;  %vm421_vm13 = vcmp.eq.s32.totalorder %v4173_v17, %v3982_v46  ;;  %1573 = vperm.xlu0 %3656, %v136_v58  }
 0x13f   :  { %v570_v1 = vsel %vm10725_vm12, %v4048_v39, 0  ;;  %vm422_vm15 = vcmp.eq.s32.totalorder %v4173_v17, %v3992_v50  ;;  %v654_v13 = vadd.s32 %v653_v59, %v4368_v18  ;;  %v673_v24 = vadd.s32 %v672_v62, %v4452_v34 }
 0x140   :  { %v691_v4 = vadd.s32 %v690_v53, %v555_v12  ;;  %v709_v35 = vadd.s32 %v708_v22, %v568_v31  ;;  %vm417_vm1 = vcmp.eq.s32.totalorder %v4161_v60, %v4026_v7  ;;  %vm10726_vm12 = vcmp.eq.s32.totalorder %v4170_v57, %v4007_v56 }
 0x141   :  { %v571_v33 = vsel %vm10726_vm12, %v4046_v37, 0  ;;  %v572_v18 = vsel %vm396_vm7, %v4052_v43, 0  ;;  %v4687_v34 = vsel %vm397_vm14, %v4050_v41, 0  ;;  %v4693_v12 = vsel %vm398_vm9, %v4056_v47, 0 }
 0x142   :  { %vm418_vm12 = vcmp.eq.s32.totalorder %v4161_v60, %v4032_v10  ;;  %vm423_vm14 = vcmp.eq.s32.totalorder %v4173_v17, %v3987_v48  ;;  %v674_v0 = vadd.s32 %v673_v24, %v4458_v16  ;;  %v692_v59 = vadd.s32 %v691_v4, %v4550_v23  ;;  %v139_v4 = vld [vmem:[%s10374_s2 + $0x278] sm:$0xff]  ;;  %1579 = vperm.xlu0 %3656, %v138_v28  }
 0x143   :  { %v710_v62 = vadd.s32 %v709_v35, %v569_v25  ;;  %v4710_v53 = vsel %vm399_vm6, %v4054_v45, 0  ;;  %v655_v22 = vadd.s32 %v654_v13, %v4374_v20  ;;  %v4721_v16 = vsel %vm400_vm4, %v4060_v51, 0  ;;  %1582 = vperm.xlu1 %3655, %v139_v4   ;;  %v141_v4 = vld [vmem:[%s10374_s2 + $0x288] sm:$0xff] }
 0x144   :  { %v581_v23 = vsel %vm405_vm11, %v4034_v11, 0  ;;  %vm10727_vm6 = vcmp.eq.s32.totalorder %v4161_v60, %v3992_v50  ;;  %vm425_vm7 = vcmp.eq.s32.totalorder %v4173_v17, %v3997_v52  ;;  %v675_v20 = vadd.s32 %v674_v0, %v4467_v38 }
 0x145   :  { %v582_v31 = vsel %vm10727_vm6, %v4040_v29, 0  ;;  %v693_v25 = vadd.s32 %v692_v59, %v4556_v30  ;;  %v711_v13 = vadd.s32 %v710_v62, %v570_v1  ;;  %vm10728_vm11 = vcmp.eq.s32.totalorder %v4170_v57, %v4026_v7  ;;  %v10734_v62 = vld [vmem:[#allocation61_spill] sm:$0xff] }
 0x146   :  { %v4743_v24 = vsel %vm10728_vm11, %v4058_v49, 0  ;;  %v4754_v38 = vsel %vm402_vm10, %v4064_v55, 0  ;;  %vm10729_vm4 = vcmp.eq.s32.totalorder %v4161_v60, %v3972_v42  ;;  %vm10731_vm11 = vcmp.eq.s32.totalorder %v4161_v60, %v3977_v44 }
 0x147   :  { %v4760_v30 = vsel %vm10729_vm4, %v4030_v9, 0  ;;  %v4766_v1 = vsel %vm10731_vm11, %v4036_v15, 0  ;;  %v728_v35 = vadd.s32 %v582_v31, %v581_v23  ;;  %v676_v57 = vadd.s32 %v675_v20, %v4473_v40  ;;  %v10735_v23 = vld [vmem:[#allocation65_spill] sm:$0xff]  ;;  %1830 = vperm.xlu1 %3655, %v141_v4   ;;  %v143_v4 = vld [vmem:[%s10374_s2 + $0x298] sm:$0xff] }
 0x148   :  { %10730 = vst [vmem:[#allocation74_spill] sm:$0xff] %v4760_v30  ;;  %10732 = vst [vmem:[#allocation75_spill] sm:$0xff] %v4766_v1  ;;  %v694_v58 = vadd.s32 %v693_v25, %v4572_v2  ;;  %v712_v0 = vadd.s32 %v711_v13, %v571_v33  ;;  %vm10733_vm11 = vcmp.eq.s32.totalorder %v4161_v60, %v3987_v48  ;;  %v10738_v33 = vld [vmem:[#allocation71_spill] sm:$0xff]  ;;  %v4828_v28 = vsel %vm413_vm3, %v4050_v41, 0 }
 0x149   :  { %v583_v59 = vsel %vm10733_vm11, %v4038_v21, 0  ;;  %v4788_v31 = vadd.s32 %v655_v22, %v10735_v23  ;;  %vm10736_vm4 = vcmp.eq.s32.totalorder %v4161_v60, %v4002_v54  ;;  %vm10737_vm6 = vcmp.eq.s32.totalorder %v4161_v60, %v3997_v52  ;;  %v10742_v23 = vld [vmem:[#allocation72_spill] sm:$0xff] }
 0x14a   :  { %v729_v1 = vadd.s32 %v728_v35, %v583_v59  ;;  %v584_v2 = vsel %vm10736_vm4, %v4044_v36, 0  ;;  %v585_v40 = vsel %vm10737_vm6, %v4042_v32, 0  ;;  %v695_v22 = vadd.s32 %v694_v58, %v10738_v33 }
 0x14b   :  { %v713_v20 = vadd.s32 %v712_v0, %v572_v18  ;;  %vm10739_vm9 = vcmp.eq.s32.totalorder %v4161_v60, %v4012_v61  ;;  %vm10740_vm4 = vcmp.eq.s32.totalorder %v4161_v60, %v4007_v56  ;;  %vm434_vm6 = vcmp.eq.s32.totalorder %v4173_v17, %v4032_v10  ;;  %v10741_v0 = vld [vmem:[#allocation68_spill] sm:$0xff]  ;;  %1836 = vperm.xlu1 %3655, %v143_v4  }
 0x14c   :  { %v586_v25 = vsel %vm10739_vm9, %v4048_v39, 0  ;;  %v587_v13 = vsel %vm10740_vm4, %v4046_v37, 0  ;;  %vm435_vm10 = vcmp.eq.s32.totalorder %v10734_v62, %v3972_v42  ;;  %vm439_vm11 = vcmp.eq.s32.totalorder %v10734_v62, %v3987_v48  ;;  %v145_v4 = vld [vmem:[%s10374_s2 + $0x2a8] sm:$0xff] }
 0x14d   :  { %v730_v18 = vadd.s32 %v729_v1, %v584_v2  ;;  %v588_v35 = vsel %vm412_vm2, %v4052_v43, 0  ;;  %v4834_v58 = vsel %vm414_vm5, %v4056_v47, 0  ;;  %v140_v1 = vld [vmem:[%s10374_s2 + $0x280] sm:$0xff]  ;;  %vm436_vm9 = vcmp.eq.s32.totalorder %v10734_v62, %v3977_v44 }
 0x14e   :  { %vm440_vm2 = vcmp.eq.s32.totalorder %v10734_v62, %v4002_v54  ;;  %v4844_v59 = vadd.s32 %v676_v57, %v10741_v0  ;;  %v696_v2 = vadd.s32 %v695_v22, %v10742_v23  ;;  %v714_v33 = vadd.s32 %v713_v20, %v4687_v34  ;;  %1827 = vperm.xlu0 %3656, %v140_v1  }
 0x14f   :  { %vm10743_vm5 = vcmp.eq.s32.totalorder %v4161_v60, %v4022_v5  ;;  %vm441_vm3 = vcmp.eq.s32.totalorder %v10734_v62, %v3997_v52  ;;  %v731_v26 = vadd.s32 %v730_v18, %v585_v40  ;;  %v4862_v57 = vsel %vm416_vm0, %v4060_v51, 0  ;;  %1842 = vperm.xlu1 %3655, %v145_v4  }
 0x150   :  { %v4852_v30 = vsel %vm10743_vm5, %v4054_v45, 0  ;;  %v597_v34 = vsel %vm421_vm13, %v4034_v11, 0  ;;  %v598_v22 = vsel %vm422_vm15, %v4040_v29, 0  ;;  %vm443_vm5 = vcmp.eq.s32.totalorder %v10734_v62, %v4007_v56 }
 0x151   :  { %vm444_vm4 = vcmp.eq.s32.totalorder %v10734_v62, %v4018_v3  ;;  %v697_v40 = vadd.s32 %v696_v2, %v4613_v14  ;;  %v715_v20 = vadd.s32 %v714_v33, %v4693_v12  ;;  %v4882_v18 = vsel %vm417_vm1, %v4058_v49, 0 }
 0x152   :  { %v749_v0 = vadd.s32 %v598_v22, %v597_v34  ;;  %vm445_vm13 = vcmp.eq.s32.totalorder %v10734_v62, %v4014_v63  ;;  %vm446_vm0 = vcmp.eq.s32.totalorder %v10734_v62, %v4024_v6  ;;  %v732_v14 = vadd.s32 %v731_v26, %v586_v25  ;;  %v142_v26 = vld [vmem:[%s10374_s2 + $0x290] sm:$0xff]  ;;  %v10746_v25 = vld [vmem:[#allocation62_spill] sm:$0xff] }
 0x153   :  { %v4897_v12 = vsel %vm418_vm12, %v4064_v55, 0  ;;  %vm10744_vm1 = vcmp.eq.s32.totalorder %v4173_v17, %v3972_v42  ;;  %v599_v23 = vsel %vm423_vm14, %v4038_v21, 0  ;;  %v716_v60 = vadd.s32 %v715_v20, %v4710_v53  ;;  %1833 = vperm.xlu0 %3656, %v142_v26  }
 0x154   :  { %v4903_v1 = vsel %vm10744_vm1, %v4030_v9, 0  ;;  %vm10747_vm1 = vcmp.eq.s32.totalorder %v4173_v17, %v3977_v44  ;;  %v750_v33 = vadd.s32 %v749_v0, %v599_v23  ;;  %vm10749_vm14 = vcmp.eq.s32.totalorder %v4173_v17, %v4002_v54 }
 0x155   :  { %10745 = vst [vmem:[#allocation61_spill] sm:$0xff] %v4903_v1  ;;  %v4921_v2 = vsel %vm10747_vm1, %v4036_v15, 0  ;;  %v600_v34 = vsel %vm10749_vm14, %v4044_v36, 0  ;;  %v733_v22 = vadd.s32 %v732_v14, %v587_v13  ;;  %v601_v53 = vsel %vm425_vm7, %v4042_v32, 0 }
 0x156   :  { %10748 = vst [vmem:[#allocation65_spill] sm:$0xff] %v4921_v2  ;;  %vm10750_vm1 = vcmp.eq.s32.totalorder %v4173_v17, %v4012_v61  ;;  %vm10751_vm14 = vcmp.eq.s32.totalorder %v4173_v17, %v4007_v56  ;;  %v4948_v13 = vadd.s32 %v697_v40, %v4619_v27  ;;  %v717_v14 = vadd.s32 %v716_v60, %v4721_v16 }
 0x157   :  { %v602_v20 = vsel %vm10750_vm1, %v4048_v39, 0  ;;  %v603_v0 = vsel %vm10751_vm14, %v4046_v37, 0  ;;  %v751_v23 = vadd.s32 %v750_v33, %v600_v34  ;;  %vm10752_vm7 = vcmp.eq.s32.totalorder %v4173_v17, %v4018_v3 }
 0x158   :  { %v604_v2 = vsel %vm10752_vm7, %v4052_v43, 0  ;;  %v734_v27 = vadd.s32 %v733_v22, %v588_v35  ;;  %vm10753_vm15 = vcmp.eq.s32.totalorder %v4173_v17, %v4014_v63  ;;  %vm10754_vm7 = vcmp.eq.s32.totalorder %v4173_v17, %v4024_v6  ;;  %v144_v35 = vld [vmem:[%s10374_s2 + $0x2a0] sm:$0xff] }
 0x159   :  { %v605_v16 = vsel %vm10753_vm15, %v4050_v41, 0  ;;  %v606_v40 = vsel %vm10754_vm7, %v4056_v47, 0  ;;  %vm10755_vm12 = vcmp.eq.s32.totalorder %v4173_v17, %v4022_v5  ;;  %vm458_vm15 = vcmp.eq.s32.totalorder %v10746_v25, %v4012_v61  ;;  %1839 = vperm.xlu0 %3656, %v144_v35   ;;  %v146_v35 = vld [vmem:[%s10374_s2 + $0x2b0] sm:$0xff] }
 0x15a   :  { %v4974_v26 = vsel %vm10755_vm12, %v4054_v45, 0  ;;  %v718_v60 = vadd.s32 %v717_v14, %v4743_v24  ;;  %v752_v33 = vadd.s32 %v751_v23, %v601_v53  ;;  %vm10756_vm12 = vcmp.eq.s32.totalorder %v10734_v62, %v3982_v46 }
 0x15b   :  { %v613_v34 = vsel %vm10756_vm12, %v4034_v11, 0  ;;  %vm10757_vm7 = vcmp.eq.s32.totalorder %v10734_v62, %v3992_v50  ;;  %v735_v1 = vadd.s32 %v734_v27, %v4828_v28  ;;  %vm10758_vm1 = vcmp.eq.s32.totalorder %v4173_v17, %v4028_v8 }
 0x15c   :  { %v614_v22 = vsel %vm10757_vm7, %v4040_v29, 0  ;;  %v5001_v24 = vsel %vm10758_vm1, %v4060_v51, 0  ;;  %vm10759_vm12 = vcmp.eq.s32.totalorder %v4173_v17, %v4026_v7  ;;  %vm461_vm7 = vcmp.eq.s32.totalorder %v10746_v25, %v4014_v63  ;;  %v153_v63 = vld [vmem:[%s10374_s2 + $0x2e8] sm:$0xff] }
 0x15d   :  { %v5007_v53 = vsel %vm10759_vm12, %v4058_v49, 0  ;;  %v770_v14 = vadd.s32 %v614_v22, %v613_v34  ;;  %vm462_vm14 = vcmp.eq.s32.totalorder %v10746_v25, %v4024_v6  ;;  %v753_v28 = vadd.s32 %v752_v33, %v602_v20  ;;  %v147_v20 = vld [vmem:[%s10374_s2 + $0x2b8] sm:$0xff]  ;;  %1845 = vperm.xlu0 %3656, %v146_v35   ;;  %v148_v35 = vld [vmem:[%s10374_s2 + $0x2c0] sm:$0xff] }
 0x15e   :  { %v5017_v23 = vsel %vm434_vm6, %v4064_v55, 0  ;;  %v5023_v27 = vsel %vm435_vm10, %v4030_v9, 0  ;;  %v615_v4 = vsel %vm439_vm11, %v4038_v21, 0  ;;  %v736_v17 = vadd.s32 %v735_v1, %v4834_v58  ;;  %1848 = vperm.xlu1 %3655, %v147_v20  }
 0x15f   :  { %10760 = vst [vmem:[#allocation71_spill] sm:$0xff] %v5023_v27  ;;  %v5037_v33 = vsel %vm436_vm9, %v4036_v15, 0  ;;  %v771_v34 = vadd.s32 %v770_v14, %v615_v4  ;;  %v616_v22 = vsel %vm440_vm2, %v4044_v36, 0  ;;  %v5047_v27 = vadd.s32 %v718_v60, %v4754_v38 }
 0x160   :  { %10761 = vst [vmem:[#allocation68_spill] sm:$0xff] %v5037_v33  ;;  %v754_v58 = vadd.s32 %v753_v28, %v603_v0  ;;  %v617_v1 = vsel %vm441_vm3, %v4042_v32, 0  ;;  %vm10762_vm10 = vcmp.eq.s32.totalorder %v10734_v62, %v4012_v61  ;;  %v737_v4 = vadd.s32 %v736_v17, %v4852_v30 }
 0x161   :  { %v618_v14 = vsel %vm10762_vm10, %v4048_v39, 0  ;;  %v772_v33 = vadd.s32 %v771_v34, %v616_v22  ;;  %v619_v38 = vsel %vm443_vm5, %v4046_v37, 0  ;;  %v620_v0 = vsel %vm444_vm4, %v4052_v43, 0  ;;  %1851 = vperm.xlu0 %3656, %v148_v35   ;;  %v152_v35 = vld [vmem:[%s10374_s2 + $0x2e0] sm:$0xff] }
 0x162   :  { %v755_v60 = vadd.s32 %v754_v58, %v604_v2  ;;  %v621_v28 = vsel %vm445_vm13, %v4050_v41, 0  ;;  %v622_v30 = vsel %vm446_vm0, %v4056_v47, 0  ;;  %vm10763_vm11 = vcmp.eq.s32.totalorder %v10734_v62, %v4022_v5  ;;  %v149_v2 = vld [vmem:[%s10374_s2 + $0x2c8] sm:$0xff] }
 0x163   :  { %v5078_v17 = vsel %vm10763_vm11, %v4054_v45, 0  ;;  %v738_v20 = vadd.s32 %v737_v4, %v4862_v57  ;;  %v773_v34 = vadd.s32 %v772_v33, %v617_v1  ;;  %vm10764_vm6 = vcmp.eq.s32.totalorder %v10746_v25, %v3982_v46  ;;  %1854 = vperm.xlu1 %3655, %v149_v2   ;;  %v10780_v2 = vld [vmem:[#allocation70_spill] sm:$0xff] }
 0x164   :  { %v629_v22 = vsel %vm10764_vm6, %v4034_v11, 0  ;;  %vm10765_vm9 = vcmp.eq.s32.totalorder %v10746_v25, %v3992_v50  ;;  %v756_v15 = vadd.s32 %v755_v60, %v605_v16  ;;  %vm10766_vm2 = vcmp.eq.s32.totalorder %v10734_v62, %v4028_v8  ;;  %v10779_v60 = vld [vmem:[#allocation69_spill] sm:$0xff] }
 0x165   :  { %v630_v58 = vsel %vm10765_vm9, %v4040_v29, 0  ;;  %v5099_v57 = vsel %vm10766_vm2, %v4060_v51, 0  ;;  %vm10767_vm3 = vcmp.eq.s32.totalorder %v10734_v62, %v4026_v7  ;;  %v739_v50 = vadd.s32 %v738_v20, %v4882_v18 }
 0x166   :  { %v5105_v46 = vsel %vm10767_vm3, %v4058_v49, 0  ;;  %v791_v11 = vadd.s32 %v630_v58, %v629_v22  ;;  %v774_v29 = vadd.s32 %v773_v34, %v618_v14  ;;  %vm10768_vm4 = vcmp.eq.s32.totalorder %v10734_v62, %v4032_v10  ;;  %v10782_v22 = vld [vmem:[#allocation74_spill] sm:$0xff] }
 0x167   :  { %v5112_v16 = vsel %vm10768_vm4, %v4064_v55, 0  ;;  %vm10769_vm5 = vcmp.eq.s32.totalorder %v10746_v25, %v3987_v48  ;;  %v757_v1 = vadd.s32 %v756_v15, %v606_v40  ;;  %vm10770_vm13 = vcmp.eq.s32.totalorder %v10746_v25, %v3972_v42  ;;  %v151_v48 = vld [vmem:[%s10374_s2 + $0x2d8] sm:$0xff]  ;;  %v10776_v40 = vld [vmem:[#allocation64_spill] sm:$0xff] }
 0x168   :  { %v631_v33 = vsel %vm10769_vm5, %v4038_v21, 0  ;;  %v5122_v4 = vsel %vm10770_vm13, %v4030_v9, 0  ;;  %vm10771_vm0 = vcmp.eq.s32.totalorder %v10746_v25, %v4002_v54  ;;  %v775_v21 = vadd.s32 %v774_v29, %v619_v38  ;;  %v150_v9 = vld [vmem:[%s10374_s2 + $0x2d0] sm:$0xff]  ;;  %1860 = vperm.xlu1 %3655, %v151_v48  }
 0x169   :  { %v792_v18 = vadd.s32 %v791_v11, %v631_v33  ;;  %v632_v62 = vsel %vm10771_vm0, %v4044_v36, 0  ;;  %vm10772_vm1 = vcmp.eq.s32.totalorder %v10746_v25, %v3997_v52  ;;  %v634_v42 = vsel %vm458_vm15, %v4048_v39, 0  ;;  %1857 = vperm.xlu0 %3656, %v150_v9   ;;  %v10784_v9 = vld [vmem:[#allocation61_spill] sm:$0xff] }
 0x16a   :  { %v633_v15 = vsel %vm10772_vm1, %v4042_v32, 0  ;;  %vm10773_vm12 = vcmp.eq.s32.totalorder %v10746_v25, %v4007_v56  ;;  %vm463_vm10 = vcmp.eq.s32.totalorder %v10746_v25, %v4022_v5  ;;  %v740_v52 = vadd.s32 %v739_v50, %v4897_v12  ;;  %v10775_v12 = vld [vmem:[#allocation63_spill] sm:$0xff] }
 0x16b   :  { %v635_v54 = vsel %vm10773_vm12, %v4046_v37, 0  ;;  %v758_v32 = vadd.s32 %v757_v1, %v4974_v26  ;;  %v793_v36 = vadd.s32 %v792_v18, %v632_v62  ;;  %vm10774_vm15 = vcmp.eq.s32.totalorder %v10746_v25, %v4018_v3  ;;  %v10777_v3 = vld [vmem:[#allocation66_spill] sm:$0xff] }
 0x16c   :  { %v636_v61 = vsel %vm10774_vm15, %v4052_v43, 0  ;;  %v776_v39 = vadd.s32 %v775_v21, %v620_v0  ;;  %v637_v56 = vsel %vm461_vm7, %v4050_v41, 0  ;;  %v638_v37 = vsel %vm462_vm14, %v4056_v47, 0  ;;  %v10778_v43 = vld [vmem:[#allocation67_spill] sm:$0xff]  ;;  %v10781_v47 = vld [vmem:[#allocation73_spill] sm:$0xff]  ;;  %1866 = vperm.xlu1 %3655, %v153_v63  }
 0x16d   :  { %v643_v26 = vadd.s32 %v10776_v40, %v10775_v12  ;;  %v759_v14 = vadd.s32 %v758_v32, %v5001_v24  ;;  %v794_v38 = vadd.s32 %v793_v36, %v633_v15  ;;  %v664_v0 = vadd.s32 %v10778_v43, %v10777_v3  ;;  %v10783_v24 = vld [vmem:[#allocation75_spill] sm:$0xff]  ;;  %1863 = vperm.xlu0 %3656, %v152_v35  }
 0x16e   :  { %v685_v20 = vadd.s32 %v10780_v2, %v10779_v60  ;;  %v777_v6 = vadd.s32 %v776_v39, %v621_v28  ;;  %v706_v34 = vadd.s32 %v10781_v47, %v4625_v19  ;;  %v727_v58 = vadd.s32 %v10783_v24, %v10782_v22  ;;  %v10786_v24 = vld [vmem:[#allocation24_spill] sm:$0xff] }
 0x16f   :  { %v657_v41 = vadd.s32 %v4788_v31, %v643_v26  ;;  %vm452_vm14 = vcmp.eq.s32.totalorder %v10746_v25, %v3977_v44  ;;  %vm464_vm7 = vcmp.eq.s32.totalorder %v10746_v25, %v4028_v8  ;;  %vm465_vm11 = vcmp.eq.s32.totalorder %v10746_v25, %v4026_v7 }
 0x170   :  { %v760_v31 = vadd.s32 %v759_v14, %v5007_v53  ;;  %v795_v28 = vadd.s32 %v794_v38, %v634_v42  ;;  %v678_v19 = vadd.s32 %v4844_v59, %v664_v0  ;;  %v699_v11 = vadd.s32 %v4948_v13, %v685_v20  ;;  %v155_v53 = vld [vmem:[%s10374_s2 + $0x2f8] sm:$0xff] }
 0x171   :  { %v778_v50 = vadd.s32 %v777_v6, %v622_v30  ;;  %v658_v29 = vrot.slane %v657_v41, 4  ;;  %v720_v33 = vadd.s32 %v5047_v27, %v706_v34  ;;  %v741_v1 = vadd.s32 %v740_v52, %v727_v58  ;;  %v154_v27 = vld [vmem:[%s10374_s2 + $0x2f0] sm:$0xff]  ;;  %1872 = vperm.xlu1 %3655, %v155_v53   ;;  %v10788_v58 = vld [vmem:[#allocation68_spill] sm:$0xff] }
 0x172   :  { %v761_v18 = vadd.s32 %v760_v31, %v5017_v23  ;;  %v796_v62 = vadd.s32 %v795_v28, %v635_v54  ;;  %v679_v48 = vrot.slane %v678_v19, 4  ;;  %v700_v21 = vrot.slane %v699_v11, 4  ;;  %v10785_v52 = vld [vmem:[#allocation65_spill] sm:$0xff]  ;;  %1869 = vperm.xlu0 %3656, %v154_v27  }
 0x173   :  { %v779_v59 = vadd.s32 %v778_v50, %v5078_v17  ;;  %v659_v15 = vadd.s32 %v658_v29, %v657_v41  ;;  %v721_v13 = vrot.slane %v720_v33, 4  ;;  %v742_v30 = vrot.slane %v741_v1, 4 }
 0x174   :  { %vm466_vm6 = vcmp.eq.s32.totalorder %v10746_v25, %v4032_v10  ;;  %v797_v23 = vadd.s32 %v796_v62, %v636_v61  ;;  %v680_v42 = vadd.s32 %v679_v48, %v678_v19  ;;  %v701_v54 = vadd.s32 %v700_v21, %v699_v11 }
 0x175   :  { %v748_v32 = vadd.s32 %v10785_v52, %v10784_v9  ;;  %v780_v36 = vadd.s32 %v779_v59, %v5099_v57  ;;  %v660_v39 = vrot.slane %v659_v15, 2  ;;  %v722_v17 = vadd.s32 %v721_v13, %v720_v33 }
 0x176   :  { %v743_v12 = vadd.s32 %v742_v30, %v741_v1  ;;  %v798_v40 = vadd.s32 %v797_v23, %v637_v56  ;;  %v681_v26 = vrot.slane %v680_v42, 2  ;;  %v702_v14 = vrot.slane %v701_v54, 2 }
 0x177   :  { %v762_v38 = vadd.s32 %v761_v18, %v748_v32  ;;  %v781_v3 = vadd.s32 %v780_v36, %v5105_v46  ;;  %v639_v61 = vsel %vm463_vm10, %v4054_v45, 0  ;;  %v661_v43 = vadd.s32 %v660_v39, %v659_v15 }
 0x178   :  { %v723_v0 = vrot.slane %v722_v17, 2  ;;  %v799_v60 = vadd.s32 %v798_v40, %v638_v37  ;;  %v682_v57 = vadd.s32 %v681_v26, %v680_v42  ;;  %v703_v2 = vadd.s32 %v702_v14, %v701_v54  ;;  %v10787_v37 = vld [vmem:[#allocation71_spill] sm:$0xff] }
 0x179   :  { %v763_v20 = vrot.slane %v762_v38, 4  ;;  %v782_v63 = vadd.s32 %v781_v3, %v5112_v16  ;;  %v662_v56 = vrot.slane %v661_v43, 1  ;;  %v744_v41 = vrot.slane %v743_v12, 2 }
 0x17a   :  { %v724_v6 = vadd.s32 %v723_v0, %v722_v17  ;;  %v800_v47 = vadd.s32 %v799_v60, %v639_v61  ;;  %v683_v34 = vrot.slane %v682_v57, 1  ;;  %v704_v22 = vrot.slane %v703_v2, 1 }
 0x17b   :  { %v764_v46 = vadd.s32 %v763_v20, %v762_v38  ;;  %v628_v5 = vsel %vm452_vm14, %v10786_v24, 0  ;;  %v640_v45 = vsel %vm464_vm7, %v4060_v51, 0  ;;  %v641_v16 = vsel %vm465_vm11, %v4058_v49, 0  ;;  %v10808_v24 = vld [vmem:[#allocation4_spill] sm:$0xff] }
 0x17c   :  { %v769_v35 = vadd.s32 %v10788_v58, %v10787_v37  ;;  %v801_v31 = vadd.s32 %v800_v47, %v640_v45  ;;  %v684_v28 = vadd.s32 %v683_v34, %v682_v57  ;;  %v725_v19 = vrot.slane %v724_v6, 1  ;;  %v10811_v37 = vld [vmem:[#allocation10_spill] sm:$0xff] }
 0x17d   :  { %v765_v11 = vrot.slane %v764_v46, 2  ;;  %v663_v50 = vadd.s32 %v662_v56, %v661_v43  ;;  %v705_v44 = vadd.s32 %v704_v22, %v703_v2  ;;  %v745_v29 = vadd.s32 %v744_v41, %v743_v12 }
 0x17e   :  { %v783_v33 = vadd.s32 %v782_v63, %v769_v35  ;;  %v802_v1 = vadd.s32 %v801_v31, %v641_v16  ;;  %vm10496_vm9 = vcmask 1041409   ;;  %vm10495_vm2 = vcmask 1042434  }
 0x17f   :  { %v642_v7 = vsel %vm466_vm6, %v4064_v55, 0  ;;  %v812_v49 = vsel %vm10496_vm9, %v684_v28, %v663_v50  ;;  %v726_v18 = vadd.s32 %v725_v19, %v724_v6  ;;  %v766_v62 = vadd.s32 %v765_v11, %v764_v46  ;;  %v10807_v46 = vld [vmem:[#allocation56_spill] sm:$0xff]  ;;  %v3657_v50 = vld [vmem:[%s10373_s1] sm:$0xff] }
 0x180   :  { %v784_v8 = vrot.slane %v783_v33, 4  ;;  %v803_v51 = vadd.s32 %v802_v1, %v642_v7  ;;  %v790_v48 = vadd.s32 %v628_v5, %v5122_v4  ;;  %v746_v21 = vrot.slane %v745_v29, 1  ;;  %v10814_v1 = vld [vmem:[#allocation42_spill] sm:$0xff]  ;;  %v10815_v7 = vld [vmem:[#allocation41_spill] sm:$0xff] }
 0x181   :  { %v814_v59 = vsel %vm10495_vm2, %v705_v44, %v812_v49  ;;  %vm10444_vm3 = vcmask 1043459   ;;  %v767_v30 = vrot.slane %v766_v62, 1  ;;  %vm10443_vm4 = vcmask 1044484  }
 0x182   :  { %v785_v53 = vadd.s32 %v784_v8, %v783_v33  ;;  %v804_v15 = vadd.s32 %v803_v51, %v790_v48  ;;  %v816_v10 = vsel %vm10444_vm3, %v726_v18, %v814_v59  ;;  %v747_v55 = vadd.s32 %v746_v21, %v745_v29  ;;  %v3658_v29 = vld [vmem:[%s10372_s0 + $0x8] sm:$0xff] }
 0x183   :  { %vm10442_vm5 = vcmask 1045509   ;;  %v768_v4 = vadd.s32 %v767_v30, %v766_v62  ;;  %vm10441_vm13 = vcmask 1046534   ;;  %vm10440_vm0 = vcmask 1047559  }
 0x184   :  { %v786_v13 = vrot.slane %v785_v53, 2  ;;  %v805_v27 = vrot.slane %v804_v15, 4  ;;  %v818_v54 = vsel %vm10443_vm4, %v747_v55, %v816_v10  ;;  %v5276_v5 = vrot.slane %v10808_v24, %v10807_v46 }
 0x185   :  { %v820_v32 = vsel %vm10442_vm5, %v768_v4, %v818_v54  ;;  %v10812_v58 = vmov 0   ;;  %v47_v44 = vmul.u32 67600, %v3657_v50  ;;  %v48_v33 = vmul.u32 67600, %v3658_v29 }
 0x186   :  { %v787_v25 = vadd.s32 %v786_v13, %v785_v53  ;;  %v806_v23 = vadd.s32 %v805_v27, %v804_v15  ;;  %vm10816_vm11 = vcmask 1039360  }
 0x187   :  { %v54_v8 = vsel %vm10816_vm11, %v10815_v7, %v10814_v1  ;;  %v56_v48 = vadd.s32 %v10814_v1, %v48_v33 }
 0x188   :  { %v788_v42 = vrot.slane %v787_v25, 1  ;;  %v807_v9 = vrot.slane %v806_v23, 2  ;;  %v55_v62 = vadd.s32 %v54_v8, %v47_v44 }
 0x18a   :  { %v808_v52 = vadd.s32 %v807_v9, %v806_v23  ;;  %v789_v36 = vadd.s32 %v788_v42, %v787_v25 }
 0x18c   :  { %v809_v39 = vrot.slane %v808_v52, 1  ;;  %v822_v17 = vsel %vm10441_vm13, %v789_v36, %v820_v32 }
 0x18e   :  { %v810_v12 = vadd.s32 %v809_v39, %v808_v52 }
 0x190   :  { %v824_v40 = vsel %vm10440_vm0, %v810_v12, %v822_v17  ;;  %v5238_v26 = vpop.permute.xlu1 %1451 }
 0x191   :  { %825 = vst [vmem:[%s10376_s4] sm:$0xff] %v824_v40  ;;  %10789 = vst [vmem:[#allocation72_spill] sm:$0xff] %v5238_v26  ;;  %v5240_v14 = vpop.permute.xlu0 %1449 }
 0x192   :  { %10790 = vst [vmem:[#allocation62_spill] sm:$0xff] %v5240_v14 }
 0x19d   :  { %v5242_v38 = vpop.permute.xlu1 %1540 }
 0x19e   :  { %10791 = vst [vmem:[#allocation63_spill] sm:$0xff] %v5242_v38  ;;  %v5244_v3 = vpop.permute.xlu0 %1537 }
 0x19f   :  { %10792 = vst [vmem:[#allocation64_spill] sm:$0xff] %v5244_v3 }
 0x1a1   :  { %v5246_v61 = vpop.permute.xlu1 %1546 }
 0x1a2   :  { %10793 = vst [vmem:[#allocation66_spill] sm:$0xff] %v5246_v61  ;;  %v5248_v43 = vpop.permute.xlu0 %1543  ;;  %v10864_v61 = vld [vmem:[#allocation17_spill] sm:$0xff] }
 0x1a3   :  { %10794 = vst [vmem:[#allocation67_spill] sm:$0xff] %v5248_v43 }
 0x1a5   :  { %v5250_v0 = vpop.permute.xlu1 %1552 }
 0x1a6   :  { %10795 = vst [vmem:[#allocation69_spill] sm:$0xff] %v5250_v0  ;;  %v5252_v60 = vpop.permute.xlu0 %1549 }
 0x1a7   :  { %10796 = vst [vmem:[#allocation70_spill] sm:$0xff] %v5252_v60 }
 0x1a9   :  { %v5254_v57 = vpop.permute.xlu1 %1558 }
 0x1aa   :  { %10797 = vst [vmem:[#allocation73_spill] sm:$0xff] %v5254_v57  ;;  %v5256_v2 = vpop.permute.xlu0 %1555 }
 0x1ab   :  { %10798 = vst [vmem:[#allocation74_spill] sm:$0xff] %v5256_v2 }
 0x1ad   :  { %v5258_v20 = vpop.permute.xlu1 %1564 }
 0x1ae   :  { %10799 = vst [vmem:[#allocation75_spill] sm:$0xff] %v5258_v20 }
 0x1af   :  { %v5260_v63 = vpop.permute.xlu0 %1561 }
 0x1b0   :  { %10800 = vst [vmem:[#allocation61_spill] sm:$0xff] %v5260_v63 }
 0x1b3   :  { %v5262_v56 = vpop.permute.xlu1 %1570  ;;  %v5264_v6 = vpop.permute.xlu0 %1567 }
 0x1b4   :  { %10801 = vst [vmem:[#allocation65_spill] sm:$0xff] %v5262_v56  ;;  %10802 = vst [vmem:[#allocation24_spill] sm:$0xff] %v5264_v6 }
 0x1b7   :  { %v5266_v41 = vpop.permute.xlu1 %1576 }
 0x1b8   :  { %10803 = vst [vmem:[#allocation71_spill] sm:$0xff] %v5266_v41 }
 0x1b9   :  { %v5268_v47 = vpop.permute.xlu0 %1573 }
 0x1ba   :  { %10804 = vst [vmem:[#allocation68_spill] sm:$0xff] %v5268_v47 }
 0x1bd   :  { %v5272_v22 = vpop.permute.xlu0 %1579 }
 0x1be   :  { %v5270_v34 = vpop.permute.xlu1 %1582  ;;  %10806 = vst [vmem:[#allocation77_spill] sm:$0xff] %v5272_v22 }
 0x1bf   :  { %10805 = vst [vmem:[#allocation76_spill] sm:$0xff] %v5270_v34 }
 0x1c2   :  { %v5278_v45 = vpop.permute.xlu1 %1830 }
 0x1c3   :  { %10809 = vst [vmem:[#allocation4_spill] sm:$0xff] %v5278_v45  ;;  %vm1877_vm10 = vcmp.eq.s32.totalorder %v10811_v37, %v5278_v45  ;;  %vm1876_vm15 = vcmp.eq.s32.totalorder %v5276_v5, %v5278_v45 }
 0x1c4   :  { %v2133_v19 = vsel %vm1877_vm10, 1, %v10812_v58  ;;  %v2132_v11 = vsel %vm1876_vm15, 1, %v10812_v58 }
 0x1c6   :  { %v5317_v18 = vpop.permute.xlu1 %1836 }
 0x1c7   :  { %10817 = vst [vmem:[#allocation42_spill] sm:$0xff] %v5317_v18  ;;  %vm1881_vm6 = vcmp.eq.s32.totalorder %v10811_v37, %v5317_v18 }
 0x1c8   :  { %v2137_v53 = vsel %vm1881_vm6, 1, %v10812_v58 }
 0x1c9   :  { %v5280_v16 = vpop.permute.xlu0 %1827 }
 0x1ca   :  { %10810 = vst [vmem:[#allocation78_spill] sm:$0xff] %v5280_v16  ;;  %vm1875_vm1 = vcmp.eq.s32.totalorder %v10811_v37, %v5280_v16  ;;  %vm1874_vm12 = vcmp.eq.s32.totalorder %v5276_v5, %v5280_v16  ;;  %v5336_v15 = vpop.permute.xlu1 %1842 }
 0x1cb   :  { %v2131_v35 = vsel %vm1875_vm1, 1, %v10812_v58  ;;  %v2130_v31 = vsel %vm1874_vm12, 1, %v10812_v58  ;;  %vm1880_vm1 = vcmp.eq.s32.totalorder %v5276_v5, %v5317_v18  ;;  %10819 = vst [vmem:[#allocation79_spill] sm:$0xff] %v5336_v15  ;;  %vm1885_vm15 = vcmp.eq.s32.totalorder %v10811_v37, %v5336_v15 }
 0x1cc   :  { %2388 = vrot.lane.b32.xlu1 %v2131_v35, %s3661_s20  ;;  %2386 = vrot.lane.b32.xlu0 %v2130_v31, %s3661_s20  ;;  %v2136_v59 = vsel %vm1880_vm1, 1, %v10812_v58  ;;  %v2141_v10 = vsel %vm1885_vm15, 1, %v10812_v58 }
 0x1ce   :  { %v5294_v28 = vpop.permute.xlu0 %1833 }
 0x1cf   :  { %10813 = vst [vmem:[#allocation10_spill] sm:$0xff] %v5294_v28  ;;  %vm1879_vm14 = vcmp.eq.s32.totalorder %v10811_v37, %v5294_v28  ;;  %vm1878_vm7 = vcmp.eq.s32.totalorder %v5276_v5, %v5294_v28 }
 0x1d0   :  { %2392 = vrot.lane.b32.xlu1 %v2133_v19, %s3661_s20  ;;  %2390 = vrot.lane.b32.xlu0 %v2132_v11, %s3661_s20  ;;  %v2135_v49 = vsel %vm1879_vm14, 1, %v10812_v58  ;;  %v2134_v51 = vsel %vm1878_vm7, 1, %v10812_v58  ;;  %vm1884_vm14 = vcmp.eq.s32.totalorder %v5276_v5, %v5336_v15 }
 0x1d1   :  { %v2140_v55 = vsel %vm1884_vm14, 1, %v10812_v58 }
 0x1d4   :  { %2396 = vrot.lane.b32.xlu1 %v2135_v49, %s3661_s20  ;;  %2394 = vrot.lane.b32.xlu0 %v2134_v51, %s3661_s20  ;;  %v5326_v21 = vpop.permute.xlu0 %1839 }
 0x1d5   :  { %10818 = vst [vmem:[#allocation41_spill] sm:$0xff] %v5326_v21  ;;  %vm1883_vm12 = vcmp.eq.s32.totalorder %v10811_v37, %v5326_v21  ;;  %vm1882_vm10 = vcmp.eq.s32.totalorder %v5276_v5, %v5326_v21 }
 0x1d6   :  { %v2139_v13 = vsel %vm1883_vm12, 1, %v10812_v58  ;;  %v2138_v30 = vsel %vm1882_vm10, 1, %v10812_v58 }
 0x1d8   :  { %828 = vrot.lane.b32.xlu1 %v56_v48, %s3662_s21  ;;  %826 = vrot.lane.b32.xlu0 %v55_v62, %s3662_s21  ;;  %v5346_v27 = vpop.permute.xlu0 %1845  ;;  %v10830_v62 = vld [vmem:[#allocation6_spill] sm:$0xff] }
 0x1d9   :  { %10820 = vst [vmem:[#allocation80_spill] sm:$0xff] %v5346_v27  ;;  %vm1887_vm7 = vcmp.eq.s32.totalorder %v10811_v37, %v5346_v27  ;;  %vm1886_vm11 = vcmp.eq.s32.totalorder %v5276_v5, %v5346_v27  ;;  %v5356_v25 = vpop.permute.xlu1 %1848  ;;  %v5448_v48 = vrot.slane %v10830_v62, %v10807_v46 }
 0x1da   :  { %10821 = vst [vmem:[#allocation81_spill] sm:$0xff] %v5356_v25  ;;  %v2143_v23 = vsel %vm1887_vm7, 1, %v10812_v58  ;;  %v2142_v42 = vsel %vm1886_vm11, 1, %v10812_v58  ;;  %vm1889_vm6 = vcmp.eq.s32.totalorder %v10811_v37, %v5356_v25  ;;  %vm1888_vm1 = vcmp.eq.s32.totalorder %v5276_v5, %v5356_v25 }
 0x1db   :  { %v2145_v4 = vsel %vm1889_vm6, 1, %v10812_v58  ;;  %v2144_v9 = vsel %vm1888_vm1, 1, %v10812_v58 }
 0x1dc   :  { %2400 = vrot.lane.b32.xlu1 %v2137_v53, %s3661_s20  ;;  %2398 = vrot.lane.b32.xlu0 %v2136_v59, %s3661_s20  ;;  %v5366_v54 = vpop.permute.xlu0 %1851 }
 0x1dd   :  { %10822 = vst [vmem:[#allocation82_spill] sm:$0xff] %v5366_v54  ;;  %vm1891_vm12 = vcmp.eq.s32.totalorder %v10811_v37, %v5366_v54  ;;  %vm1890_vm10 = vcmp.eq.s32.totalorder %v5276_v5, %v5366_v54 }
 0x1de   :  { %v5376_v52 = vpop.permute.xlu1 %1854  ;;  %v2147_v32 = vsel %vm1891_vm12, 1, %v10812_v58  ;;  %v2146_v36 = vsel %vm1890_vm10, 1, %v10812_v58 }
 0x1df   :  { %10823 = vst [vmem:[#allocation83_spill] sm:$0xff] %v5376_v52  ;;  %vm1893_vm15 = vcmp.eq.s32.totalorder %v10811_v37, %v5376_v52  ;;  %vm1892_vm14 = vcmp.eq.s32.totalorder %v5276_v5, %v5376_v52 }
 0x1e0   :  { %2404 = vrot.lane.b32.xlu1 %v2139_v13, %s3661_s20  ;;  %2402 = vrot.lane.b32.xlu0 %v2138_v30, %s3661_s20  ;;  %v2149_v17 = vsel %vm1893_vm15, 1, %v10812_v58  ;;  %v2148_v12 = vsel %vm1892_vm14, 1, %v10812_v58  ;;  %v10831_v13 = vld [vmem:[#allocation14_spill] sm:$0xff] }
 0x1e3   :  { %v5396_v40 = vpop.permute.xlu1 %1860 }
 0x1e4   :  { %2408 = vrot.lane.b32.xlu1 %v2141_v10, %s3661_s20  ;;  %2406 = vrot.lane.b32.xlu0 %v2140_v55, %s3661_s20  ;;  %v5386_v39 = vpop.permute.xlu0 %1857  ;;  %10825 = vst [vmem:[#allocation85_spill] sm:$0xff] %v5396_v40  ;;  %vm1897_vm6 = vcmp.eq.s32.totalorder %v10811_v37, %v5396_v40  ;;  %vm1896_vm1 = vcmp.eq.s32.totalorder %v5276_v5, %v5396_v40 }
 0x1e5   :  { %10824 = vst [vmem:[#allocation84_spill] sm:$0xff] %v5386_v39  ;;  %vm1895_vm7 = vcmp.eq.s32.totalorder %v10811_v37, %v5386_v39  ;;  %vm1894_vm11 = vcmp.eq.s32.totalorder %v5276_v5, %v5386_v39  ;;  %v2153_v19 = vsel %vm1897_vm6, 1, %v10812_v58  ;;  %v2152_v11 = vsel %vm1896_vm1, 1, %v10812_v58 }
 0x1e6   :  { %v2151_v24 = vsel %vm1895_vm7, 1, %v10812_v58  ;;  %v2150_v35 = vsel %vm1894_vm11, 1, %v10812_v58 }
 0x1e7   :  { %v5416_v50 = vpop.permute.xlu1 %1866 }
 0x1e8   :  { %2412 = vrot.lane.b32.xlu1 %v2143_v23, %s3661_s20  ;;  %2410 = vrot.lane.b32.xlu0 %v2142_v42, %s3661_s20  ;;  %v5406_v31 = vpop.permute.xlu0 %1863  ;;  %10827 = vst [vmem:[#allocation87_spill] sm:$0xff] %v5416_v50  ;;  %vm1901_vm15 = vcmp.eq.s32.totalorder %v10811_v37, %v5416_v50  ;;  %vm1900_vm14 = vcmp.eq.s32.totalorder %v5276_v5, %v5416_v50 }
 0x1e9   :  { %10826 = vst [vmem:[#allocation86_spill] sm:$0xff] %v5406_v31  ;;  %vm1899_vm12 = vcmp.eq.s32.totalorder %v10811_v37, %v5406_v31  ;;  %vm1898_vm10 = vcmp.eq.s32.totalorder %v5276_v5, %v5406_v31  ;;  %v2157_v1 = vsel %vm1901_vm15, 1, %v10812_v58  ;;  %v2156_v7 = vsel %vm1900_vm14, 1, %v10812_v58 }
 0x1ea   :  { %v2155_v44 = vsel %vm1899_vm12, 1, %v10812_v58  ;;  %v2154_v29 = vsel %vm1898_vm10, 1, %v10812_v58  ;;  %vm1907_vm12 = vcmp.eq.s32.totalorder %v10831_v13, %v5280_v16  ;;  %vm1906_vm10 = vcmp.eq.s32.totalorder %v5448_v48, %v5280_v16 }
 0x1eb   :  { %vm1909_vm15 = vcmp.eq.s32.totalorder %v10831_v13, %v5278_v45  ;;  %vm1908_vm14 = vcmp.eq.s32.totalorder %v5448_v48, %v5278_v45 }
 0x1ec   :  { %2416 = vrot.lane.b32.xlu1 %v2145_v4, %s3661_s20  ;;  %2414 = vrot.lane.b32.xlu0 %v2144_v9, %s3661_s20  ;;  %v5436_v8 = vpop.permute.xlu1 %1872  ;;  %v2165_v30 = vsel %vm1909_vm15, 1, %v10812_v58  ;;  %v2164_v10 = vsel %vm1908_vm14, 1, %v10812_v58  ;;  %vm1917_vm15 = vcmp.eq.s32.totalorder %v10831_v13, %v5336_v15  ;;  %vm1916_vm14 = vcmp.eq.s32.totalorder %v5448_v48, %v5336_v15 }
 0x1ed   :  { %v5426_v33 = vpop.permute.xlu0 %1869  ;;  %10829 = vst [vmem:[#allocation89_spill] sm:$0xff] %v5436_v8  ;;  %vm1905_vm6 = vcmp.eq.s32.totalorder %v10811_v37, %v5436_v8  ;;  %vm1904_vm1 = vcmp.eq.s32.totalorder %v5276_v5, %v5436_v8 }
 0x1ee   :  { %10828 = vst [vmem:[#allocation88_spill] sm:$0xff] %v5426_v33  ;;  %vm1903_vm7 = vcmp.eq.s32.totalorder %v10811_v37, %v5426_v33  ;;  %vm1902_vm11 = vcmp.eq.s32.totalorder %v5276_v5, %v5426_v33  ;;  %v2161_v53 = vsel %vm1905_vm6, 1, %v10812_v58  ;;  %v2160_v59 = vsel %vm1904_vm1, 1, %v10812_v58 }
 0x1ef   :  { %v2159_v49 = vsel %vm1903_vm7, 1, %v10812_v58  ;;  %v2158_v51 = vsel %vm1902_vm11, 1, %v10812_v58  ;;  %v2163_v5 = vsel %vm1907_vm12, 1, %v10812_v58  ;;  %v2162_v37 = vsel %vm1906_vm10, 1, %v10812_v58 }
 0x1f0   :  { %2420 = vrot.lane.b32.xlu1 %v2147_v32, %s3661_s20  ;;  %2418 = vrot.lane.b32.xlu0 %v2146_v36, %s3661_s20  ;;  %vm1911_vm7 = vcmp.eq.s32.totalorder %v10831_v13, %v5294_v28  ;;  %vm1910_vm11 = vcmp.eq.s32.totalorder %v5448_v48, %v5294_v28  ;;  %vm1913_vm6 = vcmp.eq.s32.totalorder %v10831_v13, %v5317_v18  ;;  %v2173_v36 = vsel %vm1917_vm15, 1, %v10812_v58 }
 0x1f1   :  { %v2167_v55 = vsel %vm1911_vm7, 1, %v10812_v58  ;;  %v2166_v23 = vsel %vm1910_vm11, 1, %v10812_v58  ;;  %vm1912_vm1 = vcmp.eq.s32.totalorder %v5448_v48, %v5317_v18  ;;  %v2169_v42 = vsel %vm1913_vm6, 1, %v10812_v58 }
 0x1f2   :  { %v2168_v4 = vsel %vm1912_vm1, 1, %v10812_v58  ;;  %vm1915_vm12 = vcmp.eq.s32.totalorder %v10831_v13, %v5326_v21  ;;  %vm1914_vm10 = vcmp.eq.s32.totalorder %v5448_v48, %v5326_v21  ;;  %vm1919_vm7 = vcmp.eq.s32.totalorder %v10831_v13, %v5346_v27 }
 0x1f3   :  { %v2171_v9 = vsel %vm1915_vm12, 1, %v10812_v58  ;;  %v2170_v32 = vsel %vm1914_vm10, 1, %v10812_v58  ;;  %vm1918_vm11 = vcmp.eq.s32.totalorder %v5448_v48, %v5346_v27  ;;  %vm1921_vm6 = vcmp.eq.s32.totalorder %v10831_v13, %v5356_v25 }
 0x1f4   :  { %2424 = vrot.lane.b32.xlu1 %v2149_v17, %s3661_s20  ;;  %2422 = vrot.lane.b32.xlu0 %v2148_v12, %s3661_s20  ;;  %v2172_v17 = vsel %vm1916_vm14, 1, %v10812_v58  ;;  %v2175_v12 = vsel %vm1919_vm7, 1, %v10812_v58  ;;  %vm1920_vm1 = vcmp.eq.s32.totalorder %v5448_v48, %v5356_v25  ;;  %vm1923_vm12 = vcmp.eq.s32.totalorder %v10831_v13, %v5366_v54 }
 0x1f5   :  { %vm1922_vm10 = vcmp.eq.s32.totalorder %v5448_v48, %v5366_v54  ;;  %vm1925_vm15 = vcmp.eq.s32.totalorder %v10831_v13, %v5376_v52  ;;  %vm1924_vm14 = vcmp.eq.s32.totalorder %v5448_v48, %v5376_v52  ;;  %vm1927_vm7 = vcmp.eq.s32.totalorder %v10831_v13, %v5386_v39 }
 0x1f8   :  { %2428 = vrot.lane.b32.xlu1 %v2151_v24, %s3661_s20  ;;  %2426 = vrot.lane.b32.xlu0 %v2150_v35, %s3661_s20  ;;  %v2174_v24 = vsel %vm1918_vm11, 1, %v10812_v58  ;;  %v2177_v35 = vsel %vm1921_vm6, 1, %v10812_v58  ;;  %vm1926_vm11 = vcmp.eq.s32.totalorder %v5448_v48, %v5386_v39  ;;  %vm1929_vm6 = vcmp.eq.s32.totalorder %v10831_v13, %v5396_v40 }
 0x1fc   :  { %2432 = vrot.lane.b32.xlu1 %v2153_v19, %s3661_s20  ;;  %2430 = vrot.lane.b32.xlu0 %v2152_v11, %s3661_s20  ;;  %v2176_v19 = vsel %vm1920_vm1, 1, %v10812_v58  ;;  %v2179_v11 = vsel %vm1923_vm12, 1, %v10812_v58  ;;  %vm1928_vm1 = vcmp.eq.s32.totalorder %v5448_v48, %v5396_v40  ;;  %vm1931_vm12 = vcmp.eq.s32.totalorder %v10831_v13, %v5406_v31 }
 0x1fd   :  { %v2184_v62 = vsel %vm1928_vm1, 1, %v10812_v58  ;;  %vm1936_vm1 = vcmp.eq.s32.totalorder %v5448_v48, %v5436_v8 }
 0x200   :  { %2436 = vrot.lane.b32.xlu1 %v2155_v44, %s3661_s20  ;;  %2434 = vrot.lane.b32.xlu0 %v2154_v29, %s3661_s20  ;;  %v2178_v44 = vsel %vm1922_vm10, 1, %v10812_v58  ;;  %v2181_v29 = vsel %vm1925_vm15, 1, %v10812_v58  ;;  %vm1930_vm10 = vcmp.eq.s32.totalorder %v5448_v48, %v5406_v31  ;;  %vm1933_vm15 = vcmp.eq.s32.totalorder %v10831_v13, %v5416_v50 }
 0x204   :  { %2440 = vrot.lane.b32.xlu1 %v2157_v1, %s3661_s20  ;;  %2438 = vrot.lane.b32.xlu0 %v2156_v7, %s3661_s20  ;;  %v2180_v1 = vsel %vm1924_vm14, 1, %v10812_v58  ;;  %v2183_v7 = vsel %vm1927_vm7, 1, %v10812_v58  ;;  %vm1932_vm14 = vcmp.eq.s32.totalorder %v5448_v48, %v5416_v50  ;;  %vm1935_vm7 = vcmp.eq.s32.totalorder %v10831_v13, %v5426_v33 }
 0x208   :  { %2444 = vrot.lane.b32.xlu1 %v2159_v49, %s3661_s20  ;;  %2442 = vrot.lane.b32.xlu0 %v2158_v51, %s3661_s20  ;;  %v2182_v49 = vsel %vm1926_vm11, 1, %v10812_v58  ;;  %v2185_v51 = vsel %vm1929_vm6, 1, %v10812_v58  ;;  %vm1934_vm11 = vcmp.eq.s32.totalorder %v5448_v48, %v5426_v33  ;;  %vm1937_vm6 = vcmp.eq.s32.totalorder %v10831_v13, %v5436_v8  ;;  %v10839_v13 = vld [vmem:[#allocation15_spill] sm:$0xff] }
 0x209   :  { %vm1953_vm0 = vcmp.eq.s32.totalorder %v10839_v13, %v5356_v25  ;;  %vm1955_vm5 = vcmp.eq.s32.totalorder %v10839_v13, %v5366_v54  ;;  %vm1957_vm3 = vcmp.eq.s32.totalorder %v10839_v13, %v5376_v52 }
 0x20a   :  { %v2209_v22 = vsel %vm1953_vm0, 1, %v10812_v58  ;;  %v5708_v47 = vsel %vm1955_vm5, 1, %v10812_v58  ;;  %v5714_v6 = vsel %vm1957_vm3, 1, %v10812_v58  ;;  %vm1965_vm0 = vcmp.eq.s32.totalorder %v10839_v13, %v5416_v50 }
 0x20b   :  { %v5780_v43 = vsel %vm1965_vm0, 1, %v10812_v58 }
 0x20c   :  { %2448 = vrot.lane.b32.xlu1 %v2161_v53, %s3661_s20  ;;  %2446 = vrot.lane.b32.xlu0 %v2160_v59, %s3661_s20 }
 0x210   :  { %2452 = vrot.lane.b32.xlu1 %v2163_v5, %s3661_s20  ;;  %2450 = vrot.lane.b32.xlu0 %v2162_v37, %s3661_s20  ;;  %v2187_v5 = vsel %vm1931_vm12, 1, %v10812_v58  ;;  %v2186_v37 = vsel %vm1930_vm10, 1, %v10812_v58  ;;  %vm1939_vm12 = vcmp.eq.s32.totalorder %v10839_v13, %v5280_v16 }
 0x214   :  { %2456 = vrot.lane.b32.xlu1 %v2165_v30, %s3661_s20  ;;  %2454 = vrot.lane.b32.xlu0 %v2164_v10, %s3661_s20 }
 0x218   :  { %2460 = vrot.lane.b32.xlu1 %v2167_v55, %s3661_s20  ;;  %2458 = vrot.lane.b32.xlu0 %v2166_v23, %s3661_s20  ;;  %v2189_v55 = vsel %vm1933_vm15, 1, %v10812_v58  ;;  %v2188_v23 = vsel %vm1932_vm14, 1, %v10812_v58  ;;  %vm1941_vm15 = vcmp.eq.s32.totalorder %v10839_v13, %v5278_v45 }
 0x21c   :  { %2464 = vrot.lane.b32.xlu1 %v2169_v42, %s3661_s20  ;;  %2462 = vrot.lane.b32.xlu0 %v2168_v4, %s3661_s20 }
 0x220   :  { %2468 = vrot.lane.b32.xlu1 %v2171_v9, %s3661_s20  ;;  %2466 = vrot.lane.b32.xlu0 %v2170_v32, %s3661_s20  ;;  %v2191_v9 = vsel %vm1935_vm7, 1, %v10812_v58  ;;  %v2190_v32 = vsel %vm1934_vm11, 1, %v10812_v58  ;;  %vm1943_vm7 = vcmp.eq.s32.totalorder %v10839_v13, %v5294_v28 }
 0x224   :  { %2472 = vrot.lane.b32.xlu1 %v2173_v36, %s3661_s20  ;;  %2470 = vrot.lane.b32.xlu0 %v2172_v17, %s3661_s20  ;;  %v10838_v36 = vld [vmem:[#allocation8_spill] sm:$0xff] }
 0x225   :  { %v5592_v17 = vrot.slane %v10838_v36, %v10807_v46 }
 0x227   :  { %vm1938_vm10 = vcmp.eq.s32.totalorder %v5592_v17, %v5280_v16  ;;  %vm1940_vm14 = vcmp.eq.s32.totalorder %v5592_v17, %v5278_v45  ;;  %vm1942_vm11 = vcmp.eq.s32.totalorder %v5592_v17, %v5294_v28  ;;  %vm1952_vm13 = vcmp.eq.s32.totalorder %v5592_v17, %v5356_v25 }
 0x228   :  { %2476 = vrot.lane.b32.xlu1 %v2175_v12, %s3661_s20  ;;  %2474 = vrot.lane.b32.xlu0 %v2174_v24, %s3661_s20  ;;  %vm1954_vm4 = vcmp.eq.s32.totalorder %v5592_v17, %v5366_v54  ;;  %v2208_v41 = vsel %vm1952_vm13, 1, %v10812_v58  ;;  %vm1961_vm13 = vcmp.eq.s32.totalorder %v10839_v13, %v5396_v40  ;;  %vm1960_vm5 = vcmp.eq.s32.totalorder %v5592_v17, %v5396_v40 }
 0x229   :  { %v5711_v56 = vsel %vm1954_vm4, 1, %v10812_v58  ;;  %vm1963_vm4 = vcmp.eq.s32.totalorder %v10839_v13, %v5406_v31  ;;  %vm1962_vm3 = vcmp.eq.s32.totalorder %v5592_v17, %v5406_v31  ;;  %v5766_v60 = vsel %vm1960_vm5, 1, %v10812_v58 }
 0x22a   :  { %v5772_v0 = vsel %vm1963_vm4, 1, %v10812_v58  ;;  %vm1975_vm5 = vcmp.eq.s32.totalorder %v10864_v61, %v5294_v28 }
 0x22c   :  { %2480 = vrot.lane.b32.xlu1 %v2177_v35, %s3661_s20  ;;  %2478 = vrot.lane.b32.xlu0 %v2176_v19, %s3661_s20  ;;  %v2193_v35 = vsel %vm1937_vm6, 1, %v10812_v58  ;;  %v2192_v19 = vsel %vm1936_vm1, 1, %v10812_v58  ;;  %vm80_vm6 = vcmask 15360   ;;  %vm1945_vm1 = vcmp.eq.s32.totalorder %v10839_v13, %v5317_v18 }
 0x230   :  { %2484 = vrot.lane.b32.xlu1 %v2179_v11, %s3661_s20  ;;  %2482 = vrot.lane.b32.xlu0 %v2178_v44, %s3661_s20  ;;  %v2195_v44 = vsel %vm1939_vm12, 1, %v10812_v58  ;;  %vm1944_vm12 = vcmp.eq.s32.totalorder %v5592_v17, %v5317_v18 }
 0x234   :  { %2488 = vrot.lane.b32.xlu1 %v2181_v29, %s3661_s20  ;;  %2486 = vrot.lane.b32.xlu0 %v2180_v1, %s3661_s20  ;;  %v2194_v29 = vsel %vm1938_vm10, 1, %v10812_v58  ;;  %vm1947_vm10 = vcmp.eq.s32.totalorder %v10839_v13, %v5326_v21 }
 0x238   :  { %2492 = vrot.lane.b32.xlu1 %v2183_v7, %s3661_s20  ;;  %2490 = vrot.lane.b32.xlu0 %v2182_v49, %s3661_s20  ;;  %v2197_v49 = vsel %vm1941_vm15, 1, %v10812_v58  ;;  %vm1946_vm15 = vcmp.eq.s32.totalorder %v5592_v17, %v5326_v21 }
 0x23c   :  { %2496 = vrot.lane.b32.xlu1 %v2185_v51, %s3661_s20  ;;  %2494 = vrot.lane.b32.xlu0 %v2184_v62, %s3661_s20  ;;  %v2196_v51 = vsel %vm1940_vm14, 1, %v10812_v58  ;;  %vm1949_vm14 = vcmp.eq.s32.totalorder %v10839_v13, %v5336_v15 }
 0x23e   :  { %v5554_v53 = vpop.permute.xlu1 %2388  ;;  %v5556_v59 = vpop.permute.xlu0 %2386 }
 0x23f   :  { %10832 = vst [vmem:[#allocation6_spill] sm:$0xff] %v5554_v53  ;;  %10833 = vst [vmem:[#allocation14_spill] sm:$0xff] %v5556_v59 }
 0x240   :  { %2500 = vrot.lane.b32.xlu1 %v2187_v5, %s3661_s20  ;;  %2498 = vrot.lane.b32.xlu0 %v2186_v37, %s3661_s20  ;;  %v2199_v37 = vsel %vm1943_vm7, 1, %v10812_v58 }
 0x242   :  { %v5566_v30 = vpop.permute.xlu1 %2392  ;;  %v5568_v10 = vpop.permute.xlu0 %2390 }
 0x243   :  { %10834 = vst [vmem:[#allocation90_spill] sm:$0xff] %v5566_v30  ;;  %10835 = vst [vmem:[#allocation91_spill] sm:$0xff] %v5568_v10 }
 0x244   :  { %2504 = vrot.lane.b32.xlu1 %v2189_v55, %s3661_s20  ;;  %2502 = vrot.lane.b32.xlu0 %v2188_v23, %s3661_s20  ;;  %v2198_v55 = vsel %vm1942_vm11, 1, %v10812_v58  ;;  %v10846_v23 = vld [vmem:[#allocation21_spill] sm:$0xff]  ;;  %vm1948_vm11 = vcmp.eq.s32.totalorder %v5592_v17, %v5336_v15 }
 0x246   :  { %v5578_v42 = vpop.permute.xlu1 %2396  ;;  %v5580_v4 = vpop.permute.xlu0 %2394 }
 0x247   :  { %10836 = vst [vmem:[#allocation92_spill] sm:$0xff] %v5578_v42  ;;  %10837 = vst [vmem:[#allocation93_spill] sm:$0xff] %v5580_v4 }
 0x248   :  { %2508 = vrot.lane.b32.xlu1 %v2191_v9, %s3661_s20  ;;  %2506 = vrot.lane.b32.xlu0 %v2190_v32, %s3661_s20  ;;  %v10847_v9 = vld [vmem:[#allocation20_spill] sm:$0xff] }
 0x249   :  { %v81_v32 = vsel %vm80_vm6, %v10847_v9, %v10846_v23  ;;  %v2203_v9 = vsel %vm1947_vm10, 1, %v10812_v58  ;;  %vm1956_vm10 = vcmp.eq.s32.totalorder %v5592_v17, %v5376_v52 }
 0x24a   :  { %v5594_v12 = vpop.permute.xlu1 %828  ;;  %v5596_v24 = vpop.permute.xlu0 %826  ;;  %vm82_vm7 = vcmp.ne.s32.totalorder %v81_v32, 0  ;;  %v5722_v63 = vsel %vm1956_vm10, 1, %v10812_v58  ;;  %vm1971_vm10 = vcmp.eq.s32.totalorder %v10864_v61, %v5280_v16 }
 0x24b   :  { %v830_v20 = vsel %vm80_vm6, %v5596_v24, %v5594_v12  ;;  %vm5743_vm6 = vmand %vm4114_vm8, %vm82_vm7  ;;  %v10859_v24 = vmov 0  ;;  %vm1969_vm8 = vcmp.eq.s32.totalorder %v10839_v13, %v5436_v8  ;;  %vm1968_vm7 = vcmp.eq.s32.totalorder %v5592_v17, %v5436_v8  ;;  %v10909_v8 = vld [vmem:[#allocation37_spill] sm:$0xff] }
 0x24c   :  { %2512 = vrot.lane.b32.xlu1 %v2193_v35, %s3661_s20  ;;  %2510 = vrot.lane.b32.xlu0 %v2192_v19, %s3661_s20  ;;  %v2201_v19 = vsel %vm1945_vm1, 1, %v10812_v58  ;;  %vm1951_vm1 = vcmp.eq.s32.totalorder %v10839_v13, %v5346_v27  ;;  %v10860_v24 = vsel %vm5743_vm6, 4294967295, %v10859_v24  ;;  %v831_v32 = vsel %vm5743_vm6, %v830_v20, 4294967295 }
 0x24d   :  { %10861 = vst [vmem:[#allocation47_spill] sm:$0xff] %v10860_v24  ;;  %v5777_v20 = vsel %vm1962_vm3, 1, %v10812_v58  ;;  %vm1977_vm3 = vcmp.eq.s32.totalorder %v10864_v61, %v5317_v18 }
 0x24e   :  { %v5606_v48 = vpop.permute.xlu1 %2400  ;;  %v5608_v11 = vpop.permute.xlu0 %2398 }
 0x24f   :  { %10840 = vst [vmem:[#allocation8_spill] sm:$0xff] %v5606_v48  ;;  %10841 = vst [vmem:[#allocation15_spill] sm:$0xff] %v5608_v11 }
 0x250   :  { %2516 = vrot.lane.b32.xlu1 %v2195_v44, %s3661_s20  ;;  %2514 = vrot.lane.b32.xlu0 %v2194_v29, %s3661_s20  ;;  %v2200_v44 = vsel %vm1944_vm12, 1, %v10812_v58  ;;  %v10850_v29 = vld [vmem:[#allocation12_spill] sm:$0xff]  ;;  %vm1950_vm12 = vcmp.eq.s32.totalorder %v5592_v17, %v5346_v27 }
 0x251   :  { %v2206_v34 = vsel %vm1950_vm12, 1, %v10812_v58  ;;  %vm1966_vm12 = vcmp.eq.s32.totalorder %v5592_v17, %v5426_v33 }
 0x252   :  { %v5618_v1 = vpop.permute.xlu1 %2404  ;;  %v5620_v7 = vpop.permute.xlu0 %2402  ;;  %v5795_v38 = vsel %vm1966_vm12, 1, %v10812_v58  ;;  %vm1981_vm12 = vcmp.eq.s32.totalorder %v10864_v61, %v5336_v15 }
 0x253   :  { %10842 = vst [vmem:[#allocation94_spill] sm:$0xff] %v5618_v1  ;;  %10843 = vst [vmem:[#allocation95_spill] sm:$0xff] %v5620_v7  ;;  %v5879_v1 = vsel %vm1981_vm12, 1, %v10812_v58 }
 0x254   :  { %2520 = vrot.lane.b32.xlu1 %v2197_v49, %s3661_s20  ;;  %2518 = vrot.lane.b32.xlu0 %v2196_v51, %s3661_s20  ;;  %v5657_v49 = vrot.slane %v10850_v29, %v10807_v46  ;;  %v10852_v51 = vld [vmem:[#allocation5_spill] sm:$0xff]  ;;  %v2204_v29 = vsel %vm1948_vm11, 1, %v10812_v58  ;;  %vm1964_vm11 = vcmp.eq.s32.totalorder %v5592_v17, %v5416_v50 }
 0x255   :  { %v5789_v3 = vsel %vm1964_vm11, 1, %v10812_v58  ;;  %vm1979_vm11 = vcmp.eq.s32.totalorder %v10864_v61, %v5326_v21 }
 0x256   :  { %v5630_v62 = vpop.permute.xlu1 %2408  ;;  %v5632_v5 = vpop.permute.xlu0 %2406  ;;  %10851 = vst [vmem:[#allocation12_spill] sm:$0xff] %v5657_v49  ;;  %vm1974_vm4 = vcmp.eq.s32.totalorder %v5657_v49, %v5294_v28  ;;  %vm1976_vm0 = vcmp.eq.s32.totalorder %v5657_v49, %v5317_v18  ;;  %vm1992_vm12 = vcmp.eq.s32.totalorder %v5657_v49, %v5396_v40 }
 0x257   :  { %10844 = vst [vmem:[#allocation96_spill] sm:$0xff] %v5630_v62  ;;  %10845 = vst [vmem:[#allocation97_spill] sm:$0xff] %v5632_v5  ;;  %v5854_v5 = vsel %vm1977_vm3, 1, %v10812_v58  ;;  %v5857_v62 = vsel %vm1976_vm0, 1, %v10812_v58  ;;  %vm1988_vm3 = vcmp.eq.s32.totalorder %v5657_v49, %v5376_v52  ;;  %vm1991_vm0 = vcmp.eq.s32.totalorder %v10864_v61, %v5386_v39 }
 0x258   :  { %2524 = vrot.lane.b32.xlu1 %v2199_v37, %s3661_s20  ;;  %2522 = vrot.lane.b32.xlu0 %v2198_v55, %s3661_s20  ;;  %v5661_v37 = vrot.slane %v10852_v51, %v10807_v46  ;;  %v2207_v51 = vsel %vm1951_vm1, 1, %v10812_v58  ;;  %vm1967_vm1 = vcmp.eq.s32.totalorder %v10839_v13, %v5426_v33  ;;  %v5946_v14 = vsel %vm1988_vm3, 1, %v10812_v58 }
 0x259   :  { %10880 = vst [vmem:[#allocation118_spill] sm:$0xff] %v5946_v14  ;;  %v5949_v26 = vsel %vm1991_vm0, 1, %v10812_v58 }
 0x25a   :  { %v5645_v36 = vpop.permute.xlu1 %2412  ;;  %v5647_v35 = vpop.permute.xlu0 %2410  ;;  %10853 = vst [vmem:[#allocation5_spill] sm:$0xff] %v5661_v37  ;;  %10881 = vst [vmem:[#allocation119_spill] sm:$0xff] %v5949_v26  ;;  %v10896_v37 = vld [vmem:[#allocation31_spill] sm:$0xff] }
 0x25b   :  { %10848 = vst [vmem:[#allocation21_spill] sm:$0xff] %v5645_v36  ;;  %10849 = vst [vmem:[#allocation20_spill] sm:$0xff] %v5647_v35  ;;  %v5842_v36 = vsel %vm1975_vm5, 1, %v10812_v58  ;;  %vm1986_vm5 = vcmp.eq.s32.totalorder %v5657_v49, %v5366_v54 }
 0x25c   :  { %2528 = vrot.lane.b32.xlu1 %v2201_v19, %s3661_s20  ;;  %2526 = vrot.lane.b32.xlu0 %v2200_v44, %s3661_s20  ;;  %v2202_v19 = vsel %vm1946_vm15, 1, %v10812_v58  ;;  %v2205_v44 = vsel %vm1949_vm14, 1, %v10812_v58  ;;  %vm1959_vm15 = vcmp.eq.s32.totalorder %v10839_v13, %v5386_v39  ;;  %vm1958_vm14 = vcmp.eq.s32.totalorder %v5592_v17, %v5386_v39 }
 0x25d   :  { %v5731_v2 = vsel %vm1959_vm15, 1, %v10812_v58  ;;  %v5734_v57 = vsel %vm1958_vm14, 1, %v10812_v58  ;;  %v5792_v13 = vsel %vm1967_vm1, 1, %v10812_v58  ;;  %vm1970_vm15 = vcmp.eq.s32.totalorder %v5657_v49, %v5280_v16 }
 0x25e   :  { %v5673_v55 = vpop.permute.xlu1 %2416  ;;  %v5675_v23 = vpop.permute.xlu0 %2414  ;;  %v832_v17 = vcombine.high %v831_v32, %v831_v32  ;;  %vm1973_vm14 = vcmp.eq.s32.totalorder %v10864_v61, %v5278_v45  ;;  %vm1978_vm1 = vcmp.eq.s32.totalorder %v5657_v49, %v5326_v21  ;;  %v10894_v21 = vld [vmem:[#allocation45_spill] sm:$0xff] }
 0x25f   :  { %10854 = vst [vmem:[#allocation98_spill] sm:$0xff] %v5673_v55  ;;  %10855 = vst [vmem:[#allocation99_spill] sm:$0xff] %v5675_v23  ;;  %v5833_v23 = vsel %vm1973_vm14, 1, %v10812_v58  ;;  %v5865_v7 = vsel %vm1978_vm1, 1, %v10812_v58  ;;  %vm1984_vm14 = vcmp.eq.s32.totalorder %v5657_v49, %v5356_v25  ;;  %vm1993_vm1 = vcmp.eq.s32.totalorder %v10864_v61, %v5396_v40 }
 0x260   :  { %2532 = vrot.lane.b32.xlu1 %v2203_v9, %s3661_s20  ;;  %2530 = vrot.lane.b32.xlu0 %v2202_v19, %s3661_s20  ;;  %v5906_v10 = vsel %vm1984_vm14, 1, %v10812_v58 }
 0x261   :  { %10874 = vst [vmem:[#allocation112_spill] sm:$0xff] %v5906_v10 }
 0x262   :  { %v5703_v9 = vpop.permute.xlu1 %2420  ;;  %v5705_v19 = vpop.permute.xlu0 %2418 }
 0x263   :  { %10856 = vst [vmem:[#allocation100_spill] sm:$0xff] %v5703_v9  ;;  %10857 = vst [vmem:[#allocation101_spill] sm:$0xff] %v5705_v19  ;;  %v5814_v19 = vsel %vm1971_vm10, 1, %v10812_v58  ;;  %v5821_v9 = vsel %vm1970_vm15, 1, %v10812_v58  ;;  %vm1982_vm10 = vcmp.eq.s32.totalorder %v5657_v49, %v5346_v27  ;;  %vm1985_vm15 = vcmp.eq.s32.totalorder %v10864_v61, %v5356_v25 }
 0x264   :  { %2536 = vrot.lane.b32.xlu1 %v2205_v44, %s3661_s20  ;;  %2534 = vrot.lane.b32.xlu0 %v2204_v29, %s3661_s20  ;;  %v5748_v44 = vsel %vm1961_vm13, 1, %v10812_v58  ;;  %vm1972_vm13 = vcmp.eq.s32.totalorder %v5657_v49, %v5278_v45  ;;  %v5898_v4 = vsel %vm1982_vm10, 1, %v10812_v58  ;;  %v5901_v42 = vsel %vm1985_vm15, 1, %v10812_v58 }
 0x265   :  { %v5836_v55 = vsel %vm1972_vm13, 1, %v10812_v58  ;;  %vm1987_vm13 = vcmp.eq.s32.totalorder %v10864_v61, %v5366_v54  ;;  %10872 = vst [vmem:[#allocation110_spill] sm:$0xff] %v5898_v4  ;;  %10873 = vst [vmem:[#allocation111_spill] sm:$0xff] %v5901_v42  ;;  %vm1997_vm10 = vcmp.eq.s32.totalorder %v10864_v61, %v5416_v50  ;;  %vm1996_vm15 = vcmp.eq.s32.totalorder %v5657_v49, %v5416_v50 }
 0x266   :  { %v5758_v29 = vpop.permute.xlu1 %2424  ;;  %v5760_v12 = vpop.permute.xlu0 %2422  ;;  %v5926_v30 = vsel %vm1987_vm13, 1, %v10812_v58 }
 0x267   :  { %10862 = vst [vmem:[#allocation102_spill] sm:$0xff] %v5758_v29  ;;  %10863 = vst [vmem:[#allocation103_spill] sm:$0xff] %v5760_v12  ;;  %v5800_v12 = vsel %vm1969_vm8, 1, %v10812_v58  ;;  %v5811_v29 = vsel %vm1968_vm7, 1, %v10812_v58  ;;  %vm1980_vm8 = vcmp.eq.s32.totalorder %v5657_v49, %v5336_v15  ;;  %vm1983_vm7 = vcmp.eq.s32.totalorder %v10864_v61, %v5346_v27  ;;  %v10893_v15 = vld [vmem:[#allocation28_spill] sm:$0xff] }
 0x268   :  { %2540 = vrot.lane.b32.xlu1 %v2207_v51, %s3661_s20  ;;  %2538 = vrot.lane.b32.xlu0 %v2206_v34, %s3661_s20  ;;  %v5884_v48 = vsel %vm1980_vm8, 1, %v10812_v58  ;;  %10875 = vst [vmem:[#allocation113_spill] sm:$0xff] %v5926_v30  ;;  %vm1995_vm8 = vcmp.eq.s32.totalorder %v10864_v61, %v5406_v31 }
 0x269   :  { %v5989_v25 = vsel %vm1995_vm8, 1, %v10812_v58 }
 0x26a   :  { %v5806_v34 = vpop.permute.xlu1 %2428  ;;  %v5808_v51 = vpop.permute.xlu0 %2426  ;;  %10889 = vst [vmem:[#allocation123_spill] sm:$0xff] %v5989_v25 }
 0x26b   :  { %10865 = vst [vmem:[#allocation104_spill] sm:$0xff] %v5806_v34  ;;  %10866 = vst [vmem:[#allocation105_spill] sm:$0xff] %v5808_v51  ;;  %v10867_v51 = vld [vmem:[#allocation3_spill] sm:$0xff] }
 0x26c   :  { %v839_v34 = vrot.slane %v831_v32, %v10867_v51  ;;  %2544 = vrot.lane.b32.xlu1 %v2209_v22, %s3661_s20  ;;  %2542 = vrot.lane.b32.xlu0 %v2208_v41, %s3661_s20  ;;  %v846_v35 = vrot.slane %v832_v17, %v10867_v51  ;;  %v5845_v32 = vsel %vm1974_vm4, 1, %v10812_v58  ;;  %v5860_v17 = vsel %vm1979_vm11, 1, %v10812_v58 }
 0x26d   :  { %vm1989_vm4 = vcmp.eq.s32.totalorder %v10864_v61, %v5376_v52  ;;  %vm1990_vm11 = vcmp.eq.s32.totalorder %v5657_v49, %v5386_v39  ;;  %v5974_v39 = vsel %vm1992_vm12, 1, %v10812_v58  ;;  %v10886_v52 = vld [vmem:[#allocation29_spill] sm:$0xff] }
 0x26e   :  { %v5849_v41 = vpop.permute.xlu1 %2432  ;;  %v5851_v22 = vpop.permute.xlu0 %2430  ;;  %v848_v11 = vcombine.high %v846_v35, %v846_v35  ;;  %v862_v59 = vrot.slane %v846_v35, %v10867_v51  ;;  %v5952_v35 = vsel %vm1990_vm11, 1, %v10812_v58 }
 0x26f   :  { %10868 = vst [vmem:[#allocation106_spill] sm:$0xff] %v5849_v41  ;;  %10869 = vst [vmem:[#allocation107_spill] sm:$0xff] %v5851_v22  ;;  %v847_v22 = vcombine.high %v839_v34, %v839_v34  ;;  %v855_v41 = vrot.slane %v839_v34, %v10867_v51 }
 0x270   :  { %2548 = vrot.lane.b32.xlu1 %v5708_v47, %s3661_s20  ;;  %2546 = vrot.lane.b32.xlu0 %v5711_v56, %s3661_s20  ;;  %v5895_v56 = vsel %vm1983_vm7, 1, %v10812_v58  ;;  %v876_v53 = vrot.slane %v848_v11, %v10867_v51  ;;  %10882 = vst [vmem:[#allocation120_spill] sm:$0xff] %v5952_v35  ;;  %vm1994_vm7 = vcmp.eq.s32.totalorder %v5657_v49, %v5406_v31 }
 0x271   :  { %v877_v11 = vcombine.high %v855_v41, %v855_v41  ;;  %v5995_v27 = vsel %vm1994_vm7, 1, %v10812_v58  ;;  %v6016_v28 = vrot.slane %v862_v59, %v10807_v46 }
 0x272   :  { %v5890_v47 = vpop.permute.xlu1 %2436  ;;  %v5892_v34 = vpop.permute.xlu0 %2434  ;;  %v880_v40 = vcombine.high %v876_v53, %v876_v53  ;;  %10890 = vst [vmem:[#allocation124_spill] sm:$0xff] %v5995_v27  ;;  %v6019_v50 = vrot.slane %v876_v53, %v10807_v46 }
 0x273   :  { %10870 = vst [vmem:[#allocation108_spill] sm:$0xff] %v5890_v47  ;;  %10871 = vst [vmem:[#allocation109_spill] sm:$0xff] %v5892_v34  ;;  %v869_v34 = vrot.slane %v847_v22, %v10867_v51  ;;  %v5916_v47 = vrot.slane %v855_v41, %v10807_v46  ;;  %v5932_v22 = vsel %vm1986_vm5, 1, %v10812_v58  ;;  %v10884_v41 = vld [vmem:[#allocation26_spill] sm:$0xff]  ;;  %v878_v51 = vcombine.high %v862_v59, %v862_v59 }
 0x274   :  { %2552 = vrot.lane.b32.xlu1 %v5714_v6, %s3661_s20  ;;  %2550 = vrot.lane.b32.xlu0 %v5722_v63, %s3661_s20  ;;  %10876 = vst [vmem:[#allocation114_spill] sm:$0xff] %v5932_v22  ;;  %v5937_v6 = vsel %vm1989_vm4, 1, %v10812_v58  ;;  %10885 = vst [vmem:[#allocation26_spill] sm:$0xff] %v5974_v39  ;;  %v6033_v59 = vrot.slane %v880_v40, %v10807_v46 }
 0x275   :  { %10877 = vst [vmem:[#allocation115_spill] sm:$0xff] %v5937_v6  ;;  %vm963_vm14 = vcmp.eq.s32.totalorder %v5916_v47, %v10884_v41  ;;  %vm964_vm13 = vcmp.eq.s32.totalorder %v5916_v47, %v10886_v52  ;;  %vm965_vm5 = vcmp.eq.s32.totalorder %v5916_v47, %v10893_v15  ;;  %vm966_vm4 = vcmp.eq.s32.totalorder %v5916_v47, %v10896_v37 }
 0x276   :  { %v5941_v63 = vpop.permute.xlu1 %2440  ;;  %v5943_v24 = vpop.permute.xlu0 %2438  ;;  %v1139_v18 = vsel %vm963_vm14, %v10894_v21, 0 }
 0x277   :  { %10878 = vst [vmem:[#allocation116_spill] sm:$0xff] %v5941_v63  ;;  %10879 = vst [vmem:[#allocation117_spill] sm:$0xff] %v5943_v24  ;;  %v879_v24 = vcombine.high %v869_v34, %v869_v34  ;;  %v5967_v63 = vsel %vm1993_vm1, 1, %v10812_v58 }
 0x278   :  { %2556 = vrot.lane.b32.xlu1 %v5731_v2, %s3661_s20  ;;  %2554 = vrot.lane.b32.xlu0 %v5734_v57, %s3661_s20  ;;  %10883 = vst [vmem:[#allocation121_spill] sm:$0xff] %v5967_v63  ;;  %v5979_v2 = vrot.slane %v869_v34, %v10807_v46  ;;  %v6001_v34 = vsel %vm1997_vm10, 1, %v10812_v58 }
 0x279   :  { %10891 = vst [vmem:[#allocation125_spill] sm:$0xff] %v6001_v34  ;;  %v6013_v31 = vrot.slane %v879_v24, %v10807_v46  ;;  %v6030_v24 = vrot.slane %v878_v51, %v10807_v46  ;;  %v10900_v51 = vld [vmem:[#allocation48_spill] sm:$0xff] }
 0x27a   :  { %v5981_v57 = vpop.permute.xlu1 %2444  ;;  %v5983_v54 = vpop.permute.xlu0 %2442  ;;  %vm979_vm0 = vcmp.eq.s32.totalorder %v5979_v2, %v10884_v41  ;;  %vm980_vm11 = vcmp.eq.s32.totalorder %v5979_v2, %v10886_v52  ;;  %v1141_v40 = vsel %vm965_vm5, %v10900_v51, 0  ;;  %vm981_vm10 = vcmp.eq.s32.totalorder %v5979_v2, %v10893_v15 }
 0x27b   :  { %10887 = vst [vmem:[#allocation29_spill] sm:$0xff] %v5981_v57  ;;  %10888 = vst [vmem:[#allocation122_spill] sm:$0xff] %v5983_v54  ;;  %v6004_v54 = vrot.slane %v877_v11, %v10807_v46  ;;  %v6007_v57 = vsel %vm1996_vm15, 1, %v10812_v58  ;;  %v10895_v11 = vld [vmem:[#allocation46_spill] sm:$0xff]  ;;  %v10901_v46 = vld [vmem:[#allocation33_spill] sm:$0xff]  ;;  %vm982_vm15 = vcmp.eq.s32.totalorder %v5979_v2, %v10896_v37 }
 0x27c   :  { %10892 = vst [vmem:[#allocation126_spill] sm:$0xff] %v6007_v57  ;;  %2560 = vrot.lane.b32.xlu1 %v5748_v44, %s3661_s20  ;;  %2558 = vrot.lane.b32.xlu0 %v5766_v60, %s3661_s20  ;;  %v1140_v45 = vsel %vm964_vm13, %v10895_v11, 0  ;;  %v10899_v60 = vld [vmem:[#allocation30_spill] sm:$0xff]  ;;  %vm968_vm1 = vcmp.eq.s32.totalorder %v5916_v47, %v10901_v46  ;;  %v10905_v57 = vld [vmem:[#allocation49_spill] sm:$0xff]  ;;  %vm984_vm5 = vcmp.eq.s32.totalorder %v5979_v2, %v10901_v46 }
 0x27d   :  { %v1266_v53 = vadd.s32 %v1140_v45, %v1139_v18  ;;  %vm967_vm3 = vcmp.eq.s32.totalorder %v5916_v47, %v10899_v60  ;;  %v10902_v45 = vld [vmem:[#allocation32_spill] sm:$0xff]  ;;  %v10903_v18 = vld [vmem:[#allocation35_spill] sm:$0xff]  ;;  %vm983_vm13 = vcmp.eq.s32.totalorder %v5979_v2, %v10899_v60  ;;  %vm996_vm2 = vcmp.eq.s32.totalorder %v6004_v54, %v10886_v52 }
 0x27e   :  { %v6037_v16 = vpop.permute.xlu1 %2448  ;;  %v6039_v44 = vpop.permute.xlu0 %2446  ;;  %vm969_vm12 = vcmp.eq.s32.totalorder %v5916_v47, %v10902_v45  ;;  %vm970_vm8 = vcmp.eq.s32.totalorder %v5916_v47, %v10903_v18  ;;  %vm997_vm9 = vcmp.eq.s32.totalorder %v6004_v54, %v10893_v15  ;;  %vm1000_vm14 = vcmp.eq.s32.totalorder %v6004_v54, %v10901_v46 }
 0x27f   :  { %10897 = vst [vmem:[#allocation28_spill] sm:$0xff] %v6037_v16  ;;  %10898 = vst [vmem:[#allocation45_spill] sm:$0xff] %v6039_v44  ;;  %v1267_v44 = vadd.s32 %v1266_v53, %v1141_v40  ;;  %v10904_v16 = vld [vmem:[#allocation34_spill] sm:$0xff]  ;;  %v1142_v53 = vsel %vm966_vm4, %v10905_v57, 0  ;;  %v1156_v40 = vsel %vm980_vm11, %v10895_v11, 0  ;;  %vm985_vm4 = vcmp.eq.s32.totalorder %v5979_v2, %v10902_v45 }
 0x280   :  { %2564 = vrot.lane.b32.xlu1 %v5772_v0, %s3661_s20  ;;  %2562 = vrot.lane.b32.xlu0 %v5777_v20, %s3661_s20  ;;  %vm971_vm7 = vcmp.eq.s32.totalorder %v5916_v47, %v10904_v16  ;;  %v1155_v20 = vsel %vm979_vm0, %v10894_v21, 0  ;;  %vm995_vm11 = vcmp.eq.s32.totalorder %v6004_v54, %v10884_v41  ;;  %vm998_vm0 = vcmp.eq.s32.totalorder %v6004_v54, %v10896_v37 }
 0x281   :  { %v1268_v0 = vadd.s32 %v1267_v44, %v1142_v53  ;;  %v10908_v44 = vld [vmem:[#allocation50_spill] sm:$0xff]  ;;  %v1287_v25 = vadd.s32 %v1156_v40, %v1155_v20  ;;  %v1171_v35 = vsel %vm995_vm11, %v10894_v21, 0  ;;  %v1172_v26 = vsel %vm996_vm2, %v10895_v11, 0 }
 0x282   :  { %v6083_v34 = vpop.permute.xlu1 %2452  ;;  %v6085_v27 = vpop.permute.xlu0 %2450  ;;  %v1143_v53 = vsel %vm967_vm3, %v10908_v44, 0  ;;  %vm1001_vm3 = vcmp.eq.s32.totalorder %v6004_v54, %v10902_v45  ;;  %v1159_v63 = vsel %vm983_vm13, %v10908_v44, 0  ;;  %v1308_v6 = vadd.s32 %v1172_v26, %v1171_v35 }
 0x283   :  { %10906 = vst [vmem:[#allocation46_spill] sm:$0xff] %v6083_v34  ;;  %10907 = vst [vmem:[#allocation31_spill] sm:$0xff] %v6085_v27  ;;  %v1269_v34 = vadd.s32 %v1268_v0, %v1143_v53  ;;  %v1157_v27 = vsel %vm981_vm10, %v10900_v51, 0  ;;  %v10910_v0 = vld [vmem:[#allocation51_spill] sm:$0xff]  ;;  %vm987_vm10 = vcmp.eq.s32.totalorder %v5979_v2, %v10904_v16  ;;  %v1173_v30 = vsel %vm997_vm9, %v10900_v51, 0 }
 0x284   :  { %2568 = vrot.lane.b32.xlu1 %v5780_v43, %s3661_s20  ;;  %2566 = vrot.lane.b32.xlu0 %v5789_v3, %s3661_s20  ;;  %v1144_v20 = vsel %vm968_vm1, %v10910_v0, 0  ;;  %v1288_v40 = vadd.s32 %v1287_v25, %v1157_v27  ;;  %v1158_v43 = vsel %vm982_vm15, %v10905_v57, 0  ;;  %v10913_v27 = vld [vmem:[#allocation25_spill] sm:$0xff]  ;;  %v10914_v25 = vld [vmem:[#allocation52_spill] sm:$0xff]  ;;  %vm1011_vm15 = vcmp.eq.s32.totalorder %v6013_v31, %v10884_v41 }
 0x285   :  { %v1270_v3 = vadd.s32 %v1269_v34, %v1144_v20  ;;  %vm961_vm1 = vcmp.eq.s32.totalorder %v5916_v47, %v10913_v27  ;;  %v1145_v34 = vsel %vm969_vm12, %v10914_v25, 0  ;;  %v1160_v22 = vsel %vm984_vm5, %v10910_v0, 0 }
 0x286   :  { %v6127_v53 = vpop.permute.xlu1 %2456  ;;  %v6129_v39 = vpop.permute.xlu0 %2454  ;;  %v1289_v20 = vadd.s32 %v1288_v40, %v1158_v43  ;;  %v10916_v40 = vld [vmem:[#allocation36_spill] sm:$0xff]  ;;  %v10918_v43 = vld [vmem:[#allocation53_spill] sm:$0xff]  ;;  %vm1012_vm5 = vcmp.eq.s32.totalorder %v6013_v31, %v10886_v52  ;;  %vm1013_vm13 = vcmp.eq.s32.totalorder %v6013_v31, %v10893_v15  ;;  %v1309_v35 = vadd.s32 %v1308_v6, %v1173_v30 }
 0x287   :  { %10911 = vst [vmem:[#allocation30_spill] sm:$0xff] %v6127_v53  ;;  %10912 = vst [vmem:[#allocation48_spill] sm:$0xff] %v6129_v39  ;;  %v10915_v53 = vld [vmem:[#allocation27_spill] sm:$0xff]  ;;  %v1271_v39 = vadd.s32 %v1270_v3, %v1145_v34  ;;  %vm973_vm12 = vcmp.eq.s32.totalorder %v5916_v47, %v10916_v40  ;;  %v10917_v3 = vld [vmem:[#allocation38_spill] sm:$0xff]  ;;  %v1146_v34 = vsel %vm970_vm8, %v10918_v43, 0  ;;  %vm1014_vm2 = vcmp.eq.s32.totalorder %v6013_v31, %v10896_v37 }
 0x288   :  { %2572 = vrot.lane.b32.xlu1 %v5792_v13, %s3661_s20  ;;  %2570 = vrot.lane.b32.xlu0 %v5795_v38, %s3661_s20  ;;  %v1290_v14 = vadd.s32 %v1289_v20, %v1159_v63  ;;  %v10919_v13 = vld [vmem:[#allocation39_spill] sm:$0xff]  ;;  %v10922_v63 = vld [vmem:[#allocation40_spill] sm:$0xff]  ;;  %v10923_v20 = vld [vmem:[#allocation54_spill] sm:$0xff]  ;;  %v1174_v30 = vsel %vm998_vm0, %v10905_v57, 0  ;;  %vm10927_vm8 = vcmp.eq.s32.totalorder %v6004_v54, %v10899_v60  ;;  %vm993_vm9 = vcmp.eq.s32.totalorder %v6004_v54, %v10913_v27 }
 0x289   :  { %v1272_v38 = vadd.s32 %v1271_v39, %v1146_v34  ;;  %v1147_v34 = vsel %vm971_vm7, %v10923_v20, 0  ;;  %vm10924_vm7 = vcmp.eq.s32.totalorder %v10864_v61, %v5426_v33  ;;  %vm1017_vm0 = vcmp.eq.s32.totalorder %v6013_v31, %v10902_v45  ;;  %v10942_v61 = vld [vmem:[#allocation58_spill] sm:$0xff] }
 0x28a   :  { %v6183_v10 = vpop.permute.xlu1 %2460  ;;  %v6185_v26 = vpop.permute.xlu0 %2458  ;;  %v1291_v39 = vadd.s32 %v1290_v14, %v1160_v22  ;;  %v1161_v14 = vsel %vm985_vm4, %v10914_v25, 0  ;;  %v6223_v22 = vsel %vm10924_vm7, 1, %v10812_v58  ;;  %vm10926_vm4 = vcmp.eq.s32.totalorder %v5979_v2, %v10903_v18 }
 0x28b   :  { %10920 = vst [vmem:[#allocation33_spill] sm:$0xff] %v6183_v10  ;;  %10921 = vst [vmem:[#allocation32_spill] sm:$0xff] %v6185_v26  ;;  %v1273_v6 = vadd.s32 %v1272_v38, %v1147_v34  ;;  %v1310_v10 = vadd.s32 %v1309_v35, %v1174_v30  ;;  %vm1027_vm7 = vcmp.eq.s32.totalorder %v6016_v28, %v10884_v41 }
 0x28c   :  { %2576 = vrot.lane.b32.xlu1 %v5800_v12, %s3661_s20  ;;  %2574 = vrot.lane.b32.xlu0 %v5811_v29, %s3661_s20  ;;  %10925 = vst [vmem:[#allocation35_spill] sm:$0xff] %v6223_v22  ;;  %v1292_v26 = vadd.s32 %v1291_v39, %v1161_v14  ;;  %v1162_v29 = vsel %vm10926_vm4, %v10918_v43, 0  ;;  %v1175_v12 = vsel %vm10927_vm8, %v10908_v44, 0  ;;  %vm1028_vm4 = vcmp.eq.s32.totalorder %v6016_v28, %v10886_v52  ;;  %v10930_v14 = vld [vmem:[#allocation55_spill] sm:$0xff]  ;;  %v10941_v22 = vld [vmem:[#allocation57_spill] sm:$0xff] }
 0x28d   :  { %v1311_v34 = vadd.s32 %v1310_v10, %v1175_v12  ;;  %vm10931_vm11 = vcmp.eq.s32.totalorder %v5916_v47, %v10909_v8  ;;  %v1188_v10 = vsel %vm1012_vm5, %v10895_v11, 0  ;;  %vm1029_vm5 = vcmp.eq.s32.totalorder %v6016_v28, %v10893_v15 }
 0x28e   :  { %v6245_v38 = vpop.permute.xlu1 %2464  ;;  %v6247_v39 = vpop.permute.xlu0 %2462  ;;  %v1293_v35 = vadd.s32 %v1292_v26, %v1162_v29  ;;  %v1148_v30 = vsel %vm10931_vm11, %v10930_v14, 0  ;;  %vm1018_vm11 = vcmp.eq.s32.totalorder %v6013_v31, %v10903_v18  ;;  %vm1005_vm8 = vcmp.eq.s32.totalorder %v6004_v54, %v10916_v40 }
 0x28f   :  { %10928 = vst [vmem:[#allocation34_spill] sm:$0xff] %v6245_v38  ;;  %10929 = vst [vmem:[#allocation49_spill] sm:$0xff] %v6247_v39  ;;  %v1176_v39 = vsel %vm1000_vm14, %v10910_v0, 0  ;;  %v1187_v38 = vsel %vm1011_vm15, %v10894_v21, 0  ;;  %vm10932_vm14 = vcmp.eq.s32.totalorder %v5657_v49, %v5426_v33  ;;  %vm994_vm15 = vcmp.eq.s32.totalorder %v6004_v54, %v10915_v53 }
 0x290   :  { %2580 = vrot.lane.b32.xlu1 %v5814_v19, %s3661_s20  ;;  %2578 = vrot.lane.b32.xlu0 %v5821_v9, %s3661_s20  ;;  %v6283_v26 = vsel %vm10932_vm14, 1, %v10812_v58  ;;  %v1274_v29 = vadd.s32 %v1273_v6, %v1148_v30  ;;  %v1312_v19 = vadd.s32 %v1311_v34, %v1176_v39  ;;  %v1329_v12 = vadd.s32 %v1188_v10, %v1187_v38  ;;  %v10934_v9 = vld [vmem:[#allocation43_spill] sm:$0xff]  ;;  %v10938_v30 = vld [vmem:[#allocation44_spill] sm:$0xff] }
 0x291   :  { %10933 = vst [vmem:[#allocation50_spill] sm:$0xff] %v6283_v26  ;;  %v6297_v33 = vsel %vm961_vm1, %v10934_v9, 0  ;;  %v1163_v58 = vsel %vm987_vm10, %v10923_v20, 0  ;;  %v1177_v6 = vsel %vm1001_vm3, %v10914_v25, 0  ;;  %v1189_v38 = vsel %vm1013_vm13, %v10900_v51, 0 }
 0x292   :  { %10935 = vst [vmem:[#allocation37_spill] sm:$0xff] %v6297_v33  ;;  %v6311_v39 = vpop.permute.xlu1 %2468  ;;  %v6313_v34 = vpop.permute.xlu0 %2466  ;;  %vm1007_vm10 = vcmp.eq.s32.totalorder %v6004_v54, %v10919_v13  ;;  %vm1019_vm14 = vcmp.eq.s32.totalorder %v6013_v31, %v10904_v16  ;;  %vm10939_vm13 = vcmp.eq.s32.totalorder %v5916_v47, %v10915_v53  ;;  %v1330_v26 = vadd.s32 %v1329_v12, %v1189_v38  ;;  %v10945_v12 = vld [vmem:[#allocation59_spill] sm:$0xff] }
 0x293   :  { %10936 = vst [vmem:[#allocation51_spill] sm:$0xff] %v6311_v39  ;;  %10937 = vst [vmem:[#allocation25_spill] sm:$0xff] %v6313_v34  ;;  %v6327_v10 = vsel %vm10939_vm13, %v10938_v30, 0  ;;  %v1294_v39 = vadd.s32 %v1293_v35, %v1163_v58  ;;  %v1313_v34 = vadd.s32 %v1312_v19, %v1177_v6  ;;  %v1149_v49 = vsel %vm973_vm12, %v10941_v22, 0 }
 0x294   :  { %10940 = vst [vmem:[#allocation52_spill] sm:$0xff] %v6327_v10  ;;  %vm10943_vm3 = vcmp.eq.s32.totalorder %v5916_v47, %v10917_v3  ;;  %vm10944_vm13 = vcmp.eq.s32.totalorder %v6004_v54, %v10903_v18  ;;  %v1190_v35 = vsel %vm1014_vm2, %v10905_v57, 0  ;;  %2584 = vrot.lane.b32.xlu1 %v5833_v23, %s3661_s20  ;;  %2582 = vrot.lane.b32.xlu0 %v5836_v55, %s3661_s20  ;;  %v10947_v55 = vld [vmem:[#allocation60_spill] sm:$0xff]  ;;  %v6483_v42 = vsel %vm994_vm15, %v10938_v30, 0 }
 0x295   :  { %v1150_v33 = vsel %vm10943_vm3, %v10942_v61, 0  ;;  %v1178_v58 = vsel %vm10944_vm13, %v10918_v43, 0  ;;  %v1275_v19 = vadd.s32 %v1274_v29, %v1149_v49  ;;  %vm10946_vm2 = vcmp.eq.s32.totalorder %v5916_v47, %v10919_v13 }
 0x296   :  { %v1151_v6 = vsel %vm10946_vm2, %v10945_v12, 0  ;;  %v1314_v38 = vadd.s32 %v1313_v34, %v1178_v58  ;;  %v1331_v23 = vadd.s32 %v1330_v26, %v1190_v35  ;;  %vm10948_vm12 = vcmp.eq.s32.totalorder %v5916_v47, %v10922_v63  ;;  %v6383_v34 = vpop.permute.xlu1 %2472  ;;  %v6385_v47 = vpop.permute.xlu0 %2470 }
 0x297   :  { %v6367_v10 = vsel %vm10948_vm12, %v10947_v55, 0  ;;  %vm10949_vm13 = vcmp.eq.s32.totalorder %v5979_v2, %v10913_v27  ;;  %vm10951_vm2 = vcmp.eq.s32.totalorder %v5979_v2, %v10909_v8  ;;  %vm10952_vm1 = vcmp.eq.s32.totalorder %v6013_v31, %v10899_v60  ;;  %10953 = vst [vmem:[#allocation36_spill] sm:$0xff] %v6383_v34  ;;  %10954 = vst [vmem:[#allocation38_spill] sm:$0xff] %v6385_v47 }
 0x298   :  { %v6373_v49 = vsel %vm10949_vm13, %v10934_v9, 0  ;;  %v1164_v26 = vsel %vm10951_vm2, %v10930_v14, 0  ;;  %v1191_v29 = vsel %vm10952_vm1, %v10908_v44, 0  ;;  %vm10955_vm1 = vcmp.eq.s32.totalorder %v5979_v2, %v10915_v53  ;;  %2588 = vrot.lane.b32.xlu1 %v5842_v36, %s3661_s20  ;;  %2586 = vrot.lane.b32.xlu0 %v5845_v32, %s3661_s20 }
 0x299   :  { %10950 = vst [vmem:[#allocation27_spill] sm:$0xff] %v6373_v49  ;;  %v6399_v58 = vsel %vm10955_vm1, %v10938_v30, 0  ;;  %v1295_v35 = vadd.s32 %v1294_v39, %v1164_v26  ;;  %vm10957_vm12 = vcmp.eq.s32.totalorder %v6004_v54, %v10904_v16  ;;  %v1332_v34 = vadd.s32 %v1331_v23, %v1191_v29 }
 0x29a   :  { %10956 = vst [vmem:[#allocation53_spill] sm:$0xff] %v6399_v58  ;;  %v1179_v47 = vsel %vm10957_vm12, %v10923_v20, 0  ;;  %vm1022_vm13 = vcmp.eq.s32.totalorder %v6013_v31, %v10917_v3  ;;  %vm10958_vm2 = vcmp.eq.s32.totalorder %v5979_v2, %v10916_v40  ;;  %vm10959_vm1 = vcmp.eq.s32.totalorder %v5979_v2, %v10917_v3 }
 0x29b   :  { %v1165_v49 = vsel %vm10958_vm2, %v10941_v22, 0  ;;  %v1166_v58 = vsel %vm10959_vm1, %v10942_v61, 0  ;;  %v1315_v39 = vadd.s32 %v1314_v38, %v1179_v47  ;;  %vm10960_vm3 = vcmp.eq.s32.totalorder %v6013_v31, %v10901_v46  ;;  %v6463_v47 = vpop.permute.xlu0 %2474 }
 0x29c   :  { %v1192_v26 = vsel %vm10960_vm3, %v10910_v0, 0  ;;  %v1276_v23 = vadd.s32 %v1275_v19, %v1150_v33  ;;  %vm10961_vm1 = vcmp.eq.s32.totalorder %v5979_v2, %v10919_v13  ;;  %vm10962_vm3 = vcmp.eq.s32.totalorder %v5979_v2, %v10922_v63  ;;  %10965 = vst [vmem:[#allocation54_spill] sm:$0xff] %v6463_v47  ;;  %2592 = vrot.lane.b32.xlu1 %v5854_v5, %s3661_s20 }
 0x29d   :  { %v6431_v38 = vsel %vm10961_vm1, %v10945_v12, 0  ;;  %v6437_v36 = vsel %vm10962_vm3, %v10947_v55, 0  ;;  %v1333_v32 = vadd.s32 %v1332_v34, %v1192_v26  ;;  %vm1023_vm12 = vcmp.eq.s32.totalorder %v6013_v31, %v10919_v13  ;;  %v6461_v34 = vpop.permute.xlu1 %2476  ;;  %2590 = vrot.lane.b32.xlu0 %v5857_v62, %s3661_s20 }
 0x29e   :  { %vm1024_vm2 = vcmp.eq.s32.totalorder %v6013_v31, %v10922_v63  ;;  %v6447_v33 = vsel %vm993_vm9, %v10934_v9, 0  ;;  %v1193_v2 = vsel %vm1017_vm0, %v10914_v25, 0  ;;  %v1203_v19 = vsel %vm1027_vm7, %v10894_v21, 0  ;;  %10964 = vst [vmem:[#allocation40_spill] sm:$0xff] %v6461_v34 }
 0x29f   :  { %10963 = vst [vmem:[#allocation39_spill] sm:$0xff] %v6447_v33  ;;  %v1204_v29 = vsel %vm1028_vm4, %v10895_v11, 0  ;;  %vm1025_vm9 = vcmp.eq.s32.totalorder %v6016_v28, %v10913_v27  ;;  %vm1026_vm0 = vcmp.eq.s32.totalorder %v6016_v28, %v10915_v53  ;;  %vm1034_vm1 = vcmp.eq.s32.totalorder %v6016_v28, %v10903_v18 }
 0x2a0   :  { %vm1046_vm7 = vcmp.eq.s32.totalorder %v6019_v50, %v10896_v37  ;;  %v1296_v26 = vadd.s32 %v1295_v35, %v1165_v49  ;;  %vm10966_vm4 = vcmp.eq.s32.totalorder %v6004_v54, %v10909_v8  ;;  %v1334_v33 = vadd.s32 %v1333_v32, %v1193_v2  ;;  %2596 = vrot.lane.b32.xlu1 %v5860_v17, %s3661_s20 }
 0x2a1   :  { %v1180_v34 = vsel %vm10966_vm4, %v10930_v14, 0  ;;  %v1350_v47 = vadd.s32 %v1204_v29, %v1203_v19  ;;  %vm1035_vm3 = vcmp.eq.s32.totalorder %v6016_v28, %v10904_v16  ;;  %v1194_v49 = vsel %vm1018_vm11, %v10918_v43, 0  ;;  %v6529_v29 = vpop.permute.xlu0 %2478  ;;  %2594 = vrot.lane.b32.xlu0 %v5865_v7, %s3661_s20 }
 0x2a2   :  { %v1316_v4 = vadd.s32 %v1315_v39, %v1180_v34  ;;  %v1205_v35 = vsel %vm1029_vm5, %v10900_v51, 0  ;;  %vm1047_vm4 = vcmp.eq.s32.totalorder %v6019_v50, %v10899_v60  ;;  %v1277_v39 = vadd.s32 %v1276_v23, %v1151_v6  ;;  %10970 = vst [vmem:[#allocation43_spill] sm:$0xff] %v6529_v29 }
 0x2a3   :  { %v1181_v32 = vsel %vm1005_vm8, %v10941_v22, 0  ;;  %v1335_v2 = vadd.s32 %v1334_v33, %v1194_v49  ;;  %v1351_v19 = vadd.s32 %v1350_v47, %v1205_v35  ;;  %vm1037_vm11 = vcmp.eq.s32.totalorder %v6016_v28, %v10916_v40  ;;  %v6527_v33 = vpop.permute.xlu1 %2480 }
 0x2a4   :  { %vm10967_vm15 = vcmp.eq.s32.totalorder %v6004_v54, %v10917_v3  ;;  %v6517_v5 = vsel %vm1007_vm10, %v10945_v12, 0  ;;  %v1195_v6 = vsel %vm1019_vm14, %v10923_v20, 0  ;;  %vm10968_vm8 = vcmp.eq.s32.totalorder %v6016_v28, %v10896_v37  ;;  %10969 = vst [vmem:[#allocation55_spill] sm:$0xff] %v6527_v33  ;;  %2600 = vrot.lane.b32.xlu1 %v5879_v1, %s3661_s20 }
 0x2a5   :  { %v1182_v62 = vsel %vm10967_vm15, %v10942_v61, 0  ;;  %v1206_v23 = vsel %vm10968_vm8, %v10905_v57, 0  ;;  %v1297_v34 = vadd.s32 %v1296_v26, %v1166_v58  ;;  %vm10971_vm8 = vcmp.eq.s32.totalorder %v6004_v54, %v10922_v63  ;;  %2598 = vrot.lane.b32.xlu0 %v5884_v48, %s3661_s20 }
 0x2a6   :  { %v6543_v47 = vsel %vm10971_vm8, %v10947_v55, 0  ;;  %v1336_v49 = vadd.s32 %v1335_v2, %v1195_v6  ;;  %v1352_v35 = vadd.s32 %v1351_v19, %v1206_v23  ;;  %v1317_v29 = vadd.s32 %v1316_v4, %v1181_v32  ;;  %v6598_v6 = vpop.permute.xlu0 %2482 }
 0x2a7   :  { %vm10972_vm5 = vcmp.eq.s32.totalorder %v6013_v31, %v10913_v27  ;;  %vm10973_vm14 = vcmp.eq.s32.totalorder %v6013_v31, %v10909_v8  ;;  %vm10974_vm8 = vcmp.eq.s32.totalorder %v6016_v28, %v10899_v60  ;;  %v6570_v4 = vadd.s32 %v1277_v39, %v6367_v10  ;;  %v6596_v19 = vpop.permute.xlu1 %2484  ;;  %10981 = vst [vmem:[#allocation57_spill] sm:$0xff] %v6598_v6 }
 0x2a8   :  { %v6551_v33 = vsel %vm10972_vm5, %v10934_v9, 0  ;;  %v1196_v58 = vsel %vm10973_vm14, %v10930_v14, 0  ;;  %v1207_v54 = vsel %vm10974_vm8, %v10908_v44, 0  ;;  %vm10975_vm14 = vcmp.eq.s32.totalorder %v6013_v31, %v10915_v53  ;;  %10980 = vst [vmem:[#allocation44_spill] sm:$0xff] %v6596_v19  ;;  %2604 = vrot.lane.b32.xlu1 %v5895_v56, %s3661_s20 }
 0x2a9   :  { %v6576_v26 = vsel %vm10975_vm14, %v10938_v30, 0  ;;  %v1337_v32 = vadd.s32 %v1336_v49, %v1196_v58  ;;  %v1353_v17 = vadd.s32 %v1352_v35, %v1207_v54  ;;  %vm10976_vm5 = vcmp.eq.s32.totalorder %v6013_v31, %v10916_v40 }
 0x2aa   :  { %v1197_v7 = vsel %vm10976_vm5, %v10941_v22, 0  ;;  %vm10977_vm15 = vcmp.eq.s32.totalorder %v6016_v28, %v10901_v46  ;;  %vm10978_vm14 = vcmp.eq.s32.totalorder %v6019_v50, %v10884_v41  ;;  %vm10979_vm10 = vcmp.eq.s32.totalorder %v6019_v50, %v10886_v52 }
 0x2ab   :  { %v1208_v10 = vsel %vm10977_vm15, %v10910_v0, 0  ;;  %v1219_v39 = vsel %vm10978_vm14, %v10894_v21, 0  ;;  %v1220_v2 = vsel %vm10979_vm10, %v10895_v11, 0  ;;  %vm1042_vm5 = vcmp.eq.s32.totalorder %v6019_v50, %v10915_v53 }
 0x2ac   :  { %v1298_v23 = vadd.s32 %v1297_v34, %v6431_v38  ;;  %v1198_v49 = vsel %vm1022_vm13, %v10942_v61, 0  ;;  %v1354_v35 = vadd.s32 %v1353_v17, %v1208_v10  ;;  %v1371_v58 = vadd.s32 %v1220_v2, %v1219_v39  ;;  %v6667_v10 = vpop.permute.xlu1 %2488  ;;  %v6669_v39 = vpop.permute.xlu0 %2486 }
 0x2ad   :  { %vm1052_vm10 = vcmp.eq.s32.totalorder %v6019_v50, %v10909_v8  ;;  %v1318_v54 = vadd.s32 %v1317_v29, %v1182_v62  ;;  %v1338_v6 = vadd.s32 %v1337_v32, %v1197_v7  ;;  %vm10982_vm14 = vcmp.eq.s32.totalorder %v6016_v28, %v10902_v45  ;;  %10984 = vst [vmem:[#allocation58_spill] sm:$0xff] %v6667_v10 }
 0x2ae   :  { %v1209_v38 = vsel %vm10982_vm14, %v10914_v25, 0  ;;  %vm10983_vm8 = vcmp.eq.s32.totalorder %v6019_v50, %v10893_v15  ;;  %vm1054_vm13 = vcmp.eq.s32.totalorder %v6019_v50, %v10917_v3  ;;  %vm1055_vm15 = vcmp.eq.s32.totalorder %v6019_v50, %v10919_v13  ;;  %10985 = vst [vmem:[#allocation59_spill] sm:$0xff] %v6669_v39 }
 0x2af   :  { %v1221_v34 = vsel %vm10983_vm8, %v10900_v51, 0  ;;  %vm1063_vm14 = vcmp.eq.s32.totalorder %v6030_v24, %v10899_v60  ;;  %v1199_v62 = vsel %vm1023_vm12, %v10945_v12, 0  ;;  %v6643_v1 = vsel %vm1024_vm2, %v10947_v55, 0 }
 0x2b0   :  { %v1355_v48 = vadd.s32 %v1354_v35, %v1209_v38  ;;  %v1372_v29 = vadd.s32 %v1371_v58, %v1221_v34  ;;  %vm1056_vm8 = vcmp.eq.s32.totalorder %v6019_v50, %v10922_v63  ;;  %v6651_v32 = vsel %vm1025_vm9, %v10934_v9, 0 }
 0x2b1   :  { %v6657_v17 = vsel %vm1026_vm0, %v10938_v30, 0  ;;  %v1210_v31 = vsel %vm1034_vm1, %v10918_v43, 0  ;;  %v1222_v7 = vsel %vm1046_vm7, %v10905_v57, 0  ;;  %vm1057_vm12 = vcmp.eq.s32.totalorder %v6030_v24, %v10913_v27 }
 0x2b2   :  { %vm1064_vm2 = vcmp.eq.s32.totalorder %v6030_v24, %v10901_v46  ;;  %vm1075_vm9 = vcmp.eq.s32.totalorder %v6033_v59, %v10884_v41  ;;  %vm1076_vm0 = vcmp.eq.s32.totalorder %v6033_v59, %v10886_v52  ;;  %v6680_v2 = vadd.s32 %v1298_v23, %v6437_v36  ;;  %v10987_v23 = vld [vmem:[#allocation110_spill] sm:$0xff] }
 0x2b3   :  { %v1356_v35 = vadd.s32 %v1355_v48, %v1210_v31  ;;  %v1211_v58 = vsel %vm1035_vm3, %v10923_v20, 0  ;;  %v1373_v38 = vadd.s32 %v1372_v29, %v1222_v7  ;;  %v1319_v34 = vadd.s32 %v1318_v54, %v6517_v5  ;;  %2602 = vrot.lane.b32.xlu0 %v10987_v23, %s3661_s20  ;;  %v6735_v7 = vpop.permute.xlu1 %2492 }
 0x2b4   :  { %v1339_v39 = vadd.s32 %v1338_v6, %v1198_v49  ;;  %vm10986_vm7 = vcmp.eq.s32.totalorder %v6016_v28, %v10909_v8  ;;  %v1223_v36 = vsel %vm1047_vm4, %v10908_v44, 0  ;;  %v1213_v6 = vsel %vm1037_vm11, %v10941_v22, 0  ;;  %10993 = vst [vmem:[#allocation60_spill] sm:$0xff] %v6735_v7 }
 0x2b5   :  { %v1212_v10 = vsel %vm10986_vm7, %v10930_v14, 0  ;;  %v1357_v5 = vadd.s32 %v1356_v35, %v1211_v58  ;;  %vm10988_vm4 = vcmp.eq.s32.totalorder %v6016_v28, %v10917_v3  ;;  %v1374_v49 = vadd.s32 %v1373_v38, %v1223_v36  ;;  %v6737_v35 = vpop.permute.xlu0 %2490 }
 0x2b6   :  { %v1214_v56 = vsel %vm10988_vm4, %v10942_v61, 0  ;;  %vm10989_vm1 = vcmp.eq.s32.totalorder %v6016_v28, %v10919_v13  ;;  %vm10990_vm7 = vcmp.eq.s32.totalorder %v6019_v50, %v10901_v46  ;;  %vm10991_vm11 = vcmp.eq.s32.totalorder %v6030_v24, %v10884_v41  ;;  %10994 = vst [vmem:[#allocation110_spill] sm:$0xff] %v6737_v35 }
 0x2b7   :  { %v6721_v54 = vsel %vm10989_vm1, %v10945_v12, 0  ;;  %v1224_v48 = vsel %vm10990_vm7, %v10910_v0, 0  ;;  %v1235_v29 = vsel %vm10991_vm11, %v10894_v21, 0  ;;  %vm10992_vm4 = vcmp.eq.s32.totalorder %v6030_v24, %v10886_v52 }
 0x2b8   :  { %v1236_v31 = vsel %vm10992_vm4, %v10895_v11, 0  ;;  %v1358_v58 = vadd.s32 %v1357_v5, %v1212_v10  ;;  %vm10995_vm4 = vcmp.eq.s32.totalorder %v6016_v28, %v10922_v63  ;;  %v1375_v36 = vadd.s32 %v1374_v49, %v1224_v48  ;;  %v10998_v5 = vld [vmem:[#allocation111_spill] sm:$0xff]  ;;  %v10999_v49 = vld [vmem:[#allocation112_spill] sm:$0xff] }
 0x2b9   :  { %v6751_v38 = vsel %vm10995_vm4, %v10947_v55, 0  ;;  %v1392_v23 = vadd.s32 %v1236_v31, %v1235_v29  ;;  %v6756_v35 = vadd.s32 %v1319_v34, %v6543_v47  ;;  %v1340_v7 = vadd.s32 %v1339_v39, %v1199_v62  ;;  %2608 = vrot.lane.b32.xlu1 %v10998_v5, %s3661_s20  ;;  %2606 = vrot.lane.b32.xlu0 %v10999_v49, %s3661_s20 }
 0x2ba   :  { %vm10996_vm11 = vcmp.eq.s32.totalorder %v6019_v50, %v10902_v45  ;;  %vm10997_vm3 = vcmp.eq.s32.totalorder %v6030_v24, %v10893_v15  ;;  %vm1073_vm1 = vcmp.eq.s32.totalorder %v6033_v59, %v10913_v27  ;;  %v1359_v47 = vadd.s32 %v1358_v58, %v1213_v6  ;;  %v6804_v58 = vpop.permute.xlu1 %2496 }
 0x2bb   :  { %v1225_v10 = vsel %vm10996_vm11, %v10914_v25, 0  ;;  %v1237_v28 = vsel %vm10997_vm3, %v10900_v51, 0  ;;  %vm1074_vm11 = vcmp.eq.s32.totalorder %v6033_v59, %v10915_v53  ;;  %vm11000_vm3 = vcmp.eq.s32.totalorder %v6019_v50, %v10913_v27  ;;  %11004 = vst [vmem:[#allocation111_spill] sm:$0xff] %v6804_v58 }
 0x2bc   :  { %v6782_v62 = vsel %vm11000_vm3, %v10934_v9, 0  ;;  %v1376_v39 = vadd.s32 %v1375_v36, %v1225_v10  ;;  %v1393_v34 = vadd.s32 %v1392_v23, %v1237_v28  ;;  %v6790_v48 = vsel %vm1042_vm5, %v10938_v30, 0  ;;  %v6806_v36 = vpop.permute.xlu0 %2494 }
 0x2bd   :  { %vm11001_vm7 = vcmp.eq.s32.totalorder %v6019_v50, %v10903_v18  ;;  %vm11002_vm3 = vcmp.eq.s32.totalorder %v6019_v50, %v10904_v16  ;;  %vm11003_vm4 = vcmp.eq.s32.totalorder %v6030_v24, %v10896_v37  ;;  %11005 = vst [vmem:[#allocation112_spill] sm:$0xff] %v6806_v36  ;;  %v1228_v10 = vsel %vm1052_vm10, %v10930_v14, 0 }
 0x2be   :  { %v1226_v6 = vsel %vm11001_vm7, %v10918_v43, 0  ;;  %v1227_v29 = vsel %vm11002_vm3, %v10923_v20, 0  ;;  %v1238_v31 = vsel %vm11003_vm4, %v10905_v57, 0  ;;  %vm11006_vm5 = vcmp.eq.s32.totalorder %v6019_v50, %v10916_v40 }
 0x2bf   :  { %v1377_v23 = vadd.s32 %v1376_v39, %v1226_v6  ;;  %v1229_v28 = vsel %vm11006_vm5, %v10941_v22, 0  ;;  %v1394_v5 = vadd.s32 %v1393_v34, %v1238_v31  ;;  %vm1081_vm7 = vcmp.eq.s32.totalorder %v6033_v59, %v10902_v45  ;;  %v11007_v34 = vld [vmem:[#allocation113_spill] sm:$0xff] }
 0x2c0   :  { %v1360_v49 = vadd.s32 %v1359_v47, %v1214_v56  ;;  %v1230_v39 = vsel %vm1054_vm13, %v10942_v61, 0  ;;  %v1231_v6 = vsel %vm1055_vm15, %v10945_v12, 0  ;;  %v1239_v36 = vsel %vm1063_vm14, %v10908_v44, 0  ;;  %2612 = vrot.lane.b32.xlu1 %v11007_v34, %s3661_s20  ;;  %v11008_v56 = vld [vmem:[#allocation114_spill] sm:$0xff] }
 0x2c1   :  { %2610 = vrot.lane.b32.xlu0 %v11008_v56, %s3661_s20  ;;  %vm1082_vm10 = vcmp.eq.s32.totalorder %v6033_v59, %v10903_v18  ;;  %v6837_v47 = vadd.s32 %v1340_v7, %v6643_v1  ;;  %v1378_v31 = vadd.s32 %v1377_v23, %v1227_v29  ;;  %v6843_v58 = vsel %vm1056_vm8, %v10947_v55, 0  ;;  %v6865_v29 = vpop.permute.xlu1 %2500 }
 0x2c2   :  { %v1395_v19 = vadd.s32 %v1394_v5, %v1239_v36  ;;  %vm1083_vm15 = vcmp.eq.s32.totalorder %v6033_v59, %v10904_v16  ;;  %v6851_v34 = vsel %vm1057_vm12, %v10934_v9, 0  ;;  %v1240_v1 = vsel %vm1064_vm2, %v10910_v0, 0  ;;  %v6867_v36 = vpop.permute.xlu0 %2498 }
 0x2c3   :  { %11009 = vst [vmem:[#allocation113_spill] sm:$0xff] %v6851_v34  ;;  %v1251_v50 = vsel %vm1075_vm9, %v10894_v21, 0  ;;  %v1252_v7 = vsel %vm1076_vm0, %v10895_v11, 0  ;;  %v1379_v23 = vadd.s32 %v1378_v31, %v1228_v10  ;;  %vm11010_vm13 = vcmp.eq.s32.totalorder %v6030_v24, %v10915_v53 }
 0x2c4   :  { %v6873_v5 = vsel %vm11010_vm13, %v10938_v30, 0  ;;  %v1396_v56 = vadd.s32 %v1395_v19, %v1240_v1  ;;  %v1413_v34 = vadd.s32 %v1252_v7, %v1251_v50  ;;  %v1361_v21 = vadd.s32 %v1360_v49, %v6721_v54  ;;  %v11014_v19 = vld [vmem:[#allocation115_spill] sm:$0xff]  ;;  %v11015_v54 = vld [vmem:[#allocation118_spill] sm:$0xff] }
 0x2c5   :  { %vm11011_vm14 = vcmp.eq.s32.totalorder %v6030_v24, %v10902_v45  ;;  %vm11012_vm8 = vcmp.eq.s32.totalorder %v6030_v24, %v10903_v18  ;;  %vm11013_vm12 = vcmp.eq.s32.totalorder %v6033_v59, %v10893_v15  ;;  %2616 = vrot.lane.b32.xlu1 %v11014_v19, %s3661_s20  ;;  %2614 = vrot.lane.b32.xlu0 %v11015_v54, %s3661_s20  ;;  %v6914_v50 = vpop.permute.xlu1 %2504  ;;  %v11026_v19 = vld [vmem:[#allocation120_spill] sm:$0xff]  ;;  %v11033_v45 = vld [vmem:[#allocation121_spill] sm:$0xff]  ;;  %v1259_v18 = vsel %vm1083_vm15, %v10923_v20, 0 }
 0x2c6   :  { %v1241_v52 = vsel %vm11011_vm14, %v10914_v25, 0  ;;  %v1242_v41 = vsel %vm11012_vm8, %v10918_v43, 0  ;;  %v1253_v11 = vsel %vm11013_vm12, %v10900_v51, 0  ;;  %v1380_v10 = vadd.s32 %v1379_v23, %v1229_v28  ;;  %v6916_v7 = vpop.permute.xlu0 %2502  ;;  %v11029_v54 = vld [vmem:[#allocation52_spill] sm:$0xff] }
 0x2c7   :  { %v1397_v49 = vadd.s32 %v1396_v56, %v1241_v52  ;;  %vm11016_vm2 = vcmp.eq.s32.totalorder %v6030_v24, %v10904_v16  ;;  %v1414_v1 = vadd.s32 %v1413_v34, %v1253_v11  ;;  %vm1084_vm9 = vcmp.eq.s32.totalorder %v6033_v59, %v10909_v8  ;;  %11021 = vst [vmem:[#allocation114_spill] sm:$0xff] %v6916_v7 }
 0x2c8   :  { %v1243_v31 = vsel %vm11016_vm2, %v10923_v20, 0  ;;  %vm11017_vm0 = vcmp.eq.s32.totalorder %v6030_v24, %v10909_v8  ;;  %vm11018_vm4 = vcmp.eq.s32.totalorder %v6030_v24, %v10916_v40  ;;  %vm11019_vm3 = vcmp.eq.s32.totalorder %v6030_v24, %v10917_v3 }
 0x2c9   :  { %v1244_v15 = vsel %vm11017_vm0, %v10930_v14, 0  ;;  %v1245_v51 = vsel %vm11018_vm4, %v10941_v22, 0  ;;  %v1246_v28 = vsel %vm11019_vm3, %v10942_v61, 0  ;;  %vm11020_vm5 = vcmp.eq.s32.totalorder %v6033_v59, %v10896_v37  ;;  %2618 = vrot.lane.b32.xlu0 %v11026_v19, %s3661_s20  ;;  %v6963_v7 = vpop.permute.xlu1 %2508 }
 0x2ca   :  { %v1254_v34 = vsel %vm11020_vm5, %v10905_v57, 0  ;;  %v1381_v23 = vadd.s32 %v1380_v10, %v1230_v39  ;;  %v1398_v56 = vadd.s32 %v1397_v49, %v1242_v41  ;;  %vm11022_vm13 = vcmp.eq.s32.totalorder %v6030_v24, %v10919_v13  ;;  %v11030_v49 = vld [vmem:[#allocation27_spill] sm:$0xff] }
 0x2cb   :  { %v1247_v52 = vsel %vm11022_vm13, %v10945_v12, 0  ;;  %v1415_v11 = vadd.s32 %v1414_v1, %v1254_v34  ;;  %vm1085_vm14 = vcmp.eq.s32.totalorder %v6033_v59, %v10916_v40  ;;  %vm11023_vm8 = vcmp.eq.s32.totalorder %v6030_v24, %v10922_v63  ;;  %v11025_v24 = vld [vmem:[#allocation119_spill] sm:$0xff]  ;;  %v11031_v1 = vld [vmem:[#allocation53_spill] sm:$0xff] }
 0x2cc   :  { %v6928_v37 = vsel %vm11023_vm8, %v10947_v55, 0  ;;  %v6934_v57 = vsel %vm1073_vm1, %v10934_v9, 0  ;;  %v6940_v39 = vsel %vm1074_vm11, %v10938_v30, 0  ;;  %vm11024_vm12 = vcmp.eq.s32.totalorder %v6033_v59, %v10899_v60  ;;  %2620 = vrot.lane.b32.xlu1 %v11025_v24, %s3661_s20  ;;  %v11032_v24 = vld [vmem:[#allocation39_spill] sm:$0xff] }
 0x2cd   :  { %v1255_v41 = vsel %vm11024_vm12, %v10908_v44, 0  ;;  %vm1086_vm1 = vcmp.eq.s32.totalorder %v6033_v59, %v10917_v3  ;;  %v1362_v27 = vadd.s32 %v1361_v21, %v6751_v38  ;;  %v1399_v9 = vadd.s32 %v1398_v56, %v1243_v31  ;;  %v11028_v44 = vld [vmem:[#allocation37_spill] sm:$0xff]  ;;  %v6965_v38 = vpop.permute.xlu0 %2506 }
 0x2ce   :  { %v1416_v53 = vadd.s32 %v1415_v11, %v1255_v41  ;;  %vm11027_vm11 = vcmp.eq.s32.totalorder %v6033_v59, %v10901_v46  ;;  %v1382_v60 = vadd.s32 %v1381_v23, %v1231_v6  ;;  %v1265_v10 = vadd.s32 %v11029_v54, %v11028_v44  ;;  %v11036_v56 = vld [vmem:[#allocation17_spill] sm:$0xff] }
 0x2cf   :  { %v1256_v30 = vsel %vm11027_vm11, %v10910_v0, 0  ;;  %v1286_v34 = vadd.s32 %v11031_v1, %v11030_v49  ;;  %v1307_v19 = vadd.s32 %v6483_v42, %v11032_v24  ;;  %v1400_v21 = vadd.s32 %v1399_v9, %v1244_v15  ;;  %v11039_v49 = vld [vmem:[#allocation124_spill] sm:$0xff] }
 0x2d0   :  { %v1417_v31 = vadd.s32 %v1416_v53, %v1256_v30  ;;  %v1257_v46 = vsel %vm1081_vm7, %v10914_v25, 0  ;;  %v1328_v0 = vadd.s32 %v6576_v26, %v6551_v33  ;;  %vm1087_vm2 = vcmp.eq.s32.totalorder %v6033_v59, %v10919_v13  ;;  %2624 = vrot.lane.b32.xlu1 %v11033_v45, %s3661_s20  ;;  %v11034_v25 = vld [vmem:[#allocation26_spill] sm:$0xff] }
 0x2d1   :  { %v1258_v42 = vsel %vm1082_vm10, %v10918_v43, 0  ;;  %v1279_v6 = vadd.s32 %v6570_v4, %v1265_v10  ;;  %v1300_v15 = vadd.s32 %v6680_v2, %v1286_v34  ;;  %v1321_v23 = vadd.s32 %v6756_v35, %v1307_v19  ;;  %2622 = vrot.lane.b32.xlu0 %v11034_v25, %s3661_s20  ;;  %v11035_v4 = vld [vmem:[#allocation89_spill] sm:$0xff]  ;;  %v11037_v2 = vld [vmem:[#allocation12_spill] sm:$0xff]  ;;  %v6998_v53 = vpop.permute.xlu0 %2510 }
 0x2d2   :  { %v1401_v33 = vadd.s32 %v1400_v21, %v1245_v51  ;;  %v1418_v26 = vadd.s32 %v1417_v31, %v1257_v46  ;;  %v1342_v43 = vadd.s32 %v6837_v47, %v1328_v0  ;;  %vm2001_vm7 = vcmp.eq.s32.totalorder %v11036_v56, %v11035_v4  ;;  %v6996_v51 = vpop.permute.xlu1 %2512 }
 0x2d3   :  { %vm2000_vm10 = vcmp.eq.s32.totalorder %v11037_v2, %v11035_v4  ;;  %v1383_v35 = vadd.s32 %v1382_v60, %v6843_v58  ;;  %v1280_v11 = vrot.slane %v1279_v6, 4  ;;  %v1301_v41 = vrot.slane %v1300_v15, 4  ;;  %v11038_v60 = vld [vmem:[#allocation123_spill] sm:$0xff] }
 0x2d4   :  { %v1322_v9 = vrot.slane %v1321_v23, 4  ;;  %vm1088_vm15 = vcmp.eq.s32.totalorder %v6033_v59, %v10922_v63  ;;  %v1402_v16 = vadd.s32 %v1401_v33, %v1246_v28  ;;  %v1419_v20 = vadd.s32 %v1418_v26, %v1258_v42  ;;  %2628 = vrot.lane.b32.xlu1 %v11038_v60, %s3661_s20 }
 0x2d5   :  { %v1343_v47 = vrot.slane %v1342_v43, 4  ;;  %v1349_v30 = vadd.s32 %v6657_v17, %v6651_v32  ;;  %v1281_v44 = vadd.s32 %v1280_v11, %v1279_v6  ;;  %v1302_v54 = vadd.s32 %v1301_v41, %v1300_v15  ;;  %2626 = vrot.lane.b32.xlu0 %v11039_v49, %s3661_s20  ;;  %v11040_v6 = vld [vmem:[#allocation125_spill] sm:$0xff]  ;;  %v11041_v15 = vld [vmem:[#allocation126_spill] sm:$0xff] }
 0x2d6   :  { %v1323_v10 = vadd.s32 %v1322_v9, %v1321_v23  ;;  %v1370_v58 = vadd.s32 %v6790_v48, %v6782_v62  ;;  %v1403_v1 = vadd.s32 %v1402_v16, %v1247_v52  ;;  %v1420_v34 = vadd.s32 %v1419_v20, %v1259_v18  ;;  %v7014_v31 = vpop.permute.xlu1 %2516  ;;  %v7016_v62 = vpop.permute.xlu0 %2514  ;;  %v11042_v20 = vld [vmem:[#allocation113_spill] sm:$0xff] }
 0x2d7   :  { %v1260_v28 = vsel %vm1084_vm9, %v10930_v14, 0  ;;  %v1344_v32 = vadd.s32 %v1343_v47, %v1342_v43  ;;  %v1282_v17 = vrot.slane %v1281_v44, 2  ;;  %v1303_v24 = vrot.slane %v1302_v54, 2 }
 0x2d8   :  { %v1324_v19 = vrot.slane %v1323_v10, 2  ;;  %v1363_v21 = vadd.s32 %v1362_v27, %v1349_v30  ;;  %v1421_v48 = vadd.s32 %v1420_v34, %v1260_v28  ;;  %v1261_v52 = vsel %vm1085_vm14, %v10941_v22, 0  ;;  %2632 = vrot.lane.b32.xlu1 %v11040_v6, %s3661_s20  ;;  %v11043_v30 = vld [vmem:[#allocation35_spill] sm:$0xff] }
 0x2d9   :  { %v1345_v46 = vrot.slane %v1344_v32, 2  ;;  %v1384_v0 = vadd.s32 %v1383_v35, %v1370_v58  ;;  %v1262_v8 = vsel %vm1086_vm1, %v10942_v61, 0  ;;  %v1283_v14 = vadd.s32 %v1282_v17, %v1281_v44  ;;  %2630 = vrot.lane.b32.xlu0 %v11041_v15, %s3661_s20  ;;  %v11044_v44 = vld [vmem:[#allocation50_spill] sm:$0xff] }
 0x2da   :  { %v1304_v42 = vadd.s32 %v1303_v24, %v1302_v54  ;;  %v1325_v27 = vadd.s32 %v1324_v19, %v1323_v10  ;;  %v1404_v23 = vadd.s32 %v1403_v1, %v6928_v37  ;;  %v1422_v40 = vadd.s32 %v1421_v48, %v1261_v52  ;;  %v7031_v3 = vpop.permute.xlu1 %2520  ;;  %v7033_v61 = vpop.permute.xlu0 %2518  ;;  %v11047_v24 = vld [vmem:[#allocation78_spill] sm:$0xff]  ;;  %v11048_v19 = vld [vmem:[#allocation11_spill] sm:$0xff] }
 0x2db   :  { %v1346_v22 = vadd.s32 %v1345_v46, %v1344_v32  ;;  %v1364_v45 = vrot.slane %v1363_v21, 4  ;;  %v1284_v25 = vrot.slane %v1283_v14, 1  ;;  %v1385_v18 = vrot.slane %v1384_v0, 4 }
 0x2dc   :  { %v1305_v33 = vrot.slane %v1304_v42, 1  ;;  %v1326_v26 = vrot.slane %v1325_v27, 1  ;;  %v1423_v43 = vadd.s32 %v1422_v40, %v1262_v8  ;;  %v1263_v35 = vsel %vm1087_vm2, %v10945_v12, 0  ;;  %2636 = vrot.lane.b32.xlu1 %v11043_v30, %s3661_s20  ;;  %v11052_v40 = vld [vmem:[#allocation4_spill] sm:$0xff] }
 0x2dd   :  { %v1347_v11 = vrot.slane %v1346_v22, 1  ;;  %v1365_v41 = vadd.s32 %v1364_v45, %v1363_v21  ;;  %v1285_v37 = vadd.s32 %v1284_v25, %v1283_v14  ;;  %v1391_v47 = vadd.s32 %v6873_v5, %v11042_v20  ;;  %2634 = vrot.lane.b32.xlu0 %v11044_v44, %s3661_s20 }
 0x2de   :  { %v1306_v9 = vadd.s32 %v1305_v33, %v1304_v42  ;;  %v1327_v16 = vadd.s32 %v1326_v26, %v1325_v27  ;;  %v11045_v54 = vmov 0   ;;  %v1424_v10 = vadd.s32 %v1423_v43, %v1263_v35  ;;  %v7058_v34 = vpop.permute.xlu1 %2524  ;;  %v7060_v56 = vpop.permute.xlu0 %2522 }
 0x2df   :  { %v2257_v13 = vsel %vm2001_vm7, 1, %v11045_v54  ;;  %v2256_v12 = vsel %vm2000_vm10, 1, %v11045_v54  ;;  %v1366_v58 = vrot.slane %v1365_v41, 2  ;;  %v1264_v5 = vsel %vm1088_vm15, %v10947_v55, 0  ;;  %v11050_v55 = vld [vmem:[#allocation5_spill] sm:$0xff] }
 0x2e0   :  { %v1386_v60 = vadd.s32 %v1385_v18, %v1384_v0  ;;  %v1405_v49 = vadd.s32 %v1404_v23, %v1391_v47  ;;  %vm11046_vm9 = vcmask 1041409   ;;  %v1425_v28 = vadd.s32 %v1424_v10, %v1264_v5  ;;  %2640 = vrot.lane.b32.xlu1 %v2257_v13, %s3661_s20 }
 0x2e1   :  { %v1433_v1 = vsel %vm11046_vm9, %v1306_v9, %v1285_v37  ;;  %v1348_v32 = vadd.s32 %v1347_v11, %v1346_v22  ;;  %v1367_v17 = vadd.s32 %v1366_v58, %v1365_v41  ;;  %v1412_v2 = vadd.s32 %v6940_v39, %v6934_v57  ;;  %2638 = vrot.lane.b32.xlu0 %v2256_v12, %s3661_s20  ;;  %v11054_v41 = vld [vmem:[#allocation10_spill] sm:$0xff] }
 0x2e2   :  { %vm2003_vm0 = vcmp.eq.s32.totalorder %v11048_v19, %v11047_v24  ;;  %v1387_v21 = vrot.slane %v1386_v60, 2  ;;  %v1406_v59 = vrot.slane %v1405_v49, 4  ;;  %vm11049_vm4 = vcmask 1042434   ;;  %v7071_v8 = vpop.permute.xlu1 %2528  ;;  %v7073_v57 = vpop.permute.xlu0 %2526  ;;  %v11057_v58 = vld [vmem:[#allocation42_spill] sm:$0xff] }
 0x2e3   :  { %v1434_v63 = vsel %vm11049_vm4, %v1327_v16, %v1433_v1  ;;  %vm2002_vm3 = vcmp.eq.s32.totalorder %v11050_v55, %v11047_v24  ;;  %v1368_v48 = vrot.slane %v1367_v17, 1  ;;  %v1426_v52 = vadd.s32 %v1425_v28, %v1412_v2 }
 0x2e4   :  { %v1388_v46 = vadd.s32 %v1387_v21, %v1386_v60  ;;  %v1407_v0 = vadd.s32 %v1406_v59, %v1405_v49  ;;  %v2259_v39 = vsel %vm2003_vm0, 1, %v11045_v54  ;;  %vm11051_vm5 = vcmask 1043459  }
 0x2e5   :  { %v1427_v14 = vrot.slane %v1426_v52, 4  ;;  %v1435_v42 = vsel %vm11051_vm5, %v1348_v32, %v1434_v63  ;;  %v2258_v27 = vsel %vm2002_vm3, 1, %v11045_v54  ;;  %v1369_v6 = vadd.s32 %v1368_v48, %v1367_v17  ;;  %2644 = vrot.lane.b32.xlu1 %v2259_v39, %s3661_s20  ;;  %v11059_v17 = vld [vmem:[#allocation41_spill] sm:$0xff]  ;;  %v11060_v48 = vld [vmem:[#allocation79_spill] sm:$0xff] }
 0x2e6   :  { %v1389_v15 = vrot.slane %v1388_v46, 1  ;;  %v1408_v23 = vrot.slane %v1407_v0, 2  ;;  %2642 = vrot.lane.b32.xlu0 %v2258_v27, %s3661_s20  ;;  %vm2005_vm13 = vcmp.eq.s32.totalorder %v11048_v19, %v11052_v40  ;;  %vm2004_vm14 = vcmp.eq.s32.totalorder %v11050_v55, %v11052_v40  ;;  %v7085_v33 = vpop.permute.xlu1 %2532  ;;  %v7087_v26 = vpop.permute.xlu0 %2530 }
 0x2e7   :  { %v1428_v22 = vadd.s32 %v1427_v14, %v1426_v52  ;;  %vm11053_vm8 = vcmask 1044484   ;;  %v2261_v35 = vsel %vm2005_vm13, 1, %v11045_v54  ;;  %v2260_v11 = vsel %vm2004_vm14, 1, %v11045_v54  ;;  %v11061_v14 = vld [vmem:[#allocation80_spill] sm:$0xff] }
 0x2e8   :  { %v1409_v45 = vadd.s32 %v1408_v23, %v1407_v0  ;;  %v1436_v25 = vsel %vm11053_vm8, %v1369_v6, %v1435_v42  ;;  %v1390_v18 = vadd.s32 %v1389_v15, %v1388_v46  ;;  %vm2007_vm12 = vcmp.eq.s32.totalorder %v11048_v19, %v11054_v41  ;;  %v11062_v23 = vld [vmem:[#allocation81_spill] sm:$0xff] }
 0x2e9   :  { %v1429_v43 = vrot.slane %v1428_v22, 2  ;;  %2648 = vrot.lane.b32.xlu1 %v2261_v35, %s3661_s20  ;;  %vm2006_vm1 = vcmp.eq.s32.totalorder %v11050_v55, %v11054_v41  ;;  %vm11055_vm11 = vcmask 1045509   ;;  %v2263_v13 = vsel %vm2007_vm12, 1, %v11045_v54 }
 0x2ea   :  { %v1410_v37 = vrot.slane %v1409_v45, 1  ;;  %2646 = vrot.lane.b32.xlu0 %v2260_v11, %s3661_s20  ;;  %v1437_v16 = vsel %vm11055_vm11, %v1390_v18, %v1436_v25  ;;  %v7098_v47 = vpop.permute.xlu1 %2536  ;;  %v7100_v30 = vpop.permute.xlu0 %2534  ;;  %v2262_v12 = vsel %vm2006_vm1, 1, %v11045_v54  ;;  %vm11056_vm2 = vcmask 1046534  }
 0x2eb   :  { %v1430_v9 = vadd.s32 %v1429_v43, %v1428_v22  ;;  %vm2009_vm7 = vcmp.eq.s32.totalorder %v11048_v19, %v11057_v58  ;;  %vm2008_vm10 = vcmp.eq.s32.totalorder %v11050_v55, %v11057_v58  ;;  %vm11058_vm15 = vcmask 1047559   ;;  %v11063_v43 = vld [vmem:[#allocation82_spill] sm:$0xff] }
 0x2ec   :  { %v1411_v20 = vadd.s32 %v1410_v37, %v1409_v45  ;;  %v2265_v28 = vsel %vm2009_vm7, 1, %v11045_v54  ;;  %v2264_v32 = vsel %vm2008_vm10, 1, %v11045_v54  ;;  %vm2011_vm9 = vcmp.eq.s32.totalorder %v11048_v19, %v11059_v17 }
 0x2ed   :  { %v1431_v44 = vrot.slane %v1430_v9, 1  ;;  %2652 = vrot.lane.b32.xlu1 %v2263_v13, %s3661_s20  ;;  %vm2010_vm0 = vcmp.eq.s32.totalorder %v11050_v55, %v11059_v17  ;;  %v2267_v59 = vsel %vm2011_vm9, 1, %v11045_v54  ;;  %vm2013_vm4 = vcmp.eq.s32.totalorder %v11048_v19, %v11060_v48 }
 0x2ee   :  { %v1438_v10 = vsel %vm11056_vm2, %v1411_v20, %v1437_v16  ;;  %2650 = vrot.lane.b32.xlu0 %v2262_v12, %s3661_s20  ;;  %v7111_v60 = vpop.permute.xlu1 %2540  ;;  %v7113_v49 = vpop.permute.xlu0 %2538  ;;  %v2266_v63 = vsel %vm2010_vm0, 1, %v11045_v54  ;;  %vm2012_vm3 = vcmp.eq.s32.totalorder %v11050_v55, %v11060_v48  ;;  %v2269_v0 = vsel %vm2013_vm4, 1, %v11045_v54  ;;  %v11064_v16 = vld [vmem:[#allocation83_spill] sm:$0xff] }
 0x2ef   :  { %v1432_v5 = vadd.s32 %v1431_v44, %v1430_v9  ;;  %v2268_v39 = vsel %vm2012_vm3, 1, %v11045_v54  ;;  %vm2015_vm5 = vcmp.eq.s32.totalorder %v11048_v19, %v11061_v14  ;;  %vm2014_vm13 = vcmp.eq.s32.totalorder %v11050_v55, %v11061_v14 }
 0x2f0   :  { %v2271_v6 = vsel %vm2015_vm5, 1, %v11045_v54  ;;  %v2270_v15 = vsel %vm2014_vm13, 1, %v11045_v54  ;;  %vm2017_vm14 = vcmp.eq.s32.totalorder %v11048_v19, %v11062_v23  ;;  %vm2016_vm8 = vcmp.eq.s32.totalorder %v11050_v55, %v11062_v23 }
 0x2f1   :  { %v1439_v1 = vsel %vm11058_vm15, %v1432_v5, %v1438_v10  ;;  %2656 = vrot.lane.b32.xlu1 %v2265_v28, %s3661_s20  ;;  %v2273_v25 = vsel %vm2017_vm14, 1, %v11045_v54  ;;  %v2272_v18 = vsel %vm2016_vm8, 1, %v11045_v54  ;;  %vm2019_vm12 = vcmp.eq.s32.totalorder %v11048_v19, %v11063_v43  ;;  %v11065_v10 = vld [vmem:[#allocation84_spill] sm:$0xff] }
 0x2f2   :  { %3647 = vst [vmem:[%s10376_s4 + $0x8] sm:$0xff] %v1439_v1  ;;  %2654 = vrot.lane.b32.xlu0 %v2264_v32, %s3661_s20  ;;  %v7127_v2 = vpop.permute.xlu1 %2544  ;;  %v7129_v21 = vpop.permute.xlu0 %2542  ;;  %vm2018_vm1 = vcmp.eq.s32.totalorder %v11050_v55, %v11063_v43  ;;  %v2275_v37 = vsel %vm2019_vm12, 1, %v11045_v54  ;;  %vm2021_vm11 = vcmp.eq.s32.totalorder %v11048_v19, %v11064_v16  ;;  %vm2020_vm2 = vcmp.eq.s32.totalorder %v11050_v55, %v11064_v16 }
 0x2f3   :  { %v2274_v9 = vsel %vm2018_vm1, 1, %v11045_v54  ;;  %v2277_v13 = vsel %vm2021_vm11, 1, %v11045_v54  ;;  %v2276_v12 = vsel %vm2020_vm2, 1, %v11045_v54  ;;  %vm2023_vm7 = vcmp.eq.s32.totalorder %v11048_v19, %v11065_v10 }
 0x2f4   :  { %vm2022_vm10 = vcmp.eq.s32.totalorder %v11050_v55, %v11065_v10  ;;  %v2279_v28 = vsel %vm2023_vm7, 1, %v11045_v54  ;;  %vm2033_vm8 = vcmp.eq.s32.totalorder %v11048_v19, %v11035_v4  ;;  %vm2032_vm12 = vcmp.eq.s32.totalorder %v11050_v55, %v11035_v4 }
 0x2f5   :  { %2660 = vrot.lane.b32.xlu1 %v2267_v59, %s3661_s20  ;;  %v2278_v32 = vsel %vm2022_vm10, 1, %v11045_v54  ;;  %v11068_v59 = vld [vmem:[#allocation85_spill] sm:$0xff] }
 0x2f6   :  { %2658 = vrot.lane.b32.xlu0 %v2266_v63, %s3661_s20  ;;  %v7139_v52 = vpop.permute.xlu1 %2548  ;;  %v7141_v46 = vpop.permute.xlu0 %2546  ;;  %vm2025_vm15 = vcmp.eq.s32.totalorder %v11048_v19, %v11068_v59  ;;  %vm2024_vm9 = vcmp.eq.s32.totalorder %v11050_v55, %v11068_v59 }
 0x2f9   :  { %2664 = vrot.lane.b32.xlu1 %v2269_v0, %s3661_s20 }
 0x2fa   :  { %2662 = vrot.lane.b32.xlu0 %v2268_v39, %s3661_s20  ;;  %v7151_v42 = vpop.permute.xlu1 %2552  ;;  %v7153_v27 = vpop.permute.xlu0 %2550  ;;  %v2281_v39 = vsel %vm2025_vm15, 1, %v11045_v54 }
 0x2fd   :  { %2668 = vrot.lane.b32.xlu1 %v2271_v6, %s3661_s20  ;;  %v2280_v6 = vsel %vm2024_vm9, 1, %v11045_v54 }
 0x2fe   :  { %2666 = vrot.lane.b32.xlu0 %v2270_v15, %s3661_s20  ;;  %v7163_v22 = vpop.permute.xlu1 %2556  ;;  %v7165_v45 = vpop.permute.xlu0 %2554  ;;  %v11071_v15 = vld [vmem:[#allocation86_spill] sm:$0xff] }
 0x2ff   :  { %vm2027_vm0 = vcmp.eq.s32.totalorder %v11048_v19, %v11071_v15  ;;  %vm2026_vm4 = vcmp.eq.s32.totalorder %v11050_v55, %v11071_v15 }
 0x301   :  { %2672 = vrot.lane.b32.xlu1 %v2273_v25, %s3661_s20 }
 0x302   :  { %2670 = vrot.lane.b32.xlu0 %v2272_v18, %s3661_s20  ;;  %v7175_v35 = vpop.permute.xlu1 %2560  ;;  %v7177_v11 = vpop.permute.xlu0 %2558 }
 0x305   :  { %2676 = vrot.lane.b32.xlu1 %v2275_v37, %s3661_s20  ;;  %v2283_v37 = vsel %vm2027_vm0, 1, %v11045_v54 }
 0x306   :  { %2674 = vrot.lane.b32.xlu0 %v2274_v9, %s3661_s20  ;;  %v7187_v20 = vpop.permute.xlu1 %2564  ;;  %v7189_v44 = vpop.permute.xlu0 %2562  ;;  %v2282_v9 = vsel %vm2026_vm4, 1, %v11045_v54 }
 0x309   :  { %2680 = vrot.lane.b32.xlu1 %v2277_v13, %s3661_s20  ;;  %v11074_v13 = vld [vmem:[#allocation87_spill] sm:$0xff] }
 0x30a   :  { %2678 = vrot.lane.b32.xlu0 %v2276_v12, %s3661_s20  ;;  %v7199_v5 = vpop.permute.xlu1 %2568  ;;  %v7201_v1 = vpop.permute.xlu0 %2566  ;;  %vm2029_vm3 = vcmp.eq.s32.totalorder %v11048_v19, %v11074_v13  ;;  %vm2028_vm5 = vcmp.eq.s32.totalorder %v11050_v55, %v11074_v13 }
 0x30b   :  { %11066 = vst [vmem:[#allocation115_spill] sm:$0xff] %v7199_v5  ;;  %11067 = vst [vmem:[#allocation118_spill] sm:$0xff] %v7201_v1  ;;  %v2289_v5 = vsel %vm2033_vm8, 1, %v11045_v54 }
 0x30d   :  { %2684 = vrot.lane.b32.xlu1 %v2279_v28, %s3661_s20 }
 0x30e   :  { %2682 = vrot.lane.b32.xlu0 %v2278_v32, %s3661_s20  ;;  %v7211_v63 = vpop.permute.xlu1 %2572  ;;  %v7213_v0 = vpop.permute.xlu0 %2570  ;;  %v2285_v32 = vsel %vm2029_vm3, 1, %v11045_v54 }
 0x30f   :  { %11069 = vst [vmem:[#allocation119_spill] sm:$0xff] %v7211_v63  ;;  %11070 = vst [vmem:[#allocation120_spill] sm:$0xff] %v7213_v0 }
 0x311   :  { %2688 = vrot.lane.b32.xlu1 %v2281_v39, %s3661_s20  ;;  %v2284_v39 = vsel %vm2028_vm5, 1, %v11045_v54 }
 0x312   :  { %2686 = vrot.lane.b32.xlu0 %v2280_v6, %s3661_s20  ;;  %v7223_v25 = vpop.permute.xlu1 %2576  ;;  %v7225_v18 = vpop.permute.xlu0 %2574  ;;  %v11075_v6 = vld [vmem:[#allocation88_spill] sm:$0xff] }
 0x313   :  { %11072 = vst [vmem:[#allocation37_spill] sm:$0xff] %v7223_v25  ;;  %11073 = vst [vmem:[#allocation52_spill] sm:$0xff] %v7225_v18  ;;  %vm2031_vm13 = vcmp.eq.s32.totalorder %v11048_v19, %v11075_v6  ;;  %vm2030_vm14 = vcmp.eq.s32.totalorder %v11050_v55, %v11075_v6  ;;  %v11080_v19 = vld [vmem:[#allocation16_spill] sm:$0xff] }
 0x314   :  { %v2287_v18 = vsel %vm2031_vm13, 1, %v11045_v54  ;;  %v2286_v25 = vsel %vm2030_vm14, 1, %v11045_v54  ;;  %vm2035_vm1 = vcmp.eq.s32.totalorder %v11080_v19, %v11047_v24  ;;  %vm2037_vm2 = vcmp.eq.s32.totalorder %v11080_v19, %v11052_v40 }
 0x315   :  { %2692 = vrot.lane.b32.xlu1 %v2283_v37, %s3661_s20  ;;  %vm2039_vm10 = vcmp.eq.s32.totalorder %v11080_v19, %v11054_v41  ;;  %vm2041_vm9 = vcmp.eq.s32.totalorder %v11080_v19, %v11057_v58  ;;  %vm2043_vm4 = vcmp.eq.s32.totalorder %v11080_v19, %v11059_v17  ;;  %vm2045_vm5 = vcmp.eq.s32.totalorder %v11080_v19, %v11060_v48 }
 0x316   :  { %2690 = vrot.lane.b32.xlu0 %v2282_v9, %s3661_s20  ;;  %v7235_v12 = vpop.permute.xlu1 %2580  ;;  %v7237_v28 = vpop.permute.xlu0 %2578  ;;  %vm2047_vm14 = vcmp.eq.s32.totalorder %v11080_v19, %v11061_v14 }
 0x319   :  { %2696 = vrot.lane.b32.xlu1 %v2285_v32, %s3661_s20  ;;  %v11076_v32 = vld [vmem:[#allocation56_spill] sm:$0xff] }
 0x31a   :  { %2694 = vrot.lane.b32.xlu0 %v2284_v39, %s3661_s20  ;;  %v7247_v37 = vpop.permute.xlu1 %2584  ;;  %v7249_v9 = vpop.permute.xlu0 %2582  ;;  %v11077_v39 = vld [vmem:[#allocation7_spill] sm:$0xff] }
 0x31b   :  { %v7261_v0 = vrot.slane %v11077_v39, %v11076_v32  ;;  %v2291_v39 = vsel %vm2035_vm1, 1, %v11045_v54 }
 0x31d   :  { %2700 = vrot.lane.b32.xlu1 %v2287_v18, %s3661_s20  ;;  %v2288_v18 = vsel %vm2032_vm12, 1, %v11045_v54  ;;  %vm2034_vm11 = vcmp.eq.s32.totalorder %v7261_v0, %v11047_v24  ;;  %vm2036_vm7 = vcmp.eq.s32.totalorder %v7261_v0, %v11052_v40  ;;  %vm2038_vm15 = vcmp.eq.s32.totalorder %v7261_v0, %v11054_v41 }
 0x31e   :  { %2698 = vrot.lane.b32.xlu0 %v2286_v25, %s3661_s20  ;;  %v7263_v63 = vpop.permute.xlu1 %2588  ;;  %v7265_v1 = vpop.permute.xlu0 %2586  ;;  %vm2040_vm0 = vcmp.eq.s32.totalorder %v7261_v0, %v11057_v58  ;;  %vm2042_vm3 = vcmp.eq.s32.totalorder %v7261_v0, %v11059_v17  ;;  %vm2044_vm13 = vcmp.eq.s32.totalorder %v7261_v0, %v11060_v48  ;;  %vm2046_vm8 = vcmp.eq.s32.totalorder %v7261_v0, %v11061_v14 }
 0x31f   :  { %11078 = vst [vmem:[#allocation27_spill] sm:$0xff] %v7263_v63  ;;  %11079 = vst [vmem:[#allocation53_spill] sm:$0xff] %v7265_v1  ;;  %v2290_v1 = vsel %vm2034_vm11, 1, %v11045_v54  ;;  %vm2049_vm12 = vcmp.eq.s32.totalorder %v11080_v19, %v11062_v23  ;;  %vm2048_vm1 = vcmp.eq.s32.totalorder %v7261_v0, %v11062_v23  ;;  %vm2051_vm11 = vcmp.eq.s32.totalorder %v11080_v19, %v11063_v43 }
 0x321   :  { %2704 = vrot.lane.b32.xlu1 %v2289_v5, %s3661_s20 }
 0x322   :  { %2702 = vrot.lane.b32.xlu0 %v2288_v18, %s3661_s20  ;;  %v7275_v55 = vpop.permute.xlu1 %2592  ;;  %v7277_v25 = vpop.permute.xlu0 %2590 }
 0x323   :  { %11081 = vst [vmem:[#allocation39_spill] sm:$0xff] %v7275_v55  ;;  %11082 = vst [vmem:[#allocation121_spill] sm:$0xff] %v7277_v25  ;;  %v2293_v25 = vsel %vm2037_vm2, 1, %v11045_v54  ;;  %v2292_v55 = vsel %vm2036_vm7, 1, %v11045_v54  ;;  %vm2050_vm2 = vcmp.eq.s32.totalorder %v7261_v0, %v11063_v43  ;;  %vm2053_vm7 = vcmp.eq.s32.totalorder %v11080_v19, %v11064_v16 }
 0x325   :  { %2708 = vrot.lane.b32.xlu1 %v2291_v39, %s3661_s20 }
 0x326   :  { %2706 = vrot.lane.b32.xlu0 %v2290_v1, %s3661_s20  ;;  %v7287_v5 = vpop.permute.xlu1 %2596  ;;  %v7289_v18 = vpop.permute.xlu0 %2594 }
 0x327   :  { %11083 = vst [vmem:[#allocation26_spill] sm:$0xff] %v7287_v5  ;;  %11084 = vst [vmem:[#allocation89_spill] sm:$0xff] %v7289_v18  ;;  %v2295_v18 = vsel %vm2039_vm10, 1, %v11045_v54  ;;  %v2294_v5 = vsel %vm2038_vm15, 1, %v11045_v54  ;;  %vm2052_vm10 = vcmp.eq.s32.totalorder %v7261_v0, %v11064_v16  ;;  %vm2055_vm15 = vcmp.eq.s32.totalorder %v11080_v19, %v11065_v10 }
 0x329   :  { %2712 = vrot.lane.b32.xlu1 %v2293_v25, %s3661_s20 }
 0x32a   :  { %2710 = vrot.lane.b32.xlu0 %v2292_v55, %s3661_s20  ;;  %v7299_v1 = vpop.permute.xlu1 %2600  ;;  %v7301_v39 = vpop.permute.xlu0 %2598 }
 0x32b   :  { %11085 = vst [vmem:[#allocation17_spill] sm:$0xff] %v7299_v1  ;;  %11086 = vst [vmem:[#allocation12_spill] sm:$0xff] %v7301_v39  ;;  %v2297_v39 = vsel %vm2041_vm9, 1, %v11045_v54  ;;  %v2296_v1 = vsel %vm2040_vm0, 1, %v11045_v54  ;;  %vm2054_vm9 = vcmp.eq.s32.totalorder %v7261_v0, %v11065_v10  ;;  %vm2057_vm0 = vcmp.eq.s32.totalorder %v11080_v19, %v11068_v59 }
 0x32d   :  { %2716 = vrot.lane.b32.xlu1 %v2295_v18, %s3661_s20 }
 0x32e   :  { %2714 = vrot.lane.b32.xlu0 %v2294_v5, %s3661_s20  ;;  %v7311_v55 = vpop.permute.xlu1 %2604  ;;  %v7313_v25 = vpop.permute.xlu0 %2602 }
 0x32f   :  { %11087 = vst [vmem:[#allocation123_spill] sm:$0xff] %v7311_v55  ;;  %11088 = vst [vmem:[#allocation124_spill] sm:$0xff] %v7313_v25  ;;  %v2299_v25 = vsel %vm2043_vm4, 1, %v11045_v54  ;;  %v2298_v55 = vsel %vm2042_vm3, 1, %v11045_v54  ;;  %vm2056_vm4 = vcmp.eq.s32.totalorder %v7261_v0, %v11068_v59  ;;  %vm2059_vm3 = vcmp.eq.s32.totalorder %v11080_v19, %v11071_v15 }
 0x331   :  { %2720 = vrot.lane.b32.xlu1 %v2297_v39, %s3661_s20 }
 0x332   :  { %2718 = vrot.lane.b32.xlu0 %v2296_v1, %s3661_s20  ;;  %v7323_v5 = vpop.permute.xlu1 %2608  ;;  %v7325_v18 = vpop.permute.xlu0 %2606 }
 0x333   :  { %11089 = vst [vmem:[#allocation125_spill] sm:$0xff] %v7323_v5  ;;  %11090 = vst [vmem:[#allocation126_spill] sm:$0xff] %v7325_v18  ;;  %v2301_v18 = vsel %vm2045_vm5, 1, %v11045_v54  ;;  %v2300_v5 = vsel %vm2044_vm13, 1, %v11045_v54  ;;  %vm2058_vm5 = vcmp.eq.s32.totalorder %v7261_v0, %v11071_v15  ;;  %vm2061_vm13 = vcmp.eq.s32.totalorder %v11080_v19, %v11074_v13 }
 0x335   :  { %2724 = vrot.lane.b32.xlu1 %v2299_v25, %s3661_s20 }
 0x336   :  { %2722 = vrot.lane.b32.xlu0 %v2298_v55, %s3661_s20  ;;  %v7335_v1 = vpop.permute.xlu1 %2612  ;;  %v7337_v39 = vpop.permute.xlu0 %2610 }
 0x337   :  { %11091 = vst [vmem:[#allocation113_spill] sm:$0xff] %v7335_v1  ;;  %11092 = vst [vmem:[#allocation35_spill] sm:$0xff] %v7337_v39  ;;  %v2303_v39 = vsel %vm2047_vm14, 1, %v11045_v54  ;;  %v2302_v1 = vsel %vm2046_vm8, 1, %v11045_v54  ;;  %vm2060_vm14 = vcmp.eq.s32.totalorder %v7261_v0, %v11074_v13  ;;  %vm2063_vm8 = vcmp.eq.s32.totalorder %v11080_v19, %v11075_v6 }
 0x339   :  { %2728 = vrot.lane.b32.xlu1 %v2301_v18, %s3661_s20 }
 0x33a   :  { %2726 = vrot.lane.b32.xlu0 %v2300_v5, %s3661_s20  ;;  %v7347_v55 = vpop.permute.xlu1 %2616  ;;  %v7349_v25 = vpop.permute.xlu0 %2614 }
 0x33b   :  { %11093 = vst [vmem:[#allocation50_spill] sm:$0xff] %v7347_v55  ;;  %11094 = vst [vmem:[#allocation78_spill] sm:$0xff] %v7349_v25  ;;  %v2305_v25 = vsel %vm2049_vm12, 1, %v11045_v54  ;;  %v2304_v55 = vsel %vm2048_vm1, 1, %v11045_v54  ;;  %vm2062_vm12 = vcmp.eq.s32.totalorder %v7261_v0, %v11075_v6  ;;  %vm2065_vm1 = vcmp.eq.s32.totalorder %v11080_v19, %v11035_v4  ;;  %v11114_v19 = vld [vmem:[#allocation18_spill] sm:$0xff] }
 0x33c   :  { %v2321_v63 = vsel %vm2065_vm1, 1, %v11045_v54 }
 0x33d   :  { %2732 = vrot.lane.b32.xlu1 %v2303_v39, %s3661_s20 }
 0x33e   :  { %2730 = vrot.lane.b32.xlu0 %v2302_v1, %s3661_s20  ;;  %v7359_v5 = vpop.permute.xlu1 %2620  ;;  %v7361_v18 = vpop.permute.xlu0 %2618 }
 0x33f   :  { %11095 = vst [vmem:[#allocation11_spill] sm:$0xff] %v7359_v5  ;;  %11096 = vst [vmem:[#allocation5_spill] sm:$0xff] %v7361_v18  ;;  %v2307_v18 = vsel %vm2051_vm11, 1, %v11045_v54  ;;  %v2306_v5 = vsel %vm2050_vm2, 1, %v11045_v54  ;;  %vm2064_vm11 = vcmp.eq.s32.totalorder %v7261_v0, %v11035_v4  ;;  %vm2067_vm2 = vcmp.eq.s32.totalorder %v11114_v19, %v11047_v24 }
 0x341   :  { %2736 = vrot.lane.b32.xlu1 %v2305_v25, %s3661_s20 }
 0x342   :  { %2734 = vrot.lane.b32.xlu0 %v2304_v55, %s3661_s20  ;;  %v7371_v1 = vpop.permute.xlu1 %2624 }
 0x343   :  { %11097 = vst [vmem:[#allocation4_spill] sm:$0xff] %v7371_v1  ;;  %v7373_v39 = vpop.permute.xlu0 %2622  ;;  %v2308_v1 = vsel %vm2052_vm10, 1, %v11045_v54  ;;  %vm2069_vm10 = vcmp.eq.s32.totalorder %v11114_v19, %v11052_v40 }
 0x344   :  { %11098 = vst [vmem:[#allocation10_spill] sm:$0xff] %v7373_v39  ;;  %v2309_v39 = vsel %vm2053_vm7, 1, %v11045_v54 }
 0x345   :  { %2740 = vrot.lane.b32.xlu1 %v2307_v18, %s3661_s20 }
 0x346   :  { %2738 = vrot.lane.b32.xlu0 %v2306_v5, %s3661_s20  ;;  %v7383_v55 = vpop.permute.xlu1 %2628 }
 0x347   :  { %11099 = vst [vmem:[#allocation42_spill] sm:$0xff] %v7383_v55  ;;  %v7385_v25 = vpop.permute.xlu0 %2626  ;;  %v2310_v55 = vsel %vm2054_vm9, 1, %v11045_v54  ;;  %vm2071_vm9 = vcmp.eq.s32.totalorder %v11114_v19, %v11054_v41 }
 0x348   :  { %11100 = vst [vmem:[#allocation41_spill] sm:$0xff] %v7385_v25  ;;  %v2311_v25 = vsel %vm2055_vm15, 1, %v11045_v54 }
 0x349   :  { %2744 = vrot.lane.b32.xlu1 %v2309_v39, %s3661_s20 }
 0x34a   :  { %2742 = vrot.lane.b32.xlu0 %v2308_v1, %s3661_s20  ;;  %v7395_v5 = vpop.permute.xlu1 %2632 }
 0x34b   :  { %11101 = vst [vmem:[#allocation79_spill] sm:$0xff] %v7395_v5  ;;  %v7397_v18 = vpop.permute.xlu0 %2630  ;;  %v2312_v5 = vsel %vm2056_vm4, 1, %v11045_v54  ;;  %vm2073_vm4 = vcmp.eq.s32.totalorder %v11114_v19, %v11057_v58 }
 0x34c   :  { %11102 = vst [vmem:[#allocation80_spill] sm:$0xff] %v7397_v18  ;;  %v2313_v18 = vsel %vm2057_vm0, 1, %v11045_v54 }
 0x34d   :  { %2748 = vrot.lane.b32.xlu1 %v2311_v25, %s3661_s20 }
 0x34e   :  { %2746 = vrot.lane.b32.xlu0 %v2310_v55, %s3661_s20  ;;  %v7407_v1 = vpop.permute.xlu1 %2636 }
 0x34f   :  { %11103 = vst [vmem:[#allocation81_spill] sm:$0xff] %v7407_v1  ;;  %v7409_v39 = vpop.permute.xlu0 %2634  ;;  %v2314_v1 = vsel %vm2058_vm5, 1, %v11045_v54  ;;  %vm2075_vm5 = vcmp.eq.s32.totalorder %v11114_v19, %v11059_v17 }
 0x350   :  { %11104 = vst [vmem:[#allocation82_spill] sm:$0xff] %v7409_v39  ;;  %v2315_v39 = vsel %vm2059_vm3, 1, %v11045_v54 }
 0x351   :  { %2752 = vrot.lane.b32.xlu1 %v2313_v18, %s3661_s20 }
 0x352   :  { %2750 = vrot.lane.b32.xlu0 %v2312_v5, %s3661_s20  ;;  %v7419_v55 = vpop.permute.xlu1 %2640 }
 0x353   :  { %11105 = vst [vmem:[#allocation83_spill] sm:$0xff] %v7419_v55  ;;  %v7421_v25 = vpop.permute.xlu0 %2638  ;;  %v2316_v55 = vsel %vm2060_vm14, 1, %v11045_v54  ;;  %vm2077_vm14 = vcmp.eq.s32.totalorder %v11114_v19, %v11060_v48 }
 0x354   :  { %11106 = vst [vmem:[#allocation84_spill] sm:$0xff] %v7421_v25  ;;  %v2317_v25 = vsel %vm2061_vm13, 1, %v11045_v54 }
 0x355   :  { %2756 = vrot.lane.b32.xlu1 %v2315_v39, %s3661_s20 }
 0x356   :  { %2754 = vrot.lane.b32.xlu0 %v2314_v1, %s3661_s20 }
 0x357   :  { %v7431_v5 = vpop.permute.xlu1 %2644 }
 0x358   :  { %11107 = vst [vmem:[#allocation85_spill] sm:$0xff] %v7431_v5  ;;  %v7433_v18 = vpop.permute.xlu0 %2642  ;;  %v2318_v5 = vsel %vm2062_vm12, 1, %v11045_v54  ;;  %vm2079_vm12 = vcmp.eq.s32.totalorder %v11114_v19, %v11061_v14 }
 0x359   :  { %11108 = vst [vmem:[#allocation86_spill] sm:$0xff] %v7433_v18  ;;  %2760 = vrot.lane.b32.xlu1 %v2317_v25, %s3661_s20  ;;  %v2319_v18 = vsel %vm2063_vm8, 1, %v11045_v54 }
 0x35a   :  { %2758 = vrot.lane.b32.xlu0 %v2316_v55, %s3661_s20  ;;  %v11111_v55 = vld [vmem:[#allocation9_spill] sm:$0xff] }
 0x35b   :  { %v7443_v1 = vpop.permute.xlu1 %2648  ;;  %v7457_v25 = vrot.slane %v11111_v55, %v11076_v32  ;;  %v2323_v55 = vsel %vm2067_vm2, 1, %v11045_v54 }
 0x35c   :  { %11109 = vst [vmem:[#allocation87_spill] sm:$0xff] %v7443_v1  ;;  %v7445_v39 = vpop.permute.xlu0 %2646 }
 0x35d   :  { %11110 = vst [vmem:[#allocation88_spill] sm:$0xff] %v7445_v39  ;;  %2764 = vrot.lane.b32.xlu1 %v2319_v18, %s3661_s20  ;;  %v2320_v18 = vsel %vm2064_vm11, 1, %v11045_v54  ;;  %vm2066_vm7 = vcmp.eq.s32.totalorder %v7457_v25, %v11047_v24  ;;  %vm2068_vm15 = vcmp.eq.s32.totalorder %v7457_v25, %v11052_v40  ;;  %vm2070_vm0 = vcmp.eq.s32.totalorder %v7457_v25, %v11054_v41 }
 0x35e   :  { %2762 = vrot.lane.b32.xlu0 %v2318_v5, %s3661_s20  ;;  %vm2072_vm3 = vcmp.eq.s32.totalorder %v7457_v25, %v11057_v58  ;;  %vm2074_vm13 = vcmp.eq.s32.totalorder %v7457_v25, %v11059_v17  ;;  %vm2076_vm8 = vcmp.eq.s32.totalorder %v7457_v25, %v11060_v48  ;;  %vm2078_vm1 = vcmp.eq.s32.totalorder %v7457_v25, %v11061_v14 }
 0x35f   :  { %v7459_v1 = vpop.permute.xlu1 %2652  ;;  %vm2081_vm11 = vcmp.eq.s32.totalorder %v11114_v19, %v11062_v23  ;;  %vm2080_vm2 = vcmp.eq.s32.totalorder %v7457_v25, %v11062_v23 }
 0x360   :  { %11112 = vst [vmem:[#allocation56_spill] sm:$0xff] %v7459_v1  ;;  %v7461_v39 = vpop.permute.xlu0 %2650 }
 0x361   :  { %11113 = vst [vmem:[#allocation7_spill] sm:$0xff] %v7461_v39  ;;  %2768 = vrot.lane.b32.xlu1 %v2321_v63, %s3661_s20  ;;  %v2322_v39 = vsel %vm2066_vm7, 1, %v11045_v54  ;;  %vm2083_vm7 = vcmp.eq.s32.totalorder %v11114_v19, %v11063_v43 }
 0x362   :  { %2766 = vrot.lane.b32.xlu0 %v2320_v18, %s3661_s20 }
 0x363   :  { %v7471_v0 = vpop.permute.xlu1 %2656 }
 0x364   :  { %11115 = vst [vmem:[#allocation16_spill] sm:$0xff] %v7471_v0  ;;  %v7473_v5 = vpop.permute.xlu0 %2654  ;;  %v2324_v0 = vsel %vm2068_vm15, 1, %v11045_v54  ;;  %vm2085_vm15 = vcmp.eq.s32.totalorder %v11114_v19, %v11064_v16 }
 0x365   :  { %11116 = vst [vmem:[#allocation9_spill] sm:$0xff] %v7473_v5  ;;  %2772 = vrot.lane.b32.xlu1 %v2323_v55, %s3661_s20  ;;  %v2325_v5 = vsel %vm2069_vm10, 1, %v11045_v54  ;;  %vm2082_vm10 = vcmp.eq.s32.totalorder %v7457_v25, %v11063_v43 }
 0x366   :  { %2770 = vrot.lane.b32.xlu0 %v2322_v39, %s3661_s20 }
 0x367   :  { %v7483_v63 = vpop.permute.xlu1 %2660 }
 0x368   :  { %11117 = vst [vmem:[#allocation18_spill] sm:$0xff] %v7483_v63  ;;  %v7485_v18 = vpop.permute.xlu0 %2658  ;;  %v2326_v63 = vsel %vm2070_vm0, 1, %v11045_v54  ;;  %vm2087_vm0 = vcmp.eq.s32.totalorder %v11114_v19, %v11065_v10 }
 0x369   :  { %11118 = vst [vmem:[#allocation127_spill] sm:$0xff] %v7485_v18  ;;  %2776 = vrot.lane.b32.xlu1 %v2325_v5, %s3661_s20  ;;  %v2327_v18 = vsel %vm2071_vm9, 1, %v11045_v54  ;;  %vm2084_vm9 = vcmp.eq.s32.totalorder %v7457_v25, %v11064_v16 }
 0x36a   :  { %2774 = vrot.lane.b32.xlu0 %v2324_v0, %s3661_s20 }
 0x36b   :  { %v7495_v39 = vpop.permute.xlu1 %2664 }
 0x36c   :  { %11119 = vst [vmem:[#allocation128_spill] sm:$0xff] %v7495_v39  ;;  %v7497_v55 = vpop.permute.xlu0 %2662  ;;  %v2328_v39 = vsel %vm2072_vm3, 1, %v11045_v54  ;;  %vm2089_vm3 = vcmp.eq.s32.totalorder %v11114_v19, %v11068_v59 }
 0x36d   :  { %11120 = vst [vmem:[#allocation129_spill] sm:$0xff] %v7497_v55  ;;  %2780 = vrot.lane.b32.xlu1 %v2327_v18, %s3661_s20  ;;  %v2329_v55 = vsel %vm2073_vm4, 1, %v11045_v54  ;;  %vm2086_vm4 = vcmp.eq.s32.totalorder %v7457_v25, %v11065_v10 }
 0x36e   :  { %2778 = vrot.lane.b32.xlu0 %v2326_v63, %s3661_s20 }
 0x36f   :  { %v7507_v0 = vpop.permute.xlu1 %2668 }
 0x370   :  { %11121 = vst [vmem:[#allocation130_spill] sm:$0xff] %v7507_v0  ;;  %v7509_v5 = vpop.permute.xlu0 %2666  ;;  %v2330_v0 = vsel %vm2074_vm13, 1, %v11045_v54  ;;  %vm2091_vm13 = vcmp.eq.s32.totalorder %v11114_v19, %v11071_v15 }
 0x371   :  { %11122 = vst [vmem:[#allocation131_spill] sm:$0xff] %v7509_v5  ;;  %2784 = vrot.lane.b32.xlu1 %v2329_v55, %s3661_s20  ;;  %v2331_v5 = vsel %vm2075_vm5, 1, %v11045_v54  ;;  %vm2088_vm5 = vcmp.eq.s32.totalorder %v7457_v25, %v11068_v59 }
 0x372   :  { %2782 = vrot.lane.b32.xlu0 %v2328_v39, %s3661_s20 }
 0x373   :  { %v7519_v63 = vpop.permute.xlu1 %2672 }
 0x374   :  { %11123 = vst [vmem:[#allocation132_spill] sm:$0xff] %v7519_v63  ;;  %v7521_v18 = vpop.permute.xlu0 %2670  ;;  %v2332_v63 = vsel %vm2076_vm8, 1, %v11045_v54  ;;  %vm2093_vm8 = vcmp.eq.s32.totalorder %v11114_v19, %v11074_v13 }
 0x375   :  { %11124 = vst [vmem:[#allocation133_spill] sm:$0xff] %v7521_v18  ;;  %2788 = vrot.lane.b32.xlu1 %v2331_v5, %s3661_s20  ;;  %v2333_v18 = vsel %vm2077_vm14, 1, %v11045_v54  ;;  %vm2090_vm14 = vcmp.eq.s32.totalorder %v7457_v25, %v11071_v15 }
 0x376   :  { %2786 = vrot.lane.b32.xlu0 %v2330_v0, %s3661_s20 }
 0x377   :  { %v7531_v39 = vpop.permute.xlu1 %2676 }
 0x378   :  { %11125 = vst [vmem:[#allocation134_spill] sm:$0xff] %v7531_v39  ;;  %v7533_v55 = vpop.permute.xlu0 %2674  ;;  %v2334_v39 = vsel %vm2078_vm1, 1, %v11045_v54  ;;  %vm2095_vm1 = vcmp.eq.s32.totalorder %v11114_v19, %v11075_v6 }
 0x379   :  { %11126 = vst [vmem:[#allocation135_spill] sm:$0xff] %v7533_v55  ;;  %2792 = vrot.lane.b32.xlu1 %v2333_v18, %s3661_s20  ;;  %v2335_v55 = vsel %vm2079_vm12, 1, %v11045_v54  ;;  %vm2092_vm12 = vcmp.eq.s32.totalorder %v7457_v25, %v11074_v13 }
 0x37a   :  { %2790 = vrot.lane.b32.xlu0 %v2332_v63, %s3661_s20 }
 0x37b   :  { %v7543_v0 = vpop.permute.xlu1 %2680 }
 0x37c   :  { %11127 = vst [vmem:[#allocation136_spill] sm:$0xff] %v7543_v0  ;;  %v7545_v5 = vpop.permute.xlu0 %2678  ;;  %v2336_v0 = vsel %vm2080_vm2, 1, %v11045_v54  ;;  %vm2097_vm2 = vcmp.eq.s32.totalorder %v11114_v19, %v11035_v4  ;;  %v11148_v19 = vld [vmem:[#allocation19_spill] sm:$0xff] }
 0x37d   :  { %11128 = vst [vmem:[#allocation137_spill] sm:$0xff] %v7545_v5  ;;  %2796 = vrot.lane.b32.xlu1 %v2335_v55, %s3661_s20  ;;  %v2337_v5 = vsel %vm2081_vm11, 1, %v11045_v54  ;;  %vm2094_vm11 = vcmp.eq.s32.totalorder %v7457_v25, %v11075_v6  ;;  %v2353_v1 = vsel %vm2097_vm2, 1, %v11045_v54 }
 0x37e   :  { %2794 = vrot.lane.b32.xlu0 %v2334_v39, %s3661_s20 }
 0x37f   :  { %v7555_v63 = vpop.permute.xlu1 %2684 }
 0x380   :  { %11129 = vst [vmem:[#allocation138_spill] sm:$0xff] %v7555_v63  ;;  %v7557_v18 = vpop.permute.xlu0 %2682  ;;  %v2338_v63 = vsel %vm2082_vm10, 1, %v11045_v54  ;;  %vm2099_vm10 = vcmp.eq.s32.totalorder %v11148_v19, %v11047_v24 }
 0x381   :  { %11130 = vst [vmem:[#allocation139_spill] sm:$0xff] %v7557_v18  ;;  %2800 = vrot.lane.b32.xlu1 %v2337_v5, %s3661_s20  ;;  %v2339_v18 = vsel %vm2083_vm7, 1, %v11045_v54  ;;  %vm2096_vm7 = vcmp.eq.s32.totalorder %v7457_v25, %v11035_v4 }
 0x382   :  { %2798 = vrot.lane.b32.xlu0 %v2336_v0, %s3661_s20 }
 0x383   :  { %v7567_v39 = vpop.permute.xlu1 %2688 }
 0x384   :  { %11131 = vst [vmem:[#allocation140_spill] sm:$0xff] %v7567_v39  ;;  %v7569_v55 = vpop.permute.xlu0 %2686  ;;  %v2340_v39 = vsel %vm2084_vm9, 1, %v11045_v54  ;;  %vm2101_vm9 = vcmp.eq.s32.totalorder %v11148_v19, %v11052_v40 }
 0x385   :  { %11132 = vst [vmem:[#allocation141_spill] sm:$0xff] %v7569_v55  ;;  %2804 = vrot.lane.b32.xlu1 %v2339_v18, %s3661_s20  ;;  %v2341_v55 = vsel %vm2085_vm15, 1, %v11045_v54 }
 0x386   :  { %2802 = vrot.lane.b32.xlu0 %v2338_v63, %s3661_s20 }
 0x387   :  { %v7579_v0 = vpop.permute.xlu1 %2692 }
 0x388   :  { %11133 = vst [vmem:[#allocation142_spill] sm:$0xff] %v7579_v0  ;;  %v7581_v5 = vpop.permute.xlu0 %2690  ;;  %v2342_v0 = vsel %vm2086_vm4, 1, %v11045_v54  ;;  %vm2103_vm4 = vcmp.eq.s32.totalorder %v11148_v19, %v11054_v41 }
 0x389   :  { %11134 = vst [vmem:[#allocation143_spill] sm:$0xff] %v7581_v5  ;;  %2808 = vrot.lane.b32.xlu1 %v2341_v55, %s3661_s20  ;;  %v2343_v5 = vsel %vm2087_vm0, 1, %v11045_v54 }
 0x38a   :  { %2806 = vrot.lane.b32.xlu0 %v2340_v39, %s3661_s20 }
 0x38b   :  { %v7591_v63 = vpop.permute.xlu1 %2696 }
 0x38c   :  { %11135 = vst [vmem:[#allocation144_spill] sm:$0xff] %v7591_v63  ;;  %v7593_v18 = vpop.permute.xlu0 %2694  ;;  %v2344_v63 = vsel %vm2088_vm5, 1, %v11045_v54  ;;  %vm2105_vm5 = vcmp.eq.s32.totalorder %v11148_v19, %v11057_v58 }
 0x38d   :  { %11136 = vst [vmem:[#allocation145_spill] sm:$0xff] %v7593_v18  ;;  %2812 = vrot.lane.b32.xlu1 %v2343_v5, %s3661_s20  ;;  %v2345_v18 = vsel %vm2089_vm3, 1, %v11045_v54 }
 0x38e   :  { %2810 = vrot.lane.b32.xlu0 %v2342_v0, %s3661_s20 }
 0x38f   :  { %v7603_v39 = vpop.permute.xlu1 %2700 }
 0x390   :  { %11137 = vst [vmem:[#allocation146_spill] sm:$0xff] %v7603_v39  ;;  %v7605_v55 = vpop.permute.xlu0 %2698  ;;  %v2346_v39 = vsel %vm2090_vm14, 1, %v11045_v54  ;;  %vm11157_vm14 = vcmask 7168  }
 0x391   :  { %11138 = vst [vmem:[#allocation147_spill] sm:$0xff] %v7605_v55  ;;  %2816 = vrot.lane.b32.xlu1 %v2345_v18, %s3661_s20  ;;  %v2347_v55 = vsel %vm2091_vm13, 1, %v11045_v54 }
 0x392   :  { %2814 = vrot.lane.b32.xlu0 %v2344_v63, %s3661_s20 }
 0x393   :  { %v7615_v0 = vpop.permute.xlu1 %2704 }
 0x394   :  { %11139 = vst [vmem:[#allocation148_spill] sm:$0xff] %v7615_v0  ;;  %v7617_v5 = vpop.permute.xlu0 %2702  ;;  %v2348_v0 = vsel %vm2092_vm12, 1, %v11045_v54 }
 0x395   :  { %11140 = vst [vmem:[#allocation149_spill] sm:$0xff] %v7617_v5  ;;  %2820 = vrot.lane.b32.xlu1 %v2347_v55, %s3661_s20  ;;  %v2349_v5 = vsel %vm2093_vm8, 1, %v11045_v54  ;;  %vm11159_vm8 = vmmov %vm11157_vm14 }
 0x396   :  { %2818 = vrot.lane.b32.xlu0 %v2346_v39, %s3661_s20  ;;  %vm11161_vm12 = vmmov %vm11159_vm8 }
 0x397   :  { %v7627_v63 = vpop.permute.xlu1 %2708 }
 0x398   :  { %11141 = vst [vmem:[#allocation150_spill] sm:$0xff] %v7627_v63  ;;  %v7629_v18 = vpop.permute.xlu0 %2706  ;;  %v2350_v63 = vsel %vm2094_vm11, 1, %v11045_v54  ;;  %vm2107_vm11 = vcmp.eq.s32.totalorder %v11148_v19, %v11059_v17 }
 0x399   :  { %11142 = vst [vmem:[#allocation151_spill] sm:$0xff] %v7629_v18  ;;  %2824 = vrot.lane.b32.xlu1 %v2349_v5, %s3661_s20  ;;  %v2351_v18 = vsel %vm2095_vm1, 1, %v11045_v54  ;;  %vm11163_vm1 = vmmov %vm11159_vm8 }
 0x39a   :  { %2822 = vrot.lane.b32.xlu0 %v2348_v0, %s3661_s20  ;;  %v11145_v0 = vld [vmem:[#allocation13_spill] sm:$0xff] }
 0x39b   :  { %v7639_v39 = vpop.permute.xlu1 %2712  ;;  %v7653_v5 = vrot.slane %v11145_v0, %v11076_v32  ;;  %v2355_v0 = vsel %vm2099_vm10, 1, %v11045_v54 }
 0x39c   :  { %11143 = vst [vmem:[#allocation152_spill] sm:$0xff] %v7639_v39  ;;  %v7641_v55 = vpop.permute.xlu0 %2710 }
 0x39d   :  { %11144 = vst [vmem:[#allocation153_spill] sm:$0xff] %v7641_v55  ;;  %2828 = vrot.lane.b32.xlu1 %v2351_v18, %s3661_s20  ;;  %v2352_v18 = vsel %vm2096_vm7, 1, %v11045_v54  ;;  %vm2098_vm15 = vcmp.eq.s32.totalorder %v7653_v5, %v11047_v24  ;;  %vm2100_vm0 = vcmp.eq.s32.totalorder %v7653_v5, %v11052_v40  ;;  %vm2102_vm3 = vcmp.eq.s32.totalorder %v7653_v5, %v11054_v41  ;;  %vm11165_vm7 = vmmov %vm11163_vm1 }
 0x39e   :  { %2826 = vrot.lane.b32.xlu0 %v2350_v63, %s3661_s20  ;;  %vm2104_vm13 = vcmp.eq.s32.totalorder %v7653_v5, %v11057_v58  ;;  %v188_v58 = vld [vmem:[%s10375_s3 + $0x100] sm:$0xff]  ;;  %vm2106_vm2 = vcmp.eq.s32.totalorder %v7653_v5, %v11059_v17  ;;  %vm2108_vm10 = vcmp.eq.s32.totalorder %v7653_v5, %v11060_v48 }
 0x39f   :  { %v7655_v39 = vpop.permute.xlu1 %2716  ;;  %v196_v17 = vld [vmem:[%s10375_s3 + $0x140] sm:$0xff] }
 0x3a0   :  { %11146 = vst [vmem:[#allocation13_spill] sm:$0xff] %v7655_v39  ;;  %v7657_v55 = vpop.permute.xlu0 %2714  ;;  %v11251_v39 = vld [vmem:[#allocation105_spill] sm:$0xff] }
 0x3a1   :  { %11147 = vst [vmem:[#allocation154_spill] sm:$0xff] %v7657_v55  ;;  %2832 = vrot.lane.b32.xlu1 %v2353_v1, %s3661_s20  ;;  %v2354_v55 = vsel %vm2098_vm15, 1, %v11045_v54  ;;  %vm11167_vm15 = vmmov %vm11163_vm1 }
 0x3a2   :  { %2830 = vrot.lane.b32.xlu0 %v2352_v18, %s3661_s20  ;;  %v2357_v18 = vsel %vm2101_vm9, 1, %v11045_v54  ;;  %vm2109_vm9 = vcmp.eq.s32.totalorder %v11148_v19, %v11060_v48 }
 0x3a3   :  { %v7667_v25 = vpop.permute.xlu1 %2720 }
 0x3a4   :  { %11149 = vst [vmem:[#allocation19_spill] sm:$0xff] %v7667_v25  ;;  %v7669_v63 = vpop.permute.xlu0 %2718 }
 0x3a5   :  { %11150 = vst [vmem:[#allocation155_spill] sm:$0xff] %v7669_v63  ;;  %2836 = vrot.lane.b32.xlu1 %v2355_v0, %s3661_s20  ;;  %v2356_v63 = vsel %vm2100_vm0, 1, %v11045_v54  ;;  %v2359_v0 = vsel %vm2103_vm4, 1, %v11045_v54  ;;  %vm11169_vm0 = vmmov %vm11163_vm1  ;;  %vm2111_vm4 = vcmp.eq.s32.totalorder %v11148_v19, %v11061_v14 }
 0x3a6   :  { %2834 = vrot.lane.b32.xlu0 %v2354_v55, %s3661_s20 }
 0x3a7   :  { %v7679_v1 = vpop.permute.xlu1 %2724 }
 0x3a8   :  { %11151 = vst [vmem:[#allocation156_spill] sm:$0xff] %v7679_v1  ;;  %v7681_v24 = vpop.permute.xlu0 %2722 }
 0x3a9   :  { %11152 = vst [vmem:[#allocation157_spill] sm:$0xff] %v7681_v24  ;;  %2840 = vrot.lane.b32.xlu1 %v2357_v18, %s3661_s20  ;;  %v2358_v24 = vsel %vm2102_vm3, 1, %v11045_v54  ;;  %v2361_v18 = vsel %vm2105_vm5, 1, %v11045_v54  ;;  %vm2110_vm3 = vcmp.eq.s32.totalorder %v7653_v5, %v11061_v14  ;;  %vm11171_vm5 = vmmov %vm11169_vm0  ;;  %v198_v14 = vld [vmem:[%s10375_s3 + $0x150] sm:$0xff] }
 0x3aa   :  { %2838 = vrot.lane.b32.xlu0 %v2356_v63, %s3661_s20 }
 0x3ab   :  { %v7691_v55 = vpop.permute.xlu1 %2728 }
 0x3ac   :  { %11153 = vst [vmem:[#allocation158_spill] sm:$0xff] %v7691_v55  ;;  %v7693_v40 = vpop.permute.xlu0 %2726 }
 0x3ad   :  { %11154 = vst [vmem:[#allocation159_spill] sm:$0xff] %v7693_v40  ;;  %2844 = vrot.lane.b32.xlu1 %v2359_v0, %s3661_s20  ;;  %v2360_v40 = vsel %vm2104_vm13, 1, %v11045_v54  ;;  %vm2112_vm13 = vcmp.eq.s32.totalorder %v7653_v5, %v11062_v23 }
 0x3ae   :  { %2842 = vrot.lane.b32.xlu0 %v2358_v24, %s3661_s20  ;;  %v189_v24 = vld [vmem:[%s10375_s3 + $0x108] sm:$0xff] }
 0x3af   :  { %v7703_v63 = vpop.permute.xlu1 %2732 }
 0x3b0   :  { %11155 = vst [vmem:[#allocation160_spill] sm:$0xff] %v7703_v63  ;;  %v7705_v41 = vpop.permute.xlu0 %2730 }
 0x3b1   :  { %11156 = vst [vmem:[#allocation161_spill] sm:$0xff] %v7705_v41  ;;  %2848 = vrot.lane.b32.xlu1 %v2361_v18, %s3661_s20  ;;  %v191_v18 = vld [vmem:[%s10375_s3 + $0x118] sm:$0xff] }
 0x3b2   :  { %2846 = vrot.lane.b32.xlu0 %v2360_v40, %s3661_s20  ;;  %v190_v40 = vld [vmem:[%s10375_s3 + $0x110] sm:$0xff] }
 0x3b3   :  { %v2737_v0 = vpop.permute.xlu1 %2736 }
 0x3b4   :  { %v2735_v63 = vpop.permute.xlu0 %2734 }
 0x3b5   :  { %v7718_v41 = vsel %vm11157_vm14, %v2735_v63, %v2737_v0  ;;  %3286 = vperm.xlu1 %3655, %v189_v24   ;;  %v193_v63 = vld [vmem:[%s10375_s3 + $0x128] sm:$0xff]  ;;  %v192_v24 = vld [vmem:[%s10375_s3 + $0x120] sm:$0xff]  ;;  %vm11173_vm14 = vmmov %vm11169_vm0 }
 0x3b6   :  { %11158 = vst [vmem:[#allocation162_spill] sm:$0xff] %v7718_v41  ;;  %3283 = vperm.xlu0 %3656, %v188_v58  }
 0x3b7   :  { %v2741_v55 = vpop.permute.xlu1 %2740 }
 0x3b8   :  { %v2739_v1 = vpop.permute.xlu0 %2738 }
 0x3b9   :  { %v7727_v25 = vsel %vm11159_vm8, %v2739_v1, %v2741_v55  ;;  %3292 = vperm.xlu1 %3655, %v191_v18   ;;  %v195_v1 = vld [vmem:[%s10375_s3 + $0x138] sm:$0xff]  ;;  %v194_v55 = vld [vmem:[%s10375_s3 + $0x130] sm:$0xff]  ;;  %vm2113_vm8 = vcmp.eq.s32.totalorder %v11148_v19, %v11062_v23 }
 0x3ba   :  { %11160 = vst [vmem:[#allocation163_spill] sm:$0xff] %v7727_v25  ;;  %3289 = vperm.xlu0 %3656, %v190_v40  }
 0x3bb   :  { %v2745_v58 = vpop.permute.xlu1 %2744 }
 0x3bc   :  { %v2743_v0 = vpop.permute.xlu0 %2742 }
 0x3bd   :  { %v7736_v41 = vsel %vm11161_vm12, %v2743_v0, %v2745_v58  ;;  %3298 = vperm.xlu1 %3655, %v193_v63   ;;  %v2363_v0 = vsel %vm2107_vm11, 1, %v11045_v54  ;;  %vm11175_vm12 = vmmov %vm11169_vm0  ;;  %vm2114_vm11 = vcmp.eq.s32.totalorder %v7653_v5, %v11063_v43 }
 0x3be   :  { %11162 = vst [vmem:[#allocation164_spill] sm:$0xff] %v7736_v41  ;;  %3295 = vperm.xlu0 %3656, %v192_v24   ;;  %v2362_v41 = vsel %vm2106_vm2, 1, %v11045_v54  ;;  %vm11177_vm2 = vmmov %vm11169_vm0 }
 0x3bf   :  { %v2749_v18 = vpop.permute.xlu1 %2748 }
 0x3c0   :  { %v2747_v40 = vpop.permute.xlu0 %2746 }
 0x3c1   :  { %v7745_v25 = vsel %vm11163_vm1, %v2747_v40, %v2749_v18  ;;  %3304 = vperm.xlu1 %3655, %v195_v1   ;;  %v2364_v40 = vsel %vm2108_vm10, 1, %v11045_v54  ;;  %vm2115_vm1 = vcmp.eq.s32.totalorder %v11148_v19, %v11063_v43  ;;  %v200_v43 = vld [vmem:[%s10375_s3 + $0x160] sm:$0xff]  ;;  %vm11179_vm10 = vmmov %vm11169_vm0 }
 0x3c2   :  { %11164 = vst [vmem:[#allocation165_spill] sm:$0xff] %v7745_v25  ;;  %3301 = vperm.xlu0 %3656, %v194_v55  }
 0x3c3   :  { %v2753_v63 = vpop.permute.xlu1 %2752 }
 0x3c4   :  { %v2751_v24 = vpop.permute.xlu0 %2750 }
 0x3c5   :  { %v7752_v58 = vsel %vm11165_vm7, %v2751_v24, %v2753_v63  ;;  %2852 = vrot.lane.b32.xlu1 %v2363_v0, %s3661_s20  ;;  %vm2116_vm7 = vcmp.eq.s32.totalorder %v7653_v5, %v11064_v16 }
 0x3c6   :  { %11166 = vst [vmem:[#allocation166_spill] sm:$0xff] %v7752_v58  ;;  %2850 = vrot.lane.b32.xlu0 %v2362_v41, %s3661_s20  ;;  %v197_v41 = vld [vmem:[%s10375_s3 + $0x148] sm:$0xff] }
 0x3c7   :  { %v2757_v1 = vpop.permute.xlu1 %2756 }
 0x3c8   :  { %v2755_v55 = vpop.permute.xlu0 %2754 }
 0x3c9   :  { %v7764_v18 = vsel %vm11167_vm15, %v2755_v55, %v2757_v1  ;;  %2854 = vrot.lane.b32.xlu1 %v2364_v40, %s3661_s20  ;;  %v2365_v1 = vsel %vm2109_vm9, 1, %v11045_v54  ;;  %v2367_v40 = vsel %vm2111_vm4, 1, %v11045_v54  ;;  %vm2117_vm15 = vcmp.eq.s32.totalorder %v11148_v19, %v11064_v16  ;;  %vm11181_vm9 = vmmov %vm11169_vm0 }
 0x3ca   :  { %11168 = vst [vmem:[#allocation167_spill] sm:$0xff] %v7764_v18  ;;  %3307 = vperm.xlu0 %3656, %v196_v17   ;;  %vm2118_vm4 = vcmp.eq.s32.totalorder %v7653_v5, %v11065_v10 }
 0x3cb   :  { %v2761_v63 = vpop.permute.xlu1 %2760 }
 0x3cc   :  { %v2759_v24 = vpop.permute.xlu0 %2758 }
 0x3cd   :  { %v7774_v0 = vsel %vm11169_vm0, %v2759_v24, %v2761_v63  ;;  %3310 = vperm.xlu1 %3655, %v197_v41   ;;  %v2366_v63 = vsel %vm2110_vm3, 1, %v11045_v54  ;;  %vm2119_vm0 = vcmp.eq.s32.totalorder %v11148_v19, %v11065_v10  ;;  %vm11183_vm3 = vmmov %vm11177_vm2  ;;  %v202_v10 = vld [vmem:[%s10375_s3 + $0x170] sm:$0xff] }
 0x3ce   :  { %11170 = vst [vmem:[#allocation168_spill] sm:$0xff] %v7774_v0  ;;  %2856 = vrot.lane.b32.xlu0 %v2365_v1, %s3661_s20 }
 0x3cf   :  { %v2765_v48 = vpop.permute.xlu1 %2764 }
 0x3d0   :  { %v2763_v17 = vpop.permute.xlu0 %2762 }
 0x3d1   :  { %v7783_v55 = vsel %vm11171_vm5, %v2763_v17, %v2765_v48  ;;  %2860 = vrot.lane.b32.xlu1 %v2367_v40, %s3661_s20  ;;  %v2368_v48 = vsel %vm2112_vm13, 1, %v11045_v54  ;;  %v199_v17 = vld [vmem:[%s10375_s3 + $0x158] sm:$0xff]  ;;  %vm2120_vm5 = vcmp.eq.s32.totalorder %v7653_v5, %v11068_v59  ;;  %vm11185_vm13 = vmmov %vm11177_vm2 }
 0x3d2   :  { %11172 = vst [vmem:[#allocation169_spill] sm:$0xff] %v7783_v55  ;;  %2858 = vrot.lane.b32.xlu0 %v2366_v63, %s3661_s20 }
 0x3d3   :  { %v2769_v41 = vpop.permute.xlu1 %2768 }
 0x3d4   :  { %v2767_v24 = vpop.permute.xlu0 %2766 }
 0x3d5   :  { %v7795_v1 = vsel %vm11173_vm14, %v2767_v24, %v2769_v41  ;;  %2862 = vrot.lane.b32.xlu1 %v2368_v48, %s3661_s20  ;;  %v2369_v41 = vsel %vm2113_vm8, 1, %v11045_v54  ;;  %v2371_v48 = vsel %vm2115_vm1, 1, %v11045_v54  ;;  %vm2121_vm14 = vcmp.eq.s32.totalorder %v11148_v19, %v11068_v59  ;;  %vm11187_vm8 = vmmov %vm11177_vm2 }
 0x3d6   :  { %11174 = vst [vmem:[#allocation170_spill] sm:$0xff] %v7795_v1  ;;  %3313 = vperm.xlu0 %3656, %v198_v14   ;;  %vm2122_vm1 = vcmp.eq.s32.totalorder %v7653_v5, %v11071_v15 }
 0x3d7   :  { %v2773_v40 = vpop.permute.xlu1 %2772 }
 0x3d8   :  { %v2771_v63 = vpop.permute.xlu0 %2770 }
 0x3d9   :  { %v7805_v55 = vsel %vm11175_vm12, %v2771_v63, %v2773_v40  ;;  %3316 = vperm.xlu1 %3655, %v199_v17   ;;  %v2370_v40 = vsel %vm2114_vm11, 1, %v11045_v54  ;;  %vm2123_vm12 = vcmp.eq.s32.totalorder %v11148_v19, %v11071_v15  ;;  %vm11189_vm11 = vmmov %vm11177_vm2 }
 0x3da   :  { %11176 = vst [vmem:[#allocation171_spill] sm:$0xff] %v7805_v55  ;;  %2864 = vrot.lane.b32.xlu0 %v2369_v41, %s3661_s20 }
 0x3db   :  { %v2777_v23 = vpop.permute.xlu1 %2776 }
 0x3dc   :  { %v2775_v14 = vpop.permute.xlu0 %2774 }
 0x3dd   :  { %v7814_v24 = vsel %vm11177_vm2, %v2775_v14, %v2777_v23  ;;  %2868 = vrot.lane.b32.xlu1 %v2371_v48, %s3661_s20  ;;  %v2372_v23 = vsel %vm2116_vm7, 1, %v11045_v54  ;;  %v201_v14 = vld [vmem:[%s10375_s3 + $0x168] sm:$0xff]  ;;  %vm2125_vm2 = vcmp.eq.s32.totalorder %v11148_v19, %v11074_v13  ;;  %vm2124_vm7 = vcmp.eq.s32.totalorder %v7653_v5, %v11074_v13 }
 0x3de   :  { %11178 = vst [vmem:[#allocation172_spill] sm:$0xff] %v7814_v24  ;;  %2866 = vrot.lane.b32.xlu0 %v2370_v40, %s3661_s20  ;;  %v11247_v24 = vld [vmem:[#allocation103_spill] sm:$0xff] }
 0x3df   :  { %v2781_v17 = vpop.permute.xlu1 %2780 }
 0x3e0   :  { %v2779_v63 = vpop.permute.xlu0 %2778 }
 0x3e1   :  { %v7826_v41 = vsel %vm11179_vm10, %v2779_v63, %v2781_v17  ;;  %2870 = vrot.lane.b32.xlu1 %v2372_v23, %s3661_s20  ;;  %v2373_v17 = vsel %vm2117_vm15, 1, %v11045_v54  ;;  %v2375_v23 = vsel %vm2119_vm0, 1, %v11045_v54  ;;  %vm88_vm10 = vcmask 23552   ;;  %vm11191_vm15 = vmmov %vm11183_vm3 }
 0x3e2   :  { %11180 = vst [vmem:[#allocation173_spill] sm:$0xff] %v7826_v41  ;;  %3319 = vperm.xlu0 %3656, %v200_v43   ;;  %vm2126_vm0 = vcmp.eq.s32.totalorder %v7653_v5, %v11075_v6 }
 0x3e3   :  { %v2785_v48 = vpop.permute.xlu1 %2784 }
 0x3e4   :  { %v2783_v40 = vpop.permute.xlu0 %2782 }
 0x3e5   :  { %v7836_v1 = vsel %vm11181_vm9, %v2783_v40, %v2785_v48  ;;  %3322 = vperm.xlu1 %3655, %v201_v14   ;;  %v2374_v48 = vsel %vm2118_vm4, 1, %v11045_v54  ;;  %vm2127_vm9 = vcmp.eq.s32.totalorder %v11148_v19, %v11075_v6 }
 0x3e6   :  { %11182 = vst [vmem:[#allocation174_spill] sm:$0xff] %v7836_v1  ;;  %2872 = vrot.lane.b32.xlu0 %v2373_v17, %s3661_s20  ;;  %v2383_v18 = vsel %vm2127_vm9, 1, %v11045_v54 }
 0x3e7   :  { %v2789_v16 = vpop.permute.xlu1 %2788 }
 0x3e8   :  { %v2787_v43 = vpop.permute.xlu0 %2786 }
 0x3e9   :  { %v7845_v63 = vsel %vm11183_vm3, %v2787_v43, %v2789_v16  ;;  %2876 = vrot.lane.b32.xlu1 %v2375_v23, %s3661_s20  ;;  %v2376_v16 = vsel %vm2120_vm5, 1, %v11045_v54  ;;  %v203_v43 = vld [vmem:[%s10375_s3 + $0x178] sm:$0xff]  ;;  %vm2129_vm5 = vcmp.eq.s32.totalorder %v11148_v19, %v11035_v4 }
 0x3ea   :  { %11184 = vst [vmem:[#allocation175_spill] sm:$0xff] %v7845_v63  ;;  %2874 = vrot.lane.b32.xlu0 %v2374_v48, %s3661_s20  ;;  %v11222_v63 = vld [vmem:[#allocation8_spill] sm:$0xff] }
 0x3eb   :  { %v2793_v14 = vpop.permute.xlu1 %2792 }
 0x3ec   :  { %v2791_v40 = vpop.permute.xlu0 %2790 }
 0x3ed   :  { %v7857_v17 = vsel %vm11185_vm13, %v2791_v40, %v2793_v14  ;;  %2878 = vrot.lane.b32.xlu1 %v2376_v16, %s3661_s20  ;;  %v2377_v14 = vsel %vm2121_vm14, 1, %v11045_v54  ;;  %v2379_v16 = vsel %vm2123_vm12, 1, %v11045_v54  ;;  %vm2128_vm13 = vcmp.eq.s32.totalorder %v7653_v5, %v11035_v4  ;;  %vm11201_vm12 = vmmov %vm11183_vm3 }
 0x3ee   :  { %11186 = vst [vmem:[#allocation176_spill] sm:$0xff] %v7857_v17  ;;  %3325 = vperm.xlu0 %3656, %v202_v10  }
 0x3ef   :  { %v2797_v23 = vpop.permute.xlu1 %2796 }
 0x3f0   :  { %v2795_v48 = vpop.permute.xlu0 %2794 }
 0x3f1   :  { %v7867_v0 = vsel %vm11187_vm8, %v2795_v48, %v2797_v23  ;;  %3328 = vperm.xlu1 %3655, %v203_v43   ;;  %v2378_v23 = vsel %vm2122_vm1, 1, %v11045_v54  ;;  %vm11199_vm8 = vmmov %vm11183_vm3 }
 0x3f2   :  { %11188 = vst [vmem:[#allocation177_spill] sm:$0xff] %v7867_v0  ;;  %2880 = vrot.lane.b32.xlu0 %v2377_v14, %s3661_s20  ;;  %v2381_v14 = vsel %vm2125_vm2, 1, %v11045_v54  ;;  %vm11206_vm1 = vmmov %vm11183_vm3 }
 0x3f3   :  { %v2801_v59 = vpop.permute.xlu1 %2800  ;;  %vm11210_vm2 = vmmov %vm11206_vm1 }
 0x3f4   :  { %v2799_v10 = vpop.permute.xlu0 %2798  ;;  %vm11224_vm9 = vmmov %vm11206_vm1 }
 0x3f5   :  { %v7876_v40 = vsel %vm11189_vm11, %v2799_v10, %v2801_v59  ;;  %2884 = vrot.lane.b32.xlu1 %v2379_v16, %s3661_s20  ;;  %v2380_v59 = vsel %vm2124_vm7, 1, %v11045_v54  ;;  %v11193_v10 = vld [vmem:[#allocation23_spill] sm:$0xff]  ;;  %v11194_v16 = vld [vmem:[#allocation22_spill] sm:$0xff]  ;;  %vm11208_vm11 = vmmov %vm11206_vm1 }
 0x3f6   :  { %11190 = vst [vmem:[#allocation178_spill] sm:$0xff] %v7876_v40  ;;  %2882 = vrot.lane.b32.xlu0 %v2378_v23, %s3661_s20  ;;  %v89_v23 = vsel %vm88_vm10, %v11194_v16, %v11193_v10  ;;  %v2382_v10 = vsel %vm2126_vm0, 1, %v11045_v54  ;;  %v11196_v16 = vld [vmem:[#allocation72_spill] sm:$0xff]  ;;  %vm11215_vm7 = vmmov %vm11206_vm1 }
 0x3f7   :  { %v2805_v15 = vpop.permute.xlu1 %2804  ;;  %vm90_vm4 = vcmp.ne.s32.totalorder %v89_v23, 0  ;;  %vm11225_vm0 = vmmov %vm11206_vm1 }
 0x3f8   :  { %v2803_v43 = vpop.permute.xlu0 %2802  ;;  %vm91_vm14 = vmand %vm5743_vm6, %vm90_vm4 }
 0x3f9   :  { %v7887_v48 = vsel %vm11191_vm15, %v2803_v43, %v2805_v15  ;;  %2888 = vrot.lane.b32.xlu1 %v2381_v14, %s3661_s20  ;;  %v11197_v14 = vld [vmem:[#allocation62_spill] sm:$0xff]  ;;  %vm11204_vm6 = vmmov %vm11183_vm3 }
 0x3fa   :  { %11192 = vst [vmem:[#allocation179_spill] sm:$0xff] %v7887_v48  ;;  %2886 = vrot.lane.b32.xlu0 %v2380_v59, %s3661_s20  ;;  %v1453_v59 = vsel %vm88_vm10, %v11197_v14, %v11196_v16  ;;  %v2385_v16 = vsel %vm2129_vm5, 1, %v11045_v54  ;;  %v11203_v14 = vld [vmem:[#allocation3_spill] sm:$0xff]  ;;  %vm11218_vm10 = vmmov %vm11206_vm1 }
 0x3fb   :  { %v2809_v13 = vpop.permute.xlu1 %2808  ;;  %vm11221_vm15 = vmmov %vm11206_vm1 }
 0x3fc   :  { %v2807_v15 = vpop.permute.xlu0 %2806  ;;  %vm11229_vm4 = vmmov %vm11225_vm0 }
 0x3fd   :  { %v7901_v43 = vsel %vm11183_vm3, %v2807_v15, %v2809_v13  ;;  %2892 = vrot.lane.b32.xlu1 %v2383_v18, %s3661_s20  ;;  %v1454_v15 = vsel %vm91_vm14, %v1453_v59, 4294967295  ;;  %v2384_v18 = vsel %vm2128_vm13, 1, %v11045_v54  ;;  %vm11233_vm3 = vmmov %vm11225_vm0 }
 0x3fe   :  { %11195 = vst [vmem:[#allocation23_spill] sm:$0xff] %v7901_v43  ;;  %2890 = vrot.lane.b32.xlu0 %v2382_v10, %s3661_s20  ;;  %v1455_v19 = vcombine.high %v1454_v15, %v1454_v15  ;;  %v1462_v6 = vrot.slane %v1454_v15, %v11203_v14  ;;  %vm11236_vm5 = vmmov %vm11225_vm0 }
 0x3ff   :  { %v2813_v23 = vpop.permute.xlu1 %2812  ;;  %vm11240_vm13 = vmmov %vm11225_vm0 }
 0x400   :  { %v2811_v13 = vpop.permute.xlu0 %2810  ;;  %v1469_v59 = vrot.slane %v1455_v19, %v11203_v14  ;;  %v1470_v54 = vcombine.high %v1462_v6, %v1462_v6  ;;  %v1478_v48 = vrot.slane %v1462_v6, %v11203_v14  ;;  %vm11244_vm14 = vmmov %vm11225_vm0 }
 0x401   :  { %v7917_v58 = vsel %vm11199_vm8, %v2811_v13, %v2813_v23  ;;  %2896 = vrot.lane.b32.xlu1 %v2385_v16, %s3661_s20  ;;  %vm11248_vm8 = vmmov %vm11225_vm0 }
 0x402   :  { %11200 = vst [vmem:[#allocation22_spill] sm:$0xff] %v7917_v58  ;;  %2894 = vrot.lane.b32.xlu0 %v2384_v18, %s3661_s20  ;;  %v1471_v25 = vcombine.high %v1469_v59, %v1469_v59  ;;  %v1485_v15 = vrot.slane %v1469_v59, %v11203_v14  ;;  %v7945_v6 = vrot.slane %v1478_v48, %v11076_v32 }
 0x403   :  { %v2817_v10 = vpop.permute.xlu1 %2816 }
 0x404   :  { %v2815_v4 = vpop.permute.xlu0 %2814  ;;  %v1499_v19 = vrot.slane %v1471_v25, %v11203_v14  ;;  %v1501_v40 = vcombine.high %v1485_v15, %v1485_v15 }
 0x405   :  { %v7924_v5 = vsel %vm11201_vm12, %v2815_v4, %v2817_v10  ;;  %v1492_v10 = vrot.slane %v1470_v54, %v11203_v14  ;;  %v7957_v14 = vrot.slane %v1485_v15, %v11076_v32  ;;  %vm11252_vm12 = vmmov %vm11225_vm0 }
 0x406   :  { %11202 = vst [vmem:[#allocation72_spill] sm:$0xff] %v7924_v5  ;;  %v1503_v0 = vcombine.high %v1499_v19, %v1499_v19  ;;  %v7960_v54 = vrot.slane %v1499_v19, %v11076_v32  ;;  %v11219_v19 = vld [vmem:[#allocation92_spill] sm:$0xff] }
 0x407   :  { %v2821_v23 = vpop.permute.xlu1 %2820  ;;  %v7948_v59 = vrot.slane %v1492_v10, %v11076_v32 }
 0x408   :  { %v2819_v13 = vpop.permute.xlu0 %2818 }
 0x409   :  { %v7929_v58 = vsel %vm11204_vm6, %v2819_v13, %v2821_v23  ;;  %v1500_v13 = vcombine.high %v1478_v48, %v1478_v48  ;;  %v7966_v48 = vrot.slane %v1503_v0, %v11076_v32  ;;  %vm11256_vm6 = vmmov %vm11225_vm0 }
 0x40a   :  { %11205 = vst [vmem:[#allocation62_spill] sm:$0xff] %v7929_v58  ;;  %v1502_v58 = vcombine.high %v1492_v10, %v1492_v10  ;;  %v11213_v10 = vld [vmem:[#allocation6_spill] sm:$0xff] }
 0x40b   :  { %v2825_v16 = vpop.permute.xlu1 %2824  ;;  %v7951_v25 = vrot.slane %v1500_v13, %v11076_v32  ;;  %11212 = vst [vmem:[#allocation181_spill] sm:$0xff] %v7966_v48  ;;  %v11228_v48 = vld [vmem:[#allocation95_spill] sm:$0xff] }
 0x40c   :  { %v2823_v43 = vpop.permute.xlu0 %2822 }
 0x40d   :  { %v7932_v18 = vsel %vm11206_vm1, %v2823_v43, %v2825_v16  ;;  %vm11260_vm1 = vmmov %vm11225_vm0 }
 0x40e   :  { %11207 = vst [vmem:[#allocation47_spill] sm:$0xff] %v7932_v18  ;;  %v11220_v18 = vld [vmem:[#allocation93_spill] sm:$0xff] }
 0x40f   :  { %v2829_v4 = vpop.permute.xlu1 %2828 }
 0x410   :  { %v2827_v5 = vpop.permute.xlu0 %2826 }
 0x411   :  { %v7939_v23 = vsel %vm11208_vm11, %v2827_v5, %v2829_v4  ;;  %v7954_v5 = vrot.slane %v1502_v58, %v11076_v32  ;;  %v11214_v4 = vld [vmem:[#allocation14_spill] sm:$0xff]  ;;  %vm11264_vm11 = vmmov %vm11225_vm0 }
 0x412   :  { %11209 = vst [vmem:[#allocation3_spill] sm:$0xff] %v7939_v23  ;;  %v7971_v13 = vsel %vm11215_vm7, %v11214_v4, %v11213_v10  ;;  %v11217_v23 = vld [vmem:[#allocation91_spill] sm:$0xff]  ;;  %v11227_v4 = vld [vmem:[#allocation94_spill] sm:$0xff]  ;;  %vm11272_vm7 = vmmov %vm11225_vm0 }
 0x413   :  { %v2833_v17 = vpop.permute.xlu1 %2832  ;;  %v7994_v1 = vsel %vm11229_vm4, %v11228_v48, %v11227_v4  ;;  %v11246_v4 = vld [vmem:[#allocation102_spill] sm:$0xff] }
 0x414   :  { %v2831_v43 = vpop.permute.xlu0 %2830  ;;  %11230 = vst [vmem:[#allocation14_spill] sm:$0xff] %v7994_v1  ;;  %v11292_v1 = vld [vmem:[#allocation40_spill] sm:$0xff] }
 0x415   :  { %v7942_v16 = vsel %vm11210_vm2, %v2831_v43, %v2833_v17  ;;  %v7963_v17 = vrot.slane %v1501_v40, %v11076_v32  ;;  %v7981_v40 = vsel %vm11221_vm15, %v11220_v18, %v11219_v19  ;;  %v11223_v32 = vld [vmem:[#allocation15_spill] sm:$0xff]  ;;  %v11234_v18 = vld [vmem:[#allocation21_spill] sm:$0xff]  ;;  %v11235_v19 = vld [vmem:[#allocation20_spill] sm:$0xff] }
 0x416   :  { %11211 = vst [vmem:[#allocation180_spill] sm:$0xff] %v7942_v16  ;;  %v11216_v16 = vld [vmem:[#allocation90_spill] sm:$0xff]  ;;  %v7986_v0 = vsel %vm11224_vm9, %v11223_v32, %v11222_v63  ;;  %v8004_v55 = vsel %vm11236_vm5, %v11235_v19, %v11234_v18  ;;  %v11239_v32 = vld [vmem:[#allocation99_spill] sm:$0xff]  ;;  %vm11268_vm2 = vmmov %vm11225_vm0 }
 0x417   :  { %v2837_v43 = vpop.permute.xlu1 %2836  ;;  %v7976_v15 = vsel %vm11218_vm10, %v11217_v23, %v11216_v16  ;;  %v11231_v23 = vld [vmem:[#allocation96_spill] sm:$0xff]  ;;  %v11232_v16 = vld [vmem:[#allocation97_spill] sm:$0xff]  ;;  %11237 = vst [vmem:[#allocation90_spill] sm:$0xff] %v8004_v55  ;;  %v11238_v63 = vld [vmem:[#allocation98_spill] sm:$0xff] }
 0x418   :  { %v2835_v58 = vpop.permute.xlu0 %2834  ;;  %v7999_v41 = vsel %vm11233_vm3, %v11232_v16, %v11231_v23  ;;  %v8019_v23 = vsel %vm11248_vm8, %v11247_v24, %v11246_v4  ;;  %v11250_v16 = vld [vmem:[#allocation104_spill] sm:$0xff]  ;;  %v11254_v19 = vld [vmem:[#allocation106_spill] sm:$0xff]  ;;  %v11255_v55 = vld [vmem:[#allocation107_spill] sm:$0xff]  ;;  %vm3027_vm4 = vcmp.ne.s32.totalorder %v7976_v15, 0  ;;  %vm3026_vm8 = vcmp.ne.s32.totalorder %v7971_v13, 0 }
 0x419   :  { %v7989_v10 = vsel %vm11225_vm0, %v2835_v58, %v2837_v43  ;;  %v8009_v43 = vsel %vm11240_vm13, %v11239_v32, %v11238_v63  ;;  %v11242_v58 = vld [vmem:[#allocation100_spill] sm:$0xff]  ;;  %11249 = vst [vmem:[#allocation93_spill] sm:$0xff] %v8019_v23  ;;  %v8024_v18 = vsel %vm11252_vm12, %v11251_v39, %v11250_v16  ;;  %v8029_v63 = vsel %vm11256_vm6, %v11255_v55, %v11254_v19  ;;  %v11266_v4 = vld [vmem:[#allocation29_spill] sm:$0xff]  ;;  %v11267_v23 = vld [vmem:[#allocation122_spill] sm:$0xff] }
 0x41a   :  { %11226 = vst [vmem:[#allocation6_spill] sm:$0xff] %v7989_v10  ;;  %11241 = vst [vmem:[#allocation91_spill] sm:$0xff] %v8009_v43  ;;  %v11243_v10 = vld [vmem:[#allocation101_spill] sm:$0xff]  ;;  %v11258_v32 = vld [vmem:[#allocation108_spill] sm:$0xff]  ;;  %v8044_v39 = vsel %vm11268_vm2, %v11267_v23, %v11266_v4 }
 0x41b   :  { %v8014_v48 = vsel %vm11244_vm14, %v11243_v10, %v11242_v58  ;;  %11253 = vst [vmem:[#allocation8_spill] sm:$0xff] %v8024_v18  ;;  %11257 = vst [vmem:[#allocation15_spill] sm:$0xff] %v8029_v63  ;;  %v11259_v43 = vld [vmem:[#allocation109_spill] sm:$0xff]  ;;  %v11262_v58 = vld [vmem:[#allocation116_spill] sm:$0xff] }
 0x41c   :  { %11245 = vst [vmem:[#allocation92_spill] sm:$0xff] %v8014_v48  ;;  %v8034_v10 = vsel %vm11260_vm1, %v11259_v43, %v11258_v32  ;;  %v11263_v48 = vld [vmem:[#allocation117_spill] sm:$0xff]  ;;  %11269 = vst [vmem:[#allocation96_spill] sm:$0xff] %v8044_v39  ;;  %v11270_v16 = vld [vmem:[#allocation30_spill] sm:$0xff] }
 0x41d   :  { %11261 = vst [vmem:[#allocation94_spill] sm:$0xff] %v8034_v10  ;;  %v8039_v24 = vsel %vm11264_vm11, %v11263_v48, %v11262_v58  ;;  %v11271_v18 = vld [vmem:[#allocation48_spill] sm:$0xff]  ;;  %v11274_v63 = vld [vmem:[#allocation45_spill] sm:$0xff]  ;;  %vm11275_vm10 = vmmov %vm11225_vm0 }
 0x41e   :  { %11265 = vst [vmem:[#allocation95_spill] sm:$0xff] %v8039_v24  ;;  %v8049_v55 = vsel %vm11272_vm7, %v11271_v18, %v11270_v16  ;;  %v11273_v19 = vld [vmem:[#allocation28_spill] sm:$0xff]  ;;  %v11277_v32 = vld [vmem:[#allocation46_spill] sm:$0xff]  ;;  %v11278_v10 = vld [vmem:[#allocation31_spill] sm:$0xff] }
 0x41f   :  { %v8054_v43 = vsel %vm11275_vm10, %v11274_v63, %v11273_v19  ;;  %vm11279_vm15 = vmmov %vm11225_vm0  ;;  %v11280_v58 = vld [vmem:[#allocation33_spill] sm:$0xff]  ;;  %v11281_v24 = vld [vmem:[#allocation32_spill] sm:$0xff]  ;;  %vm3043_vm12 = vcmp.ne.s32.totalorder %v8049_v55, 0 }
 0x420   :  { %11276 = vst [vmem:[#allocation97_spill] sm:$0xff] %v8054_v43  ;;  %v8059_v48 = vsel %vm11279_vm15, %v11278_v10, %v11277_v32  ;;  %vm11282_vm9 = vmmov %vm11225_vm0  ;;  %v11283_v4 = vld [vmem:[#allocation34_spill] sm:$0xff]  ;;  %v11284_v39 = vld [vmem:[#allocation49_spill] sm:$0xff] }
 0x421   :  { %v8064_v23 = vsel %vm11282_vm9, %v11281_v24, %v11280_v58  ;;  %v8069_v18 = vsel %vm11225_vm0, %v11284_v39, %v11283_v4  ;;  %v11285_v16 = vld [vmem:[#allocation51_spill] sm:$0xff]  ;;  %v11286_v63 = vld [vmem:[#allocation25_spill] sm:$0xff]  ;;  %vm11287_vm3 = vmmov %vm11225_vm0  ;;  %vm3042_vm10 = vcmp.ne.s32.totalorder %v8059_v48, 0 }
 0x422   :  { %v8075_v19 = vsel %vm11287_vm3, %v11286_v63, %v11285_v16  ;;  %v11289_v43 = vld [vmem:[#allocation36_spill] sm:$0xff]  ;;  %v11290_v10 = vld [vmem:[#allocation38_spill] sm:$0xff]  ;;  %vm11291_vm5 = vmmov %vm11225_vm0 }
 0x423   :  { %11288 = vst [vmem:[#allocation21_spill] sm:$0xff] %v8075_v19  ;;  %v8080_v32 = vsel %vm11291_vm5, %v11290_v10, %v11289_v43  ;;  %v11293_v24 = vld [vmem:[#allocation54_spill] sm:$0xff]  ;;  %vm11294_vm13 = vmmov %vm11225_vm0  ;;  %v11297_v4 = vld [vmem:[#allocation55_spill] sm:$0xff] }
 0x424   :  { %v8085_v58 = vsel %vm11294_vm13, %v11293_v24, %v11292_v1  ;;  %vm11296_vm14 = vmmov %vm11225_vm0  ;;  %v11298_v16 = vld [vmem:[#allocation43_spill] sm:$0xff]  ;;  %v11301_v43 = vld [vmem:[#allocation44_spill] sm:$0xff] }
 0x425   :  { %11295 = vst [vmem:[#allocation20_spill] sm:$0xff] %v8085_v58  ;;  %v8090_v39 = vsel %vm11296_vm14, %v7016_v62, %v7014_v31  ;;  %vm11299_vm6 = vmmov %vm11225_vm0  ;;  %v11302_v10 = vld [vmem:[#allocation57_spill] sm:$0xff]  ;;  %v11305_v1 = vld [vmem:[#allocation58_spill] sm:$0xff] }
 0x426   :  { %v8097_v63 = vsel %vm11299_vm6, %v11298_v16, %v11297_v4  ;;  %vm11303_vm1 = vmmov %vm11225_vm0  ;;  %v11306_v24 = vld [vmem:[#allocation59_spill] sm:$0xff]  ;;  %v11311_v4 = vld [vmem:[#allocation60_spill] sm:$0xff] }
 0x427   :  { %11300 = vst [vmem:[#allocation98_spill] sm:$0xff] %v8097_v63  ;;  %v8102_v19 = vsel %vm11303_vm1, %v11302_v10, %v11301_v43  ;;  %vm11307_vm11 = vmmov %vm11225_vm0  ;;  %v11310_v62 = vld [vmem:[#allocation63_spill] sm:$0xff]  ;;  %v11312_v16 = vld [vmem:[#allocation110_spill] sm:$0xff]  ;;  %vm3058_vm1 = vcmp.ne.s32.totalorder %v8090_v39, 0 }
 0x428   :  { %11304 = vst [vmem:[#allocation99_spill] sm:$0xff] %v8102_v19  ;;  %v8107_v58 = vsel %vm11307_vm11, %v11306_v24, %v11305_v1  ;;  %vm11309_vm2 = vmmov %vm11225_vm0  ;;  %vm1585_vm7 = vcmp.eq.s32.totalorder %v7945_v6, %v11310_v62  ;;  %v11315_v10 = vld [vmem:[#allocation111_spill] sm:$0xff]  ;;  %v11316_v19 = vld [vmem:[#allocation112_spill] sm:$0xff]  ;;  %vm1601_vm13 = vcmp.eq.s32.totalorder %v7948_v59, %v11310_v62 }
 0x429   :  { %11308 = vst [vmem:[#allocation100_spill] sm:$0xff] %v8107_v58  ;;  %v8112_v31 = vsel %vm11309_vm2, %v7033_v61, %v7031_v3  ;;  %vm11313_vm15 = vmmov %vm11225_vm0  ;;  %v8130_v3 = vsel %vm11225_vm0, %v6867_v36, %v6865_v29  ;;  %v11320_v61 = vld [vmem:[#allocation114_spill] sm:$0xff]  ;;  %v11323_v58 = vld [vmem:[#allocation64_spill] sm:$0xff] }
 0x42a   :  { %v8120_v43 = vsel %vm11313_vm15, %v11312_v16, %v11311_v4  ;;  %vm11317_vm9 = vmmov %vm11225_vm0  ;;  %11319 = vst [vmem:[#allocation103_spill] sm:$0xff] %v8130_v3  ;;  %vm1584_vm5 = vcmp.eq.s32.totalorder %v7945_v6, %v11323_v58  ;;  %v8159_v4 = vpop.permute.xlu0 %2838  ;;  %vm1600_vm2 = vcmp.eq.s32.totalorder %v7948_v59, %v11323_v58  ;;  %v11366_v16 = vld [vmem:[#allocation89_spill] sm:$0xff]  ;;  %v11415_v13 = vld [vmem:[#allocation79_spill] sm:$0xff] }
 0x42b   :  { %11314 = vst [vmem:[#allocation101_spill] sm:$0xff] %v8120_v43  ;;  %v8125_v1 = vsel %vm11317_vm9, %v11316_v19, %v11315_v10  ;;  %vm11321_vm3 = vmmov %vm11225_vm0  ;;  %v11433_v48 = vld [vmem:[#allocation16_spill] sm:$0xff] }
 0x42c   :  { %11318 = vst [vmem:[#allocation102_spill] sm:$0xff] %v8125_v1  ;;  %v8135_v24 = vsel %vm11321_vm3, %v11320_v61, %v6914_v50  ;;  %vm11324_vm14 = vmmov %vm11225_vm0  ;;  %v8157_v50 = vpop.permute.xlu1 %2840  ;;  %v11369_v61 = vld [vmem:[#allocation17_spill] sm:$0xff] }
 0x42d   :  { %11322 = vst [vmem:[#allocation104_spill] sm:$0xff] %v8135_v24  ;;  %v8144_v19 = vsel %vm11324_vm14, %v6965_v38, %v6963_v7  ;;  %vm11326_vm6 = vmmov %vm11225_vm0  ;;  %v8169_v7 = vsel %vm11225_vm0, %v7060_v56, %v7058_v34  ;;  %v8191_v34 = vsel %vm11225_vm0, %v7129_v21, %v7127_v2  ;;  %v11349_v21 = vld [vmem:[#allocation119_spill] sm:$0xff]  ;;  %v11407_v24 = vld [vmem:[#allocation56_spill] sm:$0xff] }
 0x42e   :  { %11325 = vst [vmem:[#allocation105_spill] sm:$0xff] %v8144_v19  ;;  %v8149_v29 = vsel %vm11326_vm6, %v6998_v53, %v6996_v51  ;;  %vm11328_vm11 = vmmov %vm11225_vm0 }
 0x42f   :  { %11327 = vst [vmem:[#allocation106_spill] sm:$0xff] %v8149_v29  ;;  %v8155_v36 = vsel %vm11328_vm11, %v7073_v57, %v7071_v8  ;;  %vm11329_vm3 = vmmov %vm11225_vm0  ;;  %v8209_v57 = vsel %vm11225_vm0, %v7141_v46, %v7139_v52  ;;  %v11350_v52 = vld [vmem:[#allocation120_spill] sm:$0xff]  ;;  %v11390_v29 = vld [vmem:[#allocation87_spill] sm:$0xff] }
 0x430   :  { %v8174_v38 = vsel %vm11329_vm3, %v7087_v26, %v7085_v33  ;;  %vm11331_vm14 = vmmov %vm11225_vm0  ;;  %11333 = vst [vmem:[#allocation108_spill] sm:$0xff] %v8191_v34  ;;  %v11557_v34 = vld [vmem:[#allocation171_spill] sm:$0xff] }
 0x431   :  { %11330 = vst [vmem:[#allocation107_spill] sm:$0xff] %v8174_v38  ;;  %v8179_v51 = vsel %vm11331_vm14, %v7100_v30, %v7098_v47  ;;  %vm11332_vm11 = vmmov %vm11225_vm0 }
 0x432   :  { %v8186_v53 = vsel %vm11332_vm11, %v7113_v49, %v7111_v60  ;;  %vm11334_vm3 = vmmov %vm11225_vm0  ;;  %11336 = vst [vmem:[#allocation109_spill] sm:$0xff] %v8209_v57  ;;  %v11345_v60 = vld [vmem:[#allocation115_spill] sm:$0xff]  ;;  %v11346_v49 = vld [vmem:[#allocation118_spill] sm:$0xff] }
 0x433   :  { %v8196_v56 = vsel %vm11334_vm3, %v7237_v28, %v7235_v12  ;;  %vm11335_vm14 = vmmov %vm11225_vm0  ;;  %v11362_v12 = vld [vmem:[#allocation121_spill] sm:$0xff]  ;;  %v11475_v57 = vld [vmem:[#allocation19_spill] sm:$0xff] }
 0x434   :  { %v8201_v8 = vsel %vm11335_vm14, %v7249_v9, %v7247_v37  ;;  %vm11337_vm3 = vmmov %vm11225_vm0  ;;  %v11364_v37 = vld [vmem:[#allocation67_spill] sm:$0xff]  ;;  %v11365_v9 = vld [vmem:[#allocation26_spill] sm:$0xff] }
 0x435   :  { %v8214_v33 = vsel %vm11337_vm3, %v7153_v27, %v7151_v42  ;;  %vm11339_vm14 = vmmov %vm11225_vm0  ;;  %v11353_v42 = vld [vmem:[#allocation37_spill] sm:$0xff]  ;;  %v11354_v27 = vld [vmem:[#allocation52_spill] sm:$0xff] }
 0x436   :  { %11338 = vst [vmem:[#allocation116_spill] sm:$0xff] %v8214_v33  ;;  %v8219_v26 = vsel %vm11339_vm14, %v7165_v45, %v7163_v22  ;;  %vm11341_vm11 = vmmov %vm11225_vm0  ;;  %v11357_v45 = vld [vmem:[#allocation66_spill] sm:$0xff]  ;;  %v11459_v33 = vld [vmem:[#allocation135_spill] sm:$0xff] }
 0x437   :  { %11340 = vst [vmem:[#allocation117_spill] sm:$0xff] %v8219_v26  ;;  %v8224_v47 = vsel %vm11341_vm11, %v7177_v11, %v7175_v35  ;;  %vm11343_vm15 = vmmov %vm11225_vm0  ;;  %v11358_v35 = vld [vmem:[#allocation27_spill] sm:$0xff]  ;;  %v11359_v11 = vld [vmem:[#allocation53_spill] sm:$0xff] }
 0x438   :  { %11342 = vst [vmem:[#allocation29_spill] sm:$0xff] %v8224_v47  ;;  %v8234_v30 = vsel %vm11343_vm15, %v7189_v44, %v7187_v20  ;;  %vm11347_vm14 = vmmov %vm11225_vm0  ;;  %v11361_v44 = vld [vmem:[#allocation39_spill] sm:$0xff]  ;;  %v11455_v26 = vld [vmem:[#allocation133_spill] sm:$0xff]  ;;  %v11498_v47 = vmov 0 }
 0x439   :  { %11344 = vst [vmem:[#allocation122_spill] sm:$0xff] %v8234_v30  ;;  %v8239_v2 = vsel %vm11347_vm14, %v11346_v49, %v11345_v60  ;;  %vm11351_vm11 = vmmov %vm11225_vm0  ;;  %v11370_v60 = vld [vmem:[#allocation12_spill] sm:$0xff]  ;;  %v11408_v30 = vld [vmem:[#allocation7_spill] sm:$0xff] }
 0x43a   :  { %11348 = vst [vmem:[#allocation30_spill] sm:$0xff] %v8239_v2  ;;  %v8244_v46 = vsel %vm11351_vm11, %v11350_v52, %v11349_v21  ;;  %vm11355_vm6 = vmmov %vm11225_vm0  ;;  %vm3074_vm11 = vcmp.ne.s32.totalorder %v8196_v56, 0  ;;  %v11372_v21 = vld [vmem:[#allocation123_spill] sm:$0xff]  ;;  %v11373_v52 = vld [vmem:[#allocation124_spill] sm:$0xff] }
 0x43b   :  { %11352 = vst [vmem:[#allocation48_spill] sm:$0xff] %v8244_v46  ;;  %v8249_v22 = vsel %vm11355_vm6, %v11354_v27, %v11353_v42  ;;  %vm11360_vm6 = vmmov %vm11225_vm0  ;;  %v11375_v27 = vld [vmem:[#allocation85_spill] sm:$0xff]  ;;  %v11391_v46 = vld [vmem:[#allocation88_spill] sm:$0xff] }
 0x43c   :  { %11356 = vst [vmem:[#allocation28_spill] sm:$0xff] %v8249_v22  ;;  %v8264_v20 = vsel %vm11360_vm6, %v11359_v11, %v11358_v35  ;;  %vm11363_vm3 = vmmov %vm11225_vm0  ;;  %v11376_v35 = vld [vmem:[#allocation86_spill] sm:$0xff]  ;;  %v11472_v56 = vld [vmem:[#allocation13_spill] sm:$0xff] }
 0x43d   :  { %v8269_v28 = vsel %vm11363_vm3, %v11362_v12, %v11361_v44  ;;  %vm11367_vm6 = vmmov %vm11225_vm0  ;;  %v8301_v44 = vpop.permute.xlu1 %2844  ;;  %v8303_v12 = vpop.permute.xlu0 %2842  ;;  %v11386_v22 = vld [vmem:[#allocation50_spill] sm:$0xff] }
 0x43e   :  { %v8282_v10 = vsel %vm11367_vm6, %v11366_v16, %v11365_v9  ;;  %vm11371_vm3 = vmmov %vm11225_vm0  ;;  %v11378_v9 = vld [vmem:[#allocation125_spill] sm:$0xff]  ;;  %v11379_v16 = vld [vmem:[#allocation126_spill] sm:$0xff] }
 0x43f   :  { %11368 = vst [vmem:[#allocation45_spill] sm:$0xff] %v8282_v10  ;;  %v8287_v49 = vsel %vm11371_vm3, %v11370_v60, %v11369_v61  ;;  %vm11374_vm14 = vmmov %vm11225_vm0  ;;  %v11382_v60 = vld [vmem:[#allocation113_spill] sm:$0xff] }
 0x440   :  { %v8292_v42 = vsel %vm11374_vm14, %v11373_v52, %v11372_v21  ;;  %vm11377_vm15 = vmmov %vm11225_vm0  ;;  %v11383_v21 = vld [vmem:[#allocation35_spill] sm:$0xff] }
 0x441   :  { %v8297_v11 = vsel %vm11377_vm15, %v11376_v35, %v11375_v27  ;;  %vm11380_vm6 = vmmov %vm11225_vm0  ;;  %v11387_v27 = vld [vmem:[#allocation78_spill] sm:$0xff]  ;;  %v8504_v10 = vpop.permute.xlu1 %2848  ;;  %v8506_v38 = vpop.permute.xlu0 %2846 }
 0x442   :  { %v8308_v61 = vsel %vm11380_vm6, %v11379_v16, %v11378_v9  ;;  %vm11384_vm14 = vmmov %vm11225_vm0  ;;  %v11396_v16 = vld [vmem:[#allocation5_spill] sm:$0xff] }
 0x443   :  { %11381 = vst [vmem:[#allocation46_spill] sm:$0xff] %v8308_v61  ;;  %v8313_v52 = vsel %vm11384_vm14, %v11383_v21, %v11382_v60  ;;  %vm11388_vm15 = vmmov %vm11225_vm0  ;;  %v11400_v60 = vld [vmem:[#allocation10_spill] sm:$0xff] }
 0x444   :  { %11385 = vst [vmem:[#allocation31_spill] sm:$0xff] %v8313_v52  ;;  %v8318_v35 = vsel %vm11388_vm15, %v11387_v27, %v11386_v22  ;;  %vm11392_vm3 = vmmov %vm11225_vm0  ;;  %v11395_v22 = vld [vmem:[#allocation11_spill] sm:$0xff]  ;;  %v11403_v21 = vld [vmem:[#allocation42_spill] sm:$0xff]  ;;  %vm11445_vm15 = vcmp.ne.s32.totalorder %v8112_v31, 0 }
 0x445   :  { %11389 = vst [vmem:[#allocation33_spill] sm:$0xff] %v8318_v35  ;;  %v8323_v19 = vsel %vm11392_vm3, %v11391_v46, %v11390_v29  ;;  %vm8332_vm6 = vmand %vm1585_vm7, %vm3027_vm4  ;;  %v11399_v46 = vld [vmem:[#allocation4_spill] sm:$0xff]  ;;  %v11404_v27 = vld [vmem:[#allocation41_spill] sm:$0xff]  ;;  %v8672_v63 = vpop.permute.xlu0 %3283 }
 0x446   :  { %vm11397_vm3 = vmmov %vm11225_vm0  ;;  %v11449_v31 = vld [vmem:[#allocation128_spill] sm:$0xff]  ;;  %v11458_v35 = vld [vmem:[#allocation134_spill] sm:$0xff]  ;;  %11560 = vst [vmem:[#allocation119_spill] sm:$0xff] %v8672_v63 }
 0x447   :  { %v8341_v29 = vsel %vm11397_vm3, %v11396_v16, %v11395_v22  ;;  %vm11401_vm9 = vmmov %vm11225_vm0 }
 0x448   :  { %11398 = vst [vmem:[#allocation32_spill] sm:$0xff] %v8341_v29  ;;  %v8346_v15 = vsel %vm11401_vm9, %v11400_v60, %v11399_v46  ;;  %vm11405_vm4 = vmmov %vm11225_vm0  ;;  %v11419_v46 = vld [vmem:[#allocation81_spill] sm:$0xff]  ;;  %v11420_v60 = vld [vmem:[#allocation82_spill] sm:$0xff] }
 0x449   :  { %11402 = vst [vmem:[#allocation34_spill] sm:$0xff] %v8346_v15  ;;  %v8351_v2 = vsel %vm11405_vm4, %v11404_v27, %v11403_v21  ;;  %vm11409_vm7 = vmmov %vm11225_vm0  ;;  %v11423_v21 = vld [vmem:[#allocation83_spill] sm:$0xff]  ;;  %v11424_v27 = vld [vmem:[#allocation84_spill] sm:$0xff] }
 0x44a   :  { %11406 = vst [vmem:[#allocation49_spill] sm:$0xff] %v8351_v2  ;;  %v8356_v3 = vsel %vm11409_vm7, %v11408_v30, %v11407_v24  ;;  %vm8365_vm9 = vmand %vm1584_vm5, %vm3026_vm8  ;;  %v11416_v30 = vld [vmem:[#allocation80_spill] sm:$0xff]  ;;  %v11427_v15 = vld [vmem:[#allocation69_spill] sm:$0xff] }
 0x44b   :  { %11410 = vst [vmem:[#allocation51_spill] sm:$0xff] %v8356_v3  ;;  %vm8374_vm3 = vmand %vm1601_vm13, %vm3043_vm12  ;;  %v11454_v29 = vld [vmem:[#allocation132_spill] sm:$0xff] }
 0x44c   :  { %vm11417_vm14 = vmmov %vm11225_vm0 }
 0x44d   :  { %v8383_v16 = vsel %vm11417_vm14, %v11416_v30, %v11415_v13  ;;  %vm11421_vm8 = vmmov %vm11225_vm0 }
 0x44e   :  { %11418 = vst [vmem:[#allocation25_spill] sm:$0xff] %v8383_v16  ;;  %v8388_v55 = vsel %vm11421_vm8, %v11420_v60, %v11419_v46  ;;  %vm11425_vm12 = vmmov %vm11225_vm0  ;;  %v11434_v46 = vld [vmem:[#allocation9_spill] sm:$0xff] }
 0x44f   :  { %11422 = vst [vmem:[#allocation36_spill] sm:$0xff] %v8388_v55  ;;  %v8393_v2 = vsel %vm11425_vm12, %v11424_v27, %v11423_v21  ;;  %vm8405_vm14 = vmand %vm1600_vm2, %vm3042_vm10  ;;  %vm11430_vm12 = vcmp.eq.s32.totalorder %v7951_v25, %v11323_v58  ;;  %v11436_v21 = vld [vmem:[#allocation18_spill] sm:$0xff]  ;;  %v11437_v27 = vld [vmem:[#allocation127_spill] sm:$0xff] }
 0x450   :  { %11426 = vst [vmem:[#allocation38_spill] sm:$0xff] %v8393_v2  ;;  %vm8416_vm4 = vmand %vm11430_vm12, %vm3058_vm1  ;;  %v11440_v2 = vld [vmem:[#allocation150_spill] sm:$0xff]  ;;  %v11441_v55 = vld [vmem:[#allocation151_spill] sm:$0xff]  ;;  %vm11496_vm12 = vcmp.ne.s32.totalorder %v7986_v0, 0  ;;  %v11506_v0 = vmov 0 }
 0x451   :  { %vm11435_vm10 = vmmov %vm11225_vm0  ;;  %v3362_v22 = vsel %vm8416_vm4, %v8672_v63, 0 }
 0x452   :  { %v8425_v60 = vsel %vm11435_vm10, %v11434_v46, %v11433_v48  ;;  %vm11438_vm2 = vmmov %vm11225_vm0  ;;  %vm11446_vm10 = vcmp.eq.s32.totalorder %v7951_v25, %v11310_v62  ;;  %v11451_v46 = vld [vmem:[#allocation130_spill] sm:$0xff] }
 0x453   :  { %v8430_v39 = vsel %vm11438_vm2, %v11437_v27, %v11436_v21  ;;  %vm11442_vm1 = vmmov %vm11225_vm0  ;;  %v11452_v21 = vld [vmem:[#allocation131_spill] sm:$0xff] }
 0x454   :  { %11439 = vst [vmem:[#allocation40_spill] sm:$0xff] %v8430_v39  ;;  %v2978_v16 = vsel %vm11442_vm1, %v11441_v55, %v11440_v2  ;;  %vm8444_vm13 = vmand %vm11446_vm10, %vm11445_vm15  ;;  %v11450_v2 = vld [vmem:[#allocation129_spill] sm:$0xff]  ;;  %v11567_v39 = vld [vmem:[#allocation90_spill] sm:$0xff] }
 0x455   :  { %v8458_v55 = vsel %vm11225_vm0, %v11450_v2, %v11449_v31  ;;  %vm11453_vm15 = vmmov %vm11225_vm0  ;;  %v11463_v31 = vmov 0  ;;  %v11465_v2 = vld [vmem:[#allocation136_spill] sm:$0xff] }
 0x456   :  { %v8463_v27 = vsel %vm11453_vm15, %v11452_v21, %v11451_v46  ;;  %vm11456_vm10 = vmmov %vm11225_vm0  ;;  %v11469_v46 = vld [vmem:[#allocation152_spill] sm:$0xff]  ;;  %v11473_v21 = vld [vmem:[#allocation154_spill] sm:$0xff]  ;;  %vm11481_vm15 = vcmp.eq.s32.totalorder %v7954_v5, %v11310_v62 }
 0x457   :  { %v8468_v43 = vsel %vm11456_vm10, %v11455_v26, %v11454_v29  ;;  %vm11460_vm7 = vmmov %vm11225_vm0  ;;  %vm11462_vm0 = vcmp.eq.s32.totalorder %v7954_v5, %v11323_v58  ;;  %v11466_v26 = vld [vmem:[#allocation137_spill] sm:$0xff] }
 0x458   :  { %11457 = vst [vmem:[#allocation54_spill] sm:$0xff] %v8468_v43  ;;  %v8473_v52 = vsel %vm11460_vm7, %v11459_v33, %v11458_v35  ;;  %vm8480_vm8 = vmand %vm11462_vm0, %vm3074_vm11  ;;  %v11470_v33 = vld [vmem:[#allocation153_spill] sm:$0xff]  ;;  %v11476_v43 = vld [vmem:[#allocation155_spill] sm:$0xff]  ;;  %vm11497_vm0 = vcmp.eq.s32.totalorder %v7945_v6, %v11357_v45 }
 0x459   :  { %11461 = vst [vmem:[#allocation55_spill] sm:$0xff] %v8473_v52  ;;  %v11464_v31 = vsel %vm8480_vm8, 4294967295, %v11463_v31  ;;  %vm11467_vm10 = vmmov %vm11442_vm1 }
 0x45a   :  { %v8489_v29 = vsel %vm11467_vm10, %v11466_v26, %v11465_v2  ;;  %vm11471_vm7 = vmmov %vm11442_vm1  ;;  %v11479_v2 = vld [vmem:[#allocation70_spill] sm:$0xff]  ;;  %v11485_v26 = vld [vmem:[#allocation139_spill] sm:$0xff] }
 0x45b   :  { %11468 = vst [vmem:[#allocation43_spill] sm:$0xff] %v8489_v29  ;;  %v2979_v35 = vsel %vm11471_vm7, %v11470_v33, %v11469_v46  ;;  %vm11474_vm2 = vmmov %vm11442_vm1  ;;  %v11488_v33 = vld [vmem:[#allocation140_spill] sm:$0xff]  ;;  %v11493_v29 = vld [vmem:[#allocation143_spill] sm:$0xff] }
 0x45c   :  { %v8497_v52 = vsel %vm11474_vm2, %v11473_v21, %v11472_v56  ;;  %vm11477_vm11 = vmmov %vm11442_vm1  ;;  %vm11480_vm2 = vcmp.ne.s32.totalorder %v8201_v8, 0  ;;  %v11489_v8 = vld [vmem:[#allocation141_spill] sm:$0xff]  ;;  %v11492_v21 = vld [vmem:[#allocation142_spill] sm:$0xff] }
 0x45d   :  { %v8502_v3 = vsel %vm11477_vm11, %v11476_v43, %v11475_v57  ;;  %vm8519_vm11 = vmand %vm11481_vm15, %vm11480_vm2  ;;  %v11484_v57 = vld [vmem:[#allocation138_spill] sm:$0xff]  ;;  %vm11505_vm2 = vcmp.eq.s32.totalorder %v7951_v25, %v11357_v45  ;;  %v11799_v43 = vld [vmem:[#allocation32_spill] sm:$0xff] }
 0x45e   :  { %11478 = vst [vmem:[#allocation44_spill] sm:$0xff] %v8502_v3  ;;  %vm11486_vm10 = vmmov %vm11442_vm1  ;;  %v8670_v3 = vpop.permute.xlu1 %3286 }
 0x45f   :  { %v8530_v46 = vsel %vm11486_vm10, %v11485_v26, %v11484_v57  ;;  %vm11490_vm7 = vmmov %vm11442_vm1  ;;  %vm11500_vm10 = vcmp.ne.s32.totalorder %v8069_v18, 0  ;;  %v11502_v57 = vmov 0  ;;  %v11510_v18 = vmov 0  ;;  %11559 = vst [vmem:[#allocation118_spill] sm:$0xff] %v8670_v3 }
 0x460   :  { %11487 = vst [vmem:[#allocation57_spill] sm:$0xff] %v8530_v46  ;;  %v8535_v56 = vsel %vm11490_vm7, %v11489_v8, %v11488_v33  ;;  %vm11494_vm15 = vmmov %vm11442_vm1  ;;  %vm11501_vm7 = vcmp.eq.s32.totalorder %v7948_v59, %v11357_v45  ;;  %v11516_v33 = vld [vmem:[#allocation146_spill] sm:$0xff]  ;;  %v11517_v8 = vld [vmem:[#allocation147_spill] sm:$0xff]  ;;  %v3379_v24 = vsel %vm8519_vm11, %v8670_v3, 0  ;;  %vm11577_vm11 = vcmp.ne.s32.totalorder %v8080_v32, 0 }
 0x461   :  { %11491 = vst [vmem:[#allocation58_spill] sm:$0xff] %v8535_v56  ;;  %v8540_v1 = vsel %vm11494_vm15, %v11493_v29, %v11492_v21  ;;  %vm8547_vm1 = vmand %vm11497_vm0, %vm11496_vm12  ;;  %vm11504_vm15 = vcmp.ne.s32.totalorder %v8155_v36, 0  ;;  %vm11508_vm0 = vcmp.ne.s32.totalorder %v8297_v11, 0  ;;  %v11512_v36 = vld [vmem:[#allocation144_spill] sm:$0xff]  ;;  %v11513_v29 = vld [vmem:[#allocation145_spill] sm:$0xff]  ;;  %v3346_v32 = vsel %vm8405_vm14, %v8672_v63, 0 }
 0x462   :  { %11495 = vst [vmem:[#allocation59_spill] sm:$0xff] %v8540_v1  ;;  %v11499_v47 = vsel %vm8547_vm1, 4294967295, %v11498_v47  ;;  %vm8556_vm5 = vmand %vm11501_vm7, %vm11500_vm10  ;;  %vm11509_vm1 = vcmp.eq.s32.totalorder %v7957_v14, %v11323_v58  ;;  %v11520_v11 = vld [vmem:[#allocation148_spill] sm:$0xff]  ;;  %v11521_v1 = vld [vmem:[#allocation149_spill] sm:$0xff]  ;;  %vm11525_vm7 = vcmp.ne.s32.totalorder %v7981_v40, 0  ;;  %v11536_v40 = vmov 0  ;;  %v8815_v61 = vpop.permute.xlu1 %3292 }
 0x463   :  { %v11503_v57 = vsel %vm8556_vm5, 4294967295, %v11502_v57  ;;  %vm8565_vm8 = vmand %vm11505_vm2, %vm11504_vm15  ;;  %vm11514_vm5 = vcmask 7168   ;;  %v11524_v46 = vld [vmem:[#allocation172_spill] sm:$0xff]  ;;  %vm11588_vm14 = vcmp.ne.s32.totalorder %v8179_v51, 0  ;;  %11600 = vst [vmem:[#allocation37_spill] sm:$0xff] %v8815_v61  ;;  %v8817_v51 = vpop.permute.xlu0 %3289 }
 0x464   :  { %v11507_v0 = vsel %vm8565_vm8, 4294967295, %v11506_v0  ;;  %vm8575_vm10 = vmand %vm11509_vm1, %vm11508_vm0  ;;  %v8583_v26 = vsel %vm11514_vm5, %v11513_v29, %v11512_v36  ;;  %v11527_v36 = vmov 0  ;;  %vm11530_vm8 = vcmp.ne.s32.totalorder %v8064_v23, 0  ;;  %v11561_v29 = vld [vmem:[#allocation73_spill] sm:$0xff]  ;;  %11601 = vst [vmem:[#allocation52_spill] sm:$0xff] %v8817_v51 }
 0x465   :  { %v11511_v18 = vsel %vm8575_vm10, 4294967295, %v11510_v18  ;;  %11515 = vst [vmem:[#allocation60_spill] sm:$0xff] %v8583_v26  ;;  %vm11518_vm2 = vmmov %vm11514_vm5  ;;  %vm11526_vm5 = vcmp.eq.s32.totalorder %v7945_v6, %v11364_v37  ;;  %vm11534_vm0 = vcmp.ne.s32.totalorder %v8169_v7, 0  ;;  %v11542_v7 = vld [vmem:[#allocation156_spill] sm:$0xff]  ;;  %v11945_v23 = vld [vmem:[#allocation25_spill] sm:$0xff] }
 0x466   :  { %v8588_v21 = vsel %vm11518_vm2, %v11517_v8, %v11516_v33  ;;  %vm11522_vm15 = vmmov %vm11518_vm2  ;;  %vm11538_vm2 = vcmp.ne.s32.totalorder %v8323_v19, 0  ;;  %v11543_v33 = vld [vmem:[#allocation157_spill] sm:$0xff] }
 0x467   :  { %11519 = vst [vmem:[#allocation110_spill] sm:$0xff] %v8588_v21  ;;  %v8593_v56 = vsel %vm11522_vm15, %v11521_v1, %v11520_v11  ;;  %vm8603_vm12 = vmand %vm11526_vm5, %vm11525_vm7  ;;  %vm11531_vm15 = vcmp.eq.s32.totalorder %v7948_v59, %v11364_v37  ;;  %v11532_v1 = vmov 0  ;;  %vm11535_vm7 = vcmp.eq.s32.totalorder %v7951_v25, %v11364_v37  ;;  %v11550_v11 = vld [vmem:[#allocation158_spill] sm:$0xff]  ;;  %v11554_v21 = vld [vmem:[#allocation161_spill] sm:$0xff] }
 0x468   :  { %11523 = vst [vmem:[#allocation111_spill] sm:$0xff] %v8593_v56  ;;  %v11528_v36 = vsel %vm8603_vm12, 4294967295, %v11527_v36  ;;  %vm8613_vm10 = vmand %vm11531_vm15, %vm11530_vm8  ;;  %vm11539_vm12 = vcmp.eq.s32.totalorder %v7957_v14, %v11310_v62  ;;  %vm11546_vm15 = vcmp.ne.s32.totalorder %v2978_v16, 0  ;;  %v11553_v56 = vld [vmem:[#allocation160_spill] sm:$0xff]  ;;  %v11558_v16 = vld [vmem:[#allocation173_spill] sm:$0xff] }
 0x469   :  { %v11533_v1 = vsel %vm8613_vm10, 4294967295, %v11532_v1  ;;  %vm8623_vm5 = vmand %vm11535_vm7, %vm11534_vm0  ;;  %vm11544_vm0 = vcmask 7168   ;;  %vm11547_vm10 = vcmp.eq.s32.totalorder %v7960_v54, %v11323_v58  ;;  %vm11562_vm7 = vcmp.ne.s32.totalorder %v11524_v46, 0 }
 0x46a   :  { %v11537_v40 = vsel %vm8623_vm5, 4294967295, %v11536_v40  ;;  %vm8632_vm8 = vmand %vm11539_vm12, %vm11538_vm2  ;;  %v8641_v8 = vsel %vm11544_vm0, %v11543_v33, %v11542_v7  ;;  %v11551_v7 = vld [vmem:[#allocation159_spill] sm:$0xff]  ;;  %vm11563_vm12 = vcmp.eq.s32.totalorder %v7963_v17, %v11310_v62  ;;  %v3363_v46 = vsel %vm8444_vm13, %v8670_v3, 0 }
 0x46b   :  { %11545 = vst [vmem:[#allocation112_spill] sm:$0xff] %v8641_v8  ;;  %vm8654_vm1 = vmand %vm11547_vm10, %vm11546_vm15  ;;  %v8661_v33 = vsel %vm11544_vm0, %v11551_v7, %v11550_v11  ;;  %v3331_v11 = vsel %vm8332_vm6, %v8670_v3, 0  ;;  %v3347_v7 = vsel %vm8374_vm3, %v8670_v3, 0  ;;  %vm11569_vm15 = vcmp.ne.s32.totalorder %v2979_v35, 0 }
 0x46c   :  { %11552 = vst [vmem:[#allocation114_spill] sm:$0xff] %v8661_v33  ;;  %vm11555_vm5 = vmmov %vm11544_vm0  ;;  %vm11570_vm3 = vcmp.eq.s32.totalorder %v7960_v54, %v11310_v62  ;;  %v3395_v48 = vsel %vm8632_vm8, %v8670_v3, 0  ;;  %v3330_v62 = vsel %vm8365_vm9, %v8672_v63, 0  ;;  %vm11578_vm8 = vcmp.eq.s32.totalorder %v7948_v59, %v11427_v15 }
 0x46d   :  { %v8666_v26 = vsel %vm11555_vm5, %v11554_v21, %v11553_v56  ;;  %vm8686_vm2 = vmand %vm11563_vm12, %vm11562_vm7  ;;  %v11566_v21 = vld [vmem:[#allocation174_spill] sm:$0xff]  ;;  %vm11589_vm12 = vcmp.eq.s32.totalorder %v7951_v25, %v11427_v15  ;;  %vm11593_vm9 = vcmp.eq.s32.totalorder %v7954_v5, %v11364_v37  ;;  %v3458_v19 = vadd.s32 %v3331_v11, %v3330_v62  ;;  %v11619_v62 = vld [vmem:[#allocation107_spill] sm:$0xff] }
 0x46e   :  { %11556 = vst [vmem:[#allocation115_spill] sm:$0xff] %v8666_v26  ;;  %v11568_v26 = vld [vmem:[#allocation20_spill] sm:$0xff]  ;;  %vm8711_vm10 = vmand %vm11570_vm3, %vm11569_vm15  ;;  %v3427_v35 = vsel %vm8686_vm2, %v8670_v3, 0  ;;  %vm11573_vm15 = vcmp.ne.s32.totalorder %v7999_v41, 0  ;;  %vm11574_vm3 = vcmp.eq.s32.totalorder %v7945_v6, %v11427_v15  ;;  %v3479_v9 = vadd.s32 %v3347_v7, %v3346_v32  ;;  %v11609_v41 = vld [vmem:[#allocation14_spill] sm:$0xff] }
 0x46f   :  { %vm8734_vm6 = vmand %vm11574_vm3, %vm11573_vm15  ;;  %vm11581_vm15 = vcmp.ne.s32.totalorder %v11557_v34, 0  ;;  %vm11582_vm3 = vcmp.eq.s32.totalorder %v7963_v17, %v11323_v58  ;;  %v11587_v58 = vld [vmem:[#allocation74_spill] sm:$0xff]  ;;  %v3500_v7 = vadd.s32 %v3363_v46, %v3362_v22  ;;  %v8938_v22 = vpop.permute.xlu0 %3295 }
 0x470   :  { %vm8743_vm5 = vmand %vm11578_vm8, %vm11577_vm11  ;;  %vm11585_vm11 = vnez %v11464_v31  ;;  %vm11586_vm8 = vnez %v11511_v18  ;;  %11651 = vst [vmem:[#allocation53_spill] sm:$0xff] %v8938_v22  ;;  %v11668_v11 = vld [vmem:[#allocation98_spill] sm:$0xff] }
 0x471   :  { %vm8756_vm7 = vmand %vm11582_vm3, %vm11581_vm15  ;;  %v3378_v56 = vsel %vm11585_vm11, %v8672_v63, 0  ;;  %v3394_v34 = vsel %vm11586_vm8, %v8672_v63, 0  ;;  %vm11592_vm8 = vcmp.ne.s32.totalorder %v8264_v20, 0  ;;  %v3411_v20 = vsel %vm8711_vm10, %v8670_v3, 0 }
 0x472   :  { %vm8781_vm4 = vmand %vm11589_vm12, %vm11588_vm14  ;;  %v3426_v8 = vsel %vm8756_vm7, %v8672_v63, 0  ;;  %v3521_v32 = vadd.s32 %v3379_v24, %v3378_v56  ;;  %v11642_v24 = vld [vmem:[#allocation54_spill] sm:$0xff]  ;;  %v11680_v56 = vld [vmem:[#allocation61_spill] sm:$0xff] }
 0x473   :  { %vm8792_vm15 = vmand %vm11593_vm9, %vm11592_vm8  ;;  %vm11602_vm8 = vcmp.ne.s32.totalorder %v8269_v28, 0 }
 0x474   :  { %vm11597_vm11 = vmmov %vm11544_vm0 }
 0x475   :  { %v8804_v31 = vsel %vm11597_vm11, %v8159_v4, %v8157_v50  ;;  %vm11599_vm9 = vmmov %vm8654_vm1  ;;  %vm11603_vm11 = vcmp.eq.s32.totalorder %v7954_v5, %v11357_v45  ;;  %v11724_v50 = vld [vmem:[#allocation46_spill] sm:$0xff] }
 0x476   :  { %11598 = vst [vmem:[#allocation120_spill] sm:$0xff] %v8804_v31  ;;  %v3410_v18 = vsel %vm11599_vm9, %v8672_v63, 0  ;;  %vm8824_vm14 = vmand %vm11603_vm11, %vm11602_vm8  ;;  %vm11610_vm8 = vcmp.ne.s32.totalorder %v11609_v41, 0  ;;  %vm11611_vm11 = vcmp.eq.s32.totalorder %v7945_v6, %v11479_v2  ;;  %v11614_v63 = vld [vmem:[#allocation21_spill] sm:$0xff]  ;;  %v3542_v41 = vadd.s32 %v3395_v48, %v3394_v34 }
 0x477   :  { %vm11606_vm12 = vmmov %vm11544_vm0  ;;  %vm11615_vm7 = vcmp.ne.s32.totalorder %v11614_v63, 0  ;;  %v11627_v63 = vmov 0  ;;  %v3563_v33 = vadd.s32 %v3411_v20, %v3410_v18  ;;  %v11663_v18 = vld [vmem:[#allocation91_spill] sm:$0xff]  ;;  %v11666_v34 = vmov 0 }
 0x478   :  { %v8836_v4 = vsel %vm11606_vm12, %v8303_v12, %v8301_v44  ;;  %vm11607_vm3 = vmmov %vm11544_vm0  ;;  %vm11616_vm12 = vcmp.eq.s32.totalorder %v7948_v59, %v11479_v2  ;;  %v11617_v44 = vmov 0  ;;  %vm11621_vm0 = vcmp.eq.s32.totalorder %v7951_v25, %v11479_v2  ;;  %v11629_v12 = vld [vmem:[#allocation51_spill] sm:$0xff] }
 0x479   :  { %v8841_v28 = vsel %vm11607_vm3, %v8506_v38, %v8504_v10  ;;  %vm8848_vm9 = vmand %vm11611_vm11, %vm11610_vm8  ;;  %vm11620_vm3 = vcmp.ne.s32.totalorder %v11619_v62, 0  ;;  %v11622_v38 = vmov 0  ;;  %v11624_v10 = vld [vmem:[#allocation45_spill] sm:$0xff]  ;;  %vm11626_vm11 = vcmp.eq.s32.totalorder %v7954_v5, %v11479_v2 }
 0x47a   :  { %11608 = vst [vmem:[#allocation66_spill] sm:$0xff] %v8841_v28  ;;  %vm8857_vm10 = vmand %vm11616_vm12, %vm11615_vm7  ;;  %vm11625_vm8 = vcmp.ne.s32.totalorder %v11624_v10, 0  ;;  %vm11630_vm7 = vcmp.ne.s32.totalorder %v11629_v12, 0  ;;  %vm11631_vm12 = vcmp.eq.s32.totalorder %v7957_v14, %v11364_v37  ;;  %v3584_v62 = vadd.s32 %v3427_v35, %v3426_v8  ;;  %v11638_v12 = vld [vmem:[#allocation176_spill] sm:$0xff]  ;;  %v8936_v35 = vpop.permute.xlu1 %3298  ;;  %v11760_v28 = vld [vmem:[#allocation163_spill] sm:$0xff] }
 0x47b   :  { %v11618_v44 = vsel %vm8857_vm10, 4294967295, %v11617_v44  ;;  %vm8866_vm2 = vmand %vm11621_vm0, %vm11620_vm3  ;;  %vm11639_vm3 = vnez %v11499_v47  ;;  %vm11643_vm0 = vcmp.ne.s32.totalorder %v11558_v16, 0  ;;  %v3380_v16 = vsel %vm8792_vm15, %v8817_v51, 0  ;;  %11650 = vst [vmem:[#allocation27_spill] sm:$0xff] %v8936_v35 }
 0x47c   :  { %v11623_v38 = vsel %vm8866_vm2, 4294967295, %v11622_v38  ;;  %vm8875_vm13 = vmand %vm11626_vm11, %vm11625_vm8  ;;  %vm11634_vm11 = vcmp.ne.s32.totalorder %v8497_v52, 0  ;;  %v3333_v46 = vsel %vm11639_vm3, %v8815_v61, 0  ;;  %vm11641_vm8 = vnez %v11507_v0 }
 0x47d   :  { %v11628_v63 = vsel %vm8875_vm13, 4294967295, %v11627_v63  ;;  %vm8884_vm1 = vmand %vm11631_vm12, %vm11630_vm7  ;;  %vm11635_vm7 = vcmp.eq.s32.totalorder %v7960_v54, %v11364_v37  ;;  %vm11640_vm13 = vnez %v11503_v57  ;;  %v3365_v52 = vsel %vm11641_vm8, %v8815_v61, 0 }
 0x47e   :  { %vm8898_vm12 = vmand %vm11635_vm7, %vm11634_vm11  ;;  %v3349_v8 = vsel %vm11640_vm13, %v8815_v61, 0  ;;  %vm11644_vm2 = vcmp.eq.s32.totalorder %v7963_v17, %v11364_v37  ;;  %vm11647_vm13 = vnez %v11528_v36  ;;  %vm11648_vm3 = vnez %v11533_v1 }
 0x47f   :  { %vm8920_vm10 = vmand %vm11644_vm2, %vm11643_vm0  ;;  %v3332_v57 = vsel %vm11647_vm13, %v8817_v51, 0  ;;  %v3348_v0 = vsel %vm11648_vm3, %v8817_v51, 0  ;;  %vm11649_vm8 = vnez %v11537_v40  ;;  %vm11654_vm13 = vcmp.ne.s32.totalorder %v8287_v49, 0 }
 0x480   :  { %v3364_v48 = vsel %vm11649_vm8, %v8817_v51, 0  ;;  %vm11655_vm3 = vcmp.eq.s32.totalorder %v7954_v5, %v11427_v15  ;;  %v11656_v1 = vmov 0  ;;  %vm11658_vm8 = vcmp.ne.s32.totalorder %v8425_v60, 0 }
 0x481   :  { %vm8947_vm11 = vmand %vm11655_vm3, %vm11654_vm13  ;;  %vm11659_vm15 = vcmp.eq.s32.totalorder %v7957_v14, %v11357_v45  ;;  %v3396_v49 = vsel %vm8884_vm1, %v8817_v51, 0  ;;  %v3412_v60 = vsel %vm8898_vm12, %v8817_v51, 0  ;;  %v3428_v30 = vsel %vm8920_vm10, %v8817_v51, 0 }
 0x482   :  { %v11657_v1 = vsel %vm8947_vm11, 4294967295, %v11656_v1  ;;  %vm8956_vm7 = vmand %vm11659_vm15, %vm11658_vm8  ;;  %v3459_v20 = vadd.s32 %v3458_v19, %v3332_v57  ;;  %vm11664_vm13 = vcmp.ne.s32.totalorder %v11663_v18, 0  ;;  %vm11665_vm3 = vcmp.eq.s32.totalorder %v7945_v6, %v11561_v29  ;;  %v11674_v19 = vld [vmem:[#allocation44_spill] sm:$0xff]  ;;  %v11686_v57 = vld [vmem:[#allocation109_spill] sm:$0xff] }
 0x483   :  { %vm8977_vm8 = vmand %vm11665_vm3, %vm11664_vm13  ;;  %vm11669_vm1 = vcmp.ne.s32.totalorder %v11668_v11, 0  ;;  %vm11670_vm15 = vcmp.eq.s32.totalorder %v7948_v59, %v11561_v29  ;;  %v11671_v10 = vmov 0  ;;  %vm11675_vm0 = vcmp.ne.s32.totalorder %v11674_v19, 0  ;;  %v11681_v19 = vld [vmem:[#allocation108_spill] sm:$0xff] }
 0x484   :  { %v11667_v34 = vsel %vm8977_vm8, 4294967295, %v11666_v34  ;;  %vm8986_vm12 = vmand %vm11670_vm15, %vm11669_vm1  ;;  %vm11676_vm13 = vcmp.eq.s32.totalorder %v7960_v54, %v11357_v45  ;;  %v3480_v18 = vadd.s32 %v3479_v9, %v3348_v0  ;;  %v3501_v11 = vadd.s32 %v3500_v7, %v3364_v48  ;;  %v11691_v7 = vld [vmem:[#allocation177_spill] sm:$0xff]  ;;  %v11737_v9 = vld [vmem:[#allocation75_spill] sm:$0xff] }
 0x485   :  { %v11672_v10 = vsel %vm8986_vm12, 4294967295, %v11671_v10  ;;  %vm8997_vm3 = vmand %vm11676_vm13, %vm11675_vm0  ;;  %v3522_v51 = vadd.s32 %v3521_v32, %v3380_v16  ;;  %v3543_v36 = vadd.s32 %v3542_v41, %v3396_v49  ;;  %vm11682_vm10 = vcmp.ne.s32.totalorder %v11681_v19, 0  ;;  %v11693_v16 = vld [vmem:[#allocation40_spill] sm:$0xff]  ;;  %v9061_v19 = vpop.permute.xlu0 %3301 }
 0x486   :  { %11673 = vst [vmem:[#allocation39_spill] sm:$0xff] %v11672_v10  ;;  %vm11683_vm0 = vcmp.eq.s32.totalorder %v7951_v25, %v11561_v29  ;;  %vm11687_vm8 = vcmp.ne.s32.totalorder %v11566_v21, 0  ;;  %vm11688_vm1 = vcmp.eq.s32.totalorder %v7963_v17, %v11357_v45  ;;  %v3381_v32 = vsel %vm8824_vm14, %v8815_v61, 0  ;;  %11700 = vst [vmem:[#allocation67_spill] sm:$0xff] %v9061_v19  ;;  %v11921_v10 = vld [vmem:[#allocation69_spill] sm:$0xff] }
 0x487   :  { %vm9011_vm13 = vmand %vm11683_vm0, %vm11682_vm10  ;;  %v3397_v41 = vsel %vm8956_vm7, %v8815_v61, 0  ;;  %v3564_v0 = vadd.s32 %v3563_v33, %v3412_v60  ;;  %v3585_v48 = vadd.s32 %v3584_v62, %v3428_v30  ;;  %vm11694_vm0 = vcmp.ne.s32.totalorder %v11693_v16, 0  ;;  %v9059_v30 = vpop.permute.xlu1 %3304 }
 0x488   :  { %vm9023_vm15 = vmand %vm11688_vm1, %vm11687_vm8  ;;  %vm11695_vm8 = vcmp.eq.s32.totalorder %v7957_v14, %v11479_v2  ;;  %v3413_v33 = vsel %vm8997_vm3, %v8815_v61, 0  ;;  %11699 = vst [vmem:[#allocation121_spill] sm:$0xff] %v9059_v30  ;;  %vm11701_vm7 = vcmp.ne.s32.totalorder %v11567_v39, 0  ;;  %vm11702_vm3 = vcmp.eq.s32.totalorder %v7945_v6, %v11587_v58 }
 0x489   :  { %vm9040_vm1 = vmand %vm11695_vm8, %vm11694_vm0  ;;  %v3429_v62 = vsel %vm9023_vm15, %v8815_v61, 0  ;;  %vm11706_vm8 = vcmp.ne.s32.totalorder %v11568_v26, 0  ;;  %vm11707_vm11 = vcmp.eq.s32.totalorder %v7948_v59, %v11587_v58  ;;  %v11708_v16 = vmov 0 }
 0x48a   :  { %vm9068_vm0 = vmand %vm11702_vm3, %vm11701_vm7  ;;  %vm11710_vm2 = vcmp.ne.s32.totalorder %v8186_v53, 0  ;;  %vm11711_vm14 = vcmp.eq.s32.totalorder %v7951_v25, %v11587_v58  ;;  %v11712_v39 = vmov 0  ;;  %vm11714_vm15 = vcmp.ne.s32.totalorder %v8292_v42, 0  ;;  %v11730_v42 = vld [vmem:[#allocation112_spill] sm:$0xff] }
 0x48b   :  { %vm9078_vm10 = vmand %vm11707_vm11, %vm11706_vm8  ;;  %vm11715_vm11 = vcmp.eq.s32.totalorder %v7954_v5, %v11587_v58  ;;  %v11716_v26 = vmov 0  ;;  %vm11718_vm12 = vcmp.ne.s32.totalorder %v8458_v55, 0  ;;  %v3460_v60 = vadd.s32 %v3459_v20, %v3333_v46  ;;  %v11739_v55 = vld [vmem:[#allocation175_spill] sm:$0xff] }
 0x48c   :  { %v11709_v16 = vsel %vm9078_vm10, 4294967295, %v11708_v16  ;;  %vm9087_vm7 = vmand %vm11711_vm14, %vm11710_vm2  ;;  %vm11719_vm2 = vcmp.eq.s32.totalorder %v7957_v14, %v11427_v15  ;;  %v3481_v40 = vadd.s32 %v3480_v18, %v3349_v8  ;;  %v3502_v61 = vadd.s32 %v3501_v11, %v3365_v52  ;;  %v11735_v8 = vld [vmem:[#allocation64_spill] sm:$0xff]  ;;  %v11736_v52 = vld [vmem:[#allocation181_spill] sm:$0xff] }
 0x48d   :  { %v11713_v39 = vsel %vm9087_vm7, 4294967295, %v11712_v39  ;;  %vm9098_vm8 = vmand %vm11715_vm11, %vm11714_vm15  ;;  %v11727_v21 = vmov 0  ;;  %vm11731_vm3 = vcmp.ne.s32.totalorder %v11730_v42, 0  ;;  %vm11732_vm10 = vcmp.eq.s32.totalorder %v7960_v54, %v11479_v2  ;;  %v11738_v42 = vld [vmem:[#allocation33_spill] sm:$0xff] }
 0x48e   :  { %v11717_v26 = vsel %vm9098_vm8, 4294967295, %v11716_v26  ;;  %vm9107_vm14 = vmand %vm11719_vm2, %vm11718_vm12  ;;  %vm11725_vm12 = vcmp.ne.s32.totalorder %v11724_v50, 0  ;;  %vm11726_vm2 = vcmp.eq.s32.totalorder %v7954_v5, %v11561_v29  ;;  %v3523_v20 = vadd.s32 %v3522_v51, %v3381_v32  ;;  %v11745_v51 = vld [vmem:[#allocation63_spill] sm:$0xff] }
 0x48f   :  { %vm9124_vm8 = vmand %vm11726_vm2, %vm11725_vm12  ;;  %v3544_v18 = vadd.s32 %v3543_v36, %v3397_v41  ;;  %v3565_v11 = vadd.s32 %v3564_v0, %v3413_v33  ;;  %v3586_v50 = vadd.s32 %v3585_v48, %v3429_v62  ;;  %v3334_v36 = vsel %vm8848_vm9, %v8938_v22, 0  ;;  %v9194_v48 = vpop.permute.xlu1 %2852  ;;  %v9196_v33 = vpop.permute.xlu0 %2850  ;;  %v11753_v62 = vld [vmem:[#allocation114_spill] sm:$0xff] }
 0x490   :  { %v11728_v21 = vsel %vm9124_vm8, 4294967295, %v11727_v21  ;;  %vm9135_vm15 = vmand %vm11732_vm10, %vm11731_vm3  ;;  %vm11740_vm8 = vcmp.ne.s32.totalorder %v11739_v55, 0  ;;  %vm11741_vm10 = vcmp.eq.s32.totalorder %v7963_v17, %v11479_v2  ;;  %vm11746_vm7 = vnez %v11618_v44 }
 0x491   :  { %11729 = vst [vmem:[#allocation26_spill] sm:$0xff] %v11728_v21  ;;  %vm9150_vm3 = vmand %vm11741_vm10, %vm11740_vm8  ;;  %v11744_v21 = vld [vmem:[#allocation178_spill] sm:$0xff]  ;;  %v3350_v32 = vsel %vm11746_vm7, %v8938_v22, 0  ;;  %vm11747_vm2 = vnez %v11623_v38  ;;  %vm11748_vm8 = vnez %v11628_v63  ;;  %vm11749_vm9 = vcmp.ne.s32.totalorder %v8463_v27, 0 }
 0x492   :  { %v3366_v41 = vsel %vm11747_vm2, %v8938_v22, 0  ;;  %v3382_v0 = vsel %vm11748_vm8, %v8938_v22, 0  ;;  %vm11750_vm11 = vcmp.eq.s32.totalorder %v7957_v14, %v11587_v58  ;;  %v3398_v44 = vsel %vm9040_vm1, %v8938_v22, 0 }
 0x493   :  { %vm9178_vm7 = vmand %vm11750_vm11, %vm11749_vm9  ;;  %v3414_v27 = vsel %vm9135_vm15, %v8938_v22, 0  ;;  %v3430_v38 = vsel %vm9150_vm3, %v8938_v22, 0  ;;  %v3461_v63 = vadd.s32 %v3460_v60, %v3334_v36  ;;  %vm11754_vm9 = vcmp.ne.s32.totalorder %v11753_v62, 0  ;;  %v11758_v36 = vld [vmem:[#allocation8_spill] sm:$0xff]  ;;  %v11759_v22 = vld [vmem:[#allocation101_spill] sm:$0xff] }
 0x494   :  { %vm11755_vm1 = vcmp.eq.s32.totalorder %v7960_v54, %v11427_v15  ;;  %v3482_v31 = vadd.s32 %v3481_v40, %v3350_v32  ;;  %v3503_v60 = vadd.s32 %v3502_v61, %v3366_v41  ;;  %v3524_v55 = vadd.s32 %v3523_v20, %v3382_v0  ;;  %v11775_v0 = vld [vmem:[#allocation92_spill] sm:$0xff] }
 0x495   :  { %vm9205_vm8 = vmand %vm11755_vm1, %vm11754_vm9  ;;  %v3545_v46 = vadd.s32 %v3544_v18, %v3398_v44  ;;  %vm11761_vm12 = vcmp.ne.s32.totalorder %v11638_v12, 0  ;;  %vm11762_vm9 = vcmp.eq.s32.totalorder %v7963_v17, %v11427_v15  ;;  %vm11765_vm10 = vnez %v11657_v1 }
 0x496   :  { %vm9219_vm1 = vmand %vm11762_vm9, %vm11761_vm12  ;;  %v3383_v61 = vsel %vm11765_vm10, %v8936_v35, 0  ;;  %v3399_v40 = vsel %vm9107_vm14, %v8936_v35, 0  ;;  %v3566_v20 = vadd.s32 %v3565_v11, %v3414_v27  ;;  %v3587_v12 = vadd.s32 %v3586_v50, %v3430_v38  ;;  %v11773_v11 = vld [vmem:[#allocation39_spill] sm:$0xff]  ;;  %v11781_v27 = vld [vmem:[#allocation24_spill] sm:$0xff] }
 0x497   :  { %vm11767_vm12 = vcmp.ne.s32.totalorder %v11642_v24, 0  ;;  %vm11768_vm9 = vcmp.eq.s32.totalorder %v7957_v14, %v11561_v29  ;;  %v3415_v1 = vsel %vm9205_vm8, %v8936_v35, 0  ;;  %v3431_v53 = vsel %vm9219_vm1, %v8936_v35, 0  ;;  %v11782_v38 = vld [vmem:[#allocation99_spill] sm:$0xff] }
 0x498   :  { %vm9237_vm11 = vmand %vm11768_vm9, %vm11767_vm12  ;;  %vm11772_vm14 = vnez %v11667_v34  ;;  %vm11776_vm9 = vcmp.ne.s32.totalorder %v11775_v0, 0  ;;  %vm11777_vm8 = vcmp.eq.s32.totalorder %v7945_v6, %v11680_v56  ;;  %v11778_v44 = vmov 0  ;;  %v11789_v0 = vld [vmem:[#allocation115_spill] sm:$0xff] }
 0x499   :  { %vm9261_vm3 = vmand %vm11777_vm8, %vm11776_vm9  ;;  %vm11783_vm2 = vcmp.ne.s32.totalorder %v11782_v38, 0  ;;  %vm11784_vm15 = vcmp.eq.s32.totalorder %v7948_v59, %v11680_v56  ;;  %v11785_v49 = vmov 0  ;;  %vm11790_vm8 = vcmp.ne.s32.totalorder %v11789_v0, 0 }
 0x49a   :  { %v11779_v44 = vsel %vm9261_vm3, 4294967295, %v11778_v44  ;;  %vm9272_vm10 = vmand %vm11784_vm15, %vm11783_vm2  ;;  %vm11791_vm3 = vcmp.eq.s32.totalorder %v7960_v54, %v11587_v58  ;;  %v11794_v24 = vsel %vm8734_vm6, %v8936_v35, 0  ;;  %v11795_v0 = vsel %vm8743_vm5, %v8936_v35, 0 }
 0x49b   :  { %11780 = vst [vmem:[#allocation89_spill] sm:$0xff] %v11779_v44  ;;  %v11786_v49 = vsel %vm9272_vm10, 4294967295, %v11785_v49  ;;  %vm9284_vm1 = vmand %vm11791_vm3, %vm11790_vm8  ;;  %v3462_v62 = vadd.s32 %v3461_v63, %v11794_v24  ;;  %v3483_v15 = vadd.s32 %v3482_v31, %v11795_v0  ;;  %v11796_v41 = vsel %vm8781_vm4, %v8936_v35, 0  ;;  %v9307_v44 = vpop.permute.xlu0 %3307  ;;  %v11800_v63 = vld [vmem:[#allocation162_spill] sm:$0xff]  ;;  %v11805_v24 = vld [vmem:[#allocation15_spill] sm:$0xff] }
 0x49c   :  { %11787 = vst [vmem:[#allocation17_spill] sm:$0xff] %v11786_v49  ;;  %v3504_v18 = vadd.s32 %v3503_v60, %v11796_v41  ;;  %v9305_v49 = vpop.permute.xlu1 %2854  ;;  %11798 = vst [vmem:[#allocation123_spill] sm:$0xff] %v9307_v44  ;;  %vm11801_vm3 = vcmp.ne.s32.totalorder %v11800_v63, 0  ;;  %vm11802_vm5 = vcmp.eq.s32.totalorder %v7960_v54, %v11561_v29  ;;  %v3525_v13 = vadd.s32 %v3524_v55, %v3383_v61  ;;  %v11810_v63 = vld [vmem:[#allocation164_spill] sm:$0xff] }
 0x49d   :  { %11797 = vst [vmem:[#allocation12_spill] sm:$0xff] %v9305_v49  ;;  %vm9317_vm8 = vmand %vm11802_vm5, %vm11801_vm3  ;;  %v3546_v31 = vadd.s32 %v3545_v46, %v3399_v40  ;;  %v3567_v60 = vadd.s32 %v3566_v20, %v3415_v1  ;;  %v3588_v41 = vadd.s32 %v3587_v12, %v3431_v53  ;;  %vm11806_vm6 = vcmp.ne.s32.totalorder %v11686_v57, 0  ;;  %v11819_v20 = vld [vmem:[#allocation31_spill] sm:$0xff]  ;;  %v11830_v12 = vld [vmem:[#allocation26_spill] sm:$0xff] }
 0x49e   :  { %vm11807_vm15 = vcmp.eq.s32.totalorder %v7951_v25, %v11680_v56  ;;  %v11808_v0 = vmov 0  ;;  %vm11811_vm4 = vcmp.ne.s32.totalorder %v11691_v7, 0  ;;  %vm11812_vm12 = vcmp.eq.s32.totalorder %v7963_v17, %v11587_v58  ;;  %v11837_v1 = vld [vmem:[#allocation65_spill] sm:$0xff]  ;;  %v11841_v55 = vld [vmem:[#allocation120_spill] sm:$0xff] }
 0x49f   :  { %vm9329_vm2 = vmand %vm11807_vm15, %vm11806_vm6  ;;  %v3336_v57 = vsel %vm9068_vm0, %v9061_v19, 0  ;;  %vm11815_vm15 = vnez %v11709_v16  ;;  %vm11816_vm6 = vnez %v11713_v39  ;;  %vm11817_vm5 = vnez %v11717_v26  ;;  %v11825_v39 = vld [vmem:[#allocation6_spill] sm:$0xff]  ;;  %v9418_v50 = vpop.permute.xlu0 %2856  ;;  %v11847_v35 = vld [vmem:[#allocation100_spill] sm:$0xff] }
 0x4a0   :  { %v11809_v0 = vsel %vm9329_vm2, 4294967295, %v11808_v0  ;;  %vm9341_vm9 = vmand %vm11812_vm12, %vm11811_vm4  ;;  %v3352_v46 = vsel %vm11815_vm15, %v9061_v19, 0  ;;  %v3368_v61 = vsel %vm11816_vm6, %v9061_v19, 0  ;;  %v3384_v7 = vsel %vm11817_vm5, %v9061_v19, 0  ;;  %v9416_v40 = vpop.permute.xlu1 %3310 }
 0x4a1   :  { %vm11820_vm4 = vcmp.ne.s32.totalorder %v11819_v20, 0  ;;  %vm11821_vm3 = vcmp.eq.s32.totalorder %v7954_v5, %v11680_v56  ;;  %v11822_v47 = vmov 0  ;;  %vm11826_vm2 = vcmp.ne.s32.totalorder %v11825_v39, 0  ;;  %v11832_v39 = vld [vmem:[#allocation93_spill] sm:$0xff]  ;;  %11846 = vst [vmem:[#allocation124_spill] sm:$0xff] %v9416_v40 }
 0x4a2   :  { %vm9363_vm0 = vmand %vm11821_vm3, %vm11820_vm4  ;;  %vm11827_vm5 = vcmp.eq.s32.totalorder %v11736_v52, %v11735_v8  ;;  %vm11831_vm3 = vnez %v11830_v12  ;;  %v3400_v53 = vsel %vm9178_vm7, %v9061_v19, 0  ;;  %v3416_v20 = vsel %vm9284_vm1, %v9061_v19, 0  ;;  %v11928_v12 = vld [vmem:[#allocation166_spill] sm:$0xff] }
 0x4a3   :  { %v11823_v47 = vsel %vm9363_vm0, 4294967295, %v11822_v47  ;;  %vm9375_vm12 = vmand %vm11827_vm5, %vm11826_vm2  ;;  %v3432_v8 = vsel %vm9341_vm9, %v9061_v19, 0  ;;  %vm11833_vm2 = vcmp.ne.s32.totalorder %v11832_v39, 0  ;;  %vm11834_vm4 = vcmp.eq.s32.totalorder %v7945_v6, %v11737_v9  ;;  %v11876_v39 = vld [vmem:[#allocation103_spill] sm:$0xff] }
 0x4a4   :  { %vm9396_vm5 = vmand %vm11834_vm4, %vm11833_vm2  ;;  %v11835_v38 = vmov 0  ;;  %vm11842_vm0 = vcmp.ne.s32.totalorder %v11841_v55, 0  ;;  %vm11843_vm2 = vcmp.eq.s32.totalorder %v11736_v52, %v11745_v51  ;;  %v3463_v19 = vadd.s32 %v3462_v62, %v3336_v57  ;;  %v11852_v51 = vld [vmem:[#allocation116_spill] sm:$0xff]  ;;  %v11862_v57 = vld [vmem:[#allocation119_spill] sm:$0xff] }
 0x4a5   :  { %v11836_v38 = vsel %vm9396_vm5, 4294967295, %v11835_v38  ;;  %vm9412_vm4 = vmand %vm11843_vm2, %vm11842_vm0  ;;  %v3484_v49 = vadd.s32 %v3483_v15, %v3352_v46  ;;  %v3505_v16 = vadd.s32 %v3504_v18, %v3368_v61  ;;  %v3526_v3 = vadd.s32 %v3525_v13, %v3384_v7  ;;  %v11863_v61 = vld [vmem:[#allocation118_spill] sm:$0xff]  ;;  %v11884_v18 = vld [vmem:[#allocation68_spill] sm:$0xff] }
 0x4a6   :  { %vm11848_vm15 = vcmp.ne.s32.totalorder %v11847_v35, 0  ;;  %vm11849_vm1 = vcmp.eq.s32.totalorder %v7948_v59, %v11737_v9  ;;  %v11850_v55 = vmov 0  ;;  %vm11853_vm2 = vcmp.ne.s32.totalorder %v11852_v51, 0  ;;  %v11857_v35 = vld [vmem:[#allocation57_spill] sm:$0xff]  ;;  %v11864_v51 = vld [vmem:[#allocation94_spill] sm:$0xff] }
 0x4a7   :  { %vm9425_vm6 = vmand %vm11849_vm1, %vm11848_vm15  ;;  %vm11854_vm9 = vcmp.eq.s32.totalorder %v7951_v25, %v11737_v9  ;;  %v11855_v15 = vmov 0  ;;  %vm11858_vm1 = vcmp.ne.s32.totalorder %v8836_v4, 0  ;;  %v3547_v62 = vadd.s32 %v3546_v31, %v3400_v53  ;;  %v11869_v4 = vld [vmem:[#allocation165_spill] sm:$0xff] }
 0x4a8   :  { %v11851_v55 = vsel %vm9425_vm6, 4294967295, %v11850_v55  ;;  %vm9436_vm7 = vmand %vm11854_vm9, %vm11853_vm2  ;;  %vm11859_vm6 = vcmp.eq.s32.totalorder %v11736_v52, %v11364_v37  ;;  %v3589_v13 = vadd.s32 %v3588_v41, %v3432_v8  ;;  %v3442_v46 = vsel %vm9375_vm12, %v11862_v57, 0  ;;  %v11874_v41 = vld [vmem:[#allocation52_spill] sm:$0xff]  ;;  %v11878_v57 = vld [vmem:[#allocation22_spill] sm:$0xff] }
 0x4a9   :  { %v11856_v15 = vsel %vm9436_vm7, 4294967295, %v11855_v15  ;;  %vm9448_vm0 = vmand %vm11859_vm6, %vm11858_vm1  ;;  %v3443_v7 = vsel %vm9412_vm4, %v11863_v61, 0  ;;  %vm11865_vm6 = vcmp.ne.s32.totalorder %v11738_v42, 0  ;;  %vm11866_vm1 = vcmp.eq.s32.totalorder %v7954_v5, %v11737_v9  ;;  %v11879_v61 = vld [vmem:[#allocation66_spill] sm:$0xff] }
 0x4aa   :  { %vm9466_vm5 = vmand %vm11866_vm1, %vm11865_vm6  ;;  %vm11870_vm15 = vcmp.ne.s32.totalorder %v11744_v21, 0  ;;  %vm11871_vm2 = vcmp.eq.s32.totalorder %v7963_v17, %v11561_v29  ;;  %v3568_v31 = vadd.s32 %v3567_v60, %v3416_v20  ;;  %v3444_v26 = vsel %vm9448_vm0, %v11874_v41, 0  ;;  %v11877_v21 = vld [vmem:[#allocation122_spill] sm:$0xff]  ;;  %v11923_v29 = vld [vmem:[#allocation55_spill] sm:$0xff] }
 0x4ab   :  { %vm9480_vm7 = vmand %vm11871_vm2, %vm11870_vm15  ;;  %v3605_v53 = vadd.s32 %v3443_v7, %v3442_v46  ;;  %vm11875_vm6 = vcmask 7168   ;;  %vm11880_vm4 = vcmp.ne.s32.totalorder %v11879_v61, 0  ;;  %vm11881_vm12 = vcmp.eq.s32.totalorder %v11736_v52, %v11357_v45  ;;  %v11885_v45 = vld [vmem:[#allocation37_spill] sm:$0xff]  ;;  %v9535_v61 = vpop.permute.xlu1 %2860 }
 0x4ac   :  { %v3014_v8 = vsel %vm11875_vm6, %v9196_v33, %v9194_v48  ;;  %vm9500_vm0 = vmand %vm11881_vm12, %vm11880_vm4  ;;  %v3401_v48 = vsel %vm9237_vm11, %v9059_v30, 0  ;;  %v3417_v33 = vsel %vm9317_vm8, %v9059_v30, 0  ;;  %v3433_v20 = vsel %vm9480_vm7, %v9059_v30, 0 }
 0x4ad   :  { %vm3142_vm6 = vcmp.ne.s32.totalorder %v3014_v8, 0  ;;  %v3445_v32 = vsel %vm9500_vm0, %v11885_v45, 0  ;;  %v3606_v46 = vadd.s32 %v3605_v53, %v3444_v26  ;;  %vm11886_vm11 = vcmp.eq.s32.totalorder %v11736_v52, %v11479_v2  ;;  %v9537_v26 = vpop.permute.xlu0 %2858  ;;  %v11908_v45 = vld [vmem:[#allocation117_spill] sm:$0xff]  ;;  %v12031_v2 = vld [vmem:[#allocation67_spill] sm:$0xff] }
 0x4ae   :  { %vm9523_vm8 = vmand %vm11886_vm11, %vm3142_vm6  ;;  %v11889_v7 = vsel %vm11772_vm14, %v9059_v30, 0  ;;  %vm11890_vm7 = vnez %v11773_v11  ;;  %vm11892_vm4 = vcmp.ne.s32.totalorder %v11758_v36, 0  ;;  %vm11893_vm0 = vcmp.eq.s32.totalorder %v7945_v6, %v11781_v27 }
 0x4af   :  { %v3464_v42 = vadd.s32 %v3463_v19, %v11889_v7  ;;  %v11891_v41 = vsel %vm11890_vm7, %v9059_v30, 0  ;;  %vm9544_vm6 = vmand %vm11893_vm0, %vm11892_vm4  ;;  %vm11896_vm14 = vcmp.ne.s32.totalorder %v11759_v22, 0  ;;  %vm11897_vm11 = vcmp.eq.s32.totalorder %v7948_v59, %v11781_v27  ;;  %v12068_v7 = vld [vmem:[#allocation59_spill] sm:$0xff] }
 0x4b0   :  { %v3485_v8 = vadd.s32 %v3484_v49, %v11891_v41  ;;  %vm9553_vm7 = vmand %vm11897_vm11, %vm11896_vm14  ;;  %vm11900_vm4 = vcmp.ne.s32.totalorder %v11760_v28, 0  ;;  %vm11901_vm0 = vcmp.eq.s32.totalorder %v7960_v54, %v11680_v56  ;;  %v11904_v19 = vsel %vm9011_vm13, %v9059_v30, 0  ;;  %v11905_v49 = vld [vmem:[#allocation89_spill] sm:$0xff] }
 0x4b1   :  { %vm9566_vm12 = vmand %vm11901_vm0, %vm11900_vm4  ;;  %v3506_v36 = vadd.s32 %v3505_v16, %v11904_v19  ;;  %v3590_v11 = vadd.s32 %v3589_v13, %v3433_v20  ;;  %vm11906_vm11 = vnez %v11905_v49  ;;  %v3354_v60 = vsel %vm9272_vm10, %v9307_v44, 0  ;;  %v11914_v16 = vld [vmem:[#allocation179_spill] sm:$0xff]  ;;  %v11919_v20 = vld [vmem:[#allocation53_spill] sm:$0xff]  ;;  %v9652_v13 = vpop.permute.xlu1 %2862 }
 0x4b2   :  { %v3338_v28 = vsel %vm11906_vm11, %v9307_v44, 0  ;;  %vm11909_vm4 = vcmp.ne.s32.totalorder %v11908_v45, 0  ;;  %vm11910_vm0 = vcmp.eq.s32.totalorder %v7951_v25, %v11781_v27  ;;  %vm11915_vm1 = vcmp.ne.s32.totalorder %v11914_v16, 0  ;;  %v11922_v16 = vld [vmem:[#allocation95_spill] sm:$0xff]  ;;  %11938 = vst [vmem:[#allocation85_spill] sm:$0xff] %v9652_v13  ;;  %v11952_v13 = vld [vmem:[#allocation102_spill] sm:$0xff] }
 0x4b3   :  { %vm9587_vm14 = vmand %vm11910_vm0, %vm11909_vm4  ;;  %vm11916_vm11 = vcmp.eq.s32.totalorder %v7963_v17, %v11680_v56  ;;  %v3446_v41 = vsel %vm9523_vm8, %v11919_v20, 0  ;;  %v11920_v19 = vsel %vm11831_vm3, %v9059_v30, 0  ;;  %v3548_v53 = vadd.s32 %v3547_v62, %v3401_v48  ;;  %v11931_v48 = vld [vmem:[#allocation30_spill] sm:$0xff] }
 0x4b4   :  { %vm9597_vm9 = vmand %vm11916_vm11, %vm11915_vm1  ;;  %v3527_v49 = vadd.s32 %v3526_v3, %v11920_v19  ;;  %v3569_v45 = vadd.s32 %v3568_v31, %v3417_v33  ;;  %vm11924_vm1 = vcmp.ne.s32.totalorder %v11923_v29, 0  ;;  %vm11925_vm0 = vcmp.eq.s32.totalorder %v7957_v14, %v11680_v56  ;;  %v11930_v31 = vld [vmem:[#allocation104_spill] sm:$0xff]  ;;  %v9654_v19 = vpop.permute.xlu0 %3313 }
 0x4b5   :  { %vm9616_vm11 = vmand %vm11925_vm0, %vm11924_vm1  ;;  %v3607_v20 = vadd.s32 %v3606_v46, %v3445_v32  ;;  %vm11929_vm3 = vnez %v11809_v0  ;;  %v3418_v62 = vsel %vm9566_vm12, %v9307_v44, 0  ;;  %v3434_v29 = vsel %vm9597_vm9, %v9307_v44, 0  ;;  %v11936_v33 = vld [vmem:[#allocation72_spill] sm:$0xff]  ;;  %11939 = vst [vmem:[#allocation86_spill] sm:$0xff] %v9654_v19  ;;  %v12107_v0 = vld [vmem:[#allocation121_spill] sm:$0xff] }
 0x4b6   :  { %v3370_v3 = vsel %vm11929_vm3, %v9307_v44, 0  ;;  %vm11932_vm4 = vcmp.ne.s32.totalorder %v11799_v43, 0  ;;  %vm11933_vm3 = vcmp.eq.s32.totalorder %v7954_v5, %v11781_v27  ;;  %vm11937_vm1 = vnez %v11823_v47  ;;  %v11944_v47 = vld [vmem:[#allocation71_spill] sm:$0xff] }
 0x4b7   :  { %vm9639_vm13 = vmand %vm11933_vm3, %vm11932_vm4  ;;  %v3386_v32 = vsel %vm11937_vm1, %v9307_v44, 0  ;;  %v3402_v43 = vsel %vm9616_vm11, %v9307_v44, 0  ;;  %v3465_v46 = vadd.s32 %v3464_v42, %v3338_v28  ;;  %v3486_v22 = vadd.s32 %v3485_v8, %v3354_v60  ;;  %v11946_v42 = vld [vmem:[#allocation58_spill] sm:$0xff] }
 0x4b8   :  { %vm11940_vm4 = vcmp.ne.s32.totalorder %v11805_v24, 0  ;;  %vm11941_vm3 = vcmp.eq.s32.totalorder %v7945_v6, %v11837_v1  ;;  %vm11947_vm0 = vcmp.ne.s32.totalorder %v11810_v63, 0  ;;  %vm11948_vm12 = vcmp.eq.s32.totalorder %v7960_v54, %v11737_v9 }
 0x4b9   :  { %vm9661_vm9 = vmand %vm11941_vm3, %vm11940_vm4  ;;  %v9680_v8 = vadd.s32 %v3607_v20, %v3446_v41  ;;  %v3570_v28 = vadd.s32 %v3569_v45, %v3418_v62  ;;  %v3591_v60 = vadd.s32 %v3590_v11, %v3434_v29  ;;  %vm11951_vm3 = vnez %v11836_v38  ;;  %v11958_v41 = vld [vmem:[#allocation23_spill] sm:$0xff]  ;;  %v9774_v38 = vpop.permute.xlu0 %2864 }
 0x4ba   :  { %vm9674_vm10 = vmand %vm11948_vm12, %vm11947_vm0  ;;  %v3339_v44 = vsel %vm11951_vm3, %v9416_v40, 0  ;;  %vm11953_vm8 = vcmp.ne.s32.totalorder %v11952_v13, 0  ;;  %vm11954_vm11 = vcmp.eq.s32.totalorder %v7948_v59, %v11837_v1  ;;  %v11955_v63 = vmov 0  ;;  %v11965_v13 = vld [vmem:[#allocation29_spill] sm:$0xff] }
 0x4bb   :  { %vm9690_vm0 = vmand %vm11954_vm11, %vm11953_vm8  ;;  %vm11959_vm2 = vcmp.ne.s32.totalorder %v11958_v41, 0  ;;  %vm11960_vm3 = vcmp.eq.s32.totalorder %v7963_v17, %v11737_v9  ;;  %v3507_v45 = vadd.s32 %v3506_v36, %v3370_v3  ;;  %vm11963_vm11 = vnez %v11851_v55  ;;  %v11970_v36 = vld [vmem:[#allocation34_spill] sm:$0xff]  ;;  %v11991_v3 = vld [vmem:[#allocation105_spill] sm:$0xff] }
 0x4bc   :  { %v11956_v63 = vsel %vm9690_vm0, 4294967295, %v11955_v63  ;;  %vm9704_vm15 = vmand %vm11960_vm3, %vm11959_vm2  ;;  %v3355_v20 = vsel %vm11963_vm11, %v9416_v40, 0  ;;  %vm11964_vm1 = vnez %v11856_v15  ;;  %v3419_v29 = vsel %vm9674_vm10, %v9416_v40, 0  ;;  %v11975_v15 = vld [vmem:[#allocation43_spill] sm:$0xff] }
 0x4bd   :  { %v3371_v62 = vsel %vm11964_vm1, %v9416_v40, 0  ;;  %vm11966_vm2 = vcmp.ne.s32.totalorder %v11965_v13, 0  ;;  %vm11967_vm3 = vcmp.eq.s32.totalorder %v7951_v25, %v11837_v1  ;;  %v11968_v41 = vmov 0 }
 0x4be   :  { %vm9724_vm4 = vmand %vm11967_vm3, %vm11966_vm2  ;;  %vm11971_vm8 = vcmp.ne.s32.totalorder %v11970_v36, 0  ;;  %vm11972_vm11 = vcmp.eq.s32.totalorder %v7954_v5, %v11837_v1  ;;  %v11973_v55 = vmov 0  ;;  %vm11976_vm1 = vcmp.ne.s32.totalorder %v11975_v15, 0 }
 0x4bf   :  { %v11969_v41 = vsel %vm9724_vm4, 4294967295, %v11968_v41  ;;  %vm9733_vm12 = vmand %vm11972_vm11, %vm11971_vm8  ;;  %vm11977_vm2 = vcmp.eq.s32.totalorder %v7957_v14, %v11737_v9  ;;  %v3528_v13 = vadd.s32 %v3527_v49, %v3386_v32  ;;  %v3549_v36 = vadd.s32 %v3548_v53, %v3402_v43  ;;  %v11990_v49 = vld [vmem:[#allocation96_spill] sm:$0xff]  ;;  %v12030_v9 = vld [vmem:[#allocation47_spill] sm:$0xff] }
 0x4c0   :  { %v11974_v55 = vsel %vm9733_vm12, 4294967295, %v11973_v55  ;;  %vm9744_vm3 = vmand %vm11977_vm2, %vm11976_vm1  ;;  %v3387_v11 = vsel %vm9466_vm5, %v9416_v40, 0  ;;  %v3435_v15 = vsel %vm9704_vm15, %v9416_v40, 0  ;;  %vm11981_vm11 = vcmp.ne.s32.totalorder %v11857_v35, 0  ;;  %v9772_v35 = vpop.permute.xlu1 %3316 }
 0x4c1   :  { %vm11982_vm1 = vcmp.eq.s32.totalorder %v7957_v14, %v11781_v27  ;;  %v3403_v37 = vsel %vm9744_vm3, %v9416_v40, 0  ;;  %v3466_v53 = vadd.s32 %v3465_v46, %v3339_v44  ;;  %v3571_v32 = vadd.s32 %v3570_v28, %v3419_v29  ;;  %v11992_v44 = vld [vmem:[#allocation48_spill] sm:$0xff] }
 0x4c2   :  { %vm9762_vm2 = vmand %vm11982_vm1, %vm11981_vm11  ;;  %v3592_v43 = vadd.s32 %v3591_v60, %v3435_v15  ;;  %vm11986_vm5 = vcmp.ne.s32.totalorder %v11864_v51, 0  ;;  %vm11987_vm15 = vcmp.eq.s32.totalorder %v7945_v6, %v11884_v18  ;;  %v11988_v24 = vmov 0  ;;  %v11997_v60 = vld [vmem:[#allocation12_spill] sm:$0xff] }
 0x4c3   :  { %vm9781_vm11 = vmand %vm11987_vm15, %vm11986_vm5  ;;  %vm11993_vm8 = vcmp.ne.s32.totalorder %v11869_v4, 0  ;;  %vm11994_vm10 = vcmp.eq.s32.totalorder %v7960_v54, %v11781_v27  ;;  %v3487_v46 = vadd.s32 %v3486_v22, %v3355_v20  ;;  %v3508_v28 = vadd.s32 %v3507_v45, %v3371_v62 }
 0x4c4   :  { %v11989_v24 = vsel %vm9781_vm11, 4294967295, %v11988_v24  ;;  %vm9793_vm12 = vmand %vm11994_vm10, %vm11993_vm8  ;;  %vm11998_vm15 = vcmask 7168   ;;  %vm12000_vm3 = vcmp.ne.s32.totalorder %v11876_v39, 0  ;;  %vm12001_vm10 = vcmp.eq.s32.totalorder %v7948_v59, %v11884_v18  ;;  %v12025_v39 = vld [vmem:[#allocation49_spill] sm:$0xff] }
 0x4c5   :  { %v3015_v29 = vsel %vm11998_vm15, %v11997_v60, %v9418_v50  ;;  %vm11999_vm4 = vmmov %vm11998_vm15  ;;  %v12002_v15 = vmov 0  ;;  %vm12004_vm1 = vcmp.ne.s32.totalorder %v11877_v21, 0  ;;  %vm12005_vm5 = vcmp.eq.s32.totalorder %v7951_v25, %v11884_v18  ;;  %v12101_v50 = vld [vmem:[#allocation38_spill] sm:$0xff] }
 0x4c6   :  { %v3016_v4 = vsel %vm11999_vm4, %v9537_v26, %v9535_v61  ;;  %vm9810_vm8 = vmand %vm12001_vm10, %vm12000_vm3  ;;  %vm12008_vm4 = vcmp.ne.s32.totalorder %v11878_v57, 0  ;;  %vm12009_vm15 = vcmp.eq.s32.totalorder %v7963_v17, %v11781_v27  ;;  %vm3143_vm10 = vcmp.ne.s32.totalorder %v3015_v29, 0  ;;  %v12012_v61 = vld [vmem:[#allocation77_spill] sm:$0xff]  ;;  %v12013_v26 = vld [vmem:[#allocation60_spill] sm:$0xff]  ;;  %v2867_v29 = vpop.permute.xlu0 %2866 }
 0x4c7   :  { %v12003_v15 = vsel %vm9810_vm8, 4294967295, %v12002_v15  ;;  %vm9819_vm11 = vmand %vm12005_vm5, %vm12004_vm1  ;;  %vm3144_vm8 = vcmp.ne.s32.totalorder %v3016_v4, 0  ;;  %v3340_v21 = vsel %vm9544_vm6, %v9654_v19, 0  ;;  %v3356_v57 = vsel %vm9553_vm7, %v9654_v19, 0  ;;  %v12036_v4 = vld [vmem:[#allocation28_spill] sm:$0xff] }
 0x4c8   :  { %vm9828_vm0 = vmand %vm12009_vm15, %vm12008_vm4  ;;  %v3529_v22 = vadd.s32 %v3528_v13, %v3387_v11  ;;  %vm12014_vm3 = vcmp.eq.s32.totalorder %v11736_v52, %v11921_v10  ;;  %v3372_v34 = vsel %vm9587_vm14, %v9654_v19, 0  ;;  %v3420_v45 = vsel %vm9793_vm12, %v9654_v19, 0  ;;  %v12017_v11 = vld [vmem:[#allocation73_spill] sm:$0xff]  ;;  %v12019_v13 = vld [vmem:[#allocation27_spill] sm:$0xff] }
 0x4c9   :  { %vm9850_vm6 = vmand %vm12014_vm3, %vm3143_vm10  ;;  %v3436_v20 = vsel %vm9828_vm0, %v9654_v19, 0  ;;  %v3550_v62 = vadd.s32 %v3549_v36, %v3403_v37  ;;  %vm12020_vm14 = vcmp.eq.s32.totalorder %v11736_v52, %v11587_v58  ;;  %v3388_v51 = vsel %vm9639_vm13, %v9654_v19, 0  ;;  %v2869_v37 = vpop.permute.xlu1 %2868  ;;  %v12037_v10 = vld [vmem:[#allocation36_spill] sm:$0xff] }
 0x4ca   :  { %v3447_v60 = vsel %vm9850_vm6, %v12019_v13, 0  ;;  %vm9873_vm10 = vmand %vm12020_vm14, %vm3144_vm8  ;;  %v3404_v36 = vsel %vm9762_vm2, %v9654_v19, 0  ;;  %vm12026_vm6 = vcmp.ne.s32.totalorder %v12025_v39, 0  ;;  %vm12027_vm14 = vcmp.eq.s32.totalorder %v7954_v5, %v11884_v18 }
 0x4cb   :  { %vm9892_vm3 = vmand %vm12027_vm14, %vm12026_vm6  ;;  %v3448_v13 = vsel %vm9873_vm10, %v12031_v2, 0  ;;  %v3467_v19 = vadd.s32 %v3466_v53, %v3340_v21  ;;  %v3488_v40 = vadd.s32 %v3487_v46, %v3356_v57  ;;  %v3572_v58 = vadd.s32 %v3571_v32, %v3420_v45  ;;  %v12042_v57 = vld [vmem:[#allocation76_spill] sm:$0xff]  ;;  %v12074_v53 = vld [vmem:[#allocation167_spill] sm:$0xff] }
 0x4cc   :  { %vm12032_vm8 = vcmp.ne.s32.totalorder %v11922_v16, 0  ;;  %vm12033_vm6 = vcmp.eq.s32.totalorder %v7945_v6, %v11944_v47  ;;  %vm12038_vm13 = vcmp.ne.s32.totalorder %v11928_v12, 0  ;;  %vm12039_vm10 = vcmp.eq.s32.totalorder %v7960_v54, %v11837_v1 }
 0x4cd   :  { %vm9907_vm14 = vmand %vm12033_vm6, %vm12032_vm8  ;;  %v3609_v16 = vadd.s32 %v9680_v8, %v3447_v60  ;;  %v3509_v32 = vadd.s32 %v3508_v28, %v3372_v34  ;;  %v3593_v46 = vadd.s32 %v3592_v43, %v3436_v20  ;;  %v3341_v21 = vsel %vm9661_vm9, %v9772_v35, 0  ;;  %v10002_v60 = vpop.permute.xlu0 %3319 }
 0x4ce   :  { %vm9918_vm15 = vmand %vm12039_vm10, %vm12038_vm13  ;;  %vm12043_vm6 = vcmp.ne.s32.totalorder %v11930_v31, 0  ;;  %vm12044_vm13 = vcmp.eq.s32.totalorder %v7948_v59, %v11944_v47  ;;  %vm12047_vm12 = vcmp.ne.s32.totalorder %v11931_v48, 0  ;;  %vm12048_vm9 = vcmp.eq.s32.totalorder %v7951_v25, %v11944_v47  ;;  %v12051_v31 = vld [vmem:[#allocation110_spill] sm:$0xff] }
 0x4cf   :  { %vm9935_vm10 = vmand %vm12044_vm13, %vm12043_vm6  ;;  %v12049_v30 = vmov 0  ;;  %vm12052_vm7 = vcmp.ne.s32.totalorder %v11936_v33, 0  ;;  %vm12053_vm6 = vcmp.eq.s32.totalorder %v7963_v17, %v11837_v1  ;;  %v3530_v48 = vadd.s32 %v3529_v22, %v3388_v51 }
 0x4d0   :  { %vm9946_vm0 = vmand %vm12048_vm9, %vm12047_vm12  ;;  %v3551_v43 = vadd.s32 %v3550_v62, %v3404_v36  ;;  %vm12056_vm12 = vnez %v11956_v63  ;;  %v3421_v33 = vsel %vm9918_vm15, %v9772_v35, 0  ;;  %v12059_v34 = vmov 0  ;;  %v10000_v62 = vpop.permute.xlu1 %2870 }
 0x4d1   :  { %v12050_v30 = vsel %vm9946_vm0, 4294967295, %v12049_v30  ;;  %vm9956_vm13 = vmand %vm12053_vm6, %vm12052_vm7  ;;  %v3357_v28 = vsel %vm12056_vm12, %v9772_v35, 0  ;;  %vm12057_vm7 = vcmp.ne.s32.totalorder %v11945_v23, 0  ;;  %vm12058_vm6 = vcmp.eq.s32.totalorder %v7954_v5, %v11944_v47  ;;  %v12065_v23 = vld [vmem:[#allocation169_spill] sm:$0xff] }
 0x4d2   :  { %vm9975_vm8 = vmand %vm12058_vm6, %vm12057_vm7  ;;  %vm12061_vm12 = vcmp.ne.s32.totalorder %v11946_v42, 0  ;;  %vm12062_vm15 = vcmp.eq.s32.totalorder %v7957_v14, %v11837_v1  ;;  %v3610_v22 = vadd.s32 %v3609_v16, %v3448_v13  ;;  %vm12066_vm7 = vnez %v11969_v41 }
 0x4d3   :  { %v12060_v34 = vsel %vm9975_vm8, 4294967295, %v12059_v34  ;;  %vm9986_vm4 = vmand %vm12062_vm15, %vm12061_vm12  ;;  %v3373_v45 = vsel %vm12066_vm7, %v9772_v35, 0  ;;  %vm12067_vm6 = vnez %v11974_v55  ;;  %v3437_v42 = vsel %vm9956_vm13, %v9772_v35, 0  ;;  %v12073_v55 = vld [vmem:[#allocation3_spill] sm:$0xff] }
 0x4d4   :  { %v3389_v20 = vsel %vm12067_vm6, %v9772_v35, 0  ;;  %vm12069_vm12 = vcmp.ne.s32.totalorder %v12068_v7, 0  ;;  %vm12070_vm15 = vcmp.eq.s32.totalorder %v7957_v14, %v11884_v18  ;;  %v3405_v51 = vsel %vm9986_vm4, %v9772_v35, 0  ;;  %v12079_v7 = vld [vmem:[#allocation85_spill] sm:$0xff] }
 0x4d5   :  { %vm10009_vm9 = vmand %vm12070_vm15, %vm12069_vm12  ;;  %v3468_v36 = vadd.s32 %v3467_v19, %v3341_v21  ;;  %v3573_v2 = vadd.s32 %v3572_v58, %v3421_v33  ;;  %v3594_v13 = vadd.s32 %v3593_v46, %v3437_v42  ;;  %vm12075_vm13 = vcmp.ne.s32.totalorder %v12074_v53, 0  ;;  %v12083_v46 = vld [vmem:[#allocation62_spill] sm:$0xff]  ;;  %v12105_v33 = vld [vmem:[#allocation75_spill] sm:$0xff] }
 0x4d6   :  { %vm12076_vm12 = vcmp.eq.s32.totalorder %v7960_v54, %v11884_v18  ;;  %v3489_v8 = vadd.s32 %v3488_v40, %v3357_v28  ;;  %vm12080_vm6 = vcmask 7168   ;;  %vm12082_vm2 = vnez %v11989_v24  ;;  %v12123_v21 = vld [vmem:[#allocation123_spill] sm:$0xff] }
 0x4d7   :  { %vm10024_vm15 = vmand %vm12076_vm12, %vm12075_vm13  ;;  %v3017_v63 = vsel %vm12080_vm6, %v12079_v7, %v9774_v38  ;;  %v3342_v58 = vsel %vm12082_vm2, %v10002_v60, 0  ;;  %vm12084_vm5 = vcmp.ne.s32.totalorder %v12083_v46, 0  ;;  %vm12085_vm13 = vcmp.eq.s32.totalorder %v7963_v17, %v11884_v18  ;;  %v12122_v46 = vld [vmem:[#allocation180_spill] sm:$0xff] }
 0x4d8   :  { %vm12081_vm4 = vmmov %vm12080_vm6  ;;  %vm3145_vm1 = vcmp.ne.s32.totalorder %v3017_v63, 0  ;;  %v3374_v24 = vsel %vm9819_vm11, %v10002_v60, 0  ;;  %vm12089_vm2 = vcmp.ne.s32.totalorder %v11990_v49, 0  ;;  %v12091_v38 = vmov 0 }
 0x4d9   :  { %v3018_v19 = vsel %vm12081_vm4, %v2867_v29, %v2869_v37  ;;  %vm10042_vm12 = vmand %vm12085_vm13, %vm12084_vm5  ;;  %vm12088_vm4 = vnez %v12003_v15  ;;  %vm12090_vm5 = vcmp.eq.s32.totalorder %v7945_v6, %v12012_v61  ;;  %vm12093_vm7 = vcmp.ne.s32.totalorder %v11991_v3, 0 }
 0x4da   :  { %v3358_v40 = vsel %vm12088_vm4, %v10002_v60, 0  ;;  %vm10059_vm13 = vmand %vm12090_vm5, %vm12089_vm2  ;;  %vm12094_vm6 = vcmp.eq.s32.totalorder %v7948_v59, %v12012_v61  ;;  %vm12097_vm11 = vcmp.ne.s32.totalorder %v11992_v44, 0  ;;  %vm12098_vm4 = vcmp.eq.s32.totalorder %v7951_v25, %v12012_v61 }
 0x4db   :  { %v12092_v38 = vsel %vm10059_vm13, 4294967295, %v12091_v38  ;;  %vm10068_vm8 = vmand %vm12094_vm6, %vm12093_vm7  ;;  %v3510_v37 = vadd.s32 %v3509_v32, %v3373_v45  ;;  %vm12102_vm5 = vcmp.eq.s32.totalorder %v11736_v52, %v12017_v11  ;;  %v3390_v44 = vsel %vm9892_vm3, %v10002_v60, 0  ;;  %v10098_v32 = vpop.permute.xlu1 %3322  ;;  %v2873_v11 = vpop.permute.xlu0 %2872  ;;  %v12106_v45 = vld [vmem:[#allocation111_spill] sm:$0xff] }
 0x4dc   :  { %vm10077_vm0 = vmand %vm12098_vm4, %vm12097_vm11  ;;  %v3422_v29 = vsel %vm10024_vm15, %v10002_v60, 0  ;;  %v3438_v28 = vsel %vm10042_vm12, %v10002_v60, 0  ;;  %v3531_v42 = vadd.s32 %v3530_v48, %v3389_v20  ;;  %v3552_v53 = vadd.s32 %v3551_v43, %v3405_v51  ;;  %v12116_v48 = vld [vmem:[#allocation170_spill] sm:$0xff] }
 0x4dd   :  { %vm10085_vm13 = vmand %vm12102_vm5, %vm3145_vm1  ;;  %vm1705_vm1 = vcmp.eq.s32.totalorder %v11736_v52, %v12105_v33  ;;  %vm12108_vm3 = vcmp.ne.s32.totalorder %v3018_v19, 0  ;;  %vm12109_vm15 = vcmp.eq.s32.totalorder %v11736_v52, %v11680_v56  ;;  %v3406_v63 = vsel %vm10009_vm9, %v10002_v60, 0  ;;  %v12117_v19 = vld [vmem:[#allocation168_spill] sm:$0xff] }
 0x4de   :  { %v3449_v7 = vsel %vm10085_vm13, %v12107_v0, 0  ;;  %vm10110_vm6 = vmand %vm12109_vm15, %vm12108_vm3  ;;  %vm12112_vm13 = vcmp.ne.s32.totalorder %v12013_v26, 0  ;;  %vm12113_vm4 = vcmp.eq.s32.totalorder %v7957_v14, %v11944_v47  ;;  %v3469_v43 = vadd.s32 %v3468_v36, %v3342_v58  ;;  %v12163_v26 = vld [vmem:[#allocation124_spill] sm:$0xff] }
 0x4df   :  { %vm10126_vm5 = vmand %vm12113_vm4, %vm12112_vm13  ;;  %v3490_v20 = vadd.s32 %v3489_v8, %v3358_v40  ;;  %v3511_v41 = vadd.s32 %v3510_v37, %v3374_v24  ;;  %v3574_v51 = vadd.s32 %v3573_v2, %v3422_v29  ;;  %vm12118_vm15 = vcmp.ne.s32.totalorder %v12117_v19, 0  ;;  %v12124_v40 = vld [vmem:[#allocation97_spill] sm:$0xff]  ;;  %v12129_v37 = vld [vmem:[#allocation106_spill] sm:$0xff]  ;;  %v2875_v29 = vpop.permute.xlu0 %2874 }
 0x4e0   :  { %vm12119_vm7 = vcmp.eq.s32.totalorder %v7960_v54, %v11944_v47  ;;  %v3450_v36 = vsel %vm10110_vm6, %v12123_v21, 0  ;;  %v3532_v8 = vadd.s32 %v3531_v42, %v3390_v44  ;;  %v3595_v2 = vadd.s32 %v3594_v13, %v3438_v28  ;;  %v2877_v44 = vpop.permute.xlu1 %2876 }
 0x4e1   :  { %vm10138_vm11 = vmand %vm12119_vm7, %vm12118_vm15  ;;  %v3343_v58 = vsel %vm9907_vm14, %v10098_v32, 0  ;;  %vm12125_vm4 = vcmp.ne.s32.totalorder %v12124_v40, 0  ;;  %vm12126_vm7 = vcmp.eq.s32.totalorder %v7945_v6, %v12042_v57  ;;  %vm12130_vm13 = vcmp.ne.s32.totalorder %v12129_v37, 0 }
 0x4e2   :  { %vm10154_vm15 = vmand %vm12126_vm7, %vm12125_vm4  ;;  %vm12131_vm6 = vcmp.eq.s32.totalorder %v7948_v59, %v12042_v57  ;;  %vm12134_vm9 = vcmp.ne.s32.totalorder %v12030_v9, 0  ;;  %vm12135_vm4 = vcmp.eq.s32.totalorder %v7963_v17, %v11944_v47  ;;  %v3611_v39 = vadd.s32 %v3610_v22, %v3449_v7 }
 0x4e3   :  { %vm10163_vm3 = vmand %vm12131_vm6, %vm12130_vm13  ;;  %v3359_v59 = vsel %vm9935_vm10, %v10098_v32, 0  ;;  %vm12138_vm13 = vnez %v12050_v30  ;;  %v3423_v9 = vsel %vm10138_vm11, %v10098_v32, 0  ;;  %vm12140_vm6 = vcmp.eq.s32.totalorder %v7951_v25, %v12042_v57 }
 0x4e4   :  { %vm10174_vm7 = vmand %vm12135_vm4, %vm12134_vm9  ;;  %v3375_v3 = vsel %vm12138_vm13, %v10098_v32, 0  ;;  %vm12139_vm9 = vcmp.ne.s32.totalorder %v12036_v4, 0  ;;  %vm12143_vm10 = vcmp.ne.s32.totalorder %v12037_v10, 0  ;;  %vm12144_vm13 = vcmp.eq.s32.totalorder %v7954_v5, %v12012_v61 }
 0x4e5   :  { %vm10192_vm4 = vmand %vm12140_vm6, %vm12139_vm9  ;;  %v3553_v4 = vadd.s32 %v3552_v53, %v3406_v63  ;;  %vm12147_vm2 = vnez %v12060_v34  ;;  %v3407_v30 = vsel %vm10126_vm5, %v10098_v32, 0  ;;  %v3439_v10 = vsel %vm10174_vm7, %v10098_v32, 0 }
 0x4e6   :  { %vm10201_vm14 = vmand %vm12144_vm13, %vm12143_vm10  ;;  %v3391_v25 = vsel %vm12147_vm2, %v10098_v32, 0  ;;  %vm12148_vm9 = vcmp.ne.s32.totalorder %v12051_v31, 0  ;;  %vm12149_vm6 = vcmp.eq.s32.totalorder %v7957_v14, %v12012_v61  ;;  %v3612_v42 = vadd.s32 %v3611_v39, %v3450_v36 }
 0x4e7   :  { %vm10221_vm10 = vmand %vm12149_vm6, %vm12148_vm9  ;;  %v3470_v34 = vadd.s32 %v3469_v43, %v3343_v58  ;;  %v3575_v53 = vadd.s32 %v3574_v51, %v3423_v9  ;;  %v3596_v0 = vadd.s32 %v3595_v2, %v3439_v10  ;;  %vm12152_vm2 = vcmp.ne.s32.totalorder %v12065_v23, 0 }
 0x4e8   :  { %vm12153_vm5 = vcmp.eq.s32.totalorder %v7960_v54, %v12012_v61  ;;  %v3491_v31 = vadd.s32 %v3490_v20, %v3359_v59  ;;  %v3512_v16 = vadd.s32 %v3511_v41, %v3375_v3  ;;  %vm12156_vm7 = vcmask 7168   ;;  %v2879_v20 = vpop.permute.xlu1 %2878  ;;  %v10246_v41 = vpop.permute.xlu0 %3325 }
 0x4e9   :  { %vm10230_vm13 = vmand %vm12153_vm5, %vm12152_vm2  ;;  %v3019_v63 = vsel %vm12156_vm7, %v10000_v62, %v2873_v11  ;;  %vm12158_vm6 = vcmp.ne.s32.totalorder %v12073_v55, 0  ;;  %vm12159_vm11 = vcmp.eq.s32.totalorder %v7963_v17, %v12012_v61  ;;  %v3533_v43 = vadd.s32 %v3532_v8, %v3391_v25  ;;  %v12171_v8 = vld [vmem:[#allocation86_spill] sm:$0xff] }
 0x4ea   :  { %vm12157_vm9 = vmmov %vm12156_vm7  ;;  %v3554_v51 = vadd.s32 %v3553_v4, %v3407_v30  ;;  %vm3147_vm2 = vcmp.ne.s32.totalorder %v3019_v63, 0  ;;  %v3360_v55 = vsel %vm10068_vm8, %v10246_v41, 0  ;;  %v3376_v11 = vsel %vm10077_vm0, %v10246_v41, 0 }
 0x4eb   :  { %v3020_v56 = vsel %vm12157_vm9, %v2875_v29, %v2877_v44  ;;  %vm10242_vm12 = vmand %vm12159_vm11, %vm12158_vm6  ;;  %vm12162_vm9 = vnez %v12092_v38  ;;  %v3392_v19 = vsel %vm10201_vm14, %v10246_v41, 0  ;;  %v3408_v15 = vsel %vm10221_vm10, %v10246_v41, 0 }
 0x4ec   :  { %vm3148_vm5 = vcmp.ne.s32.totalorder %v3020_v56, 0  ;;  %vm3275_vm7 = vmand %vm1705_vm1, %vm3147_vm2  ;;  %v3344_v62 = vsel %vm12162_vm9, %v10246_v41, 0  ;;  %vm12164_vm1 = vcmp.eq.s32.totalorder %v11736_v52, %v11781_v27  ;;  %v3424_v49 = vsel %vm10230_vm13, %v10246_v41, 0  ;;  %v10303_v59 = vpop.permute.xlu1 %3328  ;;  %v2881_v3 = vpop.permute.xlu0 %2880 }
 0x4ed   :  { %v3451_v21 = vsel %vm3275_vm7, %v12163_v26, 0  ;;  %vm10267_vm11 = vmand %vm12164_vm1, %vm3148_vm5  ;;  %v3440_v33 = vsel %vm10242_vm12, %v10246_v41, 0  ;;  %vm12167_vm0 = vcmp.ne.s32.totalorder %v12101_v50, 0  ;;  %vm12168_vm8 = vcmp.eq.s32.totalorder %v7954_v5, %v12042_v57 }
 0x4ee   :  { %vm10285_vm14 = vmand %vm12168_vm8, %vm12167_vm0  ;;  %v3613_v36 = vadd.s32 %v3612_v42, %v3451_v21  ;;  %v3452_v2 = vsel %vm10267_vm11, %v12171_v8, 0  ;;  %v3471_v58 = vadd.s32 %v3470_v34, %v3344_v62  ;;  %v3492_v40 = vadd.s32 %v3491_v31, %v3360_v55 }
 0x4ef   :  { %vm1707_vm10 = vcmp.eq.s32.totalorder %v11736_v52, %v11837_v1  ;;  %vm12172_vm12 = vcmp.ne.s32.totalorder %v12106_v45, 0  ;;  %vm12173_vm13 = vcmp.eq.s32.totalorder %v7957_v14, %v12042_v57  ;;  %v3513_v50 = vadd.s32 %v3512_v16, %v3376_v11 }
 0x4f0   :  { %vm10299_vm6 = vmand %vm12173_vm13, %vm12172_vm12  ;;  %v3534_v37 = vadd.s32 %v3533_v43, %v3392_v19  ;;  %v3555_v6 = vadd.s32 %v3554_v51, %v3408_v15  ;;  %v3576_v39 = vadd.s32 %v3575_v53, %v3424_v49  ;;  %vm12176_vm2 = vcmp.ne.s32.totalorder %v12116_v48, 0  ;;  %v2885_v28 = vpop.permute.xlu1 %2884  ;;  %v2883_v42 = vpop.permute.xlu0 %2882 }
 0x4f1   :  { %vm12177_vm5 = vcmp.eq.s32.totalorder %v7960_v54, %v12042_v57  ;;  %v3614_v14 = vadd.s32 %v3613_v36, %v3452_v2  ;;  %v3597_v9 = vadd.s32 %v3596_v0, %v3440_v33  ;;  %v3345_v44 = vsel %vm10154_vm15, %v10303_v59, 0 }
 0x4f2   :  { %vm10310_vm7 = vmand %vm12177_vm5, %vm12176_vm2  ;;  %v3361_v29 = vsel %vm10163_vm3, %v10303_v59, 0  ;;  %vm12180_vm9 = vcmp.ne.s32.totalorder %v12122_v46, 0  ;;  %vm12181_vm1 = vcmp.eq.s32.totalorder %v7963_v17, %v12042_v57  ;;  %v3377_v54 = vsel %vm10192_vm4, %v10303_v59, 0 }
 0x4f3   :  { %vm3265_vm11 = vmand %vm12181_vm1, %vm12180_vm9  ;;  %v3393_v48 = vsel %vm10285_vm14, %v10303_v59, 0  ;;  %v3409_v24 = vsel %vm10299_vm6, %v10303_v59, 0  ;;  %v3425_v46 = vsel %vm10310_vm7, %v10303_v59, 0  ;;  %v3472_v17 = vadd.s32 %v3471_v58, %v3345_v44 }
 0x4f4   :  { %v3441_v13 = vsel %vm3265_vm11, %v10303_v59, 0  ;;  %v3493_v12 = vadd.s32 %v3492_v40, %v3361_v29  ;;  %v3514_v4 = vadd.s32 %v3513_v50, %v3377_v54  ;;  %v3535_v25 = vadd.s32 %v3534_v37, %v3393_v48  ;;  %v2887_v26 = vpop.permute.xlu0 %2886 }
 0x4f5   :  { %v3556_v22 = vadd.s32 %v3555_v6, %v3409_v24  ;;  %v3577_v30 = vadd.s32 %v3576_v39, %v3425_v46  ;;  %v3598_v10 = vadd.s32 %v3597_v9, %v3441_v13  ;;  %v3473_v34 = vrot.slane %v3472_v17, 4 }
 0x4f6   :  { %v3494_v53 = vrot.slane %v3493_v12, 4  ;;  %v3515_v0 = vrot.slane %v3514_v4, 4  ;;  %vm12182_vm3 = vcmask 7168   ;;  %vm1708_vm15 = vcmp.eq.s32.totalorder %v11736_v52, %v11884_v18 }
 0x4f7   :  { %v3021_v7 = vsel %vm12182_vm3, %v2879_v20, %v2881_v3  ;;  %v3536_v31 = vrot.slane %v3535_v25, 4  ;;  %v3557_v16 = vrot.slane %v3556_v22, 4  ;;  %v3578_v63 = vrot.slane %v3577_v30, 4  ;;  %v2889_v20 = vpop.permute.xlu1 %2888  ;;  %vm12183_vm8 = vmmov %vm12182_vm3 }
 0x4f8   :  { %v3599_v56 = vrot.slane %v3598_v10, 4  ;;  %v3474_v23 = vadd.s32 %v3473_v34, %v3472_v17  ;;  %v3495_v43 = vadd.s32 %v3494_v53, %v3493_v12  ;;  %v3516_v51 = vadd.s32 %v3515_v0, %v3514_v4  ;;  %v2891_v3 = vpop.permute.xlu0 %2890  ;;  %vm12184_vm12 = vmmov %vm12182_vm3 }
 0x4f9   :  { %vm3149_vm4 = vcmp.ne.s32.totalorder %v3021_v7, 0  ;;  %v3537_v62 = vadd.s32 %v3536_v31, %v3535_v25  ;;  %v3558_v55 = vadd.s32 %v3557_v16, %v3556_v22  ;;  %v3579_v11 = vadd.s32 %v3578_v63, %v3577_v30  ;;  %vm12185_vm13 = vmmov %vm12182_vm3 }
 0x4fa   :  { %v3600_v19 = vadd.s32 %v3599_v56, %v3598_v10  ;;  %vm3277_vm0 = vmand %vm1707_vm10, %vm3149_vm4  ;;  %v3475_v21 = vrot.slane %v3474_v23, 2  ;;  %v3496_v38 = vrot.slane %v3495_v43, 2  ;;  %v3517_v15 = vrot.slane %v3516_v51, 2 }
 0x4fb   :  { %v3453_v49 = vsel %vm3277_vm0, %v9772_v35, 0  ;;  %v3538_v33 = vrot.slane %v3537_v62, 2  ;;  %v3559_v27 = vrot.slane %v3558_v55, 2  ;;  %v3580_v36 = vrot.slane %v3579_v11, 2  ;;  %v2893_v39 = vpop.permute.xlu1 %2892 }
 0x4fc   :  { %v3601_v8 = vrot.slane %v3600_v19, 2  ;;  %v3476_v2 = vadd.s32 %v3475_v21, %v3474_v23  ;;  %v3497_v58 = vadd.s32 %v3496_v38, %v3495_v43  ;;  %v3518_v40 = vadd.s32 %v3517_v15, %v3516_v51  ;;  %v2895_v18 = vpop.permute.xlu0 %2894 }
 0x4fd   :  { %v3615_v5 = vadd.s32 %v3614_v14, %v3453_v49  ;;  %v3539_v50 = vadd.s32 %v3538_v33, %v3537_v62  ;;  %v3560_v37 = vadd.s32 %v3559_v27, %v3558_v55  ;;  %v3581_v6 = vadd.s32 %v3580_v36, %v3579_v11 }
 0x4fe   :  { %v3022_v1 = vsel %vm12183_vm8, %v2883_v42, %v2885_v28  ;;  %v3477_v45 = vrot.slane %v3476_v2, 1  ;;  %v3498_v9 = vrot.slane %v3497_v58, 1  ;;  %v3519_v44 = vrot.slane %v3518_v40, 1 }
 0x4ff   :  { %vm3150_vm14 = vcmp.ne.s32.totalorder %v3022_v1, 0  ;;  %v3540_v35 = vrot.slane %v3539_v50, 1  ;;  %v3561_v29 = vrot.slane %v3560_v37, 1  ;;  %v3023_v54 = vsel %vm12184_vm12, %v2887_v26, %v2889_v20  ;;  %v2897_v17 = vpop.permute.xlu1 %2896 }
 0x500   :  { %vm3278_vm10 = vmand %vm1708_vm15, %vm3150_vm14  ;;  %v3024_v14 = vsel %vm12185_vm13, %v2891_v3, %v2893_v39  ;;  %v3478_v48 = vadd.s32 %v3477_v45, %v3476_v2  ;;  %v3499_v24 = vadd.s32 %v3498_v9, %v3497_v58  ;;  %v3520_v46 = vadd.s32 %v3519_v44, %v3518_v40 }
 0x501   :  { %v3454_v13 = vsel %vm3278_vm10, %v10002_v60, 0  ;;  %vm1709_vm6 = vcmp.eq.s32.totalorder %v11736_v52, %v11944_v47  ;;  %vm3151_vm2 = vcmp.ne.s32.totalorder %v3023_v54, 0  ;;  %vm1710_vm5 = vcmp.eq.s32.totalorder %v11736_v52, %v12012_v61  ;;  %vm12188_vm15 = vmmov %vm12183_vm8 }
 0x502   :  { %vm3152_vm7 = vcmp.ne.s32.totalorder %v3024_v14, 0  ;;  %v3616_v12 = vadd.s32 %v3615_v5, %v3454_v13  ;;  %vm3279_vm9 = vmand %vm1709_vm6, %vm3151_vm2  ;;  %v3582_v4 = vrot.slane %v3581_v6, 1  ;;  %v3602_v25 = vadd.s32 %v3601_v8, %v3600_v19 }
 0x503   :  { %vm12186_vm1 = vcmask 1041409   ;;  %v3541_v30 = vadd.s32 %v3540_v35, %v3539_v50  ;;  %v3455_v10 = vsel %vm3279_vm9, %v10098_v32, 0  ;;  %vm3280_vm11 = vmand %vm1710_vm5, %vm3152_vm7  ;;  %vm12187_vm3 = vcmask 1042434  }
 0x504   :  { %v3626_v22 = vsel %vm12186_vm1, %v3499_v24, %v3478_v48  ;;  %v3025_v47 = vsel %vm12188_vm15, %v2895_v18, %v2897_v17  ;;  %v3617_v28 = vadd.s32 %v3616_v12, %v3455_v10  ;;  %v3456_v61 = vsel %vm3280_vm11, %v10246_v41, 0 }
 0x505   :  { %v3627_v60 = vsel %vm12187_vm3, %v3520_v46, %v3626_v22  ;;  %v3562_v42 = vadd.s32 %v3561_v29, %v3560_v37  ;;  %v3603_v34 = vrot.slane %v3602_v25, 1  ;;  %vm1711_vm4 = vcmp.eq.s32.totalorder %v11736_v52, %v12042_v57 }
 0x506   :  { %v3583_v53 = vadd.s32 %v3582_v4, %v3581_v6  ;;  %vm12189_vm0 = vcmask 1043459   ;;  %vm3153_vm8 = vcmp.ne.s32.totalorder %v3025_v47, 0  ;;  %v3618_v7 = vadd.s32 %v3617_v28, %v3456_v61 }
 0x507   :  { %v3628_v0 = vsel %vm12189_vm0, %v3541_v30, %v3627_v60  ;;  %v3604_v31 = vadd.s32 %v3603_v34, %v3602_v25  ;;  %vm12190_vm14 = vcmask 1044484   ;;  %vm3281_vm10 = vmand %vm1711_vm4, %vm3153_vm8  ;;  %vm12191_vm12 = vcmask 1045509  }
 0x508   :  { %v3629_v32 = vsel %vm12190_vm14, %v3562_v42, %v3628_v0  ;;  %v3457_v63 = vsel %vm3281_vm10, %v10303_v59, 0  ;;  %vm12192_vm13 = vcmask 1046534   ;;  %vm12193_vm6 = vcmask 1047559  }
 0x509   :  { %v3630_v16 = vsel %vm12191_vm12, %v3583_v53, %v3629_v32  ;;  %v3619_v56 = vadd.s32 %v3618_v7, %v3457_v63 }
 0x50a   :  { %v3631_v41 = vsel %vm12192_vm13, %v3604_v31, %v3630_v16 }
 0x50b   :  { %v3620_v23 = vrot.slane %v3619_v56, 4 }
 0x50d   :  { %v3621_v43 = vadd.s32 %v3620_v23, %v3619_v56 }
 0x50f   :  { %v3622_v51 = vrot.slane %v3621_v43, 2 }
 0x511   :  { %v3623_v52 = vadd.s32 %v3622_v51, %v3621_v43 }
 0x513   :  { %v3624_v57 = vrot.slane %v3623_v52, 1 }
 0x515   :  { %v3625_v62 = vadd.s32 %v3624_v57, %v3623_v52 }
 0x517   :  { %v3632_v55 = vsel %vm12193_vm6, %v3625_v62, %v3631_v41 }
 0x518   :  { %3648 = vst [vmem:[%s10376_s4 + $0x10] sm:$0xff] %v3632_v55 }

</bundles_post_ra>
